<compile_context>
chip_gen: v7x
topology: tpu7x:2x2x1
jax: 0.10.0
libtpu: 0.0.40
codegen_flags: <defaults>
</compile_context>

<pallas_src>
import jax
import jax.numpy as jnp
from jax.experimental import pallas as pl
from jax.experimental.pallas import tpu as pltpu

BN_EPS = 1e-5
TM_CAP = 128          # row-tile cap; safe across v5e/v6e/v7x scoped VMEM defaults

ENC_CH = [(3, 32), (32, 64), (64, 128), (128, 256), (256, 512)]
DEC_CH = [(512, 256), (256, 128), (128, 64), (64, 32), (32, 8)]


def _round_up(x, m):
    return (x + m - 1) // m * m


# ----------------------------------------------------------------------------
# Pallas kernels: fused  relu((patches @ W) * bn_scale + bn_bias)
# ----------------------------------------------------------------------------
def _fused_kernel(p_ref, w_ref, s_ref, b_ref, o_ref):
    """bf16 operands on the MXU, f32 accumulate, f32 epilogue."""
    acc = jnp.dot(p_ref[...], w_ref[...], preferred_element_type=jnp.float32)
    y = jnp.maximum(acc * s_ref[...] + b_ref[...], 0.0)
    o_ref[...] = y.astype(o_ref.dtype)


def _fused_cls_kernel(p_ref, w_ref, s_ref, b_ref, wc_ref, bc_ref, o_ref):
    """Last deconv + BN + ReLU with the 1x1 classifier fused in the epilogue."""
    acc = jnp.dot(p_ref[...], w_ref[...], preferred_element_type=jnp.float32)
    y = jnp.maximum(acc * s_ref[...] + b_ref[...], 0.0)
    out = jnp.dot(y, wc_ref[...], preferred_element_type=jnp.float32) + bc_ref[...]
    o_ref[...] = out.astype(o_ref.dtype)


def fused_matmul(patches, w_mat, scale, bias, cls_w=None, cls_b=None):
    """patches: (M, K) bf16; w_mat: (K, Wc) bf16; scale/bias: (1, Wc) f32.
    Optional fused classifier: cls_w (Wc, Cp) f32, cls_b (1, Cp) f32.
    Returns (M, Wc or Cp) f32."""
    M, K = patches.shape
    wc = w_mat.shape[1]
    ocols = wc if cls_w is None else cls_w.shape[1]

    tm = min(TM_CAP, _round_up(M, 16))        # per-layer row tile, bf16-friendly
    mp = _round_up(M, tm)
    if mp != M:
        patches = jnp.pad(patches, ((0, mp - M), (0, 0)))

    in_specs = [
        pl.BlockSpec((tm, K), lambda i: (i, 0)),      # streaming patch tile
        pl.BlockSpec((K, wc), lambda i: (0, 0)),      # resident weight
        pl.BlockSpec((1, wc), lambda i: (0, 0)),      # folded BN scale
        pl.BlockSpec((1, wc), lambda i: (0, 0)),      # folded BN bias
    ]
    args = [patches, w_mat, scale, bias]
    if cls_w is None:
        kernel = _fused_kernel
    else:
        kernel = _fused_cls_kernel
        in_specs += [pl.BlockSpec((wc, ocols), lambda i: (0, 0)),
                     pl.BlockSpec((1, ocols), lambda i: (0, 0))]
        args += [cls_w, cls_b]

    out = pl.pallas_call(
        kernel,
        out_shape=jax.ShapeDtypeStruct((mp, ocols), jnp.float32),
        grid=(mp // tm,),
        in_specs=in_specs,
        out_specs=pl.BlockSpec((tm, ocols), lambda i: (i, 0)),
        compiler_params=pltpu.CompilerParams(
            dimension_semantics=("parallel",)),
    )(*args)
    return out[:M]


# ----------------------------------------------------------------------------
# Plain-JAX glue: im2col (encoder only), BN folding
# ----------------------------------------------------------------------------
# TODO(synk): fuse encoder patch extraction into the kernel (needs strided
# lane gathers); stride-2 im2col duplication left in XLA glue is only ~2.25x.
def _im2col(x_padded, kh, kw, stride):
    """x_padded: (N, Hp, Wp, C) -> (N*oh*ow, kh*kw*C).  Channel ordering is
    (ky, kx, cin), matching weights reshaped via transpose(2, 3, 1, 0)."""
    N, Hp, Wp, C = x_padded.shape
    oh = (Hp - kh) // stride + 1
    ow = (Wp - kw) // stride + 1
    cols = []
    for ky in range(kh):
        for kx in range(kw):
            sl = x_padded[:,
                          ky:ky + stride * (oh - 1) + 1:stride,
                          kx:kx + stride * (ow - 1) + 1:stride, :]
            cols.append(sl)
    patches = jnp.concatenate(cols, axis=-1)
    return patches.reshape(N * oh * ow, kh * kw * C), oh, ow


def _fold_bn(conv_bias, gamma, beta, mean, var):
    scale = gamma / jnp.sqrt(var + BN_EPS)
    bias = beta + (conv_bias - mean) * scale
    return scale, bias


# ----------------------------------------------------------------------------
# Layer wrappers
# ----------------------------------------------------------------------------
def conv_bn_relu(x, lp, cout):
    """3x3 stride-2 Conv + BN + ReLU.  x: (N,H,W,Cin) -> (N,H/2,W/2,Cout)."""
    N = x.shape[0]
    x = x.astype(jnp.bfloat16)
    xp = jnp.pad(x, ((0, 0), (1, 1), (1, 1), (0, 0)))
    patches, oh, ow = _im2col(xp, 3, 3, 2)
    out = fused_matmul(patches, lp["w"], lp["scale"], lp["bias"])
    return out[:, :cout].reshape(N, oh, ow, cout)


def deconv_bn_relu(x, lp, cout, cls=None):
    """ConvTranspose2d(3, s=2, p=1, op=1) + BN + ReLU via a 4-phase sub-pixel
    decomposition (no zero-dilation); optionally fuses the 1x1 classifier."""
    N, H, W, C = x.shape
    x = x.astype(jnp.bfloat16)
    xp = jnp.pad(x, ((0, 0), (0, 1), (0, 1), (0, 0)))       # +1 bottom/right
    shifts = [x,                                            # (dy,dx) = (0,0)
              xp[:, :H, 1:W + 1, :],                        # (0,+1)
              xp[:, 1:H + 1, :W, :],                        # (+1,0)
              xp[:, 1:H + 1, 1:W + 1, :]]                   # (+1,+1)
    patches = jnp.concatenate(shifts, axis=-1).reshape(N * H * W, 4 * C)
    if cls is None:
        out = fused_matmul(patches, lp["w"], lp["scale"], lp["bias"])
        out_ch = cout
    else:
        out = fused_matmul(patches, lp["w"], lp["scale"], lp["bias"],
                           cls_w=cls["w"], cls_b=cls["b"])
        out_ch = 2
    out = out[:, :4 * out_ch].reshape(N, H, W, 2, 2, out_ch)
    # interleave the (even/odd row, even/odd col) phases into the full map
    return out.transpose(0, 1, 3, 2, 4, 5).reshape(N, 2 * H, 2 * W, out_ch)


# ----------------------------------------------------------------------------
# Parameter construction (PyTorch layouts) + one-time preprocessing
# ----------------------------------------------------------------------------
def make_params(key):
    def conv_block(key, cin, cout, transpose=False):
        ks = jax.random.split(key, 6)
        w_shape = (cin, cout, 3, 3) if transpose else (cout, cin, 3, 3)
        return {
            "w": 0.05 * jax.random.normal(ks[0], w_shape, jnp.float32),
            "b": 0.05 * jax.random.normal(ks[1], (cout,), jnp.float32),
            "gamma": 1.0 + 0.05 * jax.random.normal(ks[2], (cout,), jnp.float32),
            "beta": 0.05 * jax.random.normal(ks[3], (cout,), jnp.float32),
            "mean": 0.05 * jax.random.normal(ks[4], (cout,), jnp.float32),
            "var": 1.0 + 0.1 * jax.random.uniform(ks[5], (cout,), jnp.float32),
        }

    keys = jax.random.split(key, 11)
    params = {"enc": [], "dec": []}
    for i, (cin, cout) in enumerate(ENC_CH):
        params["enc"].append(conv_block(keys[i], cin, cout, transpose=False))
    for i, (cin, cout) in enumerate(DEC_CH):
        params["dec"].append(conv_block(keys[5 + i], cin, cout, transpose=True))
    kc = jax.random.split(keys[10], 2)
    params["cls"] = {
        "w": 0.05 * jax.random.normal(kc[0], (2, 8, 1, 1), jnp.float32),
        "b": 0.05 * jax.random.normal(kc[1], (2,), jnp.float32),
    }
    return params


def prepare_params(params):
    """One-time weight prep (outside the jitted forward): fold BN, reshape to
    (K, Cout) matmul layout, pad Cout to a multiple of 128 lanes, build the
    4-phase deconv weights + fused classifier block, cast MXU operands bf16."""
    prepped = {"enc": [], "dec": []}

    # ---- encoder: stride-2 3x3 convs --------------------------------------
    for p in params["enc"]:
        w = p["w"]                                       # (Cout, Cin, 3, 3)
        cout, cin = int(w.shape[0]), int(w.shape[1])
        w_mat = w.transpose(2, 3, 1, 0).reshape(9 * cin, cout)
        scale, bias = _fold_bn(p["b"], p["gamma"], p["beta"], p["mean"], p["var"])
        coutp = _round_up(cout, 128)                     # lane-dense output
        w_mat = jnp.pad(w_mat, ((0, 0), (0, coutp - cout)))
        scale = jnp.pad(scale, (0, coutp - cout), constant_values=1.0)
        bias = jnp.pad(bias, (0, coutp - cout))
        prepped["enc"].append({
            "w": w_mat.astype(jnp.bfloat16),
            "scale": scale.reshape(1, coutp),
            "bias": bias.reshape(1, coutp),
        })

    # ---- decoder: ConvTranspose2d(3, s=2, p=1, op=1) as 4-phase conv -------
    # y[2m+py, 2n+px] uses taps w[ky, kx] with ky = {1} (py=0) / {2,0} (py=1),
    # same for kx; rows of w_big are the 4 input shifts, cols the 4 phases.
    for p in params["dec"]:
        w_t = p["w"]                                     # (Cin, Cout, 3, 3)
        cin, cout = int(w_t.shape[0]), int(w_t.shape[1])
        scale, bias = _fold_bn(p["b"], p["gamma"], p["beta"], p["mean"], p["var"])
        tap = lambda ky, kx: w_t[:, :, ky, kx]           # (Cin, Cout)
        Z = jnp.zeros((cin, cout), jnp.float32)
        w_big = jnp.block([
            [tap(1, 1), tap(1, 2), tap(2, 1), tap(2, 2)],   # shift (0, 0)
            [Z,         tap(1, 0), Z,         tap(2, 0)],   # shift (0,+1)
            [Z,         Z,         tap(0, 1), tap(0, 2)],   # shift (+1,0)
            [Z,         Z,         Z,         tap(0, 0)],   # shift (+1,+1)
        ])                                               # (4*Cin, 4*Cout)
        prepped["dec"].append({
            "w": w_big.astype(jnp.bfloat16),
            "scale": jnp.tile(scale, 4).reshape(1, 4 * cout),
            "bias": jnp.tile(bias, 4).reshape(1, 4 * cout),
        })

    # ---- 1x1 classifier fused into the last deconv kernel ------------------
    wc = params["cls"]["w"].reshape(2, 8).T              # (8, 2)
    bc = params["cls"]["b"]                              # (2,)
    wc_big = jnp.zeros((4 * 8, 4 * 2), jnp.float32)      # per-phase block diag
    for ph in range(4):
        wc_big = wc_big.at[ph * 8:(ph + 1) * 8, ph * 2:(ph + 1) * 2].set(wc)
    bc_big = jnp.tile(bc, 4)                             # (8,)
    pad = 128 - wc_big.shape[1]                          # lane-dense store
    prepped["cls"] = {
        "w": jnp.pad(wc_big, ((0, 0), (0, pad))),
        "b": jnp.pad(bc_big, (0, pad)).reshape(1, 128),
    }
    return prepped


# ----------------------------------------------------------------------------
# Full forward pass (NCHW in / NCHW out, like PyTorch)
# ----------------------------------------------------------------------------
@jax.jit
def simple_net5_forward(prepped, x_nchw):
    x = jnp.transpose(x_nchw, (0, 2, 3, 1)).astype(jnp.float32)   # NCHW -> NHWC
    for lp, (_, cout) in zip(prepped["enc"], ENC_CH):
        x = conv_bn_relu(x, lp, cout)
    for lp, (_, cout) in zip(prepped["dec"][:-1], DEC_CH[:-1]):
        x = deconv_bn_relu(x, lp, cout)
    x = deconv_bn_relu(x, prepped["dec"][-1], DEC_CH[-1][1], cls=prepped["cls"])
    return jnp.transpose(x, (0, 3, 1, 2))                         # NHWC -> NCHW


if __name__ == "__main__":
    key = jax.random.PRNGKey(0)
    k_param, k_x = jax.random.split(key)
    params = make_params(k_param)
    prepped = prepare_params(params)      # one-time weight prep, outside jit

    # 5 stride-2 downsamples need H, W divisible by 32; batch=2, 3 channels.
    x = jax.random.normal(k_x, (2, 3, 32, 32), jnp.float32)

    out = simple_net5_forward(prepped, x)
    out = jax.block_until_ready(out)

    assert out.shape == (2, 2, 32, 32), out.shape
    assert out.dtype == jnp.float32
    assert bool(jnp.all(jnp.isfinite(out)))
    print("KERNEL_OK")
</pallas_src>

<mosaic_0001>
module attributes {stable_mosaic.version = 11 : i64} {
  func.func @_fused_kernel(%arg0: i32, %arg1: memref<128x27xbf16, #tpu.memory_space<vmem>>, %arg2: memref<27x128xbf16, #tpu.memory_space<vmem>>, %arg3: memref<1x128xf32, #tpu.memory_space<vmem>>, %arg4: memref<1x128xf32, #tpu.memory_space<vmem>>, %arg5: memref<128x128xf32, #tpu.memory_space<vmem>>) attributes {dimension_semantics = [#tpu.dimension_semantics<parallel>], iteration_bounds = array<i64: 4>, scalar_prefetch = 0 : i64, scratch_operands = 0 : i64, tpu.core_type = #tpu.core_type<tc>, window_params = [{transform_indices = @transform_0, window_bounds = array<i64: 128, 27>}, {pipeline_mode = #tpu.pipeline_mode<synchronous>, transform_indices = @transform_1, window_bounds = array<i64: 27, 128>}, {pipeline_mode = #tpu.pipeline_mode<synchronous>, transform_indices = @transform_2, window_bounds = array<i64: 1, 128>}, {pipeline_mode = #tpu.pipeline_mode<synchronous>, transform_indices = @transform_3, window_bounds = array<i64: 1, 128>}, {transform_indices = @transform_4, window_bounds = array<i64: 128, 128>}]} {
    %c0 = arith.constant 0 : index
    %c0_0 = arith.constant 0 : index
    %0 = vector.load %arg1[%c0, %c0_0] : memref<128x27xbf16, #tpu.memory_space<vmem>>, vector<128x27xbf16>
    %c0_1 = arith.constant 0 : index
    %c0_2 = arith.constant 0 : index
    %1 = vector.load %arg2[%c0_1, %c0_2] : memref<27x128xbf16, #tpu.memory_space<vmem>>, vector<27x128xbf16>
    %cst = arith.constant dense<0.000000e+00> : vector<128x128xf32>
    %2 = tpu.matmul %0, %1, %cst {dimension_numbers = #tpu.dot_dimension_numbers<[1], [0], [0], [1], [0, 0, 1, 1], [], []>} : vector<128x27xbf16>, vector<27x128xbf16>, vector<128x128xf32> -> vector<128x128xf32>
    %c0_3 = arith.constant 0 : index
    %c0_4 = arith.constant 0 : index
    %3 = vector.load %arg3[%c0_3, %c0_4] : memref<1x128xf32, #tpu.memory_space<vmem>>, vector<1x128xf32>
    %4 = vector.broadcast %3 : vector<1x128xf32> to vector<128x128xf32>
    %5 = arith.mulf %2, %4 : vector<128x128xf32>
    %c0_5 = arith.constant 0 : index
    %c0_6 = arith.constant 0 : index
    %6 = vector.load %arg4[%c0_5, %c0_6] : memref<1x128xf32, #tpu.memory_space<vmem>>, vector<1x128xf32>
    %7 = vector.broadcast %6 : vector<1x128xf32> to vector<128x128xf32>
    %8 = arith.addf %5, %7 : vector<128x128xf32>
    %cst_7 = arith.constant 0.000000e+00 : f32
    %9 = vector.broadcast %cst_7 : f32 to vector<128x128xf32>
    %10 = arith.maximumf %8, %9 : vector<128x128xf32>
    %c0_8 = arith.constant 0 : index
    %c0_9 = arith.constant 0 : index
    %11 = vector.load %arg5[%c0_8, %c0_9] : memref<128x128xf32, #tpu.memory_space<vmem>>, vector<128x128xf32>
    tpu.vector_store %arg5[%c0_8, %c0_9], %10 {strides = array<i32>} : memref<128x128xf32, #tpu.memory_space<vmem>>, vector<128x128xf32>,
    return
  }
  func.func @transform_0(%arg0: i32) -> (i32, i32) {
    %c0_i32 = arith.constant 0 : i32
    %c0_i32_0 = arith.constant 0 : i32
    return %arg0, %c0_i32 : i32, i32
  }
  func.func @transform_1(%arg0: i32) -> (i32, i32) {
    %c0_i32 = arith.constant 0 : i32
    %c0_i32_0 = arith.constant 0 : i32
    %c0_i32_1 = arith.constant 0 : i32
    return %c0_i32, %c0_i32_0 : i32, i32
  }
  func.func @transform_2(%arg0: i32) -> (i32, i32) {
    %c0_i32 = arith.constant 0 : i32
    %c0_i32_0 = arith.constant 0 : i32
    %c0_i32_1 = arith.constant 0 : i32
    return %c0_i32, %c0_i32_0 : i32, i32
  }
  func.func @transform_3(%arg0: i32) -> (i32, i32) {
    %c0_i32 = arith.constant 0 : i32
    %c0_i32_0 = arith.constant 0 : i32
    %c0_i32_1 = arith.constant 0 : i32
    return %c0_i32, %c0_i32_0 : i32, i32
  }
  func.func @transform_4(%arg0: i32) -> (i32, i32) {
    %c0_i32 = arith.constant 0 : i32
    %c0_i32_0 = arith.constant 0 : i32
    return %arg0, %c0_i32 : i32, i32
  }
}

module attributes {stable_mosaic.version = 11 : i64} {
  func.func @_fused_kernel(%arg0: i32, %arg1: memref<128x288xbf16, #tpu.memory_space<vmem>>, %arg2: memref<288x128xbf16, #tpu.memory_space<vmem>>, %arg3: memref<1x128xf32, #tpu.memory_space<vmem>>, %arg4: memref<1x128xf32, #tpu.memory_space<vmem>>, %arg5: memref<128x128xf32, #tpu.memory_space<vmem>>) attributes {dimension_semantics = [#tpu.dimension_semantics<parallel>], iteration_bounds = array<i64: 1>, scalar_prefetch = 0 : i64, scratch_operands = 0 : i64, tpu.core_type = #tpu.core_type<tc>, window_params = [{transform_indices = @transform_0, window_bounds = array<i64: 128, 288>}, {pipeline_mode = #tpu.pipeline_mode<synchronous>, transform_indices = @transform_1, window_bounds = array<i64: 288, 128>}, {pipeline_mode = #tpu.pipeline_mode<synchronous>, transform_indices = @transform_2, window_bounds = array<i64: 1, 128>}, {pipeline_mode = #tpu.pipeline_mode<synchronous>, transform_indices = @transform_3, window_bounds = array<i64: 1, 128>}, {transform_indices = @transform_4, window_bounds = array<i64: 128, 128>}]} {
    %c0 = arith.constant 0 : index
    %c0_0 = arith.constant 0 : index
    %0 = vector.load %arg1[%c0, %c0_0] : memref<128x288xbf16, #tpu.memory_space<vmem>>, vector<128x288xbf16>
    %c0_1 = arith.constant 0 : index
    %c0_2 = arith.constant 0 : index
    %1 = vector.load %arg2[%c0_1, %c0_2] : memref<288x128xbf16, #tpu.memory_space<vmem>>, vector<288x128xbf16>
    %cst = arith.constant dense<0.000000e+00> : vector<128x128xf32>
    %2 = tpu.matmul %0, %1, %cst {dimension_numbers = #tpu.dot_dimension_numbers<[1], [0], [0], [1], [0, 0, 1, 1], [], []>} : vector<128x288xbf16>, vector<288x128xbf16>, vector<128x128xf32> -> vector<128x128xf32>
    %c0_3 = arith.constant 0 : index
    %c0_4 = arith.constant 0 : index
    %3 = vector.load %arg3[%c0_3, %c0_4] : memref<1x128xf32, #tpu.memory_space<vmem>>, vector<1x128xf32>
    %4 = vector.broadcast %3 : vector<1x128xf32> to vector<128x128xf32>
    %5 = arith.mulf %2, %4 : vector<128x128xf32>
    %c0_5 = arith.constant 0 : index
    %c0_6 = arith.constant 0 : index
    %6 = vector.load %arg4[%c0_5, %c0_6] : memref<1x128xf32, #tpu.memory_space<vmem>>, vector<1x128xf32>
    %7 = vector.broadcast %6 : vector<1x128xf32> to vector<128x128xf32>
    %8 = arith.addf %5, %7 : vector<128x128xf32>
    %cst_7 = arith.constant 0.000000e+00 : f32
    %9 = vector.broadcast %cst_7 : f32 to vector<128x128xf32>
    %10 = arith.maximumf %8, %9 : vector<128x128xf32>
    %c0_8 = arith.constant 0 : index
    %c0_9 = arith.constant 0 : index
    %11 = vector.load %arg5[%c0_8, %c0_9] : memref<128x128xf32, #tpu.memory_space<vmem>>, vector<128x128xf32>
    tpu.vector_store %arg5[%c0_8, %c0_9], %10 {strides = array<i32>} : memref<128x128xf32, #tpu.memory_space<vmem>>, vector<128x128xf32>,
    return
  }
  func.func @transform_0(%arg0: i32) -> (i32, i32) {
    %c0_i32 = arith.constant 0 : i32
    %c0_i32_0 = arith.constant 0 : i32
    return %arg0, %c0_i32 : i32, i32
  }
  func.func @transform_1(%arg0: i32) -> (i32, i32) {
    %c0_i32 = arith.constant 0 : i32
    %c0_i32_0 = arith.constant 0 : i32
    %c0_i32_1 = arith.constant 0 : i32
    return %c0_i32, %c0_i32_0 : i32, i32
  }
  func.func @transform_2(%arg0: i32) -> (i32, i32) {
    %c0_i32 = arith.constant 0 : i32
    %c0_i32_0 = arith.constant 0 : i32
    %c0_i32_1 = arith.constant 0 : i32
    return %c0_i32, %c0_i32_0 : i32, i32
  }
  func.func @transform_3(%arg0: i32) -> (i32, i32) {
    %c0_i32 = arith.constant 0 : i32
    %c0_i32_0 = arith.constant 0 : i32
    %c0_i32_1 = arith.constant 0 : i32
    return %c0_i32, %c0_i32_0 : i32, i32
  }
  func.func @transform_4(%arg0: i32) -> (i32, i32) {
    %c0_i32 = arith.constant 0 : i32
    %c0_i32_0 = arith.constant 0 : i32
    return %arg0, %c0_i32 : i32, i32
  }
}

module attributes {stable_mosaic.version = 11 : i64} {
  func.func @_fused_kernel(%arg0: i32, %arg1: memref<32x576xbf16, #tpu.memory_space<vmem>>, %arg2: memref<576x128xbf16, #tpu.memory_space<vmem>>, %arg3: memref<1x128xf32, #tpu.memory_space<vmem>>, %arg4: memref<1x128xf32, #tpu.memory_space<vmem>>, %arg5: memref<32x128xf32, #tpu.memory_space<vmem>>) attributes {dimension_semantics = [#tpu.dimension_semantics<parallel>], iteration_bounds = array<i64: 1>, scalar_prefetch = 0 : i64, scratch_operands = 0 : i64, tpu.core_type = #tpu.core_type<tc>, window_params = [{transform_indices = @transform_0, window_bounds = array<i64: 32, 576>}, {pipeline_mode = #tpu.pipeline_mode<synchronous>, transform_indices = @transform_1, window_bounds = array<i64: 576, 128>}, {pipeline_mode = #tpu.pipeline_mode<synchronous>, transform_indices = @transform_2, window_bounds = array<i64: 1, 128>}, {pipeline_mode = #tpu.pipeline_mode<synchronous>, transform_indices = @transform_3, window_bounds = array<i64: 1, 128>}, {transform_indices = @transform_4, window_bounds = array<i64: 32, 128>}]} {
    %c0 = arith.constant 0 : index
    %c0_0 = arith.constant 0 : index
    %0 = vector.load %arg1[%c0, %c0_0] : memref<32x576xbf16, #tpu.memory_space<vmem>>, vector<32x576xbf16>
    %c0_1 = arith.constant 0 : index
    %c0_2 = arith.constant 0 : index
    %1 = vector.load %arg2[%c0_1, %c0_2] : memref<576x128xbf16, #tpu.memory_space<vmem>>, vector<576x128xbf16>
    %cst = arith.constant dense<0.000000e+00> : vector<32x128xf32>
    %2 = tpu.matmul %0, %1, %cst {dimension_numbers = #tpu.dot_dimension_numbers<[1], [0], [0], [1], [0, 0, 1, 1], [], []>} : vector<32x576xbf16>, vector<576x128xbf16>, vector<32x128xf32> -> vector<32x128xf32>
    %c0_3 = arith.constant 0 : index
    %c0_4 = arith.constant 0 : index
    %3 = vector.load %arg3[%c0_3, %c0_4] : memref<1x128xf32, #tpu.memory_space<vmem>>, vector<1x128xf32>
    %4 = vector.broadcast %3 : vector<1x128xf32> to vector<32x128xf32>
    %5 = arith.mulf %2, %4 : vector<32x128xf32>
    %c0_5 = arith.constant 0 : index
    %c0_6 = arith.constant 0 : index
    %6 = vector.load %arg4[%c0_5, %c0_6] : memref<1x128xf32, #tpu.memory_space<vmem>>, vector<1x128xf32>
    %7 = vector.broadcast %6 : vector<1x128xf32> to vector<32x128xf32>
    %8 = arith.addf %5, %7 : vector<32x128xf32>
    %cst_7 = arith.constant 0.000000e+00 : f32
    %9 = vector.broadcast %cst_7 : f32 to vector<32x128xf32>
    %10 = arith.maximumf %8, %9 : vector<32x128xf32>
    %c0_8 = arith.constant 0 : index
    %c0_9 = arith.constant 0 : index
    %11 = vector.load %arg5[%c0_8, %c0_9] : memref<32x128xf32, #tpu.memory_space<vmem>>, vector<32x128xf32>
    tpu.vector_store %arg5[%c0_8, %c0_9], %10 {strides = array<i32>} : memref<32x128xf32, #tpu.memory_space<vmem>>, vector<32x128xf32>,
    return
  }
  func.func @transform_0(%arg0: i32) -> (i32, i32) {
    %c0_i32 = arith.constant 0 : i32
    %c0_i32_0 = arith.constant 0 : i32
    return %arg0, %c0_i32 : i32, i32
  }
  func.func @transform_1(%arg0: i32) -> (i32, i32) {
    %c0_i32 = arith.constant 0 : i32
    %c0_i32_0 = arith.constant 0 : i32
    %c0_i32_1 = arith.constant 0 : i32
    return %c0_i32, %c0_i32_0 : i32, i32
  }
  func.func @transform_2(%arg0: i32) -> (i32, i32) {
    %c0_i32 = arith.constant 0 : i32
    %c0_i32_0 = arith.constant 0 : i32
    %c0_i32_1 = arith.constant 0 : i32
    return %c0_i32, %c0_i32_0 : i32, i32
  }
  func.func @transform_3(%arg0: i32) -> (i32, i32) {
    %c0_i32 = arith.constant 0 : i32
    %c0_i32_0 = arith.constant 0 : i32
    %c0_i32_1 = arith.constant 0 : i32
    return %c0_i32, %c0_i32_0 : i32, i32
  }
  func.func @transform_4(%arg0: i32) -> (i32, i32) {
    %c0_i32 = arith.constant 0 : i32
    %c0_i32_0 = arith.constant 0 : i32
    return %arg0, %c0_i32 : i32, i32
  }
}

module attributes {stable_mosaic.version = 11 : i64} {
  func.func @_fused_kernel(%arg0: i32, %arg1: memref<16x1152xbf16, #tpu.memory_space<vmem>>, %arg2: memref<1152x256xbf16, #tpu.memory_space<vmem>>, %arg3: memref<1x256xf32, #tpu.memory_space<vmem>>, %arg4: memref<1x256xf32, #tpu.memory_space<vmem>>, %arg5: memref<16x256xf32, #tpu.memory_space<vmem>>) attributes {dimension_semantics = [#tpu.dimension_semantics<parallel>], iteration_bounds = array<i64: 1>, scalar_prefetch = 0 : i64, scratch_operands = 0 : i64, tpu.core_type = #tpu.core_type<tc>, window_params = [{transform_indices = @transform_0, window_bounds = array<i64: 16, 1152>}, {pipeline_mode = #tpu.pipeline_mode<synchronous>, transform_indices = @transform_1, window_bounds = array<i64: 1152, 256>}, {pipeline_mode = #tpu.pipeline_mode<synchronous>, transform_indices = @transform_2, window_bounds = array<i64: 1, 256>}, {pipeline_mode = #tpu.pipeline_mode<synchronous>, transform_indices = @transform_3, window_bounds = array<i64: 1, 256>}, {transform_indices = @transform_4, window_bounds = array<i64: 16, 256>}]} {
    %c0 = arith.constant 0 : index
    %c0_0 = arith.constant 0 : index
    %0 = vector.load %arg1[%c0, %c0_0] : memref<16x1152xbf16, #tpu.memory_space<vmem>>, vector<16x1152xbf16>
    %c0_1 = arith.constant 0 : index
    %c0_2 = arith.constant 0 : index
    %1 = vector.load %arg2[%c0_1, %c0_2] : memref<1152x256xbf16, #tpu.memory_space<vmem>>, vector<1152x256xbf16>
    %cst = arith.constant dense<0.000000e+00> : vector<16x256xf32>
    %2 = tpu.matmul %0, %1, %cst {dimension_numbers = #tpu.dot_dimension_numbers<[1], [0], [0], [1], [0, 0, 1, 1], [], []>} : vector<16x1152xbf16>, vector<1152x256xbf16>, vector<16x256xf32> -> vector<16x256xf32>
    %c0_3 = arith.constant 0 : index
    %c0_4 = arith.constant 0 : index
    %3 = vector.load %arg3[%c0_3, %c0_4] : memref<1x256xf32, #tpu.memory_space<vmem>>, vector<1x256xf32>
    %4 = vector.broadcast %3 : vector<1x256xf32> to vector<16x256xf32>
    %5 = arith.mulf %2, %4 : vector<16x256xf32>
    %c0_5 = arith.constant 0 : index
    %c0_6 = arith.constant 0 : index
    %6 = vector.load %arg4[%c0_5, %c0_6] : memref<1x256xf32, #tpu.memory_space<vmem>>, vector<1x256xf32>
    %7 = vector.broadcast %6 : vector<1x256xf32> to vector<16x256xf32>
    %8 = arith.addf %5, %7 : vector<16x256xf32>
    %cst_7 = arith.constant 0.000000e+00 : f32
    %9 = vector.broadcast %cst_7 : f32 to vector<16x256xf32>
    %10 = arith.maximumf %8, %9 : vector<16x256xf32>
    %c0_8 = arith.constant 0 : index
    %c0_9 = arith.constant 0 : index
    %11 = vector.load %arg5[%c0_8, %c0_9] : memref<16x256xf32, #tpu.memory_space<vmem>>, vector<16x256xf32>
    tpu.vector_store %arg5[%c0_8, %c0_9], %10 {strides = array<i32>} : memref<16x256xf32, #tpu.memory_space<vmem>>, vector<16x256xf32>,
    return
  }
  func.func @transform_0(%arg0: i32) -> (i32, i32) {
    %c0_i32 = arith.constant 0 : i32
    %c0_i32_0 = arith.constant 0 : i32
    return %arg0, %c0_i32 : i32, i32
  }
  func.func @transform_1(%arg0: i32) -> (i32, i32) {
    %c0_i32 = arith.constant 0 : i32
    %c0_i32_0 = arith.constant 0 : i32
    %c0_i32_1 = arith.constant 0 : i32
    return %c0_i32, %c0_i32_0 : i32, i32
  }
  func.func @transform_2(%arg0: i32) -> (i32, i32) {
    %c0_i32 = arith.constant 0 : i32
    %c0_i32_0 = arith.constant 0 : i32
    %c0_i32_1 = arith.constant 0 : i32
    return %c0_i32, %c0_i32_0 : i32, i32
  }
  func.func @transform_3(%arg0: i32) -> (i32, i32) {
    %c0_i32 = arith.constant 0 : i32
    %c0_i32_0 = arith.constant 0 : i32
    %c0_i32_1 = arith.constant 0 : i32
    return %c0_i32, %c0_i32_0 : i32, i32
  }
  func.func @transform_4(%arg0: i32) -> (i32, i32) {
    %c0_i32 = arith.constant 0 : i32
    %c0_i32_0 = arith.constant 0 : i32
    return %arg0, %c0_i32 : i32, i32
  }
}

module attributes {stable_mosaic.version = 11 : i64} {
  func.func @_fused_kernel(%arg0: i32, %arg1: memref<16x2304xbf16, #tpu.memory_space<vmem>>, %arg2: memref<2304x512xbf16, #tpu.memory_space<vmem>>, %arg3: memref<1x512xf32, #tpu.memory_space<vmem>>, %arg4: memref<1x512xf32, #tpu.memory_space<vmem>>, %arg5: memref<16x512xf32, #tpu.memory_space<vmem>>) attributes {dimension_semantics = [#tpu.dimension_semantics<parallel>], iteration_bounds = array<i64: 1>, scalar_prefetch = 0 : i64, scratch_operands = 0 : i64, tpu.core_type = #tpu.core_type<tc>, window_params = [{transform_indices = @transform_0, window_bounds = array<i64: 16, 2304>}, {pipeline_mode = #tpu.pipeline_mode<synchronous>, transform_indices = @transform_1, window_bounds = array<i64: 2304, 512>}, {pipeline_mode = #tpu.pipeline_mode<synchronous>, transform_indices = @transform_2, window_bounds = array<i64: 1, 512>}, {pipeline_mode = #tpu.pipeline_mode<synchronous>, transform_indices = @transform_3, window_bounds = array<i64: 1, 512>}, {transform_indices = @transform_4, window_bounds = array<i64: 16, 512>}]} {
    %c0 = arith.constant 0 : index
    %c0_0 = arith.constant 0 : index
    %0 = vector.load %arg1[%c0, %c0_0] : memref<16x2304xbf16, #tpu.memory_space<vmem>>, vector<16x2304xbf16>
    %c0_1 = arith.constant 0 : index
    %c0_2 = arith.constant 0 : index
    %1 = vector.load %arg2[%c0_1, %c0_2] : memref<2304x512xbf16, #tpu.memory_space<vmem>>, vector<2304x512xbf16>
    %cst = arith.constant dense<0.000000e+00> : vector<16x512xf32>
    %2 = tpu.matmul %0, %1, %cst {dimension_numbers = #tpu.dot_dimension_numbers<[1], [0], [0], [1], [0, 0, 1, 1], [], []>} : vector<16x2304xbf16>, vector<2304x512xbf16>, vector<16x512xf32> -> vector<16x512xf32>
    %c0_3 = arith.constant 0 : index
    %c0_4 = arith.constant 0 : index
    %3 = vector.load %arg3[%c0_3, %c0_4] : memref<1x512xf32, #tpu.memory_space<vmem>>, vector<1x512xf32>
    %4 = vector.broadcast %3 : vector<1x512xf32> to vector<16x512xf32>
    %5 = arith.mulf %2, %4 : vector<16x512xf32>
    %c0_5 = arith.constant 0 : index
    %c0_6 = arith.constant 0 : index
    %6 = vector.load %arg4[%c0_5, %c0_6] : memref<1x512xf32, #tpu.memory_space<vmem>>, vector<1x512xf32>
    %7 = vector.broadcast %6 : vector<1x512xf32> to vector<16x512xf32>
    %8 = arith.addf %5, %7 : vector<16x512xf32>
    %cst_7 = arith.constant 0.000000e+00 : f32
    %9 = vector.broadcast %cst_7 : f32 to vector<16x512xf32>
    %10 = arith.maximumf %8, %9 : vector<16x512xf32>
    %c0_8 = arith.constant 0 : index
    %c0_9 = arith.constant 0 : index
    %11 = vector.load %arg5[%c0_8, %c0_9] : memref<16x512xf32, #tpu.memory_space<vmem>>, vector<16x512xf32>
    tpu.vector_store %arg5[%c0_8, %c0_9], %10 {strides = array<i32>} : memref<16x512xf32, #tpu.memory_space<vmem>>, vector<16x512xf32>,
    return
  }
  func.func @transform_0(%arg0: i32) -> (i32, i32) {
    %c0_i32 = arith.constant 0 : i32
    %c0_i32_0 = arith.constant 0 : i32
    return %arg0, %c0_i32 : i32, i32
  }
  func.func @transform_1(%arg0: i32) -> (i32, i32) {
    %c0_i32 = arith.constant 0 : i32
    %c0_i32_0 = arith.constant 0 : i32
    %c0_i32_1 = arith.constant 0 : i32
    return %c0_i32, %c0_i32_0 : i32, i32
  }
  func.func @transform_2(%arg0: i32) -> (i32, i32) {
    %c0_i32 = arith.constant 0 : i32
    %c0_i32_0 = arith.constant 0 : i32
    %c0_i32_1 = arith.constant 0 : i32
    return %c0_i32, %c0_i32_0 : i32, i32
  }
  func.func @transform_3(%arg0: i32) -> (i32, i32) {
    %c0_i32 = arith.constant 0 : i32
    %c0_i32_0 = arith.constant 0 : i32
    %c0_i32_1 = arith.constant 0 : i32
    return %c0_i32, %c0_i32_0 : i32, i32
  }
  func.func @transform_4(%arg0: i32) -> (i32, i32) {
    %c0_i32 = arith.constant 0 : i32
    %c0_i32_0 = arith.constant 0 : i32
    return %arg0, %c0_i32 : i32, i32
  }
}

module attributes {stable_mosaic.version = 11 : i64} {
  func.func @_fused_kernel(%arg0: i32, %arg1: memref<16x2048xbf16, #tpu.memory_space<vmem>>, %arg2: memref<2048x1024xbf16, #tpu.memory_space<vmem>>, %arg3: memref<1x1024xf32, #tpu.memory_space<vmem>>, %arg4: memref<1x1024xf32, #tpu.memory_space<vmem>>, %arg5: memref<16x1024xf32, #tpu.memory_space<vmem>>) attributes {dimension_semantics = [#tpu.dimension_semantics<parallel>], iteration_bounds = array<i64: 1>, scalar_prefetch = 0 : i64, scratch_operands = 0 : i64, tpu.core_type = #tpu.core_type<tc>, window_params = [{transform_indices = @transform_0, window_bounds = array<i64: 16, 2048>}, {pipeline_mode = #tpu.pipeline_mode<synchronous>, transform_indices = @transform_1, window_bounds = array<i64: 2048, 1024>}, {pipeline_mode = #tpu.pipeline_mode<synchronous>, transform_indices = @transform_2, window_bounds = array<i64: 1, 1024>}, {pipeline_mode = #tpu.pipeline_mode<synchronous>, transform_indices = @transform_3, window_bounds = array<i64: 1, 1024>}, {transform_indices = @transform_4, window_bounds = array<i64: 16, 1024>}]} {
    %c0 = arith.constant 0 : index
    %c0_0 = arith.constant 0 : index
    %0 = vector.load %arg1[%c0, %c0_0] : memref<16x2048xbf16, #tpu.memory_space<vmem>>, vector<16x2048xbf16>
    %c0_1 = arith.constant 0 : index
    %c0_2 = arith.constant 0 : index
    %1 = vector.load %arg2[%c0_1, %c0_2] : memref<2048x1024xbf16, #tpu.memory_space<vmem>>, vector<2048x1024xbf16>
    %cst = arith.constant dense<0.000000e+00> : vector<16x1024xf32>
    %2 = tpu.matmul %0, %1, %cst {dimension_numbers = #tpu.dot_dimension_numbers<[1], [0], [0], [1], [0, 0, 1, 1], [], []>} : vector<16x2048xbf16>, vector<2048x1024xbf16>, vector<16x1024xf32> -> vector<16x1024xf32>
    %c0_3 = arith.constant 0 : index
    %c0_4 = arith.constant 0 : index
    %3 = vector.load %arg3[%c0_3, %c0_4] : memref<1x1024xf32, #tpu.memory_space<vmem>>, vector<1x1024xf32>
    %4 = vector.broadcast %3 : vector<1x1024xf32> to vector<16x1024xf32>
    %5 = arith.mulf %2, %4 : vector<16x1024xf32>
    %c0_5 = arith.constant 0 : index
    %c0_6 = arith.constant 0 : index
    %6 = vector.load %arg4[%c0_5, %c0_6] : memref<1x1024xf32, #tpu.memory_space<vmem>>, vector<1x1024xf32>
    %7 = vector.broadcast %6 : vector<1x1024xf32> to vector<16x1024xf32>
    %8 = arith.addf %5, %7 : vector<16x1024xf32>
    %cst_7 = arith.constant 0.000000e+00 : f32
    %9 = vector.broadcast %cst_7 : f32 to vector<16x1024xf32>
    %10 = arith.maximumf %8, %9 : vector<16x1024xf32>
    %c0_8 = arith.constant 0 : index
    %c0_9 = arith.constant 0 : index
    %11 = vector.load %arg5[%c0_8, %c0_9] : memref<16x1024xf32, #tpu.memory_space<vmem>>, vector<16x1024xf32>
    tpu.vector_store %arg5[%c0_8, %c0_9], %10 {strides = array<i32>} : memref<16x1024xf32, #tpu.memory_space<vmem>>, vector<16x1024xf32>,
    return
  }
  func.func @transform_0(%arg0: i32) -> (i32, i32) {
    %c0_i32 = arith.constant 0 : i32
    %c0_i32_0 = arith.constant 0 : i32
    return %arg0, %c0_i32 : i32, i32
  }
  func.func @transform_1(%arg0: i32) -> (i32, i32) {
    %c0_i32 = arith.constant 0 : i32
    %c0_i32_0 = arith.constant 0 : i32
    %c0_i32_1 = arith.constant 0 : i32
    return %c0_i32, %c0_i32_0 : i32, i32
  }
  func.func @transform_2(%arg0: i32) -> (i32, i32) {
    %c0_i32 = arith.constant 0 : i32
    %c0_i32_0 = arith.constant 0 : i32
    %c0_i32_1 = arith.constant 0 : i32
    return %c0_i32, %c0_i32_0 : i32, i32
  }
  func.func @transform_3(%arg0: i32) -> (i32, i32) {
    %c0_i32 = arith.constant 0 : i32
    %c0_i32_0 = arith.constant 0 : i32
    %c0_i32_1 = arith.constant 0 : i32
    return %c0_i32, %c0_i32_0 : i32, i32
  }
  func.func @transform_4(%arg0: i32) -> (i32, i32) {
    %c0_i32 = arith.constant 0 : i32
    %c0_i32_0 = arith.constant 0 : i32
    return %arg0, %c0_i32 : i32, i32
  }
}

module attributes {stable_mosaic.version = 11 : i64} {
  func.func @_fused_kernel(%arg0: i32, %arg1: memref<16x1024xbf16, #tpu.memory_space<vmem>>, %arg2: memref<1024x512xbf16, #tpu.memory_space<vmem>>, %arg3: memref<1x512xf32, #tpu.memory_space<vmem>>, %arg4: memref<1x512xf32, #tpu.memory_space<vmem>>, %arg5: memref<16x512xf32, #tpu.memory_space<vmem>>) attributes {dimension_semantics = [#tpu.dimension_semantics<parallel>], iteration_bounds = array<i64: 1>, scalar_prefetch = 0 : i64, scratch_operands = 0 : i64, tpu.core_type = #tpu.core_type<tc>, window_params = [{transform_indices = @transform_0, window_bounds = array<i64: 16, 1024>}, {pipeline_mode = #tpu.pipeline_mode<synchronous>, transform_indices = @transform_1, window_bounds = array<i64: 1024, 512>}, {pipeline_mode = #tpu.pipeline_mode<synchronous>, transform_indices = @transform_2, window_bounds = array<i64: 1, 512>}, {pipeline_mode = #tpu.pipeline_mode<synchronous>, transform_indices = @transform_3, window_bounds = array<i64: 1, 512>}, {transform_indices = @transform_4, window_bounds = array<i64: 16, 512>}]} {
    %c0 = arith.constant 0 : index
    %c0_0 = arith.constant 0 : index
    %0 = vector.load %arg1[%c0, %c0_0] : memref<16x1024xbf16, #tpu.memory_space<vmem>>, vector<16x1024xbf16>
    %c0_1 = arith.constant 0 : index
    %c0_2 = arith.constant 0 : index
    %1 = vector.load %arg2[%c0_1, %c0_2] : memref<1024x512xbf16, #tpu.memory_space<vmem>>, vector<1024x512xbf16>
    %cst = arith.constant dense<0.000000e+00> : vector<16x512xf32>
    %2 = tpu.matmul %0, %1, %cst {dimension_numbers = #tpu.dot_dimension_numbers<[1], [0], [0], [1], [0, 0, 1, 1], [], []>} : vector<16x1024xbf16>, vector<1024x512xbf16>, vector<16x512xf32> -> vector<16x512xf32>
    %c0_3 = arith.constant 0 : index
    %c0_4 = arith.constant 0 : index
    %3 = vector.load %arg3[%c0_3, %c0_4] : memref<1x512xf32, #tpu.memory_space<vmem>>, vector<1x512xf32>
    %4 = vector.broadcast %3 : vector<1x512xf32> to vector<16x512xf32>
    %5 = arith.mulf %2, %4 : vector<16x512xf32>
    %c0_5 = arith.constant 0 : index
    %c0_6 = arith.constant 0 : index
    %6 = vector.load %arg4[%c0_5, %c0_6] : memref<1x512xf32, #tpu.memory_space<vmem>>, vector<1x512xf32>
    %7 = vector.broadcast %6 : vector<1x512xf32> to vector<16x512xf32>
    %8 = arith.addf %5, %7 : vector<16x512xf32>
    %cst_7 = arith.constant 0.000000e+00 : f32
    %9 = vector.broadcast %cst_7 : f32 to vector<16x512xf32>
    %10 = arith.maximumf %8, %9 : vector<16x512xf32>
    %c0_8 = arith.constant 0 : index
    %c0_9 = arith.constant 0 : index
    %11 = vector.load %arg5[%c0_8, %c0_9] : memref<16x512xf32, #tpu.memory_space<vmem>>, vector<16x512xf32>
    tpu.vector_store %arg5[%c0_8, %c0_9], %10 {strides = array<i32>} : memref<16x512xf32, #tpu.memory_space<vmem>>, vector<16x512xf32>,
    return
  }
  func.func @transform_0(%arg0: i32) -> (i32, i32) {
    %c0_i32 = arith.constant 0 : i32
    %c0_i32_0 = arith.constant 0 : i32
    return %arg0, %c0_i32 : i32, i32
  }
  func.func @transform_1(%arg0: i32) -> (i32, i32) {
    %c0_i32 = arith.constant 0 : i32
    %c0_i32_0 = arith.constant 0 : i32
    %c0_i32_1 = arith.constant 0 : i32
    return %c0_i32, %c0_i32_0 : i32, i32
  }
  func.func @transform_2(%arg0: i32) -> (i32, i32) {
    %c0_i32 = arith.constant 0 : i32
    %c0_i32_0 = arith.constant 0 : i32
    %c0_i32_1 = arith.constant 0 : i32
    return %c0_i32, %c0_i32_0 : i32, i32
  }
  func.func @transform_3(%arg0: i32) -> (i32, i32) {
    %c0_i32 = arith.constant 0 : i32
    %c0_i32_0 = arith.constant 0 : i32
    %c0_i32_1 = arith.constant 0 : i32
    return %c0_i32, %c0_i32_0 : i32, i32
  }
  func.func @transform_4(%arg0: i32) -> (i32, i32) {
    %c0_i32 = arith.constant 0 : i32
    %c0_i32_0 = arith.constant 0 : i32
    return %arg0, %c0_i32 : i32, i32
  }
}

module attributes {stable_mosaic.version = 11 : i64} {
  func.func @_fused_kernel(%arg0: i32, %arg1: memref<32x512xbf16, #tpu.memory_space<vmem>>, %arg2: memref<512x256xbf16, #tpu.memory_space<vmem>>, %arg3: memref<1x256xf32, #tpu.memory_space<vmem>>, %arg4: memref<1x256xf32, #tpu.memory_space<vmem>>, %arg5: memref<32x256xf32, #tpu.memory_space<vmem>>) attributes {dimension_semantics = [#tpu.dimension_semantics<parallel>], iteration_bounds = array<i64: 1>, scalar_prefetch = 0 : i64, scratch_operands = 0 : i64, tpu.core_type = #tpu.core_type<tc>, window_params = [{transform_indices = @transform_0, window_bounds = array<i64: 32, 512>}, {pipeline_mode = #tpu.pipeline_mode<synchronous>, transform_indices = @transform_1, window_bounds = array<i64: 512, 256>}, {pipeline_mode = #tpu.pipeline_mode<synchronous>, transform_indices = @transform_2, window_bounds = array<i64: 1, 256>}, {pipeline_mode = #tpu.pipeline_mode<synchronous>, transform_indices = @transform_3, window_bounds = array<i64: 1, 256>}, {transform_indices = @transform_4, window_bounds = array<i64: 32, 256>}]} {
    %c0 = arith.constant 0 : index
    %c0_0 = arith.constant 0 : index
    %0 = vector.load %arg1[%c0, %c0_0] : memref<32x512xbf16, #tpu.memory_space<vmem>>, vector<32x512xbf16>
    %c0_1 = arith.constant 0 : index
    %c0_2 = arith.constant 0 : index
    %1 = vector.load %arg2[%c0_1, %c0_2] : memref<512x256xbf16, #tpu.memory_space<vmem>>, vector<512x256xbf16>
    %cst = arith.constant dense<0.000000e+00> : vector<32x256xf32>
    %2 = tpu.matmul %0, %1, %cst {dimension_numbers = #tpu.dot_dimension_numbers<[1], [0], [0], [1], [0, 0, 1, 1], [], []>} : vector<32x512xbf16>, vector<512x256xbf16>, vector<32x256xf32> -> vector<32x256xf32>
    %c0_3 = arith.constant 0 : index
    %c0_4 = arith.constant 0 : index
    %3 = vector.load %arg3[%c0_3, %c0_4] : memref<1x256xf32, #tpu.memory_space<vmem>>, vector<1x256xf32>
    %4 = vector.broadcast %3 : vector<1x256xf32> to vector<32x256xf32>
    %5 = arith.mulf %2, %4 : vector<32x256xf32>
    %c0_5 = arith.constant 0 : index
    %c0_6 = arith.constant 0 : index
    %6 = vector.load %arg4[%c0_5, %c0_6] : memref<1x256xf32, #tpu.memory_space<vmem>>, vector<1x256xf32>
    %7 = vector.broadcast %6 : vector<1x256xf32> to vector<32x256xf32>
    %8 = arith.addf %5, %7 : vector<32x256xf32>
    %cst_7 = arith.constant 0.000000e+00 : f32
    %9 = vector.broadcast %cst_7 : f32 to vector<32x256xf32>
    %10 = arith.maximumf %8, %9 : vector<32x256xf32>
    %c0_8 = arith.constant 0 : index
    %c0_9 = arith.constant 0 : index
    %11 = vector.load %arg5[%c0_8, %c0_9] : memref<32x256xf32, #tpu.memory_space<vmem>>, vector<32x256xf32>
    tpu.vector_store %arg5[%c0_8, %c0_9], %10 {strides = array<i32>} : memref<32x256xf32, #tpu.memory_space<vmem>>, vector<32x256xf32>,
    return
  }
  func.func @transform_0(%arg0: i32) -> (i32, i32) {
    %c0_i32 = arith.constant 0 : i32
    %c0_i32_0 = arith.constant 0 : i32
    return %arg0, %c0_i32 : i32, i32
  }
  func.func @transform_1(%arg0: i32) -> (i32, i32) {
    %c0_i32 = arith.constant 0 : i32
    %c0_i32_0 = arith.constant 0 : i32
    %c0_i32_1 = arith.constant 0 : i32
    return %c0_i32, %c0_i32_0 : i32, i32
  }
  func.func @transform_2(%arg0: i32) -> (i32, i32) {
    %c0_i32 = arith.constant 0 : i32
    %c0_i32_0 = arith.constant 0 : i32
    %c0_i32_1 = arith.constant 0 : i32
    return %c0_i32, %c0_i32_0 : i32, i32
  }
  func.func @transform_3(%arg0: i32) -> (i32, i32) {
    %c0_i32 = arith.constant 0 : i32
    %c0_i32_0 = arith.constant 0 : i32
    %c0_i32_1 = arith.constant 0 : i32
    return %c0_i32, %c0_i32_0 : i32, i32
  }
  func.func @transform_4(%arg0: i32) -> (i32, i32) {
    %c0_i32 = arith.constant 0 : i32
    %c0_i32_0 = arith.constant 0 : i32
    return %arg0, %c0_i32 : i32, i32
  }
}

module attributes {stable_mosaic.version = 11 : i64} {
  func.func @_fused_kernel(%arg0: i32, %arg1: memref<128x256xbf16, #tpu.memory_space<vmem>>, %arg2: memref<256x128xbf16, #tpu.memory_space<vmem>>, %arg3: memref<1x128xf32, #tpu.memory_space<vmem>>, %arg4: memref<1x128xf32, #tpu.memory_space<vmem>>, %arg5: memref<128x128xf32, #tpu.memory_space<vmem>>) attributes {dimension_semantics = [#tpu.dimension_semantics<parallel>], iteration_bounds = array<i64: 1>, scalar_prefetch = 0 : i64, scratch_operands = 0 : i64, tpu.core_type = #tpu.core_type<tc>, window_params = [{transform_indices = @transform_0, window_bounds = array<i64: 128, 256>}, {pipeline_mode = #tpu.pipeline_mode<synchronous>, transform_indices = @transform_1, window_bounds = array<i64: 256, 128>}, {pipeline_mode = #tpu.pipeline_mode<synchronous>, transform_indices = @transform_2, window_bounds = array<i64: 1, 128>}, {pipeline_mode = #tpu.pipeline_mode<synchronous>, transform_indices = @transform_3, window_bounds = array<i64: 1, 128>}, {transform_indices = @transform_4, window_bounds = array<i64: 128, 128>}]} {
    %c0 = arith.constant 0 : index
    %c0_0 = arith.constant 0 : index
    %0 = vector.load %arg1[%c0, %c0_0] : memref<128x256xbf16, #tpu.memory_space<vmem>>, vector<128x256xbf16>
    %c0_1 = arith.constant 0 : index
    %c0_2 = arith.constant 0 : index
    %1 = vector.load %arg2[%c0_1, %c0_2] : memref<256x128xbf16, #tpu.memory_space<vmem>>, vector<256x128xbf16>
    %cst = arith.constant dense<0.000000e+00> : vector<128x128xf32>
    %2 = tpu.matmul %0, %1, %cst {dimension_numbers = #tpu.dot_dimension_numbers<[1], [0], [0], [1], [0, 0, 1, 1], [], []>} : vector<128x256xbf16>, vector<256x128xbf16>, vector<128x128xf32> -> vector<128x128xf32>
    %c0_3 = arith.constant 0 : index
    %c0_4 = arith.constant 0 : index
    %3 = vector.load %arg3[%c0_3, %c0_4] : memref<1x128xf32, #tpu.memory_space<vmem>>, vector<1x128xf32>
    %4 = vector.broadcast %3 : vector<1x128xf32> to vector<128x128xf32>
    %5 = arith.mulf %2, %4 : vector<128x128xf32>
    %c0_5 = arith.constant 0 : index
    %c0_6 = arith.constant 0 : index
    %6 = vector.load %arg4[%c0_5, %c0_6] : memref<1x128xf32, #tpu.memory_space<vmem>>, vector<1x128xf32>
    %7 = vector.broadcast %6 : vector<1x128xf32> to vector<128x128xf32>
    %8 = arith.addf %5, %7 : vector<128x128xf32>
    %cst_7 = arith.constant 0.000000e+00 : f32
    %9 = vector.broadcast %cst_7 : f32 to vector<128x128xf32>
    %10 = arith.maximumf %8, %9 : vector<128x128xf32>
    %c0_8 = arith.constant 0 : index
    %c0_9 = arith.constant 0 : index
    %11 = vector.load %arg5[%c0_8, %c0_9] : memref<128x128xf32, #tpu.memory_space<vmem>>, vector<128x128xf32>
    tpu.vector_store %arg5[%c0_8, %c0_9], %10 {strides = array<i32>} : memref<128x128xf32, #tpu.memory_space<vmem>>, vector<128x128xf32>,
    return
  }
  func.func @transform_0(%arg0: i32) -> (i32, i32) {
    %c0_i32 = arith.constant 0 : i32
    %c0_i32_0 = arith.constant 0 : i32
    return %arg0, %c0_i32 : i32, i32
  }
  func.func @transform_1(%arg0: i32) -> (i32, i32) {
    %c0_i32 = arith.constant 0 : i32
    %c0_i32_0 = arith.constant 0 : i32
    %c0_i32_1 = arith.constant 0 : i32
    return %c0_i32, %c0_i32_0 : i32, i32
  }
  func.func @transform_2(%arg0: i32) -> (i32, i32) {
    %c0_i32 = arith.constant 0 : i32
    %c0_i32_0 = arith.constant 0 : i32
    %c0_i32_1 = arith.constant 0 : i32
    return %c0_i32, %c0_i32_0 : i32, i32
  }
  func.func @transform_3(%arg0: i32) -> (i32, i32) {
    %c0_i32 = arith.constant 0 : i32
    %c0_i32_0 = arith.constant 0 : i32
    %c0_i32_1 = arith.constant 0 : i32
    return %c0_i32, %c0_i32_0 : i32, i32
  }
  func.func @transform_4(%arg0: i32) -> (i32, i32) {
    %c0_i32 = arith.constant 0 : i32
    %c0_i32_0 = arith.constant 0 : i32
    return %arg0, %c0_i32 : i32, i32
  }
}

module attributes {stable_mosaic.version = 11 : i64} {
  func.func @_fused_cls_kernel(%arg0: i32, %arg1: memref<128x128xbf16, #tpu.memory_space<vmem>>, %arg2: memref<128x32xbf16, #tpu.memory_space<vmem>>, %arg3: memref<1x32xf32, #tpu.memory_space<vmem>>, %arg4: memref<1x32xf32, #tpu.memory_space<vmem>>, %arg5: memref<32x128xf32, #tpu.memory_space<vmem>>, %arg6: memref<1x128xf32, #tpu.memory_space<vmem>>, %arg7: memref<128x128xf32, #tpu.memory_space<vmem>>) attributes {dimension_semantics = [#tpu.dimension_semantics<parallel>], iteration_bounds = array<i64: 4>, scalar_prefetch = 0 : i64, scratch_operands = 0 : i64, tpu.core_type = #tpu.core_type<tc>, window_params = [{transform_indices = @transform_0, window_bounds = array<i64: 128, 128>}, {pipeline_mode = #tpu.pipeline_mode<synchronous>, transform_indices = @transform_1, window_bounds = array<i64: 128, 32>}, {pipeline_mode = #tpu.pipeline_mode<synchronous>, transform_indices = @transform_2, window_bounds = array<i64: 1, 32>}, {pipeline_mode = #tpu.pipeline_mode<synchronous>, transform_indices = @transform_3, window_bounds = array<i64: 1, 32>}, {pipeline_mode = #tpu.pipeline_mode<synchronous>, transform_indices = @transform_4, window_bounds = array<i64: 32, 128>}, {pipeline_mode = #tpu.pipeline_mode<synchronous>, transform_indices = @transform_5, window_bounds = array<i64: 1, 128>}, {transform_indices = @transform_6, window_bounds = array<i64: 128, 128>}]} {
    %c0 = arith.constant 0 : index
    %c0_0 = arith.constant 0 : index
    %0 = vector.load %arg1[%c0, %c0_0] : memref<128x128xbf16, #tpu.memory_space<vmem>>, vector<128x128xbf16>
    %c0_1 = arith.constant 0 : index
    %c0_2 = arith.constant 0 : index
    %1 = vector.load %arg2[%c0_1, %c0_2] : memref<128x32xbf16, #tpu.memory_space<vmem>>, vector<128x32xbf16>
    %cst = arith.constant dense<0.000000e+00> : vector<128x32xf32>
    %2 = tpu.matmul %0, %1, %cst {dimension_numbers = #tpu.dot_dimension_numbers<[1], [0], [0], [1], [0, 0, 1, 1], [], []>} : vector<128x128xbf16>, vector<128x32xbf16>, vector<128x32xf32> -> vector<128x32xf32>
    %c0_3 = arith.constant 0 : index
    %c0_4 = arith.constant 0 : index
    %3 = vector.load %arg3[%c0_3, %c0_4] : memref<1x32xf32, #tpu.memory_space<vmem>>, vector<1x32xf32>
    %4 = vector.broadcast %3 : vector<1x32xf32> to vector<128x32xf32>
    %5 = arith.mulf %2, %4 : vector<128x32xf32>
    %c0_5 = arith.constant 0 : index
    %c0_6 = arith.constant 0 : index
    %6 = vector.load %arg4[%c0_5, %c0_6] : memref<1x32xf32, #tpu.memory_space<vmem>>, vector<1x32xf32>
    %7 = vector.broadcast %6 : vector<1x32xf32> to vector<128x32xf32>
    %8 = arith.addf %5, %7 : vector<128x32xf32>
    %cst_7 = arith.constant 0.000000e+00 : f32
    %9 = vector.broadcast %cst_7 : f32 to vector<128x32xf32>
    %10 = arith.maximumf %8, %9 : vector<128x32xf32>
    %c0_8 = arith.constant 0 : index
    %c0_9 = arith.constant 0 : index
    %11 = vector.load %arg5[%c0_8, %c0_9] : memref<32x128xf32, #tpu.memory_space<vmem>>, vector<32x128xf32>
    %cst_10 = arith.constant dense<0.000000e+00> : vector<128x128xf32>
    %12 = tpu.matmul %10, %11, %cst_10 {dimension_numbers = #tpu.dot_dimension_numbers<[1], [0], [0], [1], [0, 0, 1, 1], [], []>} : vector<128x32xf32>, vector<32x128xf32>, vector<128x128xf32> -> vector<128x128xf32>
    %c0_11 = arith.constant 0 : index
    %c0_12 = arith.constant 0 : index
    %13 = vector.load %arg6[%c0_11, %c0_12] : memref<1x128xf32, #tpu.memory_space<vmem>>, vector<1x128xf32>
    %14 = vector.broadcast %13 : vector<1x128xf32> to vector<128x128xf32>
    %15 = arith.addf %12, %14 : vector<128x128xf32>
    %c0_13 = arith.constant 0 : index
    %c0_14 = arith.constant 0 : index
    %16 = vector.load %arg7[%c0_13, %c0_14] : memref<128x128xf32, #tpu.memory_space<vmem>>, vector<128x128xf32>
    tpu.vector_store %arg7[%c0_13, %c0_14], %15 {strides = array<i32>} : memref<128x128xf32, #tpu.memory_space<vmem>>, vector<128x128xf32>,
    return
  }
  func.func @transform_0(%arg0: i32) -> (i32, i32) {
    %c0_i32 = arith.constant 0 : i32
    %c0_i32_0 = arith.constant 0 : i32
    return %arg0, %c0_i32 : i32, i32
  }
  func.func @transform_1(%arg0: i32) -> (i32, i32) {
    %c0_i32 = arith.constant 0 : i32
    %c0_i32_0 = arith.constant 0 : i32
    %c0_i32_1 = arith.constant 0 : i32
    return %c0_i32, %c0_i32_0 : i32, i32
  }
  func.func @transform_2(%arg0: i32) -> (i32, i32) {
    %c0_i32 = arith.constant 0 : i32
    %c0_i32_0 = arith.constant 0 : i32
    %c0_i32_1 = arith.constant 0 : i32
    return %c0_i32, %c0_i32_0 : i32, i32
  }
  func.func @transform_3(%arg0: i32) -> (i32, i32) {
    %c0_i32 = arith.constant 0 : i32
    %c0_i32_0 = arith.constant 0 : i32
    %c0_i32_1 = arith.constant 0 : i32
    return %c0_i32, %c0_i32_0 : i32, i32
  }
  func.func @transform_4(%arg0: i32) -> (i32, i32) {
    %c0_i32 = arith.constant 0 : i32
    %c0_i32_0 = arith.constant 0 : i32
    %c0_i32_1 = arith.constant 0 : i32
    return %c0_i32, %c0_i32_0 : i32, i32
  }
  func.func @transform_5(%arg0: i32) -> (i32, i32) {
    %c0_i32 = arith.constant 0 : i32
    %c0_i32_0 = arith.constant 0 : i32
    %c0_i32_1 = arith.constant 0 : i32
    return %c0_i32, %c0_i32_0 : i32, i32
  }
  func.func @transform_6(%arg0: i32) -> (i32, i32) {
    %c0_i32 = arith.constant 0 : i32
    %c0_i32_0 = arith.constant 0 : i32
    return %arg0, %c0_i32 : i32, i32
  }
}

</mosaic_0001>

<bundles_post_ra>
// kernel: simple_net5_forward.10
= control target key start
LH: loop header
LB: loop body
LE: loop exit
PB: predicated region body
PF: predicated region fallthrough
CT: control target
= control target key end

     0   :  { %9 = vsyncpa [#allocation3], 0  ;;  %s1049_s0 = inlined_call_operand.vmem [shape: bf16[512,27], index: 0, kind: input, shape index: {}]   ;;  %s1050_s1 = inlined_call_operand.hbm [shape: bf16[27,128], index: 1, kind: input, shape index: {}]   ;;  %s1051_s2 = inlined_call_operand.hbm [shape: f32[1,128], index: 2, kind: input, shape index: {}]   ;;  %s1052_s3 = inlined_call_operand.hbm [shape: f32[1,128], index: 3, kind: input, shape index: {}]   ;;  %s1053_s4 = inlined_call_operand.vmem [shape: f32[512,128], index: 4, kind: output, shape index: {}]  }
   0x1   :  { %10 = vsyncpa [#allocation5], 0  ;;  %s861_s15 = smov 0  }
   0x2 LB: > { %s830_s16 = smov [#allocation4]   ;;  %s607_s18 = sadd.s32 4294967295, %s828_s15   ;;  %s828_s15 = sphi %s861_s15, %s16_s15  }
   0x3   : > { %s162_s17 = sshll.u32 %s830_s16, 4  ;;  %p609_p0 = scmp.ge.s32.totalorder %s828_s15, 1  ;;  %s163_s17 = int_to_ptr.vmem [resolvable:$true] %s162_s17 }
   0x4   : > { %p136_p1 = scmp.lt.s32.totalorder %s828_s15, 5  ;;  %p871_p2 = scmp.eq.s32.totalorder %s607_s18, 0 }
   0x5   : > { %s831_s21 = smov [#allocation2]   ;;  %s832_s24 = smov [#allocation6]  }
   0x6   : > { %s1057_s19 = scalar_select %p871_p2, 1, 0 }
   0x7   : > { %p875_p3 = pnand %p609_p0, %p136_p1  ;;  %s148_s22 = sshll.u32 %s831_s21, 4  ;;  %s887_s22 = int_to_ptr.vmem [resolvable:$true] %s148_s22 }
   0x8   : > { %s173_s25 = sshll.u32 %s832_s24, 4  ;;  %s730_s28 = scalar_lea.hbm %s1051_s2, 16  ;;  %s889_s25 = int_to_ptr.vmem [resolvable:$true] %s173_s25 }
   0x9   : > { %s1058_s20 = scalar_select %p875_p3, 1, 0 }
   0xa   : > { %p690_p4 = pneg %p875_p3  ;;  %p731_p6 = scmp.ne.s32.totalorder %s1051_s2, %s730_s28 }
   0xb   : > { %p737_p10 = scmp.lt.u32.totalorder %s730_s28, %s1051_s2 }
   0xc   : > { %p883_p5 = pnand %p871_p2, %p690_p4 }
   0xe   : > { %p899_p7 = pneg %p883_p5 }
  0x10   : > { %p733_p8 = pnand %p899_p7, %p731_p6 }
  0x12   : > { %p734_p9 = pneg %p733_p8 }
  0x14   : > { %p739_p11 = pnand %p737_p10, %p734_p9 }
  0x16   : > { %742 = shalt.err (!%p739_p11)
}
  0x17   : > { %s743_s8 = scalar_lea.vmem %s163_s17, 16  ;;  %s750_s9 = scalar_lea.vmem %s163_s17, 32 }
  0x18   : > { %p744_p12 = scmp.ne.s32.totalorder %s163_s17, %s743_s8  ;;  %p751_p1 = scmp.lt.s32.totalorder %s163_s17, %s163_s17 }
  0x19   : > { %p752_p4 = scmp.lt.s32.totalorder %s750_s9, %s743_s8 }
  0x1a   : > { %p746_p13 = pnand %p744_p12, %p899_p7 }
  0x1b   : > { %p753_p2 = por %p752_p4, %p751_p1 }
  0x1c   : > { %p747_p0 = pneg %p746_p13 }
  0x1e   : > { %p754_p3 = pnand %p753_p2, %p747_p0 }
  0x20   : > { %757 = shalt.err (!%p754_p3)
}
  0x21   : > { %696 = dma.hbm_to_vmem [thread:$0]  (!%p883_p5), %s1051_s2, 16, %s163_s17, [#allocation5]  }
  0x22   : > { %s758_s14 = scalar_lea.hbm %s1050_s1, 256 }
  0x23   : > { %p759_p6 = scmp.ne.s32.totalorder %s1050_s1, %s758_s14  ;;  %p765_p2 = scmp.lt.u32.totalorder %s758_s14, %s1050_s1 }
  0x25   : > { %p761_p8 = pnand %p759_p6, %p899_p7 }
  0x27   : > { %p762_p9 = pneg %p761_p8 }
  0x29   : > { %p767_p3 = pnand %p765_p2, %p762_p9 }
  0x2b   : > { %770 = shalt.err (!%p767_p3)
}
  0x2c   : > { %s771_s17 = scalar_lea.vmem %s887_s22, 256  ;;  %p779_p13 = scmp.lt.s32.totalorder %s887_s22, %s887_s22 }
  0x2d   : > { %p772_p10 = scmp.ne.s32.totalorder %s887_s22, %s771_s17  ;;  %p780_p0 = scmp.lt.s32.totalorder %s771_s17, %s771_s17 }
  0x2f   : > { %p774_p11 = pnand %p772_p10, %p899_p7  ;;  %p781_p1 = por %p780_p0, %p779_p13 }
  0x31   : > { %p775_p12 = pneg %p774_p11 }
  0x33   : > { %p782_p4 = pnand %p781_p1, %p775_p12 }
  0x35   : > { %785 = shalt.err (!%p782_p4)
}
  0x36   : > { %s833_s27 = smov 64   ;;  %s834_s28 = smov 4  }
  0x37   : > { %693 = dma.hbm_to_vmem [thread:$0]  (!%p883_p5), %s1050_s1, 256, %s887_s22, [#allocation3], %s833_s27, %s833_s27, %s834_s28  }
  0x38   : > { %s786_s8 = scalar_lea.hbm %s1052_s3, 16 }
  0x39   : > { %p787_p6 = scmp.ne.s32.totalorder %s1052_s3, %s786_s8  ;;  %p793_p2 = scmp.lt.u32.totalorder %s786_s8, %s1052_s3 }
  0x3b   : > { %p789_p8 = pnand %p787_p6, %p899_p7 }
  0x3d   : > { %p790_p9 = pneg %p789_p8 }
  0x3f   : > { %p795_p3 = pnand %p793_p2, %p790_p9 }
  0x41   : > { %798 = shalt.err (!%p795_p3)
}
  0x42   : > { %s799_s22 = scalar_lea.vmem %s889_s25, 16  ;;  %s806_s13 = scalar_lea.vmem %s889_s25, 32 }
  0x43   : > { %p800_p10 = scmp.ne.s32.totalorder %s889_s25, %s799_s22  ;;  %p807_p13 = scmp.lt.s32.totalorder %s889_s25, %s889_s25 }
  0x44   : > { %p808_p0 = scmp.lt.s32.totalorder %s806_s13, %s799_s22 }
  0x45   : > { %p802_p11 = pnand %p800_p10, %p899_p7 }
  0x46   : > { %p809_p1 = por %p808_p0, %p807_p13 }
  0x47   : > { %p803_p12 = pneg %p802_p11 }
  0x49   : > { %p810_p4 = pnand %p809_p1, %p803_p12 }
  0x4b   : > { %813 = shalt.err (!%p810_p4)
}
  0x4c   : > { %699 = dma.hbm_to_vmem [thread:$0]  (!%p883_p5), %s1052_s3, 16, %s889_s25, [#allocation5]  }
  0x4d   : > { %p1061_p6 = scmp.ne.s32.totalorder %s1058_s20, 0 }
  0x4e   : > { %p1062_p7 = scmp.ne.s32.totalorder (!%p1061_p6), %s1057_s19, 0 }
  0x4f   : > { %195 = sbr.rel (%p1061_p6) target bundleno = 330 (0x14a), region = 36 }
  0x56   : > { %819 = dma.done.wait (%p1062_p7), [#allocation3], 256  }
  0x57   : > { %821 = vsyncadd (%p1062_p7), [#allocation3], 4294967040 }
  0x58   : > { %823 = dma.done.wait (%p1062_p7), [#allocation5], 32  }
  0x59   : > { %825 = vsyncadd (%p1062_p7), [#allocation5], 4294967264  ;;  %s618_s23 = sshll.u32 %s607_s18, 4  ;;  %vm338_vm0 = vcmask 1044480   ;;  %vm339_vm1 = vcmask 1045504   ;;  %v835_v0 = vmov 65535  }
  0x5a   : > { %p230_p5 = scmp.lt.s32.totalorder %s618_s23, 63  ;;  %v340_v1 = vsel %vm338_vm0, 4294967295, %v835_v0  ;;  %vm313_vm2 = vcmask 220160   ;;  %v720_v2 = vld [vmem:[#allocation2] sm:$0xff]   ;;  %v721_v4 = vld [vmem:[#allocation2 + $0x8] sm:$0x3f]  }
  0x5b   : > { %v341_v3 = vsel %vm339_vm1, %v340_v1, 0  ;;  %654 = vmatprep.subr.bf16.mxu0 %v720_v2  ;;  %674 = vmatprep.subr.bf16.mxu1 %v720_v2  ;;  %v988_v14 = vld [vmem:[#allocation4] ss:$0 sm:$0xff]  ;;  %v990_v16 = vld [vmem:[#allocation6] ss:$0 sm:$0xff] }
  0x5c   : > { %s1064_s23 = smov (!%p230_p5, %s618_s23), 63  ;;  %655 = vmatpush3.bf16.msra.mxu0 %v720_v2  ;;  %676 = vmatpush3.bf16.msra.mxu1 %v720_v2  ;;  %v343_v6 = vand.u32 %v721_v4, %v341_v3 }
  0x5d   : > { %s619_s20 = sshll.u32 %s1064_s23, 2  ;;  %s621_s18 = sshll.u32 %s1064_s23, 3 }
  0x5e   : > { %s233_s21 = scalar_lea.vmem %s1049_s0, %s619_s20  ;;  %656 = vmatprep.subr.bf16.mxu0 %v343_v6  ;;  %675 = vmatprep.subr.bf16.mxu1 %v343_v6  ;;  %s1004_s26 = scalar_lea.vmem %s1053_s4, %s621_s18 }
  0x5f   : > { %v722_v5 = vld [vmem:[%s233_s21] sm:$0xff]   ;;  %v724_v8 = vld [vmem:[%s233_s21 + $0x8] sm:$0xff]   ;;  %v726_v10 = vld [vmem:[%s233_s21 + $0x10] sm:$0xff]  }
  0x60   : > { %v723_v7 = vld [vmem:[%s233_s21 + $0x20] sm:$0xff]   ;;  %658 = vmatprep.mubr.msk.bf16.mxu0 %vm313_vm2, %v722_v5  ;;  %v725_v9 = vld [vmem:[%s233_s21 + $0x28] sm:$0xff]   ;;  %657 = vmatpush3.bf16.msra.mxu0 %v343_v6  ;;  %v727_v11 = vld [vmem:[%s233_s21 + $0x30] sm:$0xff]  }
  0x61   : > { %666 = vmatprep.mubr.msk.bf16.mxu1 %vm313_vm2, %v723_v7  ;;  %677 = vmatpush3.bf16.msra.mxu1 %v343_v6  ;;  %v728_v12 = vld [vmem:[%s233_s21 + $0x18] sm:$0xff]  }
  0x62   : > { %v729_v13 = vld [vmem:[%s233_s21 + $0x38] sm:$0xff]  }
  0x63   : > { %659 = vmatmul.mubr.msk.bf16.vlgmr.msra.gmra.mrb[0].mxu0 %vm313_vm2, %v724_v8 }
  0x64   : > { %667 = vmatmul.mubr.msk.bf16.vlgmr.msra.gmra.mrb[0].mxu1 %vm313_vm2, %v725_v9  ;;  %662 = vmatprep.mubr.msk.bf16.mxu0 %vm313_vm2, %v726_v10 }
  0x65   : > { %670 = vmatprep.mubr.msk.bf16.mxu1 %vm313_vm2, %v727_v11 }
  0x6b   : > { %663 = vmatmul.mubr.msk.bf16.gmra.mrb[4].mxu0 %vm313_vm2, %v728_v12 }
  0x6c   : > { %671 = vmatmul.mubr.msk.bf16.gmra.mrb[4].mxu1 %vm313_vm2, %v729_v13 }
 0x136   : > { %v660_v15 = vpop.f32.mrb[0].mxu0 }
 0x137   : > { %v668_v17 = vpop.f32.mrb[0].mxu1  ;;  %v451_v18 = vmul.f32 %v660_v15, %v988_v14  ;;  %v379_v20 = vpop.f32.mrb[1].mxu0 }
 0x138   : > { %v459_v19 = vmul.f32 %v668_v17, %v988_v14  ;;  %v411_v21 = vpop.f32.mrb[1].mxu1  ;;  %v449_v22 = vmul.f32 %v988_v14, %v379_v20  ;;  %v661_v24 = vpop.f32.mrb[2].mxu0 }
 0x139   : > { %v457_v23 = vmul.f32 %v988_v14, %v411_v21  ;;  %v669_v25 = vpop.f32.mrb[2].mxu1  ;;  %v474_v26 = vadd.f32 %v990_v16, %v451_v18  ;;  %v452_v28 = vmul.f32 %v661_v24, %v988_v14  ;;  %v382_v30 = vpop.f32.mrb[3].mxu0 }
 0x13a   : > { %v482_v27 = vadd.f32 %v990_v16, %v459_v19  ;;  %v460_v29 = vmul.f32 %v669_v25, %v988_v14  ;;  %v414_v31 = vpop.f32.mrb[3].mxu1  ;;  %v472_v32 = vadd.f32 %v990_v16, %v449_v22  ;;  %v450_v34 = vmul.f32 %v988_v14, %v382_v30 }
 0x13b   : > { %v480_v33 = vadd.f32 %v990_v16, %v457_v23  ;;  %v458_v35 = vmul.f32 %v988_v14, %v414_v31  ;;  %v490_v36 = vmax.f32 %v474_v26, 0.0  ;;  %v475_v38 = vadd.f32 %v990_v16, %v452_v28 }
 0x13c   : > { %v498_v37 = vmax.f32 %v482_v27, 0.0  ;;  %v483_v39 = vadd.f32 %v990_v16, %v460_v29  ;;  %v488_v40 = vmax.f32 %v472_v32, 0.0  ;;  %v473_v42 = vadd.f32 %v990_v16, %v450_v34 }
 0x13d   : > { %v496_v41 = vmax.f32 %v480_v33, 0.0  ;;  %v481_v43 = vadd.f32 %v990_v16, %v458_v35  ;;  %506 = vst [vmem:[%s1004_s26 + $0x10] sm:$0xff] %v490_v36  ;;  %v491_v44 = vmax.f32 %v475_v38, 0.0 }
 0x13e   : > { %514 = vst [vmem:[%s1004_s26 + $0x50] sm:$0xff] %v498_v37  ;;  %v499_v45 = vmax.f32 %v483_v39, 0.0  ;;  %504 = vst [vmem:[%s1004_s26] sm:$0xff] %v488_v40  ;;  %v489_v46 = vmax.f32 %v473_v42, 0.0  ;;  %v664_v48 = vpop.f32.mrb[4].mxu0 }
 0x13f   : > { %512 = vst [vmem:[%s1004_s26 + $0x40] sm:$0xff] %v496_v41  ;;  %v497_v47 = vmax.f32 %v481_v43, 0.0  ;;  %v672_v49 = vpop.f32.mrb[4].mxu1  ;;  %507 = vst [vmem:[%s1004_s26 + $0x18] sm:$0xff] %v491_v44  ;;  %v455_v50 = vmul.f32 %v664_v48, %v988_v14  ;;  %v395_v52 = vpop.f32.mrb[5].mxu0 }
 0x140   : > { %515 = vst [vmem:[%s1004_s26 + $0x58] sm:$0xff] %v499_v45  ;;  %v463_v51 = vmul.f32 %v672_v49, %v988_v14  ;;  %v427_v53 = vpop.f32.mrb[5].mxu1  ;;  %505 = vst [vmem:[%s1004_s26 + $0x8] sm:$0xff] %v489_v46  ;;  %v453_v54 = vmul.f32 %v988_v14, %v395_v52  ;;  %v665_v56 = vpop.f32.mrb[6].mxu0 }
 0x141   : > { %513 = vst [vmem:[%s1004_s26 + $0x48] sm:$0xff] %v497_v47  ;;  %v461_v55 = vmul.f32 %v988_v14, %v427_v53  ;;  %v673_v57 = vpop.f32.mrb[6].mxu1  ;;  %v478_v58 = vadd.f32 %v990_v16, %v455_v50  ;;  %v456_v60 = vmul.f32 %v665_v56, %v988_v14  ;;  %v398_v62 = vpop.f32.mrb[7].mxu0 }
 0x142   : > { %v486_v59 = vadd.f32 %v990_v16, %v463_v51  ;;  %v464_v61 = vmul.f32 %v673_v57, %v988_v14  ;;  %v430_v63 = vpop.f32.mrb[7].mxu1  ;;  %v476_v0 = vadd.f32 %v990_v16, %v453_v54  ;;  %v454_v2 = vmul.f32 %v988_v14, %v398_v62 }
 0x143   : > { %v484_v1 = vadd.f32 %v990_v16, %v461_v55  ;;  %v462_v3 = vmul.f32 %v988_v14, %v430_v63  ;;  %v494_v4 = vmax.f32 %v478_v58, 0.0  ;;  %v479_v6 = vadd.f32 %v990_v16, %v456_v60 }
 0x144   : > { %v502_v5 = vmax.f32 %v486_v59, 0.0  ;;  %v487_v7 = vadd.f32 %v990_v16, %v464_v61  ;;  %v492_v8 = vmax.f32 %v476_v0, 0.0  ;;  %v477_v10 = vadd.f32 %v990_v16, %v454_v2 }
 0x145   : > { %v500_v9 = vmax.f32 %v484_v1, 0.0  ;;  %v485_v11 = vadd.f32 %v990_v16, %v462_v3  ;;  %510 = vst [vmem:[%s1004_s26 + $0x30] sm:$0xff] %v494_v4  ;;  %v495_v12 = vmax.f32 %v479_v6, 0.0 }
 0x146   : > { %518 = vst [vmem:[%s1004_s26 + $0x70] sm:$0xff] %v502_v5  ;;  %v503_v13 = vmax.f32 %v487_v7, 0.0  ;;  %508 = vst [vmem:[%s1004_s26 + $0x20] sm:$0xff] %v492_v8  ;;  %v493_v14 = vmax.f32 %v477_v10, 0.0 }
 0x147   : > { %516 = vst [vmem:[%s1004_s26 + $0x60] sm:$0xff] %v500_v9  ;;  %v501_v15 = vmax.f32 %v485_v11, 0.0  ;;  %511 = vst [vmem:[%s1004_s26 + $0x38] sm:$0xff] %v495_v12 }
 0x148   : > { %519 = vst [vmem:[%s1004_s26 + $0x78] sm:$0xff] %v503_v13  ;;  %509 = vst [vmem:[%s1004_s26 + $0x28] sm:$0xff] %v493_v14 }
 0x149   : > { %517 = vst [vmem:[%s1004_s26 + $0x68] sm:$0xff] %v501_v15 }
 0x14a PF: > { %s16_s15 = sadd.s32 1, %s828_s15  }
 0x14b   : > { %p13_p8 = scmp.ge.s32.totalorder %s16_s15, 6  }
 0x14d   :  { %15 = sbr.rel (!%p13_p8) target bundleno = 2 (0x2), region = 79 }
 0x154   :  { %542 = vsyncpa [#allocation3], 1 }
 0x155   :  { %544 = vsyncpa [#allocation3 + $0x1], 1 }
 0x156   :  { %545 = vsyncpa [#allocation5], 1 }

// kernel: simple_net5_forward.11
= control target key start
LH: loop header
LB: loop body
LE: loop exit
PB: predicated region body
PF: predicated region fallthrough
CT: control target
= control target key end

     0   :  { %9 = vsyncpa [#allocation3], 0  ;;  %s1190_s0 = inlined_call_operand.vmem [shape: bf16[128,288], index: 0, kind: input, shape index: {}]   ;;  %s1191_s1 = inlined_call_operand.hbm [shape: bf16[288,128], index: 1, kind: input, shape index: {}]   ;;  %s1192_s2 = inlined_call_operand.hbm [shape: f32[1,128], index: 2, kind: input, shape index: {}]   ;;  %s1193_s3 = inlined_call_operand.hbm [shape: f32[1,128], index: 3, kind: input, shape index: {}]   ;;  %s1194_s4 = inlined_call_operand.vmem [shape: f32[128,128], index: 4, kind: output, shape index: {}]  }
   0x1   :  { %10 = vsyncpa [#allocation5], 0  ;;  %s941_s15 = smov [#allocation4]   ;;  %s942_s17 = smov [#allocation2]  }
   0x2   :  { %s31_s16 = sshll.u32 %s941_s15, 4  ;;  %s18_s18 = sshll.u32 %s942_s17, 4  ;;  %s32_s16 = int_to_ptr.vmem [resolvable:$true] %s31_s16  ;;  %s971_s18 = int_to_ptr.vmem [resolvable:$true] %s18_s18 }
   0x3   :  { %s871_s21 = scalar_lea.hbm %s1192_s2, 16 }
   0x4   :  { %p872_p0 = scmp.ne.s32.totalorder %s1192_s2, %s871_s21  ;;  %p875_p1 = scmp.lt.u32.totalorder %s871_s21, %s1192_s2 }
   0x6   :  { %p877_p2 = pnand %p875_p1, %p872_p0 }
   0x8   :  { %880 = shalt.err (!%p877_p2)
}
   0x9   :  { %s881_s26 = scalar_lea.vmem %s32_s16, 16  ;;  %s885_s27 = scalar_lea.vmem %s32_s16, 32 }
   0xa   :  { %p882_p3 = scmp.ne.s32.totalorder %s32_s16, %s881_s26  ;;  %p886_p4 = scmp.lt.s32.totalorder %s32_s16, %s32_s16 }
   0xb   :  { %p887_p5 = scmp.lt.s32.totalorder %s885_s27, %s881_s26 }
   0xd   :  { %p888_p6 = por %p887_p5, %p886_p4 }
   0xf   :  { %p889_p7 = pnand %p888_p6, %p882_p3 }
  0x11   :  { %892 = shalt.err (!%p889_p7)
}
  0x12   :  { %34 = dma.hbm_to_vmem [thread:$0]  %s1192_s2, 16, %s32_s16, [#allocation5]  }
  0x13   :  { %s893_s6 = scalar_lea.hbm %s1191_s1, 2304 }
  0x14   :  { %p894_p8 = scmp.ne.s32.totalorder %s1191_s1, %s893_s6  ;;  %p897_p9 = scmp.lt.u32.totalorder %s893_s6, %s1191_s1 }
  0x16   :  { %p899_p10 = pnand %p897_p9, %p894_p8 }
  0x18   :  { %902 = shalt.err (!%p899_p10)
}
  0x19   :  { %s903_s11 = scalar_lea.vmem %s971_s18, 2304  ;;  %p908_p12 = scmp.lt.s32.totalorder %s971_s18, %s971_s18 }
  0x1a   :  { %p904_p11 = scmp.ne.s32.totalorder %s971_s18, %s903_s11  ;;  %p909_p13 = scmp.lt.s32.totalorder %s903_s11, %s903_s11 }
  0x1c   :  { %p910_p0 = por %p909_p13, %p908_p12 }
  0x1e   :  { %p911_p1 = pnand %p910_p0, %p904_p11 }
  0x20   :  { %914 = shalt.err (!%p911_p1)
}
  0x21   :  { %s943_s2 = smov 64   ;;  %s944_s12 = smov 4  }
  0x22   :  { %24 = dma.hbm_to_vmem [thread:$0]  %s1191_s1, 2304, %s971_s18, [#allocation3], %s943_s2, %s943_s2, %s944_s12  }
  0x23   :  { %s945_s15 = smov [#allocation6]   ;;  %s915_s20 = scalar_lea.hbm %s1193_s3, 16 }
  0x24   :  { %s41_s16 = sshll.u32 %s945_s15, 4  ;;  %p916_p2 = scmp.ne.s32.totalorder %s1193_s3, %s915_s20  ;;  %s42_s16 = int_to_ptr.vmem [resolvable:$true] %s41_s16 }
  0x25   :  { %p919_p3 = scmp.lt.u32.totalorder %s915_s20, %s1193_s3 }
  0x27   :  { %p921_p4 = pnand %p919_p3, %p916_p2 }
  0x29   :  { %924 = shalt.err (!%p921_p4)
}
  0x2a   :  { %s925_s25 = scalar_lea.vmem %s42_s16, 16  ;;  %s929_s1 = scalar_lea.vmem %s42_s16, 32 }
  0x2b   :  { %p926_p5 = scmp.ne.s32.totalorder %s42_s16, %s925_s25  ;;  %p930_p6 = scmp.lt.s32.totalorder %s42_s16, %s42_s16 }
  0x2c   :  { %p931_p7 = scmp.lt.s32.totalorder %s929_s1, %s925_s25 }
  0x2e   :  { %p932_p8 = por %p931_p7, %p930_p6 }
  0x30   :  { %p933_p9 = pnand %p932_p8, %p926_p5 }
  0x32   :  { %936 = shalt.err (!%p933_p9)
}
  0x33   :  { %44 = dma.hbm_to_vmem [thread:$0]  %s1193_s3, 16, %s42_s16, [#allocation5]  }
  0x34   :  { %937 = dma.done.wait [#allocation3], 2304  }
  0x35   :  { %938 = vsyncadd [#allocation3], 4294964992 }
  0x36   :  { %939 = dma.done.wait [#allocation5], 32  }
  0x37   :  { %940 = vsyncadd [#allocation5], 4294967264  ;;  %v821_v0 = vld [vmem:[#allocation2 + $0x40] sm:$0xff]   ;;  %v823_v2 = vld [vmem:[#allocation2 + $0x48] sm:$0xff]   ;;  %vm351_vm0 = vcmask 261120  }
  0x38   :  { %v822_v1 = vld [vmem:[#allocation2] sm:$0xff]   ;;  %706 = vmatprep.subr.bf16.mxu0 %v821_v0  ;;  %800 = vmatprep.subr.bf16.mxu1 %v821_v0  ;;  %v824_v3 = vld [vmem:[#allocation2 + $0x8] sm:$0xff]   ;;  %v825_v4 = vld [vmem:[#allocation2 + $0x50] sm:$0xff]  }
  0x39   :  { %707 = vmatpush3.bf16.msra.mxu0 %v822_v1  ;;  %808 = vmatpush3.bf16.msra.mxu1 %v822_v1  ;;  %v826_v5 = vld [vmem:[#allocation2 + $0x10] sm:$0xff]   ;;  %v827_v6 = vld [vmem:[#allocation2 + $0x58] sm:$0xff]   ;;  %v829_v8 = vld [vmem:[#allocation2 + $0x60] sm:$0xff]  }
  0x3a   :  { %708 = vmatprep.subr.bf16.mxu0 %v823_v2  ;;  %801 = vmatprep.subr.bf16.mxu1 %v823_v2  ;;  %v828_v7 = vld [vmem:[#allocation2 + $0x18] sm:$0xff]   ;;  %v830_v9 = vld [vmem:[#allocation2 + $0x20] sm:$0xff]   ;;  %v831_v10 = vld [vmem:[#allocation2 + $0x68] sm:$0xff]  }
  0x3b   :  { %v839_v11 = vld [vmem:[%s1190_s0 + $0x4] ss:$12 sps:$4 sm:$0xff]   ;;  %v842_v12 = vld [vmem:[%s1190_s0 + $0x94] ss:$12 sps:$4 sm:$0xff]   ;;  %v832_v13 = vld [vmem:[#allocation2 + $0x28] sm:$0xff]  }
  0x3c   :  { %v833_v14 = vld [vmem:[#allocation2 + $0x70] sm:$0xff]   ;;  %408 = vmatprep.mubr.bf16.mxu0 %v839_v11  ;;  %456 = vmatprep.mubr.bf16.mxu1 %v842_v12  ;;  %v835_v16 = vld [vmem:[#allocation2 + $0x78] sm:$0xff]   ;;  %v837_v18 = vld [vmem:[%s1190_s0] ss:$12 sps:$4 sm:$0xff]  }
  0x3d   :  { %709 = vmatpush3.bf16.msra.mxu0 %v824_v3  ;;  %809 = vmatpush3.bf16.msra.mxu1 %v824_v3  ;;  %v834_v15 = vld [vmem:[#allocation2 + $0x30] sm:$0xff]   ;;  %v836_v17 = vld [vmem:[#allocation2 + $0x38] sm:$0xff]   ;;  %v843_v19 = vld [vmem:[#allocation2 + $0x80] sm:$0xff]  }
  0x3e   :  { %710 = vmatprep.subr.bf16.mxu0 %v825_v4  ;;  %802 = vmatprep.subr.bf16.mxu1 %v825_v4  ;;  %v840_v20 = vld [vmem:[%s1190_s0 + $0x90] ss:$12 sps:$4 sm:$0xff]   ;;  %v846_v22 = vld [vmem:[%s1190_s0 + $0xac] ss:$12 sps:$4 sm:$0xff]   ;;  %v849_v25 = vld [vmem:[%s1190_s0 + $0xa8] ss:$12 sps:$4 sm:$0xff]  }
  0x3f   :  { %v844_v21 = vld [vmem:[%s1190_s0 + $0x1c] ss:$12 sps:$4 sm:$0xff]   ;;  %v848_v24 = vld [vmem:[%s1190_s0 + $0x18] ss:$12 sps:$4 sm:$0xff]   ;;  %v851_v26 = vld [vmem:[%s1190_s0 + $0x34] ss:$12 sps:$4 sm:$0xff]  }
  0x40   :  { %v850_v23 = vld [vmem:[#allocation2 + $0x88] sm:$0xff]   ;;  %v854_v28 = vld [vmem:[%s1190_s0 + $0x30] ss:$12 sps:$4 sm:$0xff]   ;;  %v858_v31 = vld [vmem:[%s1190_s0 + $0x38] ss:$12 sps:$4 sm:$0xff]  }
  0x41   :  { %711 = vmatpush3.bf16.msra.mxu0 %v826_v5  ;;  %810 = vmatpush3.bf16.msra.mxu1 %v826_v5  ;;  %v853_v27 = vld [vmem:[%s1190_s0 + $0x8] ss:$12 sps:$4 sm:$0xff]   ;;  %v855_v29 = vld [vmem:[%s1190_s0 + $0x20] ss:$12 sps:$4 sm:$0xff]   ;;  %v860_v33 = vld [vmem:[%s1190_s0 + $0x50] ss:$12 sps:$4 sm:$0xff]  }
  0x42   :  { %712 = vmatprep.subr.bf16.mxu0 %v827_v6  ;;  %803 = vmatprep.subr.bf16.mxu1 %v827_v6  ;;  %v856_v30 = vld [vmem:[%s1190_s0 + $0x4c] ss:$12 sps:$4 sm:$0xff]   ;;  %v859_v32 = vld [vmem:[%s1190_s0 + $0x48] ss:$12 sps:$4 sm:$0xff]   ;;  %v861_v34 = vld [vmem:[%s1190_s0 + $0x64] ss:$12 sps:$4 sm:$0xff]  }
  0x43   :  { %v863_v35 = vld [vmem:[%s1190_s0 + $0x68] ss:$12 sps:$4 sm:$0xff]   ;;  %v864_v36 = vld [vmem:[%s1190_s0 + $0x60] ss:$12 sps:$4 sm:$0xff]   ;;  %v868_v39 = vld [vmem:[%s1190_s0 + $0x98] ss:$12 sps:$4 sm:$0xff]  }
  0x44   :  { %v865_v37 = vld [vmem:[%s1190_s0 + $0x80] ss:$12 sps:$4 sm:$0xff]   ;;  %v866_v38 = vld [vmem:[%s1190_s0 + $0x7c] ss:$12 sps:$4 sm:$0xff]   ;;  %v869_v40 = vld [vmem:[%s1190_s0 + $0x78] ss:$12 sps:$4 sm:$0xff]  }
  0x45   :  { %713 = vmatpush3.bf16.msra.mxu0 %v828_v7  ;;  %811 = vmatpush3.bf16.msra.mxu1 %v828_v7  ;;  %v870_v41 = vld [vmem:[%s1190_s0 + $0xb0] ss:$12 sps:$4 sm:$0xff]  }
  0x46   :  { %714 = vmatprep.subr.bf16.mxu0 %v829_v8  ;;  %804 = vmatprep.subr.bf16.mxu1 %v829_v8  ;;  %v1102_v4 = vld [vmem:[#allocation4] ss:$0 sm:$0xff]  ;;  %v1104_v8 = vld [vmem:[#allocation6] ss:$0 sm:$0xff] }
  0x49   :  { %715 = vmatpush3.bf16.msra.mxu0 %v830_v9  ;;  %812 = vmatpush3.bf16.msra.mxu1 %v830_v9 }
  0x4a   :  { %716 = vmatprep.subr.bf16.mxu0 %v831_v10  ;;  %805 = vmatprep.subr.bf16.mxu1 %v831_v10 }
  0x4d   :  { %717 = vmatpush3.bf16.msra.mxu0 %v832_v13  ;;  %813 = vmatpush3.bf16.msra.mxu1 %v832_v13 }
  0x4e   :  { %718 = vmatprep.subr.bf16.mxu0 %v833_v14  ;;  %806 = vmatprep.subr.bf16.mxu1 %v833_v14 }
  0x51   :  { %719 = vmatpush3.bf16.msra.mxu0 %v834_v15  ;;  %814 = vmatpush3.bf16.msra.mxu1 %v834_v15 }
  0x52   :  { %720 = vmatprep.subr.bf16.mxu0 %v835_v16  ;;  %807 = vmatprep.subr.bf16.mxu1 %v835_v16 }
  0x55   :  { %721 = vmatpush3.bf16.msra.mxu0 %v836_v17  ;;  %815 = vmatpush3.bf16.msra.mxu1 %v836_v17 }
  0x56   :  { %780 = vmatprep.subr.bf16.mxu1 %v843_v19 }
  0x58   :  { %409 = vmatmul.mubr.bf16.vlgmr.msra.gmra.mrb[0].mxu0 %v837_v18  ;;  %457 = vmatmul.mubr.bf16.vlgmr.msra.gmra.mrb[0].mxu1 %v840_v20 }
  0x59   :  { %781 = vmatpush3.bf16.msra.mxu1 %v843_v19  ;;  %416 = vmatprep.mubr.bf16.mxu0 %v844_v21 }
  0x5a   :  { %464 = vmatprep.mubr.bf16.mxu1 %v846_v22  ;;  %782 = vmatprep.subr.bf16.mxu1 %v850_v23 }
  0x5d   :  { %783 = vmatpush3.bf16.msra.mxu1 %v850_v23 }
  0x60   :  { %417 = vmatmul.mubr.bf16.gmra.mrb[4].mxu0 %v848_v24  ;;  %465 = vmatmul.mubr.bf16.gmra.mrb[4].mxu1 %v849_v25 }
  0x61   :  { %424 = vmatprep.mubr.bf16.mxu0 %v851_v26  ;;  %784 = vmatprep.mubr.msk.bf16.mxu1 %vm351_vm0, %v853_v27 }
  0x68   :  { %425 = vmatmul.mubr.bf16.gmra.mrb[8].mxu0 %v854_v28  ;;  %785 = vmatmul.mubr.msk.bf16.vlgmr.msra.gmra.mrb[8].mxu1 %vm351_vm0, %v855_v29 }
  0x69   :  { %432 = vmatprep.mubr.bf16.mxu0 %v856_v30  ;;  %788 = vmatprep.mubr.msk.bf16.mxu1 %vm351_vm0, %v858_v31 }
  0x70   :  { %433 = vmatmul.mubr.bf16.gmra.mrb[12].mxu0 %v859_v32  ;;  %789 = vmatmul.mubr.msk.bf16.gmra.mrb[12].mxu1 %vm351_vm0, %v860_v33 }
  0x71   :  { %440 = vmatprep.mubr.bf16.mxu0 %v861_v34  ;;  %792 = vmatprep.mubr.msk.bf16.mxu1 %vm351_vm0, %v863_v35 }
  0x78   :  { %441 = vmatmul.mubr.bf16.gmra.mrb[16].mxu0 %v864_v36  ;;  %793 = vmatmul.mubr.msk.bf16.gmra.mrb[16].mxu1 %vm351_vm0, %v865_v37 }
  0x79   :  { %448 = vmatprep.mubr.bf16.mxu0 %v866_v38  ;;  %796 = vmatprep.mubr.msk.bf16.mxu1 %vm351_vm0, %v868_v39 }
  0x80   :  { %449 = vmatmul.mubr.bf16.gmra.mrb[20].mxu0 %v869_v40  ;;  %797 = vmatmul.mubr.msk.bf16.gmra.mrb[20].mxu1 %vm351_vm0, %v870_v41 }
 0x12b   :  { %v722_v42 = vpop.f32.mrb[0].mxu0  ;;  %v758_v43 = vpop.f32.mrb[0].mxu1 }
 0x12c   :  { %v723_v44 = vpop.f32.mrb[1].mxu0  ;;  %v759_v45 = vpop.f32.mrb[1].mxu1 }
 0x12d   :  { %v724_v46 = vadd.f32 %v723_v44, %v722_v42  ;;  %v1094_v47 = vadd.f32 %v759_v45, %v758_v43  ;;  %v725_v48 = vpop.f32.mrb[2].mxu0  ;;  %v761_v49 = vpop.f32.mrb[2].mxu1 }
 0x12e   :  { %v726_v50 = vpop.f32.mrb[3].mxu0  ;;  %v762_v51 = vpop.f32.mrb[3].mxu1 }
 0x12f   :  { %v727_v52 = vadd.f32 %v726_v50, %v725_v48  ;;  %v1096_v53 = vadd.f32 %v762_v51, %v761_v49 }
 0x133   :  { %v728_v54 = vpop.f32.mrb[4].mxu0  ;;  %v764_v55 = vpop.f32.mrb[4].mxu1 }
 0x134   :  { %v729_v56 = vpop.f32.mrb[5].mxu0  ;;  %v765_v57 = vpop.f32.mrb[5].mxu1 }
 0x135   :  { %v730_v58 = vadd.f32 %v729_v56, %v728_v54  ;;  %v1098_v59 = vadd.f32 %v765_v57, %v764_v55  ;;  %v731_v60 = vpop.f32.mrb[6].mxu0  ;;  %v767_v61 = vpop.f32.mrb[6].mxu1 }
 0x136   :  { %v732_v62 = vpop.f32.mrb[7].mxu0  ;;  %v768_v63 = vpop.f32.mrb[7].mxu1 }
 0x137   :  { %v733_v0 = vadd.f32 %v732_v62, %v731_v60  ;;  %v1100_v1 = vadd.f32 %v768_v63, %v767_v61 }
 0x13b   :  { %v734_v2 = vpop.f32.mrb[8].mxu0  ;;  %v786_v3 = vpop.f32.mrb[8].mxu1 }
 0x13c   :  { %v516_v5 = vadd.f32 %v786_v3, %v730_v58  ;;  %v735_v6 = vpop.f32.mrb[9].mxu0  ;;  %v507_v7 = vpop.f32.mrb[9].mxu1 }
 0x13d   :  { %v736_v9 = vadd.f32 %v735_v6, %v734_v2  ;;  %v508_v10 = vadd.f32 %v724_v46, %v507_v7  ;;  %v737_v11 = vpop.f32.mrb[10].mxu0  ;;  %v787_v12 = vpop.f32.mrb[10].mxu1 }
 0x13e   :  { %v579_v13 = vmul.f32 %v1102_v4, %v516_v5  ;;  %v519_v14 = vadd.f32 %v787_v12, %v733_v0  ;;  %v738_v15 = vpop.f32.mrb[11].mxu0  ;;  %v510_v16 = vpop.f32.mrb[11].mxu1 }
 0x13f   :  { %v577_v17 = vmul.f32 %v1102_v4, %v508_v10  ;;  %v739_v18 = vadd.f32 %v738_v15, %v737_v11  ;;  %v511_v19 = vadd.f32 %v727_v52, %v510_v16 }
 0x140   :  { %v602_v20 = vadd.f32 %v1104_v8, %v579_v13  ;;  %v580_v21 = vmul.f32 %v1102_v4, %v519_v14 }
 0x141   :  { %v600_v22 = vadd.f32 %v1104_v8, %v577_v17  ;;  %v578_v23 = vmul.f32 %v1102_v4, %v511_v19 }
 0x142   :  { %v618_v24 = vmax.f32 %v602_v20, 0.0  ;;  %v603_v25 = vadd.f32 %v1104_v8, %v580_v21 }
 0x143   :  { %v616_v26 = vmax.f32 %v600_v22, 0.0  ;;  %v601_v27 = vadd.f32 %v1104_v8, %v578_v23  ;;  %v740_v28 = vpop.f32.mrb[12].mxu0  ;;  %v790_v29 = vpop.f32.mrb[12].mxu1 }
 0x144   :  { %634 = vst [vmem:[%s1194_s4 + $0x10] sm:$0xff] %v618_v24  ;;  %v619_v30 = vmax.f32 %v603_v25, 0.0  ;;  %v741_v31 = vpop.f32.mrb[13].mxu0  ;;  %v523_v32 = vpop.f32.mrb[13].mxu1 }
 0x145   :  { %632 = vst [vmem:[%s1194_s4] sm:$0xff] %v616_v26  ;;  %v617_v33 = vmax.f32 %v601_v27, 0.0  ;;  %v742_v34 = vadd.f32 %v741_v31, %v740_v28  ;;  %v524_v35 = vadd.f32 %v736_v9, %v523_v32  ;;  %v743_v36 = vpop.f32.mrb[14].mxu0  ;;  %v791_v37 = vpop.f32.mrb[14].mxu1 }
 0x146   :  { %635 = vst [vmem:[%s1194_s4 + $0x18] sm:$0xff] %v619_v30  ;;  %v744_v38 = vpop.f32.mrb[15].mxu0  ;;  %v526_v39 = vpop.f32.mrb[15].mxu1 }
 0x147   :  { %633 = vst [vmem:[%s1194_s4 + $0x8] sm:$0xff] %v617_v33  ;;  %v532_v40 = vadd.f32 %v790_v29, %v742_v34  ;;  %v581_v41 = vmul.f32 %v1102_v4, %v524_v35  ;;  %v745_v42 = vadd.f32 %v744_v38, %v743_v36  ;;  %v527_v43 = vadd.f32 %v739_v18, %v526_v39 }
 0x149   :  { %v583_v44 = vmul.f32 %v1102_v4, %v532_v40  ;;  %v604_v45 = vadd.f32 %v1104_v8, %v581_v41  ;;  %v535_v46 = vadd.f32 %v791_v37, %v745_v42  ;;  %v582_v48 = vmul.f32 %v1102_v4, %v527_v43 }
 0x14b   :  { %v606_v49 = vadd.f32 %v1104_v8, %v583_v44  ;;  %v620_v50 = vmax.f32 %v604_v45, 0.0  ;;  %v584_v51 = vmul.f32 %v1102_v4, %v535_v46  ;;  %v605_v52 = vadd.f32 %v1104_v8, %v582_v48  ;;  %v746_v54 = vpop.f32.mrb[16].mxu0  ;;  %v794_v55 = vpop.f32.mrb[16].mxu1 }
 0x14c   :  { %v747_v56 = vpop.f32.mrb[17].mxu0  ;;  %v539_v57 = vpop.f32.mrb[17].mxu1 }
 0x14d   :  { %v622_v58 = vmax.f32 %v606_v49, 0.0  ;;  %636 = vst [vmem:[%s1194_s4 + $0x20] sm:$0xff] %v620_v50  ;;  %v607_v60 = vadd.f32 %v1104_v8, %v584_v51  ;;  %v621_v61 = vmax.f32 %v605_v52, 0.0  ;;  %v748_v62 = vadd.f32 %v747_v56, %v746_v54  ;;  %v749_v63 = vpop.f32.mrb[18].mxu0  ;;  %v795_v0 = vpop.f32.mrb[18].mxu1 }
 0x14e   :  { %v750_v2 = vpop.f32.mrb[19].mxu0  ;;  %v542_v3 = vpop.f32.mrb[19].mxu1 }
 0x14f   :  { %638 = vst [vmem:[%s1194_s4 + $0x30] sm:$0xff] %v622_v58  ;;  %v623_v5 = vmax.f32 %v607_v60, 0.0  ;;  %637 = vst [vmem:[%s1194_s4 + $0x28] sm:$0xff] %v621_v61  ;;  %v540_v6 = vadd.f32 %v748_v62, %v539_v57  ;;  %v751_v7 = vadd.f32 %v750_v2, %v749_v63 }
 0x151   :  { %639 = vst [vmem:[%s1194_s4 + $0x38] sm:$0xff] %v623_v5  ;;  %v585_v9 = vmul.f32 %v1102_v4, %v540_v6  ;;  %v543_v10 = vadd.f32 %v751_v7, %v542_v3 }
 0x153   :  { %v608_v11 = vadd.f32 %v1104_v8, %v585_v9  ;;  %v586_v12 = vmul.f32 %v1102_v4, %v543_v10  ;;  %v752_v13 = vpop.f32.mrb[20].mxu0  ;;  %v798_v14 = vpop.f32.mrb[20].mxu1 }
 0x154   :  { %v564_v15 = vadd.f32 %v798_v14, %v1098_v59  ;;  %v753_v16 = vpop.f32.mrb[21].mxu0  ;;  %v555_v17 = vpop.f32.mrb[21].mxu1 }
 0x155   :  { %v624_v18 = vmax.f32 %v608_v11, 0.0  ;;  %v609_v19 = vadd.f32 %v1104_v8, %v586_v12  ;;  %v754_v20 = vadd.f32 %v753_v16, %v752_v13  ;;  %v556_v21 = vadd.f32 %v1094_v47, %v555_v17  ;;  %v755_v22 = vpop.f32.mrb[22].mxu0  ;;  %v799_v23 = vpop.f32.mrb[22].mxu1 }
 0x156   :  { %v591_v24 = vmul.f32 %v1102_v4, %v564_v15  ;;  %v567_v25 = vadd.f32 %v799_v23, %v1100_v1  ;;  %v756_v26 = vpop.f32.mrb[23].mxu0  ;;  %v558_v27 = vpop.f32.mrb[23].mxu1 }
 0x157   :  { %640 = vst [vmem:[%s1194_s4 + $0x40] sm:$0xff] %v624_v18  ;;  %v625_v59 = vmax.f32 %v609_v19, 0.0  ;;  %v548_v28 = vadd.f32 %v794_v55, %v754_v20  ;;  %v589_v29 = vmul.f32 %v1102_v4, %v556_v21  ;;  %v757_v30 = vadd.f32 %v756_v26, %v755_v22 }
 0x158   :  { %v614_v31 = vadd.f32 %v1104_v8, %v591_v24  ;;  %v592_v47 = vmul.f32 %v1102_v4, %v567_v25  ;;  %v559_v32 = vadd.f32 %v1096_v53, %v558_v27 }
 0x159   :  { %641 = vst [vmem:[%s1194_s4 + $0x48] sm:$0xff] %v625_v59  ;;  %v587_v1 = vmul.f32 %v1102_v4, %v548_v28  ;;  %v612_v33 = vadd.f32 %v1104_v8, %v589_v29  ;;  %v551_v34 = vadd.f32 %v795_v0, %v757_v30 }
 0x15a   :  { %v630_v35 = vmax.f32 %v614_v31, 0.0  ;;  %v615_v36 = vadd.f32 %v1104_v8, %v592_v47  ;;  %v590_v37 = vmul.f32 %v1102_v4, %v559_v32 }
 0x15b   :  { %v610_v38 = vadd.f32 %v1104_v8, %v587_v1  ;;  %v628_v39 = vmax.f32 %v612_v33, 0.0  ;;  %v588_v40 = vmul.f32 %v1102_v4, %v551_v34 }
 0x15c   :  { %646 = vst [vmem:[%s1194_s4 + $0x70] sm:$0xff] %v630_v35  ;;  %v631_v53 = vmax.f32 %v615_v36, 0.0  ;;  %v613_v41 = vadd.f32 %v1104_v8, %v590_v37 }
 0x15d   :  { %v626_v42 = vmax.f32 %v610_v38, 0.0  ;;  %644 = vst [vmem:[%s1194_s4 + $0x60] sm:$0xff] %v628_v39  ;;  %v611_v43 = vadd.f32 %v1104_v8, %v588_v40 }
 0x15e   :  { %647 = vst [vmem:[%s1194_s4 + $0x78] sm:$0xff] %v631_v53  ;;  %v629_v44 = vmax.f32 %v613_v41, 0.0 }
 0x15f   :  { %642 = vst [vmem:[%s1194_s4 + $0x50] sm:$0xff] %v626_v42  ;;  %v627_v4 = vmax.f32 %v611_v43, 0.0 }
 0x160   :  { %645 = vst [vmem:[%s1194_s4 + $0x68] sm:$0xff] %v629_v44 }
 0x161   :  { %643 = vst [vmem:[%s1194_s4 + $0x58] sm:$0xff] %v627_v4 }
 0x162   :  { %652 = vsyncpa [#allocation3], 1 }
 0x163   :  { %653 = vsyncpa [#allocation5], 1 }

// kernel: simple_net5_forward.12
= control target key start
LH: loop header
LB: loop body
LE: loop exit
PB: predicated region body
PF: predicated region fallthrough
CT: control target
= control target key end

     0   :  { %vm368_vm0 = vcmask 523264   ;;  %s911_s1 = inlined_call_operand.vmem [shape: bf16[576,128], index: 1, kind: input, shape index: {}]   ;;  %s912_s0 = inlined_call_operand.vmem [shape: bf16[32,576], index: 0, kind: input, shape index: {}]   ;;  %s913_s2 = inlined_call_operand.vmem [shape: f32[1,128], index: 2, kind: input, shape index: {}]   ;;  %s914_s3 = inlined_call_operand.vmem [shape: f32[1,128], index: 3, kind: input, shape index: {}]   ;;  %s915_s4 = inlined_call_operand.vmem [shape: f32[32,128], index: 4, kind: output, shape index: {}]  }
   0x1   :  { %v680_v0 = vld [vmem:[%s911_s1 + $0x40] sm:$0xff]   ;;  %v684_v4 = vld [vmem:[%s911_s1 + $0x48] sm:$0xff]   ;;  %v688_v8 = vld [vmem:[%s911_s1 + $0x50] sm:$0xff]  }
   0x2   :  { %v681_v1 = vld [vmem:[%s911_s1 + $0xc0] sm:$0xff]   ;;  %606 = vmatprep.subr.bf16.mxu0 %v680_v0  ;;  %v685_v5 = vld [vmem:[%s911_s1 + $0xc8] sm:$0xff]   ;;  %v689_v9 = vld [vmem:[%s911_s1 + $0xd0] sm:$0xff]  }
   0x3   :  { %v682_v2 = vld [vmem:[%s911_s1] sm:$0xff]   ;;  %634 = vmatprep.subr.bf16.mxu1 %v681_v1  ;;  %v686_v6 = vld [vmem:[%s911_s1 + $0x8] sm:$0xff]   ;;  %v690_v10 = vld [vmem:[%s911_s1 + $0x10] sm:$0xff]  }
   0x4   :  { %v683_v3 = vld [vmem:[%s911_s1 + $0x80] sm:$0xff]   ;;  %607 = vmatpush3.bf16.msra.mxu0 %v682_v2  ;;  %v687_v7 = vld [vmem:[%s911_s1 + $0x88] sm:$0xff]   ;;  %v691_v11 = vld [vmem:[%s911_s1 + $0x90] sm:$0xff]  }
   0x5   :  { %635 = vmatpush3.bf16.msra.mxu1 %v683_v3  ;;  %608 = vmatprep.subr.bf16.mxu0 %v684_v4  ;;  %v692_v12 = vld [vmem:[%s911_s1 + $0x58] sm:$0xff]   ;;  %v696_v16 = vld [vmem:[%s911_s1 + $0x60] sm:$0xff]   ;;  %v700_v20 = vld [vmem:[%s911_s1 + $0x68] sm:$0xff]  }
   0x6   :  { %636 = vmatprep.subr.bf16.mxu1 %v685_v5  ;;  %v693_v13 = vld [vmem:[%s911_s1 + $0xd8] sm:$0xff]   ;;  %v697_v17 = vld [vmem:[%s911_s1 + $0xe0] sm:$0xff]   ;;  %v701_v21 = vld [vmem:[%s911_s1 + $0xe8] sm:$0xff]  }
   0x7   :  { %v694_v14 = vld [vmem:[%s911_s1 + $0x18] sm:$0xff]   ;;  %v698_v18 = vld [vmem:[%s911_s1 + $0x20] sm:$0xff]   ;;  %v702_v22 = vld [vmem:[%s911_s1 + $0x28] sm:$0xff]  }
   0x8   :  { %609 = vmatpush3.bf16.msra.mxu0 %v686_v6  ;;  %v695_v15 = vld [vmem:[%s911_s1 + $0x98] sm:$0xff]   ;;  %v699_v19 = vld [vmem:[%s911_s1 + $0xa0] sm:$0xff]   ;;  %v703_v23 = vld [vmem:[%s911_s1 + $0xa8] sm:$0xff]  }
   0x9   :  { %637 = vmatpush3.bf16.msra.mxu1 %v687_v7  ;;  %610 = vmatprep.subr.bf16.mxu0 %v688_v8  ;;  %v704_v24 = vld [vmem:[%s911_s1 + $0x70] sm:$0xff]   ;;  %v708_v28 = vld [vmem:[%s911_s1 + $0x78] sm:$0xff]   ;;  %v717_v35 = vld [vmem:[%s912_s0 + $0xc] ss:$20 sps:$4 sm:$0xff]  }
   0xa   :  { %638 = vmatprep.subr.bf16.mxu1 %v689_v9  ;;  %v705_v25 = vld [vmem:[%s911_s1 + $0xf0] sm:$0xff]   ;;  %v709_v29 = vld [vmem:[%s911_s1 + $0xf8] sm:$0xff]   ;;  %v718_v36 = vld [vmem:[%s911_s1 + $0x100] sm:$0xff]   ;;  %456 = vmatprep.mubr.bf16.mxu1 %v717_v35 }
   0xb   :  { %v706_v26 = vld [vmem:[%s911_s1 + $0x30] sm:$0xff]   ;;  %v710_v30 = vld [vmem:[%s911_s1 + $0x38] sm:$0xff]   ;;  %v719_v37 = vld [vmem:[%s911_s1 + $0x108] sm:$0xff]  }
   0xc   :  { %611 = vmatpush3.bf16.msra.mxu0 %v690_v10  ;;  %v707_v27 = vld [vmem:[%s911_s1 + $0xb0] sm:$0xff]   ;;  %v711_v31 = vld [vmem:[%s911_s1 + $0xb8] sm:$0xff]   ;;  %v720_v38 = vld [vmem:[%s912_s0 + $0x2c] ss:$20 sps:$4 sm:$0xff]  }
   0xd   :  { %639 = vmatpush3.bf16.msra.mxu1 %v691_v11  ;;  %612 = vmatprep.subr.bf16.mxu0 %v692_v12  ;;  %v712_v32 = vld [vmem:[%s912_s0] ss:$20 sps:$4 sm:$0xff]   ;;  %v714_v33 = vld [vmem:[%s912_s0 + $0x4] ss:$20 sps:$4 sm:$0xff]   ;;  %v715_v34 = vld [vmem:[%s912_s0 + $0x8] ss:$20 sps:$4 sm:$0xff]  }
   0xe   :  { %640 = vmatprep.subr.bf16.mxu1 %v693_v13  ;;  %407 = vmatprep.mubr.bf16.mxu0 %v714_v33  ;;  %v722_v39 = vld [vmem:[%s912_s0 + $0x34] ss:$20 sps:$4 sm:$0xff]   ;;  %v725_v42 = vld [vmem:[%s912_s0 + $0x30] ss:$20 sps:$4 sm:$0xff]   ;;  %v727_v44 = vld [vmem:[%s911_s1 + $0x118] sm:$0xff]  }
   0xf   :  { %v724_v40 = vld [vmem:[%s912_s0 + $0x28] ss:$20 sps:$4 sm:$0xff]   ;;  %v726_v41 = vld [vmem:[%s911_s1 + $0x110] sm:$0xff]   ;;  %v729_v45 = vld [vmem:[%s912_s0 + $0x38] ss:$20 sps:$4 sm:$0xff]  }
  0x10   :  { %613 = vmatpush3.bf16.msra.mxu0 %v694_v14  ;;  %v728_v43 = vld [vmem:[%s912_s0 + $0x10] ss:$20 sps:$4 sm:$0xff]   ;;  %v604_v11 = vld [vmem:[%s913_s2] ss:$0 sm:$0xff] }
  0x11   :  { %641 = vmatpush3.bf16.msra.mxu1 %v695_v15  ;;  %614 = vmatprep.subr.bf16.mxu0 %v696_v16  ;;  %v605_v14 = vld [vmem:[%s914_s3] ss:$0 sm:$0xff] }
  0x12   :  { %642 = vmatprep.subr.bf16.mxu1 %v697_v17 }
  0x14   :  { %615 = vmatpush3.bf16.msra.mxu0 %v698_v18 }
  0x15   :  { %643 = vmatpush3.bf16.msra.mxu1 %v699_v19  ;;  %616 = vmatprep.subr.bf16.mxu0 %v700_v20 }
  0x16   :  { %644 = vmatprep.subr.bf16.mxu1 %v701_v21 }
  0x18   :  { %617 = vmatpush3.bf16.msra.mxu0 %v702_v22 }
  0x19   :  { %645 = vmatpush3.bf16.msra.mxu1 %v703_v23  ;;  %618 = vmatprep.subr.bf16.mxu0 %v704_v24 }
  0x1a   :  { %646 = vmatprep.subr.bf16.mxu1 %v705_v25 }
  0x1c   :  { %619 = vmatpush3.bf16.msra.mxu0 %v706_v26 }
  0x1d   :  { %647 = vmatpush3.bf16.msra.mxu1 %v707_v27  ;;  %620 = vmatprep.subr.bf16.mxu0 %v708_v28 }
  0x1e   :  { %648 = vmatprep.subr.bf16.mxu1 %v709_v29 }
  0x20   :  { %621 = vmatpush3.bf16.msra.mxu0 %v710_v30 }
  0x21   :  { %649 = vmatpush3.bf16.msra.mxu1 %v711_v31  ;;  %668 = vmatprep.subr.bf16.mxu0 %v718_v36 }
  0x23   :  { %408 = vmatmul.mubr.bf16.vlgmr.msra.gmra.mrb[0].mxu0 %v712_v32 }
  0x24   :  { %457 = vmatmul.mubr.bf16.vlgmr.msra.gmra.mrb[0].mxu1 %v715_v34  ;;  %669 = vmatpush3.bf16.msra.mxu0 %v718_v36 }
  0x25   :  { %670 = vmatprep.subr.bf16.mxu0 %v719_v37  ;;  %415 = vmatprep.mubr.bf16.mxu0 %v720_v38 }
  0x26   :  { %464 = vmatprep.mubr.bf16.mxu1 %v722_v39 }
  0x28   :  { %671 = vmatpush3.bf16.msra.mxu0 %v719_v37 }
  0x29   :  { %672 = vmatprep.subr.bf16.mxu0 %v726_v41 }
  0x2b   :  { %416 = vmatmul.mubr.bf16.gmra.mrb[4].mxu0 %v724_v40 }
  0x2c   :  { %465 = vmatmul.mubr.bf16.gmra.mrb[4].mxu1 %v725_v42  ;;  %676 = vmatprep.mubr.msk.bf16.mxu0 %vm368_vm0, %v728_v43 }
  0x2d   :  { %673 = vmatpush3.bf16.msra.mxu0 %v726_v41 }
  0x2e   :  { %674 = vmatprep.subr.bf16.mxu0 %v727_v44 }
  0x31   :  { %675 = vmatpush3.bf16.msra.mxu0 %v727_v44 }
  0x34   :  { %677 = vmatmul.mubr.msk.bf16.vlgmr.msra.gmra.mrb[8].mxu0 %vm368_vm0, %v729_v45 }
  0xf6   :  { %v622_v46 = vpop.f32.mrb[0].mxu0 }
  0xf7   :  { %v650_v47 = vpop.f32.mrb[0].mxu1  ;;  %v623_v48 = vpop.f32.mrb[1].mxu0 }
  0xf8   :  { %v624_v49 = vadd.f32 %v623_v48, %v622_v46  ;;  %v651_v50 = vpop.f32.mrb[1].mxu1  ;;  %v625_v51 = vpop.f32.mrb[2].mxu0 }
  0xf9   :  { %v652_v52 = vadd.f32 %v651_v50, %v650_v47  ;;  %v653_v53 = vpop.f32.mrb[2].mxu1  ;;  %v626_v54 = vpop.f32.mrb[3].mxu0 }
  0xfa   :  { %v627_v55 = vadd.f32 %v626_v54, %v625_v51  ;;  %v654_v56 = vpop.f32.mrb[3].mxu1 }
  0xfb   :  { %v655_v57 = vadd.f32 %v654_v56, %v653_v53  ;;  %v459_v58 = vadd.f32 %v652_v52, %v624_v49 }
  0xfd   :  { %v462_v59 = vadd.f32 %v655_v57, %v627_v55 }
  0xfe   :  { %v628_v60 = vpop.f32.mrb[4].mxu0 }
  0xff   :  { %v656_v61 = vpop.f32.mrb[4].mxu1  ;;  %v629_v62 = vpop.f32.mrb[5].mxu0 }
 0x100   :  { %v630_v63 = vadd.f32 %v629_v62, %v628_v60  ;;  %v657_v0 = vpop.f32.mrb[5].mxu1  ;;  %v631_v1 = vpop.f32.mrb[6].mxu0 }
 0x101   :  { %v658_v2 = vadd.f32 %v657_v0, %v656_v61  ;;  %v659_v3 = vpop.f32.mrb[6].mxu1  ;;  %v632_v4 = vpop.f32.mrb[7].mxu0 }
 0x102   :  { %v633_v5 = vadd.f32 %v632_v4, %v631_v1  ;;  %v660_v6 = vpop.f32.mrb[7].mxu1 }
 0x103   :  { %v661_v7 = vadd.f32 %v660_v6, %v659_v3  ;;  %v467_v8 = vadd.f32 %v658_v2, %v630_v63 }
 0x105   :  { %v470_v9 = vadd.f32 %v661_v7, %v633_v5 }
 0x107   :  { %v678_v10 = vpop.f32.mrb[8].mxu0 }
 0x108   :  { %v516_v12 = vadd.f32 %v678_v10, %v467_v8  ;;  %v507_v13 = vpop.f32.mrb[9].mxu0 }
 0x109   :  { %v508_v15 = vadd.f32 %v507_v13, %v459_v58  ;;  %v679_v16 = vpop.f32.mrb[10].mxu0 }
 0x10a   :  { %v531_v17 = vmul.f32 %v604_v11, %v516_v12  ;;  %v519_v18 = vadd.f32 %v679_v16, %v470_v9  ;;  %v510_v19 = vpop.f32.mrb[11].mxu0 }
 0x10b   :  { %v529_v20 = vmul.f32 %v604_v11, %v508_v15  ;;  %v511_v21 = vadd.f32 %v510_v19, %v462_v59 }
 0x10c   :  { %v542_v22 = vadd.f32 %v605_v14, %v531_v17  ;;  %v532_v23 = vmul.f32 %v604_v11, %v519_v18 }
 0x10d   :  { %v540_v24 = vadd.f32 %v605_v14, %v529_v20  ;;  %v530_v25 = vmul.f32 %v604_v11, %v511_v21 }
 0x10e   :  { %v546_v26 = vmax.f32 %v542_v22, 0.0  ;;  %v543_v27 = vadd.f32 %v605_v14, %v532_v23 }
 0x10f   :  { %v544_v28 = vmax.f32 %v540_v24, 0.0  ;;  %v541_v29 = vadd.f32 %v605_v14, %v530_v25 }
 0x110   :  { %550 = vst [vmem:[%s915_s4 + $0x10] sm:$0xff] %v546_v26  ;;  %v547_v30 = vmax.f32 %v543_v27, 0.0 }
 0x111   :  { %548 = vst [vmem:[%s915_s4] sm:$0xff] %v544_v28  ;;  %v545_v31 = vmax.f32 %v541_v29, 0.0 }
 0x112   :  { %551 = vst [vmem:[%s915_s4 + $0x18] sm:$0xff] %v547_v30 }
 0x113   :  { %549 = vst [vmem:[%s915_s4 + $0x8] sm:$0xff] %v545_v31 }

// kernel: simple_net5_forward.13
= control target key start
LH: loop header
LB: loop body
LE: loop exit
PB: predicated region body
PF: predicated region fallthrough
CT: control target
= control target key end

     0   :  { %s2099_s1 = inlined_call_operand.vmem [shape: bf16[1152,256], index: 1, kind: input, shape index: {}]   ;;  %s2100_s0 = inlined_call_operand.vmem [shape: bf16[16,1152], index: 0, kind: input, shape index: {}]   ;;  %s2101_s2 = inlined_call_operand.vmem [shape: f32[1,256], index: 2, kind: input, shape index: {}]   ;;  %s2102_s3 = inlined_call_operand.vmem [shape: f32[1,256], index: 3, kind: input, shape index: {}]   ;;  %s2103_s4 = inlined_call_operand.vmem [shape: f32[16,256], index: 4, kind: output, shape index: {}]  }
   0x1   :  { %v1367_v0 = vld [vmem:[%s2099_s1 + $0x4] ss:$8 sps:$4 sm:$0xff]   ;;  %v1371_v2 = vld [vmem:[%s2099_s1] ss:$8 sps:$4 sm:$0xff]   ;;  %v1373_v4 = vld [vmem:[%s2099_s1 + $0x14] ss:$8 sps:$4 sm:$0xff]  }
   0x2   :  { %v1369_v1 = vld [vmem:[%s2099_s1 + $0x204] ss:$8 sps:$4 sm:$0xff]   ;;  %938 = vmatprep.subr.bf16.mxu1 %v1367_v0  ;;  %v1372_v3 = vld [vmem:[%s2099_s1 + $0x200] ss:$8 sps:$4 sm:$0xff]   ;;  %v1375_v5 = vld [vmem:[%s2099_s1 + $0x214] ss:$8 sps:$4 sm:$0xff]  }
   0x3   :  { %1024 = vmatprep.subr.bf16.mxu0 %v1369_v1  ;;  %939 = vmatpush1.bf16.msra.mxu1 %v1371_v2  ;;  %v1377_v6 = vld [vmem:[%s2099_s1 + $0x10] ss:$8 sps:$4 sm:$0xff]   ;;  %v1379_v8 = vld [vmem:[%s2099_s1 + $0x24] ss:$8 sps:$4 sm:$0xff]   ;;  %v1383_v10 = vld [vmem:[%s2099_s1 + $0x20] ss:$8 sps:$4 sm:$0xff]  }
   0x4   :  { %1025 = vmatpush1.bf16.msra.mxu0 %v1372_v3  ;;  %940 = vmatprep.subr.bf16.mxu1 %v1373_v4  ;;  %v1378_v7 = vld [vmem:[%s2099_s1 + $0x210] ss:$8 sps:$4 sm:$0xff]   ;;  %v1381_v9 = vld [vmem:[%s2099_s1 + $0x224] ss:$8 sps:$4 sm:$0xff]   ;;  %v1384_v11 = vld [vmem:[%s2099_s1 + $0x220] ss:$8 sps:$4 sm:$0xff]  }
   0x5   :  { %1026 = vmatprep.subr.bf16.mxu0 %v1375_v5  ;;  %v1385_v12 = vld [vmem:[%s2099_s1 + $0x34] ss:$8 sps:$4 sm:$0xff]   ;;  %v1389_v14 = vld [vmem:[%s2099_s1 + $0x30] ss:$8 sps:$4 sm:$0xff]   ;;  %v1391_v16 = vld [vmem:[%s2099_s1 + $0x44] ss:$8 sps:$4 sm:$0xff]  }
   0x6   :  { %v1387_v13 = vld [vmem:[%s2099_s1 + $0x234] ss:$8 sps:$4 sm:$0xff]   ;;  %v1390_v15 = vld [vmem:[%s2099_s1 + $0x230] ss:$8 sps:$4 sm:$0xff]   ;;  %v1393_v17 = vld [vmem:[%s2099_s1 + $0x244] ss:$8 sps:$4 sm:$0xff]  }
   0x7   :  { %941 = vmatpush1.bf16.msra.mxu1 %v1377_v6  ;;  %v1395_v18 = vld [vmem:[%s2099_s1 + $0x40] ss:$8 sps:$4 sm:$0xff]   ;;  %v1397_v20 = vld [vmem:[%s2099_s1 + $0x54] ss:$8 sps:$4 sm:$0xff]   ;;  %v1401_v22 = vld [vmem:[%s2099_s1 + $0x50] ss:$8 sps:$4 sm:$0xff]  }
   0x8   :  { %1027 = vmatpush1.bf16.msra.mxu0 %v1378_v7  ;;  %942 = vmatprep.subr.bf16.mxu1 %v1379_v8  ;;  %v1396_v19 = vld [vmem:[%s2099_s1 + $0x240] ss:$8 sps:$4 sm:$0xff]   ;;  %v1399_v21 = vld [vmem:[%s2099_s1 + $0x254] ss:$8 sps:$4 sm:$0xff]   ;;  %v1402_v23 = vld [vmem:[%s2099_s1 + $0x250] ss:$8 sps:$4 sm:$0xff]  }
   0x9   :  { %1028 = vmatprep.subr.bf16.mxu0 %v1381_v9  ;;  %v1403_v24 = vld [vmem:[%s2099_s1 + $0x64] ss:$8 sps:$4 sm:$0xff]   ;;  %v1407_v26 = vld [vmem:[%s2099_s1 + $0x60] ss:$8 sps:$4 sm:$0xff]   ;;  %v1409_v28 = vld [vmem:[%s2099_s1 + $0x74] ss:$8 sps:$4 sm:$0xff]  }
   0xa   :  { %v1405_v25 = vld [vmem:[%s2099_s1 + $0x264] ss:$8 sps:$4 sm:$0xff]   ;;  %v1408_v27 = vld [vmem:[%s2099_s1 + $0x260] ss:$8 sps:$4 sm:$0xff]   ;;  %v1411_v29 = vld [vmem:[%s2099_s1 + $0x274] ss:$8 sps:$4 sm:$0xff]  }
   0xb   :  { %943 = vmatpush1.bf16.msra.mxu1 %v1383_v10  ;;  %v1413_v30 = vld [vmem:[%s2099_s1 + $0x70] ss:$8 sps:$4 sm:$0xff]   ;;  %v1415_v32 = vld [vmem:[%s2099_s1 + $0x84] ss:$8 sps:$4 sm:$0xff]   ;;  %v1419_v34 = vld [vmem:[%s2099_s1 + $0x80] ss:$8 sps:$4 sm:$0xff]  }
   0xc   :  { %1029 = vmatpush1.bf16.msra.mxu0 %v1384_v11  ;;  %944 = vmatprep.subr.bf16.mxu1 %v1385_v12  ;;  %v1414_v31 = vld [vmem:[%s2099_s1 + $0x270] ss:$8 sps:$4 sm:$0xff]   ;;  %v1417_v33 = vld [vmem:[%s2099_s1 + $0x284] ss:$8 sps:$4 sm:$0xff]   ;;  %v1420_v35 = vld [vmem:[%s2099_s1 + $0x280] ss:$8 sps:$4 sm:$0xff]  }
   0xd   :  { %1030 = vmatprep.subr.bf16.mxu0 %v1387_v13  ;;  %v1421_v36 = vld [vmem:[%s2099_s1 + $0x94] ss:$8 sps:$4 sm:$0xff]   ;;  %v1425_v38 = vld [vmem:[%s2099_s1 + $0x90] ss:$8 sps:$4 sm:$0xff]   ;;  %v1427_v40 = vld [vmem:[%s2099_s1 + $0xa4] ss:$8 sps:$4 sm:$0xff]  }
   0xe   :  { %v1423_v37 = vld [vmem:[%s2099_s1 + $0x294] ss:$8 sps:$4 sm:$0xff]   ;;  %v1426_v39 = vld [vmem:[%s2099_s1 + $0x290] ss:$8 sps:$4 sm:$0xff]   ;;  %v1429_v41 = vld [vmem:[%s2099_s1 + $0x2a4] ss:$8 sps:$4 sm:$0xff]  }
   0xf   :  { %945 = vmatpush1.bf16.msra.mxu1 %v1389_v14  ;;  %v1431_v42 = vld [vmem:[%s2099_s1 + $0xa0] ss:$8 sps:$4 sm:$0xff]   ;;  %v1433_v44 = vld [vmem:[%s2099_s1 + $0xb4] ss:$8 sps:$4 sm:$0xff]   ;;  %v1437_v46 = vld [vmem:[%s2099_s1 + $0xb0] ss:$8 sps:$4 sm:$0xff]  }
  0x10   :  { %1031 = vmatpush1.bf16.msra.mxu0 %v1390_v15  ;;  %946 = vmatprep.subr.bf16.mxu1 %v1391_v16  ;;  %v1432_v43 = vld [vmem:[%s2099_s1 + $0x2a0] ss:$8 sps:$4 sm:$0xff]   ;;  %v1435_v45 = vld [vmem:[%s2099_s1 + $0x2b4] ss:$8 sps:$4 sm:$0xff]   ;;  %v1438_v47 = vld [vmem:[%s2099_s1 + $0x2b0] ss:$8 sps:$4 sm:$0xff]  }
  0x11   :  { %1032 = vmatprep.subr.bf16.mxu0 %v1393_v17  ;;  %v1465_v48 = vld [vmem:[%s2100_s0 + $0x4] ss:$36 sps:$4 sm:$0xff]   ;;  %v1471_v51 = vld [vmem:[%s2100_s0 + $0x14] ss:$36 sps:$4 sm:$0xff]  }
  0x12   :  { %v1439_v49 = vld [vmem:[%s2099_s1 + $0xc4] ss:$8 sps:$4 sm:$0xff]   ;;  %970 = vmatprep.mubr.bf16.mxu1 %v1465_v48  ;;  %v1443_v52 = vld [vmem:[%s2099_s1 + $0xc0] ss:$8 sps:$4 sm:$0xff]   ;;  %v1445_v54 = vld [vmem:[%s2099_s1 + $0xd4] ss:$8 sps:$4 sm:$0xff]   ;;  %1056 = vmatprep.mubr.bf16.mxu0 %v1471_v51 }
  0x13   :  { %947 = vmatpush1.bf16.msra.mxu1 %v1395_v18  ;;  %v1441_v50 = vld [vmem:[%s2099_s1 + $0x2c4] ss:$8 sps:$4 sm:$0xff]   ;;  %v1444_v53 = vld [vmem:[%s2099_s1 + $0x2c0] ss:$8 sps:$4 sm:$0xff]   ;;  %v1447_v55 = vld [vmem:[%s2099_s1 + $0x2d4] ss:$8 sps:$4 sm:$0xff]  }
  0x14   :  { %1033 = vmatpush1.bf16.msra.mxu0 %v1396_v19  ;;  %948 = vmatprep.subr.bf16.mxu1 %v1397_v20  ;;  %v1449_v56 = vld [vmem:[%s2099_s1 + $0xd0] ss:$8 sps:$4 sm:$0xff]   ;;  %v1451_v58 = vld [vmem:[%s2099_s1 + $0xe4] ss:$8 sps:$4 sm:$0xff]   ;;  %v1455_v60 = vld [vmem:[%s2099_s1 + $0xe0] ss:$8 sps:$4 sm:$0xff]  }
  0x15   :  { %1034 = vmatprep.subr.bf16.mxu0 %v1399_v21  ;;  %v1450_v57 = vld [vmem:[%s2099_s1 + $0x2d0] ss:$8 sps:$4 sm:$0xff]   ;;  %v1453_v59 = vld [vmem:[%s2099_s1 + $0x2e4] ss:$8 sps:$4 sm:$0xff]   ;;  %v1456_v61 = vld [vmem:[%s2099_s1 + $0x2e0] ss:$8 sps:$4 sm:$0xff]  }
  0x16   :  { %v1457_v62 = vld [vmem:[%s2099_s1 + $0xf4] ss:$8 sps:$4 sm:$0xff]   ;;  %v1461_v0 = vld [vmem:[%s2099_s1 + $0xf0] ss:$8 sps:$4 sm:$0xff]   ;;  %v1468_v2 = vld [vmem:[%s2099_s1 + $0x104] ss:$8 sps:$4 sm:$0xff]  }
  0x17   :  { %949 = vmatpush1.bf16.msra.mxu1 %v1401_v22  ;;  %v1459_v63 = vld [vmem:[%s2099_s1 + $0x2f4] ss:$8 sps:$4 sm:$0xff]   ;;  %v1462_v1 = vld [vmem:[%s2099_s1 + $0x2f0] ss:$8 sps:$4 sm:$0xff]   ;;  %v1474_v3 = vld [vmem:[%s2099_s1 + $0x304] ss:$8 sps:$4 sm:$0xff]  }
  0x18   :  { %1035 = vmatpush1.bf16.msra.mxu0 %v1402_v23  ;;  %950 = vmatprep.subr.bf16.mxu1 %v1403_v24  ;;  %v1463_v4 = vld [vmem:[%s2100_s0] ss:$36 sps:$4 sm:$0xff]   ;;  %v1469_v6 = vld [vmem:[%s2100_s0 + $0x10] ss:$36 sps:$4 sm:$0xff]  }
  0x19   :  { %1036 = vmatprep.subr.bf16.mxu0 %v1405_v25  ;;  %v1466_v5 = vld [vmem:[%s2099_s1 + $0x100] ss:$8 sps:$4 sm:$0xff]   ;;  %v1477_v8 = vld [vmem:[%s2099_s1 + $0x114] ss:$8 sps:$4 sm:$0xff]   ;;  %v1475_v10 = vld [vmem:[%s2099_s1 + $0x110] ss:$8 sps:$4 sm:$0xff]  }
  0x1a   :  { %v1472_v7 = vld [vmem:[%s2099_s1 + $0x300] ss:$8 sps:$4 sm:$0xff]   ;;  %v1480_v9 = vld [vmem:[%s2099_s1 + $0x314] ss:$8 sps:$4 sm:$0xff]   ;;  %v1478_v11 = vld [vmem:[%s2099_s1 + $0x310] ss:$8 sps:$4 sm:$0xff]  }
  0x1b   :  { %951 = vmatpush1.bf16.msra.mxu1 %v1407_v26  ;;  %v1483_v12 = vld [vmem:[%s2099_s1 + $0x124] ss:$8 sps:$4 sm:$0xff]   ;;  %v1481_v14 = vld [vmem:[%s2099_s1 + $0x120] ss:$8 sps:$4 sm:$0xff]   ;;  %v1489_v16 = vld [vmem:[%s2099_s1 + $0x134] ss:$8 sps:$4 sm:$0xff]  }
  0x1c   :  { %1037 = vmatpush1.bf16.msra.mxu0 %v1408_v27  ;;  %952 = vmatprep.subr.bf16.mxu1 %v1409_v28  ;;  %v1486_v13 = vld [vmem:[%s2099_s1 + $0x324] ss:$8 sps:$4 sm:$0xff]   ;;  %v1484_v15 = vld [vmem:[%s2099_s1 + $0x320] ss:$8 sps:$4 sm:$0xff]   ;;  %v1492_v17 = vld [vmem:[%s2099_s1 + $0x334] ss:$8 sps:$4 sm:$0xff]  }
  0x1d   :  { %1038 = vmatprep.subr.bf16.mxu0 %v1411_v29  ;;  %v1487_v18 = vld [vmem:[%s2099_s1 + $0x130] ss:$8 sps:$4 sm:$0xff]   ;;  %v1495_v20 = vld [vmem:[%s2099_s1 + $0x144] ss:$8 sps:$4 sm:$0xff]   ;;  %v1493_v22 = vld [vmem:[%s2099_s1 + $0x140] ss:$8 sps:$4 sm:$0xff]  }
  0x1e   :  { %v1490_v19 = vld [vmem:[%s2099_s1 + $0x330] ss:$8 sps:$4 sm:$0xff]   ;;  %v1498_v21 = vld [vmem:[%s2099_s1 + $0x344] ss:$8 sps:$4 sm:$0xff]   ;;  %v1496_v23 = vld [vmem:[%s2099_s1 + $0x340] ss:$8 sps:$4 sm:$0xff]  }
  0x1f   :  { %953 = vmatpush1.bf16.msra.mxu1 %v1413_v30  ;;  %v1501_v24 = vld [vmem:[%s2099_s1 + $0x154] ss:$8 sps:$4 sm:$0xff]   ;;  %v1499_v26 = vld [vmem:[%s2099_s1 + $0x150] ss:$8 sps:$4 sm:$0xff]   ;;  %v1507_v28 = vld [vmem:[%s2099_s1 + $0x164] ss:$8 sps:$4 sm:$0xff]  }
  0x20   :  { %1039 = vmatpush1.bf16.msra.mxu0 %v1414_v31  ;;  %954 = vmatprep.subr.bf16.mxu1 %v1415_v32  ;;  %v1504_v25 = vld [vmem:[%s2099_s1 + $0x354] ss:$8 sps:$4 sm:$0xff]   ;;  %v1502_v27 = vld [vmem:[%s2099_s1 + $0x350] ss:$8 sps:$4 sm:$0xff]   ;;  %v1510_v29 = vld [vmem:[%s2099_s1 + $0x364] ss:$8 sps:$4 sm:$0xff]  }
  0x21   :  { %1040 = vmatprep.subr.bf16.mxu0 %v1417_v33  ;;  %v1505_v30 = vld [vmem:[%s2099_s1 + $0x160] ss:$8 sps:$4 sm:$0xff]   ;;  %v1513_v32 = vld [vmem:[%s2099_s1 + $0x174] ss:$8 sps:$4 sm:$0xff]  }
  0x22   :  { %v1508_v31 = vld [vmem:[%s2099_s1 + $0x360] ss:$8 sps:$4 sm:$0xff]   ;;  %v1516_v33 = vld [vmem:[%s2099_s1 + $0x374] ss:$8 sps:$4 sm:$0xff]  }
  0x23   :  { %955 = vmatpush1.bf16.msra.mxu1 %v1419_v34  ;;  %v1567_v34 = vld [vmem:[%s2100_s0 + $0xc] ss:$36 sps:$4 sm:$0xff]   ;;  %v1529_v48 = vld [vmem:[%s2099_s1 + $0x1a0] ss:$8 sps:$4 sm:$0xff]   ;;  %v1540_v51 = vld [vmem:[%s2099_s1 + $0x3b4] ss:$8 sps:$4 sm:$0xff]  }
  0x24   :  { %1041 = vmatpush1.bf16.msra.mxu0 %v1420_v35  ;;  %956 = vmatprep.subr.bf16.mxu1 %v1421_v36  ;;  %v1570_v35 = vld [vmem:[%s2100_s0 + $0x1c] ss:$36 sps:$4 sm:$0xff]   ;;  %v1511_v36 = vld [vmem:[%s2099_s1 + $0x170] ss:$8 sps:$4 sm:$0xff]  }
  0x25   :  { %1042 = vmatprep.subr.bf16.mxu0 %v1423_v37  ;;  %v1514_v37 = vld [vmem:[%s2099_s1 + $0x370] ss:$8 sps:$4 sm:$0xff]  }
  0x27   :  { %957 = vmatpush1.bf16.msra.mxu1 %v1425_v38  ;;  %v1519_v38 = vld [vmem:[%s2099_s1 + $0x184] ss:$8 sps:$4 sm:$0xff]  }
  0x28   :  { %1043 = vmatpush1.bf16.msra.mxu0 %v1426_v39  ;;  %958 = vmatprep.subr.bf16.mxu1 %v1427_v40  ;;  %v1522_v39 = vld [vmem:[%s2099_s1 + $0x384] ss:$8 sps:$4 sm:$0xff]   ;;  %v1517_v40 = vld [vmem:[%s2099_s1 + $0x180] ss:$8 sps:$4 sm:$0xff]  }
  0x29   :  { %1044 = vmatprep.subr.bf16.mxu0 %v1429_v41  ;;  %v1520_v41 = vld [vmem:[%s2099_s1 + $0x380] ss:$8 sps:$4 sm:$0xff]  }
  0x2b   :  { %959 = vmatpush1.bf16.msra.mxu1 %v1431_v42  ;;  %v1525_v42 = vld [vmem:[%s2099_s1 + $0x194] ss:$8 sps:$4 sm:$0xff]  }
  0x2c   :  { %1045 = vmatpush1.bf16.msra.mxu0 %v1432_v43  ;;  %960 = vmatprep.subr.bf16.mxu1 %v1433_v44  ;;  %v1528_v43 = vld [vmem:[%s2099_s1 + $0x394] ss:$8 sps:$4 sm:$0xff]   ;;  %v1523_v44 = vld [vmem:[%s2099_s1 + $0x190] ss:$8 sps:$4 sm:$0xff]  }
  0x2d   :  { %1046 = vmatprep.subr.bf16.mxu0 %v1435_v45  ;;  %v1526_v45 = vld [vmem:[%s2099_s1 + $0x390] ss:$8 sps:$4 sm:$0xff]  }
  0x2f   :  { %961 = vmatpush1.bf16.msra.mxu1 %v1437_v46  ;;  %v1531_v46 = vld [vmem:[%s2099_s1 + $0x1a4] ss:$8 sps:$4 sm:$0xff]  }
  0x30   :  { %1047 = vmatpush1.bf16.msra.mxu0 %v1438_v47  ;;  %962 = vmatprep.subr.bf16.mxu1 %v1439_v49  ;;  %v1534_v47 = vld [vmem:[%s2099_s1 + $0x3a4] ss:$8 sps:$4 sm:$0xff]   ;;  %v1532_v49 = vld [vmem:[%s2099_s1 + $0x3a0] ss:$8 sps:$4 sm:$0xff]  }
  0x31   :  { %1048 = vmatprep.subr.bf16.mxu0 %v1441_v50  ;;  %v1537_v50 = vld [vmem:[%s2099_s1 + $0x1b4] ss:$8 sps:$4 sm:$0xff]  }
  0x33   :  { %963 = vmatpush1.bf16.msra.mxu1 %v1443_v52  ;;  %v1535_v52 = vld [vmem:[%s2099_s1 + $0x1b0] ss:$8 sps:$4 sm:$0xff]  }
  0x34   :  { %1049 = vmatpush1.bf16.msra.mxu0 %v1444_v53  ;;  %964 = vmatprep.subr.bf16.mxu1 %v1445_v54  ;;  %v1538_v53 = vld [vmem:[%s2099_s1 + $0x3b0] ss:$8 sps:$4 sm:$0xff]   ;;  %v1543_v54 = vld [vmem:[%s2099_s1 + $0x1c4] ss:$8 sps:$4 sm:$0xff]  }
  0x35   :  { %1050 = vmatprep.subr.bf16.mxu0 %v1447_v55  ;;  %v1546_v55 = vld [vmem:[%s2099_s1 + $0x3c4] ss:$8 sps:$4 sm:$0xff]  }
  0x37   :  { %965 = vmatpush1.bf16.msra.mxu1 %v1449_v56  ;;  %v1541_v56 = vld [vmem:[%s2099_s1 + $0x1c0] ss:$8 sps:$4 sm:$0xff]  }
  0x38   :  { %1051 = vmatpush1.bf16.msra.mxu0 %v1450_v57  ;;  %966 = vmatprep.subr.bf16.mxu1 %v1451_v58  ;;  %v1544_v57 = vld [vmem:[%s2099_s1 + $0x3c0] ss:$8 sps:$4 sm:$0xff]   ;;  %v1549_v58 = vld [vmem:[%s2099_s1 + $0x1d4] ss:$8 sps:$4 sm:$0xff]  }
  0x39   :  { %1052 = vmatprep.subr.bf16.mxu0 %v1453_v59  ;;  %v1552_v59 = vld [vmem:[%s2099_s1 + $0x3d4] ss:$8 sps:$4 sm:$0xff]  }
  0x3b   :  { %967 = vmatpush1.bf16.msra.mxu1 %v1455_v60  ;;  %v1547_v60 = vld [vmem:[%s2099_s1 + $0x1d0] ss:$8 sps:$4 sm:$0xff]  }
  0x3c   :  { %1053 = vmatpush1.bf16.msra.mxu0 %v1456_v61  ;;  %968 = vmatprep.subr.bf16.mxu1 %v1457_v62  ;;  %v1550_v61 = vld [vmem:[%s2099_s1 + $0x3d0] ss:$8 sps:$4 sm:$0xff]   ;;  %v1555_v62 = vld [vmem:[%s2099_s1 + $0x1e4] ss:$8 sps:$4 sm:$0xff]  }
  0x3d   :  { %1054 = vmatprep.subr.bf16.mxu0 %v1459_v63  ;;  %v1558_v63 = vld [vmem:[%s2099_s1 + $0x3e4] ss:$8 sps:$4 sm:$0xff]  }
  0x3f   :  { %969 = vmatpush1.bf16.msra.mxu1 %v1461_v0  ;;  %v1553_v0 = vld [vmem:[%s2099_s1 + $0x1e0] ss:$8 sps:$4 sm:$0xff]  }
  0x40   :  { %1055 = vmatpush1.bf16.msra.mxu0 %v1462_v1  ;;  %981 = vmatprep.subr.bf16.mxu1 %v1468_v2  ;;  %v1556_v1 = vld [vmem:[%s2099_s1 + $0x3e0] ss:$8 sps:$4 sm:$0xff]   ;;  %v1561_v2 = vld [vmem:[%s2099_s1 + $0x1f4] ss:$8 sps:$4 sm:$0xff]  }
  0x41   :  { %1067 = vmatprep.subr.bf16.mxu0 %v1474_v3  ;;  %v1564_v3 = vld [vmem:[%s2099_s1 + $0x3f4] ss:$8 sps:$4 sm:$0xff]  }
  0x42   :  { %971 = vmatmul.mubr.bf16.vlgmr.msra.gmra.mrb[0].mxu1 %v1463_v4  ;;  %v1559_v4 = vld [vmem:[%s2099_s1 + $0x1f0] ss:$8 sps:$4 sm:$0xff]  }
  0x43   :  { %1057 = vmatmul.mubr.bf16.vlgmr.msra.gmra.mrb[0].mxu0 %v1469_v6  ;;  %982 = vmatpush1.bf16.msra.mxu1 %v1466_v5  ;;  %v1562_v5 = vld [vmem:[%s2099_s1 + $0x3f0] ss:$8 sps:$4 sm:$0xff]   ;;  %v1573_v6 = vld [vmem:[%s2099_s1 + $0x404] ss:$8 sps:$4 sm:$0xff]  }
  0x44   :  { %1068 = vmatpush1.bf16.msra.mxu0 %v1472_v7  ;;  %983 = vmatprep.subr.bf16.mxu1 %v1477_v8  ;;  %v1565_v7 = vld [vmem:[%s2100_s0 + $0x8] ss:$36 sps:$4 sm:$0xff]   ;;  %v1568_v8 = vld [vmem:[%s2100_s0 + $0x18] ss:$36 sps:$4 sm:$0xff]  }
  0x45   :  { %1069 = vmatprep.subr.bf16.mxu0 %v1480_v9  ;;  %1013 = vmatprep.mubr.bf16.mxu1 %v1567_v34  ;;  %v1571_v9 = vld [vmem:[%s2099_s1 + $0x400] ss:$8 sps:$4 sm:$0xff]  }
  0x46   :  { %1099 = vmatprep.mubr.bf16.mxu0 %v1570_v35  ;;  %v1169_v35 = vld [vmem:[%s2102_s3] sm:$0x3] }
  0x47   :  { %984 = vmatpush1.bf16.msra.mxu1 %v1475_v10  ;;  %v1576_v10 = vld [vmem:[%s2099_s1 + $0x414] ss:$8 sps:$4 sm:$0xff]  }
  0x48   :  { %1070 = vmatpush1.bf16.msra.mxu0 %v1478_v11  ;;  %985 = vmatprep.subr.bf16.mxu1 %v1483_v12  ;;  %v1574_v11 = vld [vmem:[%s2099_s1 + $0x410] ss:$8 sps:$4 sm:$0xff]   ;;  %v1596_v12 = vmov 0  }
  0x49   :  { %1071 = vmatprep.subr.bf16.mxu0 %v1486_v13  ;;  %v1579_v13 = vld [vmem:[%s2099_s1 + $0x424] ss:$8 sps:$4 sm:$0xff]  }
  0x4b   :  { %986 = vmatpush1.bf16.msra.mxu1 %v1481_v14  ;;  %v1577_v14 = vld [vmem:[%s2099_s1 + $0x420] ss:$8 sps:$4 sm:$0xff]  }
  0x4c   :  { %1072 = vmatpush1.bf16.msra.mxu0 %v1484_v15  ;;  %987 = vmatprep.subr.bf16.mxu1 %v1489_v16  ;;  %v1582_v15 = vld [vmem:[%s2099_s1 + $0x434] ss:$8 sps:$4 sm:$0xff]   ;;  %v1580_v16 = vld [vmem:[%s2099_s1 + $0x430] ss:$8 sps:$4 sm:$0xff]  }
  0x4d   :  { %1073 = vmatprep.subr.bf16.mxu0 %v1492_v17  ;;  %v1585_v17 = vld [vmem:[%s2099_s1 + $0x444] ss:$8 sps:$4 sm:$0xff]  }
  0x4f   :  { %988 = vmatpush1.bf16.msra.mxu1 %v1487_v18  ;;  %v1583_v18 = vld [vmem:[%s2099_s1 + $0x440] ss:$8 sps:$4 sm:$0xff]  }
  0x50   :  { %1074 = vmatpush1.bf16.msra.mxu0 %v1490_v19  ;;  %989 = vmatprep.subr.bf16.mxu1 %v1495_v20  ;;  %v1588_v19 = vld [vmem:[%s2099_s1 + $0x454] ss:$8 sps:$4 sm:$0xff]   ;;  %v1586_v20 = vld [vmem:[%s2099_s1 + $0x450] ss:$8 sps:$4 sm:$0xff]  }
  0x51   :  { %1075 = vmatprep.subr.bf16.mxu0 %v1498_v21  ;;  %v1591_v21 = vld [vmem:[%s2099_s1 + $0x464] ss:$8 sps:$4 sm:$0xff]  }
  0x53   :  { %990 = vmatpush1.bf16.msra.mxu1 %v1493_v22  ;;  %v1589_v22 = vld [vmem:[%s2099_s1 + $0x460] ss:$8 sps:$4 sm:$0xff]  }
  0x54   :  { %1076 = vmatpush1.bf16.msra.mxu0 %v1496_v23  ;;  %991 = vmatprep.subr.bf16.mxu1 %v1501_v24  ;;  %v1594_v23 = vld [vmem:[%s2099_s1 + $0x474] ss:$8 sps:$4 sm:$0xff]   ;;  %v1592_v24 = vld [vmem:[%s2099_s1 + $0x470] ss:$8 sps:$4 sm:$0xff]  }
  0x55   :  { %1077 = vmatprep.subr.bf16.mxu0 %v1504_v25  ;;  %v1595_v25 = vld [vmem:[%s2100_s0 + $0x20] ss:$36 sps:$4 sm:$0xff]  }
  0x57   :  { %992 = vmatpush1.bf16.msra.mxu1 %v1499_v26 }
  0x58   :  { %1078 = vmatpush1.bf16.msra.mxu0 %v1502_v27  ;;  %993 = vmatprep.subr.bf16.mxu1 %v1507_v28 }
  0x59   :  { %1079 = vmatprep.subr.bf16.mxu0 %v1510_v29 }
  0x5b   :  { %994 = vmatpush1.bf16.msra.mxu1 %v1505_v30  ;;  %v1155_v30 = vlaneseq }
  0x5c   :  { %1080 = vmatpush1.bf16.msra.mxu0 %v1508_v31  ;;  %995 = vmatprep.subr.bf16.mxu1 %v1513_v32 }
  0x5d   :  { %1081 = vmatprep.subr.bf16.mxu0 %v1516_v33  ;;  %v1156_v31 = vshrl.u32 %v1155_v30, 7  ;;  %v1153_v33 = vld [vmem:[%s2101_s2] sm:$0x3] }
  0x5f   :  { %996 = vmatpush1.bf16.msra.mxu1 %v1511_v36  ;;  %v1157_v32 = vsub.s32 0, %v1156_v31  ;;  %v1161_v34 = vsub.s32 1, %v1156_v31 }
  0x60   :  { %1082 = vmatpush1.bf16.msra.mxu0 %v1514_v37  ;;  %997 = vmatprep.subr.bf16.mxu1 %v1519_v38 }
  0x61   :  { %1083 = vmatprep.subr.bf16.mxu0 %v1522_v39  ;;  %v1158_v36 = vrot.slane %v1153_v33, %v1157_v32  ;;  %v1162_v38 = vrot.slane %v1153_v33, %v1161_v34 }
  0x63   :  { %998 = vmatpush1.bf16.msra.mxu1 %v1517_v40  ;;  %v1174_v40 = vrot.slane %v1169_v35, %v1157_v32 }
  0x64   :  { %1084 = vmatpush1.bf16.msra.mxu0 %v1520_v41  ;;  %999 = vmatprep.subr.bf16.mxu1 %v1525_v42 }
  0x65   :  { %1085 = vmatprep.subr.bf16.mxu0 %v1528_v43  ;;  %v1178_v43 = vrot.slane %v1169_v35, %v1161_v34 }
  0x67   :  { %1000 = vmatpush1.bf16.msra.mxu1 %v1523_v44 }
  0x68   :  { %1086 = vmatpush1.bf16.msra.mxu0 %v1526_v45  ;;  %1001 = vmatprep.subr.bf16.mxu1 %v1531_v46 }
  0x69   :  { %1087 = vmatprep.subr.bf16.mxu0 %v1534_v47 }
  0x6b   :  { %1002 = vmatpush1.bf16.msra.mxu1 %v1529_v48 }
  0x6c   :  { %1088 = vmatpush1.bf16.msra.mxu0 %v1532_v49  ;;  %1003 = vmatprep.subr.bf16.mxu1 %v1537_v50 }
  0x6d   :  { %1089 = vmatprep.subr.bf16.mxu0 %v1540_v51 }
  0x6f   :  { %1004 = vmatpush1.bf16.msra.mxu1 %v1535_v52 }
  0x70   :  { %1090 = vmatpush1.bf16.msra.mxu0 %v1538_v53  ;;  %1005 = vmatprep.subr.bf16.mxu1 %v1543_v54 }
  0x71   :  { %1091 = vmatprep.subr.bf16.mxu0 %v1546_v55 }
  0x73   :  { %1006 = vmatpush1.bf16.msra.mxu1 %v1541_v56 }
  0x74   :  { %1092 = vmatpush1.bf16.msra.mxu0 %v1544_v57  ;;  %1007 = vmatprep.subr.bf16.mxu1 %v1549_v58 }
  0x75   :  { %1093 = vmatprep.subr.bf16.mxu0 %v1552_v59 }
  0x77   :  { %1008 = vmatpush1.bf16.msra.mxu1 %v1547_v60 }
  0x78   :  { %1094 = vmatpush1.bf16.msra.mxu0 %v1550_v61  ;;  %1009 = vmatprep.subr.bf16.mxu1 %v1555_v62 }
  0x79   :  { %1095 = vmatprep.subr.bf16.mxu0 %v1558_v63 }
  0x7b   :  { %1010 = vmatpush1.bf16.msra.mxu1 %v1553_v0 }
  0x7c   :  { %1096 = vmatpush1.bf16.msra.mxu0 %v1556_v1  ;;  %1011 = vmatprep.subr.bf16.mxu1 %v1561_v2 }
  0x7d   :  { %1097 = vmatprep.subr.bf16.mxu0 %v1564_v3 }
  0x7f   :  { %1012 = vmatpush1.bf16.msra.mxu1 %v1559_v4 }
  0x80   :  { %1098 = vmatpush1.bf16.msra.mxu0 %v1562_v5 }
  0x81   :  { %1110 = vmatprep.subr.bf16.mxu0 %v1573_v6 }
  0x82   :  { %1014 = vmatmul.mubr.bf16.vlgmr.msra.gmra.mrb[0].mxu1 %v1565_v7 }
  0x83   :  { %1100 = vmatmul.mubr.bf16.vlgmr.msra.gmra.mrb[0].mxu0 %v1568_v8 }
  0x84   :  { %1111 = vmatpush1.bf16.msra.mxu0 %v1571_v9  ;;  %1142 = vmatprep.mubr.bf16.mxu0 %v1596_v12 }
  0x85   :  { %1112 = vmatprep.subr.bf16.mxu0 %v1576_v10 }
  0x88   :  { %1113 = vmatpush1.bf16.msra.mxu0 %v1574_v11 }
  0x89   :  { %1114 = vmatprep.subr.bf16.mxu0 %v1579_v13 }
  0x8c   :  { %1115 = vmatpush1.bf16.msra.mxu0 %v1577_v14 }
  0x8d   :  { %1116 = vmatprep.subr.bf16.mxu0 %v1582_v15 }
  0x90   :  { %1117 = vmatpush1.bf16.msra.mxu0 %v1580_v16 }
  0x91   :  { %1118 = vmatprep.subr.bf16.mxu0 %v1585_v17 }
  0x94   :  { %1119 = vmatpush1.bf16.msra.mxu0 %v1583_v18 }
  0x95   :  { %1120 = vmatprep.subr.bf16.mxu0 %v1588_v19 }
  0x98   :  { %1121 = vmatpush1.bf16.msra.mxu0 %v1586_v20 }
  0x99   :  { %1122 = vmatprep.subr.bf16.mxu0 %v1591_v21 }
  0x9c   :  { %1123 = vmatpush1.bf16.msra.mxu0 %v1589_v22 }
  0x9d   :  { %1124 = vmatprep.subr.bf16.mxu0 %v1594_v23 }
  0xa0   :  { %1125 = vmatpush1.bf16.msra.mxu0 %v1592_v24 }
  0xa3   :  { %1143 = vmatmul.mubr.bf16.vlgmr.msra.gmra.mrb[0].mxu0 %v1595_v25 }
 0x155   :  { %v1015_v26 = vpop.f32.mrb[0].mxu1 }
 0x156   :  { %v1017_v27 = vpop.f32.mrb[1].mxu1 }
 0x157   :  { %v1019_v28 = vpop.f32.mrb[2].mxu1 }
 0x158   :  { %v1021_v29 = vpop.f32.mrb[3].mxu1 }
 0x176   :  { %v1144_v37 = vpop.f32.mrb[0].mxu0 }
 0x177   :  { %v1350_v39 = vadd.f32 %v1144_v37, %v1015_v26  ;;  %v1146_v41 = vpop.f32.mrb[1].mxu0 }
 0x178   :  { %v1351_v42 = vadd.f32 %v1146_v41, %v1017_v27  ;;  %v1148_v44 = vpop.f32.mrb[2].mxu0 }
 0x179   :  { %v1165_v45 = vmul.f32 %v1350_v39, %v1158_v36  ;;  %v1352_v46 = vadd.f32 %v1148_v44, %v1019_v28  ;;  %v1150_v47 = vpop.f32.mrb[3].mxu0 }
 0x17a   :  { %v1166_v48 = vmul.f32 %v1351_v42, %v1162_v38  ;;  %v1353_v49 = vadd.f32 %v1150_v47, %v1021_v29 }
 0x17b   :  { %v1181_v50 = vadd.f32 %v1174_v40, %v1165_v45  ;;  %v1167_v51 = vmul.f32 %v1352_v46, %v1158_v36 }
 0x17c   :  { %v1182_v52 = vadd.f32 %v1178_v43, %v1166_v48  ;;  %v1168_v53 = vmul.f32 %v1353_v49, %v1162_v38 }
 0x17d   :  { %v1185_v54 = vmax.f32 %v1181_v50, 0.0  ;;  %v1183_v55 = vadd.f32 %v1174_v40, %v1167_v51 }
 0x17e   :  { %v1186_v56 = vmax.f32 %v1182_v52, 0.0  ;;  %v1184_v57 = vadd.f32 %v1178_v43, %v1168_v53 }
 0x17f   :  { %1189 = vst [vmem:[%s2103_s4] sm:$0xff] %v1185_v54  ;;  %v1187_v58 = vmax.f32 %v1183_v55, 0.0 }
 0x180   :  { %1190 = vst [vmem:[%s2103_s4 + $0x8] sm:$0xff] %v1186_v56  ;;  %v1188_v59 = vmax.f32 %v1184_v57, 0.0 }
 0x181   :  { %1191 = vst [vmem:[%s2103_s4 + $0x10] sm:$0xff] %v1187_v58 }
 0x182   :  { %1192 = vst [vmem:[%s2103_s4 + $0x18] sm:$0xff] %v1188_v59 }

// kernel: simple_net5_forward.16
= control target key start
LH: loop header
LB: loop body
LE: loop exit
PB: predicated region body
PF: predicated region fallthrough
CT: control target
= control target key end

     0   :  { %s3568_s1 = inlined_call_operand.vmem [shape: bf16[1024,512], index: 1, kind: input, shape index: {}]   ;;  %s3569_s0 = inlined_call_operand.vmem [shape: bf16[16,1024], index: 0, kind: input, shape index: {}]   ;;  %s3570_s2 = inlined_call_operand.vmem [shape: f32[1,512], index: 2, kind: input, shape index: {}]   ;;  %s3571_s3 = inlined_call_operand.vmem [shape: f32[1,512], index: 3, kind: input, shape index: {}]   ;;  %s3572_s4 = inlined_call_operand.vmem [shape: f32[16,512], index: 4, kind: output, shape index: {}]  }
   0x1   :  { %v2313_v0 = vld [vmem:[%s3568_s1 + $0x4] ss:$16 sps:$4 sm:$0xff]   ;;  %v2315_v1 = vld [vmem:[%s3568_s1 + $0xc] ss:$16 sps:$4 sm:$0xff]   ;;  %v2317_v2 = vld [vmem:[%s3568_s1] ss:$16 sps:$4 sm:$0xff]  }
   0x2   :  { %1601 = vmatprep.subr.bf16.mxu0 %v2313_v0  ;;  %v2318_v3 = vld [vmem:[%s3568_s1 + $0x8] ss:$16 sps:$4 sm:$0xff]   ;;  %1773 = vmatprep.subr.bf16.mxu1 %v2315_v1  ;;  %v2319_v4 = vld [vmem:[%s3568_s1 + $0x24] ss:$16 sps:$4 sm:$0xff]   ;;  %v2321_v5 = vld [vmem:[%s3568_s1 + $0x2c] ss:$16 sps:$4 sm:$0xff]  }
   0x3   :  { %1602 = vmatpush1.bf16.msra.mxu0 %v2317_v2  ;;  %1774 = vmatpush1.bf16.msra.mxu1 %v2318_v3  ;;  %v2323_v6 = vld [vmem:[%s3568_s1 + $0x20] ss:$16 sps:$4 sm:$0xff]   ;;  %v2324_v7 = vld [vmem:[%s3568_s1 + $0x28] ss:$16 sps:$4 sm:$0xff]   ;;  %v2325_v8 = vld [vmem:[%s3568_s1 + $0x44] ss:$16 sps:$4 sm:$0xff]  }
   0x4   :  { %1603 = vmatprep.subr.bf16.mxu0 %v2319_v4  ;;  %1775 = vmatprep.subr.bf16.mxu1 %v2321_v5  ;;  %v2327_v9 = vld [vmem:[%s3568_s1 + $0x4c] ss:$16 sps:$4 sm:$0xff]   ;;  %v2329_v10 = vld [vmem:[%s3568_s1 + $0x40] ss:$16 sps:$4 sm:$0xff]   ;;  %v2330_v11 = vld [vmem:[%s3568_s1 + $0x48] ss:$16 sps:$4 sm:$0xff]  }
   0x5   :  { %v2331_v12 = vld [vmem:[%s3568_s1 + $0x64] ss:$16 sps:$4 sm:$0xff]   ;;  %v2333_v13 = vld [vmem:[%s3568_s1 + $0x6c] ss:$16 sps:$4 sm:$0xff]   ;;  %v2335_v14 = vld [vmem:[%s3568_s1 + $0x60] ss:$16 sps:$4 sm:$0xff]  }
   0x6   :  { %v2336_v15 = vld [vmem:[%s3568_s1 + $0x68] ss:$16 sps:$4 sm:$0xff]   ;;  %v2337_v16 = vld [vmem:[%s3568_s1 + $0x84] ss:$16 sps:$4 sm:$0xff]   ;;  %v2339_v17 = vld [vmem:[%s3568_s1 + $0x8c] ss:$16 sps:$4 sm:$0xff]  }
   0x7   :  { %1604 = vmatpush1.bf16.msra.mxu0 %v2323_v6  ;;  %1776 = vmatpush1.bf16.msra.mxu1 %v2324_v7  ;;  %v2341_v18 = vld [vmem:[%s3568_s1 + $0x80] ss:$16 sps:$4 sm:$0xff]   ;;  %v2342_v19 = vld [vmem:[%s3568_s1 + $0x88] ss:$16 sps:$4 sm:$0xff]   ;;  %v2343_v20 = vld [vmem:[%s3568_s1 + $0xa4] ss:$16 sps:$4 sm:$0xff]  }
   0x8   :  { %1605 = vmatprep.subr.bf16.mxu0 %v2325_v8  ;;  %1777 = vmatprep.subr.bf16.mxu1 %v2327_v9  ;;  %v2345_v21 = vld [vmem:[%s3568_s1 + $0xac] ss:$16 sps:$4 sm:$0xff]   ;;  %v2347_v22 = vld [vmem:[%s3568_s1 + $0xa0] ss:$16 sps:$4 sm:$0xff]   ;;  %v2348_v23 = vld [vmem:[%s3568_s1 + $0xa8] ss:$16 sps:$4 sm:$0xff]  }
   0x9   :  { %v2349_v24 = vld [vmem:[%s3568_s1 + $0xc4] ss:$16 sps:$4 sm:$0xff]   ;;  %v2351_v25 = vld [vmem:[%s3568_s1 + $0xcc] ss:$16 sps:$4 sm:$0xff]   ;;  %v2353_v26 = vld [vmem:[%s3568_s1 + $0xc0] ss:$16 sps:$4 sm:$0xff]  }
   0xa   :  { %v2354_v27 = vld [vmem:[%s3568_s1 + $0xc8] ss:$16 sps:$4 sm:$0xff]   ;;  %v2355_v28 = vld [vmem:[%s3568_s1 + $0xe4] ss:$16 sps:$4 sm:$0xff]   ;;  %v2357_v29 = vld [vmem:[%s3568_s1 + $0xec] ss:$16 sps:$4 sm:$0xff]  }
   0xb   :  { %1606 = vmatpush1.bf16.msra.mxu0 %v2329_v10  ;;  %1778 = vmatpush1.bf16.msra.mxu1 %v2330_v11  ;;  %v2359_v30 = vld [vmem:[%s3568_s1 + $0xe0] ss:$16 sps:$4 sm:$0xff]   ;;  %v2360_v31 = vld [vmem:[%s3568_s1 + $0xe8] ss:$16 sps:$4 sm:$0xff]   ;;  %v2361_v32 = vld [vmem:[%s3568_s1 + $0x104] ss:$16 sps:$4 sm:$0xff]  }
   0xc   :  { %1607 = vmatprep.subr.bf16.mxu0 %v2331_v12  ;;  %1779 = vmatprep.subr.bf16.mxu1 %v2333_v13  ;;  %v2363_v33 = vld [vmem:[%s3568_s1 + $0x10c] ss:$16 sps:$4 sm:$0xff]   ;;  %v2365_v34 = vld [vmem:[%s3568_s1 + $0x100] ss:$16 sps:$4 sm:$0xff]   ;;  %v2366_v35 = vld [vmem:[%s3568_s1 + $0x108] ss:$16 sps:$4 sm:$0xff]  }
   0xd   :  { %v2367_v36 = vld [vmem:[%s3568_s1 + $0x124] ss:$16 sps:$4 sm:$0xff]   ;;  %v2369_v37 = vld [vmem:[%s3568_s1 + $0x12c] ss:$16 sps:$4 sm:$0xff]   ;;  %v2371_v38 = vld [vmem:[%s3568_s1 + $0x120] ss:$16 sps:$4 sm:$0xff]  }
   0xe   :  { %v2372_v39 = vld [vmem:[%s3568_s1 + $0x128] ss:$16 sps:$4 sm:$0xff]   ;;  %v2373_v40 = vld [vmem:[%s3568_s1 + $0x144] ss:$16 sps:$4 sm:$0xff]   ;;  %v2375_v41 = vld [vmem:[%s3568_s1 + $0x14c] ss:$16 sps:$4 sm:$0xff]  }
   0xf   :  { %1608 = vmatpush1.bf16.msra.mxu0 %v2335_v14  ;;  %1780 = vmatpush1.bf16.msra.mxu1 %v2336_v15  ;;  %v2377_v42 = vld [vmem:[%s3568_s1 + $0x140] ss:$16 sps:$4 sm:$0xff]   ;;  %v2378_v43 = vld [vmem:[%s3568_s1 + $0x148] ss:$16 sps:$4 sm:$0xff]   ;;  %v2379_v44 = vld [vmem:[%s3568_s1 + $0x164] ss:$16 sps:$4 sm:$0xff]  }
  0x10   :  { %1609 = vmatprep.subr.bf16.mxu0 %v2337_v16  ;;  %1781 = vmatprep.subr.bf16.mxu1 %v2339_v17  ;;  %v2381_v45 = vld [vmem:[%s3568_s1 + $0x16c] ss:$16 sps:$4 sm:$0xff]   ;;  %v17_v46 = vld [vmem:[%s3569_s0] sm:$0xff]  ;;  %v2384_v49 = vld [vmem:[%s3568_s1 + $0x168] ss:$16 sps:$4 sm:$0xff]  }
  0x11   :  { %v21_v47 = vld [vmem:[%s3569_s0 + $0x20] sm:$0xff]  ;;  %v2387_v52 = vld [vmem:[%s3568_s1 + $0x18c] ss:$16 sps:$4 sm:$0xff]   ;;  %v2390_v54 = vld [vmem:[%s3568_s1 + $0x188] ss:$16 sps:$4 sm:$0xff]  }
  0x12   :  { %v2383_v48 = vld [vmem:[%s3568_s1 + $0x160] ss:$16 sps:$4 sm:$0xff]   ;;  %v2026_v50 = vcombine.high %v17_v46, %v21_v47  ;;  %v2385_v51 = vld [vmem:[%s3568_s1 + $0x184] ss:$16 sps:$4 sm:$0xff]   ;;  %v2393_v56 = vld [vmem:[%s3568_s1 + $0x1ac] ss:$16 sps:$4 sm:$0xff]   ;;  %v2025_v5 = vcombine.low %v17_v46, %v21_v47 }
  0x13   :  { %1610 = vmatpush1.bf16.msra.mxu0 %v2341_v18  ;;  %1782 = vmatpush1.bf16.msra.mxu1 %v2342_v19  ;;  %v2389_v53 = vld [vmem:[%s3568_s1 + $0x180] ss:$16 sps:$4 sm:$0xff]   ;;  %v2391_v55 = vld [vmem:[%s3568_s1 + $0x1a4] ss:$16 sps:$4 sm:$0xff]   ;;  %v2396_v58 = vld [vmem:[%s3568_s1 + $0x1a8] ss:$16 sps:$4 sm:$0xff]  }
  0x14   :  { %1611 = vmatprep.subr.bf16.mxu0 %v2343_v20  ;;  %1783 = vmatprep.subr.bf16.mxu1 %v2345_v21  ;;  %v2395_v57 = vld [vmem:[%s3568_s1 + $0x1a0] ss:$16 sps:$4 sm:$0xff]   ;;  %v2397_v59 = vld [vmem:[%s3568_s1 + $0x1c4] ss:$16 sps:$4 sm:$0xff]   ;;  %v2399_v60 = vld [vmem:[%s3568_s1 + $0x1cc] ss:$16 sps:$4 sm:$0xff]  }
  0x15   :  { %1633 = vmatprep.mubr.bf16.mxu0 %v2026_v50  ;;  %1805 = vmatprep.mubr.bf16.mxu1 %v2026_v50  ;;  %v2401_v61 = vld [vmem:[%s3568_s1 + $0x1c0] ss:$16 sps:$4 sm:$0xff]   ;;  %v2402_v62 = vld [vmem:[%s3568_s1 + $0x1c8] ss:$16 sps:$4 sm:$0xff]   ;;  %v2403_v63 = vld [vmem:[%s3568_s1 + $0x1e4] ss:$16 sps:$4 sm:$0xff]  }
  0x16   :  { %v2405_v0 = vld [vmem:[%s3568_s1 + $0x1ec] ss:$16 sps:$4 sm:$0xff]   ;;  %v2407_v1 = vld [vmem:[%s3568_s1 + $0x1e0] ss:$16 sps:$4 sm:$0xff]   ;;  %v2408_v2 = vld [vmem:[%s3568_s1 + $0x1e8] ss:$16 sps:$4 sm:$0xff]  }
  0x17   :  { %1612 = vmatpush1.bf16.msra.mxu0 %v2347_v22  ;;  %1784 = vmatpush1.bf16.msra.mxu1 %v2348_v23  ;;  %v2411_v3 = vld [vmem:[%s3568_s1 + $0x204] ss:$16 sps:$4 sm:$0xff]   ;;  %v2414_v4 = vld [vmem:[%s3568_s1 + $0x20c] ss:$16 sps:$4 sm:$0xff]   ;;  %v2409_v6 = vld [vmem:[%s3568_s1 + $0x200] ss:$16 sps:$4 sm:$0xff]  }
  0x18   :  { %1613 = vmatprep.subr.bf16.mxu0 %v2349_v24  ;;  %1785 = vmatprep.subr.bf16.mxu1 %v2351_v25  ;;  %v2412_v7 = vld [vmem:[%s3568_s1 + $0x208] ss:$16 sps:$4 sm:$0xff]   ;;  %v2417_v8 = vld [vmem:[%s3568_s1 + $0x224] ss:$16 sps:$4 sm:$0xff]   ;;  %v2420_v9 = vld [vmem:[%s3568_s1 + $0x22c] ss:$16 sps:$4 sm:$0xff]  }
  0x19   :  { %v2415_v10 = vld [vmem:[%s3568_s1 + $0x220] ss:$16 sps:$4 sm:$0xff]   ;;  %v2418_v11 = vld [vmem:[%s3568_s1 + $0x228] ss:$16 sps:$4 sm:$0xff]   ;;  %v2423_v12 = vld [vmem:[%s3568_s1 + $0x244] ss:$16 sps:$4 sm:$0xff]  }
  0x1a   :  { %v2426_v13 = vld [vmem:[%s3568_s1 + $0x24c] ss:$16 sps:$4 sm:$0xff]   ;;  %v2421_v14 = vld [vmem:[%s3568_s1 + $0x240] ss:$16 sps:$4 sm:$0xff]   ;;  %v2424_v15 = vld [vmem:[%s3568_s1 + $0x248] ss:$16 sps:$4 sm:$0xff]  }
  0x1b   :  { %1614 = vmatpush1.bf16.msra.mxu0 %v2353_v26  ;;  %1786 = vmatpush1.bf16.msra.mxu1 %v2354_v27  ;;  %v2429_v16 = vld [vmem:[%s3568_s1 + $0x264] ss:$16 sps:$4 sm:$0xff]   ;;  %v2432_v17 = vld [vmem:[%s3568_s1 + $0x26c] ss:$16 sps:$4 sm:$0xff]   ;;  %v2427_v18 = vld [vmem:[%s3568_s1 + $0x260] ss:$16 sps:$4 sm:$0xff]  }
  0x1c   :  { %1615 = vmatprep.subr.bf16.mxu0 %v2355_v28  ;;  %1787 = vmatprep.subr.bf16.mxu1 %v2357_v29  ;;  %v2430_v19 = vld [vmem:[%s3568_s1 + $0x268] ss:$16 sps:$4 sm:$0xff]   ;;  %v2435_v20 = vld [vmem:[%s3568_s1 + $0x284] ss:$16 sps:$4 sm:$0xff]   ;;  %v2438_v21 = vld [vmem:[%s3568_s1 + $0x28c] ss:$16 sps:$4 sm:$0xff]  }
  0x1d   :  { %v2433_v22 = vld [vmem:[%s3568_s1 + $0x280] ss:$16 sps:$4 sm:$0xff]   ;;  %v2436_v23 = vld [vmem:[%s3568_s1 + $0x288] ss:$16 sps:$4 sm:$0xff]   ;;  %v2441_v24 = vld [vmem:[%s3568_s1 + $0x2a4] ss:$16 sps:$4 sm:$0xff]  }
  0x1e   :  { %v2444_v25 = vld [vmem:[%s3568_s1 + $0x2ac] ss:$16 sps:$4 sm:$0xff]   ;;  %v2439_v26 = vld [vmem:[%s3568_s1 + $0x2a0] ss:$16 sps:$4 sm:$0xff]   ;;  %v2442_v27 = vld [vmem:[%s3568_s1 + $0x2a8] ss:$16 sps:$4 sm:$0xff]  }
  0x1f   :  { %1616 = vmatpush1.bf16.msra.mxu0 %v2359_v30  ;;  %1788 = vmatpush1.bf16.msra.mxu1 %v2360_v31  ;;  %v2447_v28 = vld [vmem:[%s3568_s1 + $0x2c4] ss:$16 sps:$4 sm:$0xff]   ;;  %v2450_v29 = vld [vmem:[%s3568_s1 + $0x2cc] ss:$16 sps:$4 sm:$0xff]   ;;  %v2466_v46 = vld [vmem:[%s3568_s1 + $0x328] ss:$16 sps:$4 sm:$0xff]  }
  0x20   :  { %1617 = vmatprep.subr.bf16.mxu0 %v2361_v32  ;;  %1789 = vmatprep.subr.bf16.mxu1 %v2363_v33  ;;  %v3001_v30 = vld [vmem:[%s3569_s0 + $0x8] sm:$0xff]  ;;  %v2445_v32 = vld [vmem:[%s3568_s1 + $0x2c0] ss:$16 sps:$4 sm:$0xff]   ;;  %v2471_v47 = vld [vmem:[%s3568_s1 + $0x344] ss:$16 sps:$4 sm:$0xff]  }
  0x21   :  { %v3006_v31 = vld [vmem:[%s3569_s0 + $0x28] sm:$0xff] }
  0x22   :  { %v2448_v33 = vld [vmem:[%s3568_s1 + $0x2c8] ss:$16 sps:$4 sm:$0xff]  }
  0x23   :  { %1618 = vmatpush1.bf16.msra.mxu0 %v2365_v34  ;;  %1790 = vmatpush1.bf16.msra.mxu1 %v2366_v35  ;;  %v2028_v34 = vcombine.high %v3001_v30, %v3006_v31  ;;  %v2453_v35 = vld [vmem:[%s3568_s1 + $0x2e4] ss:$16 sps:$4 sm:$0xff]   ;;  %v2472_v50 = vld [vmem:[%s3568_s1 + $0x348] ss:$16 sps:$4 sm:$0xff]  }
  0x24   :  { %1619 = vmatprep.subr.bf16.mxu0 %v2367_v36  ;;  %1791 = vmatprep.subr.bf16.mxu1 %v2369_v37  ;;  %v2456_v36 = vld [vmem:[%s3568_s1 + $0x2ec] ss:$16 sps:$4 sm:$0xff]   ;;  %v2451_v37 = vld [vmem:[%s3568_s1 + $0x2e0] ss:$16 sps:$4 sm:$0xff]  }
  0x27   :  { %1620 = vmatpush1.bf16.msra.mxu0 %v2371_v38  ;;  %1792 = vmatpush1.bf16.msra.mxu1 %v2372_v39  ;;  %v2454_v38 = vld [vmem:[%s3568_s1 + $0x2e8] ss:$16 sps:$4 sm:$0xff]   ;;  %v2459_v39 = vld [vmem:[%s3568_s1 + $0x304] ss:$16 sps:$4 sm:$0xff]  }
  0x28   :  { %1621 = vmatprep.subr.bf16.mxu0 %v2373_v40  ;;  %1793 = vmatprep.subr.bf16.mxu1 %v2375_v41  ;;  %v2462_v40 = vld [vmem:[%s3568_s1 + $0x30c] ss:$16 sps:$4 sm:$0xff]   ;;  %v2457_v41 = vld [vmem:[%s3568_s1 + $0x300] ss:$16 sps:$4 sm:$0xff]  }
  0x2b   :  { %1622 = vmatpush1.bf16.msra.mxu0 %v2377_v42  ;;  %1794 = vmatpush1.bf16.msra.mxu1 %v2378_v43  ;;  %v2460_v42 = vld [vmem:[%s3568_s1 + $0x308] ss:$16 sps:$4 sm:$0xff]   ;;  %v2465_v43 = vld [vmem:[%s3568_s1 + $0x324] ss:$16 sps:$4 sm:$0xff]  }
  0x2c   :  { %1623 = vmatprep.subr.bf16.mxu0 %v2379_v44  ;;  %1795 = vmatprep.subr.bf16.mxu1 %v2381_v45  ;;  %v2468_v44 = vld [vmem:[%s3568_s1 + $0x32c] ss:$16 sps:$4 sm:$0xff]   ;;  %v2463_v45 = vld [vmem:[%s3568_s1 + $0x320] ss:$16 sps:$4 sm:$0xff]  }
  0x2f   :  { %1624 = vmatpush1.bf16.msra.mxu0 %v2383_v48  ;;  %1796 = vmatpush1.bf16.msra.mxu1 %v2384_v49  ;;  %v2474_v48 = vld [vmem:[%s3568_s1 + $0x34c] ss:$16 sps:$4 sm:$0xff]   ;;  %v2469_v49 = vld [vmem:[%s3568_s1 + $0x340] ss:$16 sps:$4 sm:$0xff]  }
  0x30   :  { %1625 = vmatprep.subr.bf16.mxu0 %v2385_v51  ;;  %1797 = vmatprep.subr.bf16.mxu1 %v2387_v52  ;;  %v2477_v51 = vld [vmem:[%s3568_s1 + $0x364] ss:$16 sps:$4 sm:$0xff]   ;;  %v2480_v52 = vld [vmem:[%s3568_s1 + $0x36c] ss:$16 sps:$4 sm:$0xff]  }
  0x33   :  { %1626 = vmatpush1.bf16.msra.mxu0 %v2389_v53  ;;  %1798 = vmatpush1.bf16.msra.mxu1 %v2390_v54  ;;  %v2475_v53 = vld [vmem:[%s3568_s1 + $0x360] ss:$16 sps:$4 sm:$0xff]   ;;  %v2478_v54 = vld [vmem:[%s3568_s1 + $0x368] ss:$16 sps:$4 sm:$0xff]  }
  0x34   :  { %1627 = vmatprep.subr.bf16.mxu0 %v2391_v55  ;;  %1799 = vmatprep.subr.bf16.mxu1 %v2393_v56  ;;  %v2483_v55 = vld [vmem:[%s3568_s1 + $0x384] ss:$16 sps:$4 sm:$0xff]   ;;  %v2486_v56 = vld [vmem:[%s3568_s1 + $0x38c] ss:$16 sps:$4 sm:$0xff]  }
  0x37   :  { %1628 = vmatpush1.bf16.msra.mxu0 %v2395_v57  ;;  %1800 = vmatpush1.bf16.msra.mxu1 %v2396_v58  ;;  %v2481_v57 = vld [vmem:[%s3568_s1 + $0x380] ss:$16 sps:$4 sm:$0xff]   ;;  %v2484_v58 = vld [vmem:[%s3568_s1 + $0x388] ss:$16 sps:$4 sm:$0xff]  }
  0x38   :  { %1629 = vmatprep.subr.bf16.mxu0 %v2397_v59  ;;  %1801 = vmatprep.subr.bf16.mxu1 %v2399_v60  ;;  %v2489_v59 = vld [vmem:[%s3568_s1 + $0x3a4] ss:$16 sps:$4 sm:$0xff]   ;;  %v2492_v60 = vld [vmem:[%s3568_s1 + $0x3ac] ss:$16 sps:$4 sm:$0xff]  }
  0x3b   :  { %1630 = vmatpush1.bf16.msra.mxu0 %v2401_v61  ;;  %1802 = vmatpush1.bf16.msra.mxu1 %v2402_v62  ;;  %v2487_v61 = vld [vmem:[%s3568_s1 + $0x3a0] ss:$16 sps:$4 sm:$0xff]   ;;  %v2490_v62 = vld [vmem:[%s3568_s1 + $0x3a8] ss:$16 sps:$4 sm:$0xff]  }
  0x3c   :  { %1631 = vmatprep.subr.bf16.mxu0 %v2403_v63  ;;  %1803 = vmatprep.subr.bf16.mxu1 %v2405_v0  ;;  %v2495_v63 = vld [vmem:[%s3568_s1 + $0x3c4] ss:$16 sps:$4 sm:$0xff]   ;;  %v2498_v0 = vld [vmem:[%s3568_s1 + $0x3cc] ss:$16 sps:$4 sm:$0xff]  }
  0x3f   :  { %1632 = vmatpush1.bf16.msra.mxu0 %v2407_v1  ;;  %1804 = vmatpush1.bf16.msra.mxu1 %v2408_v2  ;;  %v2493_v1 = vld [vmem:[%s3568_s1 + $0x3c0] ss:$16 sps:$4 sm:$0xff]   ;;  %v2496_v2 = vld [vmem:[%s3568_s1 + $0x3c8] ss:$16 sps:$4 sm:$0xff]  }
  0x40   :  { %1644 = vmatprep.subr.bf16.mxu0 %v2411_v3  ;;  %1816 = vmatprep.subr.bf16.mxu1 %v2414_v4  ;;  %v2501_v3 = vld [vmem:[%s3568_s1 + $0x3e4] ss:$16 sps:$4 sm:$0xff]   ;;  %v2504_v4 = vld [vmem:[%s3568_s1 + $0x3ec] ss:$16 sps:$4 sm:$0xff]  }
  0x42   :  { %1634 = vmatmul.mubr.bf16.vlgmr.msra.gmra.mrb[0].mxu0 %v2025_v5  ;;  %1806 = vmatmul.mubr.bf16.vlgmr.msra.gmra.mrb[0].mxu1 %v2025_v5  ;;  %v2499_v5 = vld [vmem:[%s3568_s1 + $0x3e0] ss:$16 sps:$4 sm:$0xff]  }
  0x43   :  { %1645 = vmatpush1.bf16.msra.mxu0 %v2409_v6  ;;  %1817 = vmatpush1.bf16.msra.mxu1 %v2412_v7  ;;  %v2502_v6 = vld [vmem:[%s3568_s1 + $0x3e8] ss:$16 sps:$4 sm:$0xff]   ;;  %v2507_v7 = vld [vmem:[%s3568_s1 + $0x404] ss:$16 sps:$4 sm:$0xff]  }
  0x44   :  { %1646 = vmatprep.subr.bf16.mxu0 %v2417_v8  ;;  %1818 = vmatprep.subr.bf16.mxu1 %v2420_v9  ;;  %v2510_v8 = vld [vmem:[%s3568_s1 + $0x40c] ss:$16 sps:$4 sm:$0xff]   ;;  %v2027_v9 = vcombine.low %v3001_v30, %v3006_v31  ;;  %v2532_v30 = vld [vmem:[%s3568_s1 + $0x488] ss:$16 sps:$4 sm:$0xff]   ;;  %v2537_v31 = vld [vmem:[%s3568_s1 + $0x4a4] ss:$16 sps:$4 sm:$0xff]  }
  0x45   :  { %1676 = vmatprep.mubr.bf16.mxu0 %v2028_v34  ;;  %1848 = vmatprep.mubr.bf16.mxu1 %v2028_v34  ;;  %v2538_v34 = vld [vmem:[%s3568_s1 + $0x4a8] ss:$16 sps:$4 sm:$0xff]  }
  0x47   :  { %1647 = vmatpush1.bf16.msra.mxu0 %v2415_v10  ;;  %1819 = vmatpush1.bf16.msra.mxu1 %v2418_v11  ;;  %v2505_v10 = vld [vmem:[%s3568_s1 + $0x400] ss:$16 sps:$4 sm:$0xff]   ;;  %v2508_v11 = vld [vmem:[%s3568_s1 + $0x408] ss:$16 sps:$4 sm:$0xff]  }
  0x48   :  { %1648 = vmatprep.subr.bf16.mxu0 %v2423_v12  ;;  %1820 = vmatprep.subr.bf16.mxu1 %v2426_v13  ;;  %v2513_v12 = vld [vmem:[%s3568_s1 + $0x424] ss:$16 sps:$4 sm:$0xff]   ;;  %v2516_v13 = vld [vmem:[%s3568_s1 + $0x42c] ss:$16 sps:$4 sm:$0xff]  }
  0x4b   :  { %1649 = vmatpush1.bf16.msra.mxu0 %v2421_v14  ;;  %1821 = vmatpush1.bf16.msra.mxu1 %v2424_v15  ;;  %v3147_v14 = vld [vmem:[%s3569_s0 + $0x10] sm:$0xff] }
  0x4c   :  { %1650 = vmatprep.subr.bf16.mxu0 %v2429_v16  ;;  %1822 = vmatprep.subr.bf16.mxu1 %v2432_v17  ;;  %v3152_v15 = vld [vmem:[%s3569_s0 + $0x30] sm:$0xff] }
  0x4d   :  { %v2030_v16 = vcombine.high %v3147_v14, %v3152_v15  ;;  %v2511_v17 = vld [vmem:[%s3568_s1 + $0x420] ss:$16 sps:$4 sm:$0xff]  }
  0x4f   :  { %1651 = vmatpush1.bf16.msra.mxu0 %v2427_v18  ;;  %1823 = vmatpush1.bf16.msra.mxu1 %v2430_v19  ;;  %v2514_v18 = vld [vmem:[%s3568_s1 + $0x428] ss:$16 sps:$4 sm:$0xff]   ;;  %v2519_v19 = vld [vmem:[%s3568_s1 + $0x444] ss:$16 sps:$4 sm:$0xff]  }
  0x50   :  { %1652 = vmatprep.subr.bf16.mxu0 %v2435_v20  ;;  %1824 = vmatprep.subr.bf16.mxu1 %v2438_v21  ;;  %v2522_v20 = vld [vmem:[%s3568_s1 + $0x44c] ss:$16 sps:$4 sm:$0xff]   ;;  %v2517_v21 = vld [vmem:[%s3568_s1 + $0x440] ss:$16 sps:$4 sm:$0xff]  }
  0x53   :  { %1653 = vmatpush1.bf16.msra.mxu0 %v2433_v22  ;;  %1825 = vmatpush1.bf16.msra.mxu1 %v2436_v23  ;;  %v2520_v22 = vld [vmem:[%s3568_s1 + $0x448] ss:$16 sps:$4 sm:$0xff]   ;;  %v2525_v23 = vld [vmem:[%s3568_s1 + $0x464] ss:$16 sps:$4 sm:$0xff]  }
  0x54   :  { %1654 = vmatprep.subr.bf16.mxu0 %v2441_v24  ;;  %1826 = vmatprep.subr.bf16.mxu1 %v2444_v25  ;;  %v2528_v24 = vld [vmem:[%s3568_s1 + $0x46c] ss:$16 sps:$4 sm:$0xff]   ;;  %v2523_v25 = vld [vmem:[%s3568_s1 + $0x460] ss:$16 sps:$4 sm:$0xff]  }
  0x57   :  { %1655 = vmatpush1.bf16.msra.mxu0 %v2439_v26  ;;  %1827 = vmatpush1.bf16.msra.mxu1 %v2442_v27  ;;  %v2526_v26 = vld [vmem:[%s3568_s1 + $0x468] ss:$16 sps:$4 sm:$0xff]   ;;  %v2531_v27 = vld [vmem:[%s3568_s1 + $0x484] ss:$16 sps:$4 sm:$0xff]  }
  0x58   :  { %1656 = vmatprep.subr.bf16.mxu0 %v2447_v28  ;;  %1828 = vmatprep.subr.bf16.mxu1 %v2450_v29  ;;  %v2534_v28 = vld [vmem:[%s3568_s1 + $0x48c] ss:$16 sps:$4 sm:$0xff]   ;;  %v2529_v29 = vld [vmem:[%s3568_s1 + $0x480] ss:$16 sps:$4 sm:$0xff]  }
  0x5b   :  { %1657 = vmatpush1.bf16.msra.mxu0 %v2445_v32  ;;  %1829 = vmatpush1.bf16.msra.mxu1 %v2448_v33  ;;  %v2540_v32 = vld [vmem:[%s3568_s1 + $0x4ac] ss:$16 sps:$4 sm:$0xff]   ;;  %v2535_v33 = vld [vmem:[%s3568_s1 + $0x4a0] ss:$16 sps:$4 sm:$0xff]  }
  0x5c   :  { %1658 = vmatprep.subr.bf16.mxu0 %v2453_v35  ;;  %1830 = vmatprep.subr.bf16.mxu1 %v2456_v36  ;;  %v2543_v35 = vld [vmem:[%s3568_s1 + $0x4c4] ss:$16 sps:$4 sm:$0xff]   ;;  %v2546_v36 = vld [vmem:[%s3568_s1 + $0x4cc] ss:$16 sps:$4 sm:$0xff]  }
  0x5f   :  { %1659 = vmatpush1.bf16.msra.mxu0 %v2451_v37  ;;  %1831 = vmatpush1.bf16.msra.mxu1 %v2454_v38  ;;  %v2541_v37 = vld [vmem:[%s3568_s1 + $0x4c0] ss:$16 sps:$4 sm:$0xff]   ;;  %v2544_v38 = vld [vmem:[%s3568_s1 + $0x4c8] ss:$16 sps:$4 sm:$0xff]  }
  0x60   :  { %1660 = vmatprep.subr.bf16.mxu0 %v2459_v39  ;;  %1832 = vmatprep.subr.bf16.mxu1 %v2462_v40  ;;  %v2549_v39 = vld [vmem:[%s3568_s1 + $0x4e4] ss:$16 sps:$4 sm:$0xff]   ;;  %v2552_v40 = vld [vmem:[%s3568_s1 + $0x4ec] ss:$16 sps:$4 sm:$0xff]  }
  0x63   :  { %1661 = vmatpush1.bf16.msra.mxu0 %v2457_v41  ;;  %1833 = vmatpush1.bf16.msra.mxu1 %v2460_v42  ;;  %v2547_v41 = vld [vmem:[%s3568_s1 + $0x4e0] ss:$16 sps:$4 sm:$0xff]   ;;  %v2550_v42 = vld [vmem:[%s3568_s1 + $0x4e8] ss:$16 sps:$4 sm:$0xff]  }
  0x64   :  { %1662 = vmatprep.subr.bf16.mxu0 %v2465_v43  ;;  %1834 = vmatprep.subr.bf16.mxu1 %v2468_v44  ;;  %v2555_v43 = vld [vmem:[%s3568_s1 + $0x504] ss:$16 sps:$4 sm:$0xff]   ;;  %v2558_v44 = vld [vmem:[%s3568_s1 + $0x50c] ss:$16 sps:$4 sm:$0xff]  }
  0x67   :  { %1663 = vmatpush1.bf16.msra.mxu0 %v2463_v45  ;;  %1835 = vmatpush1.bf16.msra.mxu1 %v2466_v46  ;;  %v2553_v45 = vld [vmem:[%s3568_s1 + $0x500] ss:$16 sps:$4 sm:$0xff]   ;;  %v2556_v46 = vld [vmem:[%s3568_s1 + $0x508] ss:$16 sps:$4 sm:$0xff]  }
  0x68   :  { %1664 = vmatprep.subr.bf16.mxu0 %v2471_v47  ;;  %1836 = vmatprep.subr.bf16.mxu1 %v2474_v48  ;;  %v2561_v47 = vld [vmem:[%s3568_s1 + $0x524] ss:$16 sps:$4 sm:$0xff]   ;;  %v2564_v48 = vld [vmem:[%s3568_s1 + $0x52c] ss:$16 sps:$4 sm:$0xff]  }
  0x6b   :  { %1665 = vmatpush1.bf16.msra.mxu0 %v2469_v49  ;;  %1837 = vmatpush1.bf16.msra.mxu1 %v2472_v50  ;;  %v2559_v49 = vld [vmem:[%s3568_s1 + $0x520] ss:$16 sps:$4 sm:$0xff]   ;;  %v2562_v50 = vld [vmem:[%s3568_s1 + $0x528] ss:$16 sps:$4 sm:$0xff]  }
  0x6c   :  { %1666 = vmatprep.subr.bf16.mxu0 %v2477_v51  ;;  %1838 = vmatprep.subr.bf16.mxu1 %v2480_v52  ;;  %v2567_v51 = vld [vmem:[%s3568_s1 + $0x544] ss:$16 sps:$4 sm:$0xff]   ;;  %v2570_v52 = vld [vmem:[%s3568_s1 + $0x54c] ss:$16 sps:$4 sm:$0xff]  }
  0x6f   :  { %1667 = vmatpush1.bf16.msra.mxu0 %v2475_v53  ;;  %1839 = vmatpush1.bf16.msra.mxu1 %v2478_v54  ;;  %v2565_v53 = vld [vmem:[%s3568_s1 + $0x540] ss:$16 sps:$4 sm:$0xff]   ;;  %v2568_v54 = vld [vmem:[%s3568_s1 + $0x548] ss:$16 sps:$4 sm:$0xff]  }
  0x70   :  { %1668 = vmatprep.subr.bf16.mxu0 %v2483_v55  ;;  %1840 = vmatprep.subr.bf16.mxu1 %v2486_v56  ;;  %v2573_v55 = vld [vmem:[%s3568_s1 + $0x564] ss:$16 sps:$4 sm:$0xff]   ;;  %v2576_v56 = vld [vmem:[%s3568_s1 + $0x56c] ss:$16 sps:$4 sm:$0xff]  }
  0x73   :  { %1669 = vmatpush1.bf16.msra.mxu0 %v2481_v57  ;;  %1841 = vmatpush1.bf16.msra.mxu1 %v2484_v58  ;;  %v2571_v57 = vld [vmem:[%s3568_s1 + $0x560] ss:$16 sps:$4 sm:$0xff]   ;;  %v2574_v58 = vld [vmem:[%s3568_s1 + $0x568] ss:$16 sps:$4 sm:$0xff]  }
  0x74   :  { %1670 = vmatprep.subr.bf16.mxu0 %v2489_v59  ;;  %1842 = vmatprep.subr.bf16.mxu1 %v2492_v60  ;;  %v2579_v59 = vld [vmem:[%s3568_s1 + $0x584] ss:$16 sps:$4 sm:$0xff]   ;;  %v2582_v60 = vld [vmem:[%s3568_s1 + $0x58c] ss:$16 sps:$4 sm:$0xff]  }
  0x77   :  { %1671 = vmatpush1.bf16.msra.mxu0 %v2487_v61  ;;  %1843 = vmatpush1.bf16.msra.mxu1 %v2490_v62  ;;  %v2577_v61 = vld [vmem:[%s3568_s1 + $0x580] ss:$16 sps:$4 sm:$0xff]   ;;  %v2580_v62 = vld [vmem:[%s3568_s1 + $0x588] ss:$16 sps:$4 sm:$0xff]  }
  0x78   :  { %1672 = vmatprep.subr.bf16.mxu0 %v2495_v63  ;;  %1844 = vmatprep.subr.bf16.mxu1 %v2498_v0  ;;  %v2585_v63 = vld [vmem:[%s3568_s1 + $0x5a4] ss:$16 sps:$4 sm:$0xff]   ;;  %v2588_v0 = vld [vmem:[%s3568_s1 + $0x5ac] ss:$16 sps:$4 sm:$0xff]  }
  0x7b   :  { %1673 = vmatpush1.bf16.msra.mxu0 %v2493_v1  ;;  %1845 = vmatpush1.bf16.msra.mxu1 %v2496_v2  ;;  %v2583_v1 = vld [vmem:[%s3568_s1 + $0x5a0] ss:$16 sps:$4 sm:$0xff]   ;;  %v2586_v2 = vld [vmem:[%s3568_s1 + $0x5a8] ss:$16 sps:$4 sm:$0xff]  }
  0x7c   :  { %1674 = vmatprep.subr.bf16.mxu0 %v2501_v3  ;;  %1846 = vmatprep.subr.bf16.mxu1 %v2504_v4  ;;  %v2591_v3 = vld [vmem:[%s3568_s1 + $0x5c4] ss:$16 sps:$4 sm:$0xff]   ;;  %v2594_v4 = vld [vmem:[%s3568_s1 + $0x5cc] ss:$16 sps:$4 sm:$0xff]  }
  0x7f   :  { %1675 = vmatpush1.bf16.msra.mxu0 %v2499_v5  ;;  %1847 = vmatpush1.bf16.msra.mxu1 %v2502_v6  ;;  %v2589_v5 = vld [vmem:[%s3568_s1 + $0x5c0] ss:$16 sps:$4 sm:$0xff]   ;;  %v2592_v6 = vld [vmem:[%s3568_s1 + $0x5c8] ss:$16 sps:$4 sm:$0xff]  }
  0x80   :  { %1687 = vmatprep.subr.bf16.mxu0 %v2507_v7  ;;  %1859 = vmatprep.subr.bf16.mxu1 %v2510_v8  ;;  %v2597_v7 = vld [vmem:[%s3568_s1 + $0x5e4] ss:$16 sps:$4 sm:$0xff]   ;;  %v2600_v8 = vld [vmem:[%s3568_s1 + $0x5ec] ss:$16 sps:$4 sm:$0xff]  }
  0x82   :  { %1677 = vmatmul.mubr.bf16.vlgmr.msra.gmra.mrb[0].mxu0 %v2027_v9  ;;  %1849 = vmatmul.mubr.bf16.vlgmr.msra.gmra.mrb[0].mxu1 %v2027_v9  ;;  %v2595_v9 = vld [vmem:[%s3568_s1 + $0x5e0] ss:$16 sps:$4 sm:$0xff]  }
  0x83   :  { %1688 = vmatpush1.bf16.msra.mxu0 %v2505_v10  ;;  %1860 = vmatpush1.bf16.msra.mxu1 %v2508_v11  ;;  %v2598_v10 = vld [vmem:[%s3568_s1 + $0x5e8] ss:$16 sps:$4 sm:$0xff]   ;;  %v2603_v11 = vld [vmem:[%s3568_s1 + $0x604] ss:$16 sps:$4 sm:$0xff]  }
  0x84   :  { %1689 = vmatprep.subr.bf16.mxu0 %v2513_v12  ;;  %1861 = vmatprep.subr.bf16.mxu1 %v2516_v13  ;;  %v2606_v12 = vld [vmem:[%s3568_s1 + $0x60c] ss:$16 sps:$4 sm:$0xff]   ;;  %v2029_v13 = vcombine.low %v3147_v14, %v3152_v15  ;;  %v2604_v14 = vld [vmem:[%s3568_s1 + $0x608] ss:$16 sps:$4 sm:$0xff]   ;;  %v2609_v15 = vld [vmem:[%s3568_s1 + $0x624] ss:$16 sps:$4 sm:$0xff]  }
  0x85   :  { %1719 = vmatprep.mubr.bf16.mxu0 %v2030_v16  ;;  %1891 = vmatprep.mubr.bf16.mxu1 %v2030_v16  ;;  %v3341_v16 = vld [vmem:[%s3569_s0 + $0x18] sm:$0xff] }
  0x87   :  { %1690 = vmatpush1.bf16.msra.mxu0 %v2511_v17  ;;  %1862 = vmatpush1.bf16.msra.mxu1 %v2514_v18  ;;  %v3346_v17 = vld [vmem:[%s3569_s0 + $0x38] sm:$0xff]  ;;  %v2601_v18 = vld [vmem:[%s3568_s1 + $0x600] ss:$16 sps:$4 sm:$0xff]  }
  0x88   :  { %1691 = vmatprep.subr.bf16.mxu0 %v2519_v19  ;;  %1863 = vmatprep.subr.bf16.mxu1 %v2522_v20  ;;  %v2612_v19 = vld [vmem:[%s3568_s1 + $0x62c] ss:$16 sps:$4 sm:$0xff]   ;;  %v2032_v20 = vcombine.high %v3341_v16, %v3346_v17 }
  0x8b   :  { %1692 = vmatpush1.bf16.msra.mxu0 %v2517_v21  ;;  %1864 = vmatpush1.bf16.msra.mxu1 %v2520_v22  ;;  %v2607_v21 = vld [vmem:[%s3568_s1 + $0x620] ss:$16 sps:$4 sm:$0xff]   ;;  %v2610_v22 = vld [vmem:[%s3568_s1 + $0x628] ss:$16 sps:$4 sm:$0xff]  }
  0x8c   :  { %1693 = vmatprep.subr.bf16.mxu0 %v2525_v23  ;;  %1865 = vmatprep.subr.bf16.mxu1 %v2528_v24  ;;  %v2615_v23 = vld [vmem:[%s3568_s1 + $0x644] ss:$16 sps:$4 sm:$0xff]   ;;  %v2618_v24 = vld [vmem:[%s3568_s1 + $0x64c] ss:$16 sps:$4 sm:$0xff]  }
  0x8f   :  { %1694 = vmatpush1.bf16.msra.mxu0 %v2523_v25  ;;  %1866 = vmatpush1.bf16.msra.mxu1 %v2526_v26  ;;  %v2613_v25 = vld [vmem:[%s3568_s1 + $0x640] ss:$16 sps:$4 sm:$0xff]   ;;  %v2616_v26 = vld [vmem:[%s3568_s1 + $0x648] ss:$16 sps:$4 sm:$0xff]  }
  0x90   :  { %1695 = vmatprep.subr.bf16.mxu0 %v2531_v27  ;;  %1867 = vmatprep.subr.bf16.mxu1 %v2534_v28  ;;  %v2621_v27 = vld [vmem:[%s3568_s1 + $0x664] ss:$16 sps:$4 sm:$0xff]   ;;  %v2624_v28 = vld [vmem:[%s3568_s1 + $0x66c] ss:$16 sps:$4 sm:$0xff]  }
  0x93   :  { %1696 = vmatpush1.bf16.msra.mxu0 %v2529_v29  ;;  %1868 = vmatpush1.bf16.msra.mxu1 %v2532_v30  ;;  %v2619_v29 = vld [vmem:[%s3568_s1 + $0x660] ss:$16 sps:$4 sm:$0xff]   ;;  %v2622_v30 = vld [vmem:[%s3568_s1 + $0x668] ss:$16 sps:$4 sm:$0xff]  }
  0x94   :  { %1697 = vmatprep.subr.bf16.mxu0 %v2537_v31  ;;  %1869 = vmatprep.subr.bf16.mxu1 %v2540_v32  ;;  %v2627_v31 = vld [vmem:[%s3568_s1 + $0x684] ss:$16 sps:$4 sm:$0xff]   ;;  %v2630_v32 = vld [vmem:[%s3568_s1 + $0x68c] ss:$16 sps:$4 sm:$0xff]  }
  0x97   :  { %1698 = vmatpush1.bf16.msra.mxu0 %v2535_v33  ;;  %1870 = vmatpush1.bf16.msra.mxu1 %v2538_v34  ;;  %v2625_v33 = vld [vmem:[%s3568_s1 + $0x680] ss:$16 sps:$4 sm:$0xff]   ;;  %v2628_v34 = vld [vmem:[%s3568_s1 + $0x688] ss:$16 sps:$4 sm:$0xff]  }
  0x98   :  { %1699 = vmatprep.subr.bf16.mxu0 %v2543_v35  ;;  %1871 = vmatprep.subr.bf16.mxu1 %v2546_v36  ;;  %v2633_v35 = vld [vmem:[%s3568_s1 + $0x6a4] ss:$16 sps:$4 sm:$0xff]   ;;  %v2636_v36 = vld [vmem:[%s3568_s1 + $0x6ac] ss:$16 sps:$4 sm:$0xff]  }
  0x9b   :  { %1700 = vmatpush1.bf16.msra.mxu0 %v2541_v37  ;;  %1872 = vmatpush1.bf16.msra.mxu1 %v2544_v38  ;;  %v2631_v37 = vld [vmem:[%s3568_s1 + $0x6a0] ss:$16 sps:$4 sm:$0xff]   ;;  %v2634_v38 = vld [vmem:[%s3568_s1 + $0x6a8] ss:$16 sps:$4 sm:$0xff]  }
  0x9c   :  { %1701 = vmatprep.subr.bf16.mxu0 %v2549_v39  ;;  %1873 = vmatprep.subr.bf16.mxu1 %v2552_v40  ;;  %v2639_v39 = vld [vmem:[%s3568_s1 + $0x6c4] ss:$16 sps:$4 sm:$0xff]   ;;  %v2642_v40 = vld [vmem:[%s3568_s1 + $0x6cc] ss:$16 sps:$4 sm:$0xff]  }
  0x9f   :  { %1702 = vmatpush1.bf16.msra.mxu0 %v2547_v41  ;;  %1874 = vmatpush1.bf16.msra.mxu1 %v2550_v42  ;;  %v2637_v41 = vld [vmem:[%s3568_s1 + $0x6c0] ss:$16 sps:$4 sm:$0xff]   ;;  %v2640_v42 = vld [vmem:[%s3568_s1 + $0x6c8] ss:$16 sps:$4 sm:$0xff]  }
  0xa0   :  { %1703 = vmatprep.subr.bf16.mxu0 %v2555_v43  ;;  %1875 = vmatprep.subr.bf16.mxu1 %v2558_v44  ;;  %v2645_v43 = vld [vmem:[%s3568_s1 + $0x6e4] ss:$16 sps:$4 sm:$0xff]   ;;  %v2648_v44 = vld [vmem:[%s3568_s1 + $0x6ec] ss:$16 sps:$4 sm:$0xff]  }
  0xa3   :  { %1704 = vmatpush1.bf16.msra.mxu0 %v2553_v45  ;;  %1876 = vmatpush1.bf16.msra.mxu1 %v2556_v46  ;;  %v2643_v45 = vld [vmem:[%s3568_s1 + $0x6e0] ss:$16 sps:$4 sm:$0xff]   ;;  %v2646_v46 = vld [vmem:[%s3568_s1 + $0x6e8] ss:$16 sps:$4 sm:$0xff]  }
  0xa4   :  { %1705 = vmatprep.subr.bf16.mxu0 %v2561_v47  ;;  %1877 = vmatprep.subr.bf16.mxu1 %v2564_v48  ;;  %v2651_v47 = vld [vmem:[%s3568_s1 + $0x704] ss:$16 sps:$4 sm:$0xff]   ;;  %v2654_v48 = vld [vmem:[%s3568_s1 + $0x70c] ss:$16 sps:$4 sm:$0xff]  }
  0xa7   :  { %1706 = vmatpush1.bf16.msra.mxu0 %v2559_v49  ;;  %1878 = vmatpush1.bf16.msra.mxu1 %v2562_v50  ;;  %v2649_v49 = vld [vmem:[%s3568_s1 + $0x700] ss:$16 sps:$4 sm:$0xff]   ;;  %v2652_v50 = vld [vmem:[%s3568_s1 + $0x708] ss:$16 sps:$4 sm:$0xff]  }
  0xa8   :  { %1707 = vmatprep.subr.bf16.mxu0 %v2567_v51  ;;  %1879 = vmatprep.subr.bf16.mxu1 %v2570_v52  ;;  %v2657_v51 = vld [vmem:[%s3568_s1 + $0x724] ss:$16 sps:$4 sm:$0xff]   ;;  %v2660_v52 = vld [vmem:[%s3568_s1 + $0x72c] ss:$16 sps:$4 sm:$0xff]  }
  0xab   :  { %1708 = vmatpush1.bf16.msra.mxu0 %v2565_v53  ;;  %1880 = vmatpush1.bf16.msra.mxu1 %v2568_v54  ;;  %v2655_v53 = vld [vmem:[%s3568_s1 + $0x720] ss:$16 sps:$4 sm:$0xff]   ;;  %v2658_v54 = vld [vmem:[%s3568_s1 + $0x728] ss:$16 sps:$4 sm:$0xff]  }
  0xac   :  { %1709 = vmatprep.subr.bf16.mxu0 %v2573_v55  ;;  %1881 = vmatprep.subr.bf16.mxu1 %v2576_v56  ;;  %v2663_v55 = vld [vmem:[%s3568_s1 + $0x744] ss:$16 sps:$4 sm:$0xff]   ;;  %v2666_v56 = vld [vmem:[%s3568_s1 + $0x74c] ss:$16 sps:$4 sm:$0xff]  }
  0xaf   :  { %1710 = vmatpush1.bf16.msra.mxu0 %v2571_v57  ;;  %1882 = vmatpush1.bf16.msra.mxu1 %v2574_v58  ;;  %v2661_v57 = vld [vmem:[%s3568_s1 + $0x740] ss:$16 sps:$4 sm:$0xff]   ;;  %v2664_v58 = vld [vmem:[%s3568_s1 + $0x748] ss:$16 sps:$4 sm:$0xff]  }
  0xb0   :  { %1711 = vmatprep.subr.bf16.mxu0 %v2579_v59  ;;  %1883 = vmatprep.subr.bf16.mxu1 %v2582_v60  ;;  %v2669_v59 = vld [vmem:[%s3568_s1 + $0x764] ss:$16 sps:$4 sm:$0xff]   ;;  %v2672_v60 = vld [vmem:[%s3568_s1 + $0x76c] ss:$16 sps:$4 sm:$0xff]  }
  0xb3   :  { %1712 = vmatpush1.bf16.msra.mxu0 %v2577_v61  ;;  %1884 = vmatpush1.bf16.msra.mxu1 %v2580_v62  ;;  %v2667_v61 = vld [vmem:[%s3568_s1 + $0x760] ss:$16 sps:$4 sm:$0xff]   ;;  %v2670_v62 = vld [vmem:[%s3568_s1 + $0x768] ss:$16 sps:$4 sm:$0xff]  }
  0xb4   :  { %1713 = vmatprep.subr.bf16.mxu0 %v2585_v63  ;;  %1885 = vmatprep.subr.bf16.mxu1 %v2588_v0  ;;  %v2675_v63 = vld [vmem:[%s3568_s1 + $0x784] ss:$16 sps:$4 sm:$0xff]   ;;  %v2678_v0 = vld [vmem:[%s3568_s1 + $0x78c] ss:$16 sps:$4 sm:$0xff]  }
  0xb7   :  { %1714 = vmatpush1.bf16.msra.mxu0 %v2583_v1  ;;  %1886 = vmatpush1.bf16.msra.mxu1 %v2586_v2  ;;  %v2673_v1 = vld [vmem:[%s3568_s1 + $0x780] ss:$16 sps:$4 sm:$0xff]   ;;  %v2676_v2 = vld [vmem:[%s3568_s1 + $0x788] ss:$16 sps:$4 sm:$0xff]  }
  0xb8   :  { %1715 = vmatprep.subr.bf16.mxu0 %v2591_v3  ;;  %1887 = vmatprep.subr.bf16.mxu1 %v2594_v4  ;;  %v2681_v3 = vld [vmem:[%s3568_s1 + $0x7a4] ss:$16 sps:$4 sm:$0xff]   ;;  %v2684_v4 = vld [vmem:[%s3568_s1 + $0x7ac] ss:$16 sps:$4 sm:$0xff]  }
  0xbb   :  { %1716 = vmatpush1.bf16.msra.mxu0 %v2589_v5  ;;  %1888 = vmatpush1.bf16.msra.mxu1 %v2592_v6  ;;  %v2679_v5 = vld [vmem:[%s3568_s1 + $0x7a0] ss:$16 sps:$4 sm:$0xff]   ;;  %v2682_v6 = vld [vmem:[%s3568_s1 + $0x7a8] ss:$16 sps:$4 sm:$0xff]  }
  0xbc   :  { %1717 = vmatprep.subr.bf16.mxu0 %v2597_v7  ;;  %1889 = vmatprep.subr.bf16.mxu1 %v2600_v8  ;;  %v2687_v7 = vld [vmem:[%s3568_s1 + $0x7c4] ss:$16 sps:$4 sm:$0xff]   ;;  %v2690_v8 = vld [vmem:[%s3568_s1 + $0x7cc] ss:$16 sps:$4 sm:$0xff]  }
  0xbf   :  { %1718 = vmatpush1.bf16.msra.mxu0 %v2595_v9  ;;  %1890 = vmatpush1.bf16.msra.mxu1 %v2598_v10  ;;  %v2685_v9 = vld [vmem:[%s3568_s1 + $0x7c0] ss:$16 sps:$4 sm:$0xff]   ;;  %v2688_v10 = vld [vmem:[%s3568_s1 + $0x7c8] ss:$16 sps:$4 sm:$0xff]  }
  0xc0   :  { %1730 = vmatprep.subr.bf16.mxu0 %v2603_v11  ;;  %1902 = vmatprep.subr.bf16.mxu1 %v2606_v12  ;;  %v2693_v11 = vld [vmem:[%s3568_s1 + $0x7e4] ss:$16 sps:$4 sm:$0xff]   ;;  %v2696_v12 = vld [vmem:[%s3568_s1 + $0x7ec] ss:$16 sps:$4 sm:$0xff]  }
  0xc2   :  { %1720 = vmatmul.mubr.bf16.vlgmr.msra.gmra.mrb[0].mxu0 %v2029_v13  ;;  %1892 = vmatmul.mubr.bf16.vlgmr.msra.gmra.mrb[0].mxu1 %v2029_v13  ;;  %v2691_v13 = vld [vmem:[%s3568_s1 + $0x7e0] ss:$16 sps:$4 sm:$0xff]  }
  0xc3   :  { %1731 = vmatpush1.bf16.msra.mxu0 %v2601_v18  ;;  %1903 = vmatpush1.bf16.msra.mxu1 %v2604_v14  ;;  %v2694_v18 = vld [vmem:[%s3568_s1 + $0x7e8] ss:$16 sps:$4 sm:$0xff]   ;;  %v2031_v14 = vcombine.low %v3341_v16, %v3346_v17 }
  0xc4   :  { %1732 = vmatprep.subr.bf16.mxu0 %v2609_v15  ;;  %1904 = vmatprep.subr.bf16.mxu1 %v2612_v19  ;;  %v1947_v15 = vlaneseq }
  0xc5   :  { %1762 = vmatprep.mubr.bf16.mxu0 %v2032_v20  ;;  %1934 = vmatprep.mubr.bf16.mxu1 %v2032_v20 }
  0xc6   :  { %v1948_v19 = vshrl.u32 %v1947_v15, 7 }
  0xc7   :  { %1733 = vmatpush1.bf16.msra.mxu0 %v2607_v21  ;;  %1905 = vmatpush1.bf16.msra.mxu1 %v2610_v22  ;;  %v1945_v22 = vld [vmem:[%s3570_s2] sm:$0xf] }
  0xc8   :  { %1734 = vmatprep.subr.bf16.mxu0 %v2615_v23  ;;  %1906 = vmatprep.subr.bf16.mxu1 %v2618_v24  ;;  %v1949_v20 = vsub.s32 0, %v1948_v19  ;;  %v1957_v21 = vsub.s32 2, %v1948_v19  ;;  %v1953_v23 = vsub.s32 1, %v1948_v19  ;;  %v1961_v24 = vsub.s32 3, %v1948_v19 }
  0xca   :  { %v1958_v16 = vrot.slane %v1945_v22, %v1957_v21  ;;  %v1954_v17 = vrot.slane %v1945_v22, %v1953_v23 }
  0xcb   :  { %1735 = vmatpush1.bf16.msra.mxu0 %v2613_v25  ;;  %1907 = vmatpush1.bf16.msra.mxu1 %v2616_v26  ;;  %v1975_v25 = vld [vmem:[%s3571_s3] sm:$0xf]  ;;  %v1950_v26 = vrot.slane %v1945_v22, %v1949_v20 }
  0xcc   :  { %1736 = vmatprep.subr.bf16.mxu0 %v2621_v27  ;;  %1908 = vmatprep.subr.bf16.mxu1 %v2624_v28  ;;  %v1962_v27 = vrot.slane %v1945_v22, %v1961_v24  ;;  %v1980_v28 = vrot.slane %v1975_v25, %v1949_v20 }
  0xcf   :  { %1737 = vmatpush1.bf16.msra.mxu0 %v2619_v29  ;;  %1909 = vmatpush1.bf16.msra.mxu1 %v2622_v30  ;;  %v1988_v29 = vrot.slane %v1975_v25, %v1957_v21 }
  0xd0   :  { %1738 = vmatprep.subr.bf16.mxu0 %v2627_v31  ;;  %1910 = vmatprep.subr.bf16.mxu1 %v2630_v32  ;;  %v1984_v32 = vrot.slane %v1975_v25, %v1953_v23 }
  0xd3   :  { %1739 = vmatpush1.bf16.msra.mxu0 %v2625_v33  ;;  %1911 = vmatpush1.bf16.msra.mxu1 %v2628_v34  ;;  %v1992_v33 = vrot.slane %v1975_v25, %v1961_v24 }
  0xd4   :  { %1740 = vmatprep.subr.bf16.mxu0 %v2633_v35  ;;  %1912 = vmatprep.subr.bf16.mxu1 %v2636_v36 }
  0xd7   :  { %1741 = vmatpush1.bf16.msra.mxu0 %v2631_v37  ;;  %1913 = vmatpush1.bf16.msra.mxu1 %v2634_v38 }
  0xd8   :  { %1742 = vmatprep.subr.bf16.mxu0 %v2639_v39  ;;  %1914 = vmatprep.subr.bf16.mxu1 %v2642_v40 }
  0xdb   :  { %1743 = vmatpush1.bf16.msra.mxu0 %v2637_v41  ;;  %1915 = vmatpush1.bf16.msra.mxu1 %v2640_v42 }
  0xdc   :  { %1744 = vmatprep.subr.bf16.mxu0 %v2645_v43  ;;  %1916 = vmatprep.subr.bf16.mxu1 %v2648_v44 }
  0xdf   :  { %1745 = vmatpush1.bf16.msra.mxu0 %v2643_v45  ;;  %1917 = vmatpush1.bf16.msra.mxu1 %v2646_v46 }
  0xe0   :  { %1746 = vmatprep.subr.bf16.mxu0 %v2651_v47  ;;  %1918 = vmatprep.subr.bf16.mxu1 %v2654_v48 }
  0xe3   :  { %1747 = vmatpush1.bf16.msra.mxu0 %v2649_v49  ;;  %1919 = vmatpush1.bf16.msra.mxu1 %v2652_v50 }
  0xe4   :  { %1748 = vmatprep.subr.bf16.mxu0 %v2657_v51  ;;  %1920 = vmatprep.subr.bf16.mxu1 %v2660_v52 }
  0xe7   :  { %1749 = vmatpush1.bf16.msra.mxu0 %v2655_v53  ;;  %1921 = vmatpush1.bf16.msra.mxu1 %v2658_v54 }
  0xe8   :  { %1750 = vmatprep.subr.bf16.mxu0 %v2663_v55  ;;  %1922 = vmatprep.subr.bf16.mxu1 %v2666_v56 }
  0xeb   :  { %1751 = vmatpush1.bf16.msra.mxu0 %v2661_v57  ;;  %1923 = vmatpush1.bf16.msra.mxu1 %v2664_v58 }
  0xec   :  { %1752 = vmatprep.subr.bf16.mxu0 %v2669_v59  ;;  %1924 = vmatprep.subr.bf16.mxu1 %v2672_v60 }
  0xef   :  { %1753 = vmatpush1.bf16.msra.mxu0 %v2667_v61  ;;  %1925 = vmatpush1.bf16.msra.mxu1 %v2670_v62 }
  0xf0   :  { %1754 = vmatprep.subr.bf16.mxu0 %v2675_v63  ;;  %1926 = vmatprep.subr.bf16.mxu1 %v2678_v0 }
  0xf3   :  { %1755 = vmatpush1.bf16.msra.mxu0 %v2673_v1  ;;  %1927 = vmatpush1.bf16.msra.mxu1 %v2676_v2 }
  0xf4   :  { %1756 = vmatprep.subr.bf16.mxu0 %v2681_v3  ;;  %1928 = vmatprep.subr.bf16.mxu1 %v2684_v4 }
  0xf7   :  { %1757 = vmatpush1.bf16.msra.mxu0 %v2679_v5  ;;  %1929 = vmatpush1.bf16.msra.mxu1 %v2682_v6 }
  0xf8   :  { %1758 = vmatprep.subr.bf16.mxu0 %v2687_v7  ;;  %1930 = vmatprep.subr.bf16.mxu1 %v2690_v8 }
  0xfb   :  { %1759 = vmatpush1.bf16.msra.mxu0 %v2685_v9  ;;  %1931 = vmatpush1.bf16.msra.mxu1 %v2688_v10 }
  0xfc   :  { %1760 = vmatprep.subr.bf16.mxu0 %v2693_v11  ;;  %1932 = vmatprep.subr.bf16.mxu1 %v2696_v12 }
  0xff   :  { %1761 = vmatpush1.bf16.msra.mxu0 %v2691_v13  ;;  %1933 = vmatpush1.bf16.msra.mxu1 %v2694_v18 }
 0x102   :  { %1763 = vmatmul.mubr.bf16.vlgmr.msra.gmra.mrb[0].mxu0 %v2031_v14  ;;  %1935 = vmatmul.mubr.bf16.vlgmr.msra.gmra.mrb[0].mxu1 %v2031_v14 }
 0x1d5   :  { %v1764_v30 = vpop.f32.mrb[0].mxu0  ;;  %v1936_v31 = vpop.f32.mrb[0].mxu1 }
 0x1d6   :  { %v1967_v34 = vmul.f32 %v1950_v26, %v1764_v30  ;;  %v1969_v35 = vmul.f32 %v1958_v16, %v1936_v31  ;;  %v1766_v36 = vpop.f32.mrb[1].mxu0  ;;  %v1938_v37 = vpop.f32.mrb[1].mxu1 }
 0x1d7   :  { %v1968_v38 = vmul.f32 %v1954_v17, %v1766_v36  ;;  %v1970_v39 = vmul.f32 %v1962_v27, %v1938_v37  ;;  %v1768_v40 = vpop.f32.mrb[2].mxu0  ;;  %v1940_v41 = vpop.f32.mrb[2].mxu1 }
 0x1d8   :  { %v1997_v42 = vadd.f32 %v1980_v28, %v1967_v34  ;;  %v1999_v43 = vadd.f32 %v1988_v29, %v1969_v35  ;;  %v1971_v44 = vmul.f32 %v1950_v26, %v1768_v40  ;;  %v1973_v45 = vmul.f32 %v1958_v16, %v1940_v41  ;;  %v1770_v46 = vpop.f32.mrb[3].mxu0  ;;  %v1942_v47 = vpop.f32.mrb[3].mxu1 }
 0x1d9   :  { %v1998_v48 = vadd.f32 %v1984_v32, %v1968_v38  ;;  %v2000_v49 = vadd.f32 %v1992_v33, %v1970_v39  ;;  %v1972_v50 = vmul.f32 %v1954_v17, %v1770_v46  ;;  %v1974_v51 = vmul.f32 %v1962_v27, %v1942_v47 }
 0x1da   :  { %v2005_v52 = vmax.f32 %v1997_v42, 0.0  ;;  %v2007_v53 = vmax.f32 %v1999_v43, 0.0  ;;  %v2001_v54 = vadd.f32 %v1980_v28, %v1971_v44  ;;  %v2003_v55 = vadd.f32 %v1988_v29, %v1973_v45 }
 0x1db   :  { %v2006_v56 = vmax.f32 %v1998_v48, 0.0  ;;  %v2008_v57 = vmax.f32 %v2000_v49, 0.0  ;;  %v2002_v58 = vadd.f32 %v1984_v32, %v1972_v50  ;;  %v2004_v59 = vadd.f32 %v1992_v33, %v1974_v51 }
 0x1dc   :  { %2013 = vst [vmem:[%s3572_s4] sm:$0xff] %v2005_v52  ;;  %2015 = vst [vmem:[%s3572_s4 + $0x10] sm:$0xff] %v2007_v53  ;;  %v2009_v60 = vmax.f32 %v2001_v54, 0.0  ;;  %v2011_v61 = vmax.f32 %v2003_v55, 0.0 }
 0x1dd   :  { %2014 = vst [vmem:[%s3572_s4 + $0x8] sm:$0xff] %v2006_v56  ;;  %2016 = vst [vmem:[%s3572_s4 + $0x18] sm:$0xff] %v2008_v57  ;;  %v2010_v62 = vmax.f32 %v2002_v58, 0.0  ;;  %v2012_v63 = vmax.f32 %v2004_v59, 0.0 }
 0x1de   :  { %2017 = vst [vmem:[%s3572_s4 + $0x20] sm:$0xff] %v2009_v60  ;;  %2019 = vst [vmem:[%s3572_s4 + $0x30] sm:$0xff] %v2011_v61 }
 0x1df   :  { %2018 = vst [vmem:[%s3572_s4 + $0x28] sm:$0xff] %v2010_v62  ;;  %2020 = vst [vmem:[%s3572_s4 + $0x38] sm:$0xff] %v2012_v63 }

// kernel: simple_net5_forward.14
= control target key start
LH: loop header
LB: loop body
LE: loop exit
PB: predicated region body
PF: predicated region fallthrough
CT: control target
= control target key end

     0   :  { %s7821_s1 = inlined_call_operand.vmem [shape: bf16[2304,512], index: 1, kind: input, shape index: {}]   ;;  %s7822_s0 = inlined_call_operand.vmem [shape: bf16[16,2304], index: 0, kind: input, shape index: {}]   ;;  %s7823_s2 = inlined_call_operand.vmem [shape: f32[1,512], index: 2, kind: input, shape index: {}]   ;;  %s7824_s3 = inlined_call_operand.vmem [shape: f32[1,512], index: 3, kind: input, shape index: {}]   ;;  %s7825_s4 = inlined_call_operand.vmem [shape: f32[16,512], index: 4, kind: output, shape index: {}]  }
   0x1   :  { %v5093_v0 = vld [vmem:[%s7821_s1 + $0x4] ss:$16 sps:$4 sm:$0xff]   ;;  %v5095_v1 = vld [vmem:[%s7821_s1 + $0xc] ss:$16 sps:$4 sm:$0xff]   ;;  %v5097_v2 = vld [vmem:[%s7821_s1] ss:$16 sps:$4 sm:$0xff]  }
   0x2   :  { %3581 = vmatprep.subr.bf16.mxu0 %v5093_v0  ;;  %v5098_v3 = vld [vmem:[%s7821_s1 + $0x8] ss:$16 sps:$4 sm:$0xff]   ;;  %3968 = vmatprep.subr.bf16.mxu1 %v5095_v1  ;;  %v5099_v4 = vld [vmem:[%s7821_s1 + $0x24] ss:$16 sps:$4 sm:$0xff]   ;;  %v5101_v5 = vld [vmem:[%s7821_s1 + $0x2c] ss:$16 sps:$4 sm:$0xff]  }
   0x3   :  { %3582 = vmatpush1.bf16.msra.mxu0 %v5097_v2  ;;  %3969 = vmatpush1.bf16.msra.mxu1 %v5098_v3  ;;  %v5103_v6 = vld [vmem:[%s7821_s1 + $0x20] ss:$16 sps:$4 sm:$0xff]   ;;  %v5104_v7 = vld [vmem:[%s7821_s1 + $0x28] ss:$16 sps:$4 sm:$0xff]   ;;  %v5105_v8 = vld [vmem:[%s7821_s1 + $0x44] ss:$16 sps:$4 sm:$0xff]  }
   0x4   :  { %3583 = vmatprep.subr.bf16.mxu0 %v5099_v4  ;;  %3970 = vmatprep.subr.bf16.mxu1 %v5101_v5  ;;  %v5107_v9 = vld [vmem:[%s7821_s1 + $0x4c] ss:$16 sps:$4 sm:$0xff]   ;;  %v5109_v10 = vld [vmem:[%s7821_s1 + $0x40] ss:$16 sps:$4 sm:$0xff]   ;;  %v5110_v11 = vld [vmem:[%s7821_s1 + $0x48] ss:$16 sps:$4 sm:$0xff]  }
   0x5   :  { %v5111_v12 = vld [vmem:[%s7821_s1 + $0x64] ss:$16 sps:$4 sm:$0xff]   ;;  %v5113_v13 = vld [vmem:[%s7821_s1 + $0x6c] ss:$16 sps:$4 sm:$0xff]   ;;  %v5115_v14 = vld [vmem:[%s7821_s1 + $0x60] ss:$16 sps:$4 sm:$0xff]  }
   0x6   :  { %v5116_v15 = vld [vmem:[%s7821_s1 + $0x68] ss:$16 sps:$4 sm:$0xff]   ;;  %v5117_v16 = vld [vmem:[%s7821_s1 + $0x84] ss:$16 sps:$4 sm:$0xff]   ;;  %v5119_v17 = vld [vmem:[%s7821_s1 + $0x8c] ss:$16 sps:$4 sm:$0xff]  }
   0x7   :  { %3584 = vmatpush1.bf16.msra.mxu0 %v5103_v6  ;;  %3971 = vmatpush1.bf16.msra.mxu1 %v5104_v7  ;;  %v5121_v18 = vld [vmem:[%s7821_s1 + $0x80] ss:$16 sps:$4 sm:$0xff]   ;;  %v5122_v19 = vld [vmem:[%s7821_s1 + $0x88] ss:$16 sps:$4 sm:$0xff]   ;;  %v5123_v20 = vld [vmem:[%s7821_s1 + $0xa4] ss:$16 sps:$4 sm:$0xff]  }
   0x8   :  { %3585 = vmatprep.subr.bf16.mxu0 %v5105_v8  ;;  %3972 = vmatprep.subr.bf16.mxu1 %v5107_v9  ;;  %v5125_v21 = vld [vmem:[%s7821_s1 + $0xac] ss:$16 sps:$4 sm:$0xff]   ;;  %v5127_v22 = vld [vmem:[%s7821_s1 + $0xa0] ss:$16 sps:$4 sm:$0xff]   ;;  %v5128_v23 = vld [vmem:[%s7821_s1 + $0xa8] ss:$16 sps:$4 sm:$0xff]  }
   0x9   :  { %v5129_v24 = vld [vmem:[%s7821_s1 + $0xc4] ss:$16 sps:$4 sm:$0xff]   ;;  %v5131_v25 = vld [vmem:[%s7821_s1 + $0xcc] ss:$16 sps:$4 sm:$0xff]   ;;  %v5133_v26 = vld [vmem:[%s7821_s1 + $0xc0] ss:$16 sps:$4 sm:$0xff]  }
   0xa   :  { %v5134_v27 = vld [vmem:[%s7821_s1 + $0xc8] ss:$16 sps:$4 sm:$0xff]   ;;  %v5135_v28 = vld [vmem:[%s7821_s1 + $0xe4] ss:$16 sps:$4 sm:$0xff]   ;;  %v5137_v29 = vld [vmem:[%s7821_s1 + $0xec] ss:$16 sps:$4 sm:$0xff]  }
   0xb   :  { %3586 = vmatpush1.bf16.msra.mxu0 %v5109_v10  ;;  %3973 = vmatpush1.bf16.msra.mxu1 %v5110_v11  ;;  %v5139_v30 = vld [vmem:[%s7821_s1 + $0xe0] ss:$16 sps:$4 sm:$0xff]   ;;  %v5140_v31 = vld [vmem:[%s7821_s1 + $0xe8] ss:$16 sps:$4 sm:$0xff]   ;;  %v5141_v32 = vld [vmem:[%s7821_s1 + $0x104] ss:$16 sps:$4 sm:$0xff]  }
   0xc   :  { %3587 = vmatprep.subr.bf16.mxu0 %v5111_v12  ;;  %3974 = vmatprep.subr.bf16.mxu1 %v5113_v13  ;;  %v5143_v33 = vld [vmem:[%s7821_s1 + $0x10c] ss:$16 sps:$4 sm:$0xff]   ;;  %v5145_v34 = vld [vmem:[%s7821_s1 + $0x100] ss:$16 sps:$4 sm:$0xff]   ;;  %v5146_v35 = vld [vmem:[%s7821_s1 + $0x108] ss:$16 sps:$4 sm:$0xff]  }
   0xd   :  { %v5147_v36 = vld [vmem:[%s7821_s1 + $0x124] ss:$16 sps:$4 sm:$0xff]   ;;  %v5149_v37 = vld [vmem:[%s7821_s1 + $0x12c] ss:$16 sps:$4 sm:$0xff]   ;;  %v5151_v38 = vld [vmem:[%s7821_s1 + $0x120] ss:$16 sps:$4 sm:$0xff]  }
   0xe   :  { %v5152_v39 = vld [vmem:[%s7821_s1 + $0x128] ss:$16 sps:$4 sm:$0xff]   ;;  %v5153_v40 = vld [vmem:[%s7821_s1 + $0x144] ss:$16 sps:$4 sm:$0xff]   ;;  %v5155_v41 = vld [vmem:[%s7821_s1 + $0x14c] ss:$16 sps:$4 sm:$0xff]  }
   0xf   :  { %3588 = vmatpush1.bf16.msra.mxu0 %v5115_v14  ;;  %3975 = vmatpush1.bf16.msra.mxu1 %v5116_v15  ;;  %v5157_v42 = vld [vmem:[%s7821_s1 + $0x140] ss:$16 sps:$4 sm:$0xff]   ;;  %v5158_v43 = vld [vmem:[%s7821_s1 + $0x148] ss:$16 sps:$4 sm:$0xff]   ;;  %v5159_v44 = vld [vmem:[%s7821_s1 + $0x164] ss:$16 sps:$4 sm:$0xff]  }
  0x10   :  { %3589 = vmatprep.subr.bf16.mxu0 %v5117_v16  ;;  %3976 = vmatprep.subr.bf16.mxu1 %v5119_v17  ;;  %v5161_v45 = vld [vmem:[%s7821_s1 + $0x16c] ss:$16 sps:$4 sm:$0xff]   ;;  %v5163_v46 = vld [vmem:[%s7821_s1 + $0x160] ss:$16 sps:$4 sm:$0xff]   ;;  %v5164_v47 = vld [vmem:[%s7821_s1 + $0x168] ss:$16 sps:$4 sm:$0xff]  }
  0x11   :  { %v5191_v48 = vld [vmem:[%s7822_s0 + $0x4] ss:$72 sps:$4 sm:$0xff]   ;;  %v5169_v51 = vld [vmem:[%s7821_s1 + $0x180] ss:$16 sps:$4 sm:$0xff]   ;;  %v5170_v52 = vld [vmem:[%s7821_s1 + $0x188] ss:$16 sps:$4 sm:$0xff]  }
  0x12   :  { %v5165_v49 = vld [vmem:[%s7821_s1 + $0x184] ss:$16 sps:$4 sm:$0xff]   ;;  %v5167_v50 = vld [vmem:[%s7821_s1 + $0x18c] ss:$16 sps:$4 sm:$0xff]   ;;  %3613 = vmatprep.mubr.bf16.mxu0 %v5191_v48  ;;  %4000 = vmatprep.mubr.bf16.mxu1 %v5191_v48  ;;  %v5175_v55 = vld [vmem:[%s7821_s1 + $0x1a0] ss:$16 sps:$4 sm:$0xff]  }
  0x13   :  { %3590 = vmatpush1.bf16.msra.mxu0 %v5121_v18  ;;  %3977 = vmatpush1.bf16.msra.mxu1 %v5122_v19  ;;  %v5171_v53 = vld [vmem:[%s7821_s1 + $0x1a4] ss:$16 sps:$4 sm:$0xff]   ;;  %v5173_v54 = vld [vmem:[%s7821_s1 + $0x1ac] ss:$16 sps:$4 sm:$0xff]   ;;  %v5176_v56 = vld [vmem:[%s7821_s1 + $0x1a8] ss:$16 sps:$4 sm:$0xff]  }
  0x14   :  { %3591 = vmatprep.subr.bf16.mxu0 %v5123_v20  ;;  %3978 = vmatprep.subr.bf16.mxu1 %v5125_v21  ;;  %v5177_v57 = vld [vmem:[%s7821_s1 + $0x1c4] ss:$16 sps:$4 sm:$0xff]   ;;  %v5179_v58 = vld [vmem:[%s7821_s1 + $0x1cc] ss:$16 sps:$4 sm:$0xff]   ;;  %v5181_v59 = vld [vmem:[%s7821_s1 + $0x1c0] ss:$16 sps:$4 sm:$0xff]  }
  0x15   :  { %v5182_v60 = vld [vmem:[%s7821_s1 + $0x1c8] ss:$16 sps:$4 sm:$0xff]   ;;  %v5183_v61 = vld [vmem:[%s7821_s1 + $0x1e4] ss:$16 sps:$4 sm:$0xff]   ;;  %v5185_v62 = vld [vmem:[%s7821_s1 + $0x1ec] ss:$16 sps:$4 sm:$0xff]  }
  0x16   :  { %v5187_v63 = vld [vmem:[%s7821_s1 + $0x1e0] ss:$16 sps:$4 sm:$0xff]   ;;  %v5188_v0 = vld [vmem:[%s7821_s1 + $0x1e8] ss:$16 sps:$4 sm:$0xff]   ;;  %v5194_v1 = vld [vmem:[%s7821_s1 + $0x204] ss:$16 sps:$4 sm:$0xff]  }
  0x17   :  { %3592 = vmatpush1.bf16.msra.mxu0 %v5127_v22  ;;  %3979 = vmatpush1.bf16.msra.mxu1 %v5128_v23  ;;  %v5197_v2 = vld [vmem:[%s7821_s1 + $0x20c] ss:$16 sps:$4 sm:$0xff]   ;;  %v5189_v3 = vld [vmem:[%s7822_s0] ss:$72 sps:$4 sm:$0xff]   ;;  %v5200_v6 = vld [vmem:[%s7821_s1 + $0x224] ss:$16 sps:$4 sm:$0xff]  }
  0x18   :  { %3593 = vmatprep.subr.bf16.mxu0 %v5129_v24  ;;  %3980 = vmatprep.subr.bf16.mxu1 %v5131_v25  ;;  %v5192_v4 = vld [vmem:[%s7821_s1 + $0x200] ss:$16 sps:$4 sm:$0xff]   ;;  %v5195_v5 = vld [vmem:[%s7821_s1 + $0x208] ss:$16 sps:$4 sm:$0xff]   ;;  %v5203_v7 = vld [vmem:[%s7821_s1 + $0x22c] ss:$16 sps:$4 sm:$0xff]  }
  0x19   :  { %v5198_v8 = vld [vmem:[%s7821_s1 + $0x220] ss:$16 sps:$4 sm:$0xff]   ;;  %v5201_v9 = vld [vmem:[%s7821_s1 + $0x228] ss:$16 sps:$4 sm:$0xff]   ;;  %v5206_v10 = vld [vmem:[%s7821_s1 + $0x244] ss:$16 sps:$4 sm:$0xff]  }
  0x1a   :  { %v5209_v11 = vld [vmem:[%s7821_s1 + $0x24c] ss:$16 sps:$4 sm:$0xff]   ;;  %v5204_v12 = vld [vmem:[%s7821_s1 + $0x240] ss:$16 sps:$4 sm:$0xff]   ;;  %v5207_v13 = vld [vmem:[%s7821_s1 + $0x248] ss:$16 sps:$4 sm:$0xff]  }
  0x1b   :  { %3594 = vmatpush1.bf16.msra.mxu0 %v5133_v26  ;;  %3981 = vmatpush1.bf16.msra.mxu1 %v5134_v27  ;;  %v5212_v14 = vld [vmem:[%s7821_s1 + $0x264] ss:$16 sps:$4 sm:$0xff]   ;;  %v5215_v15 = vld [vmem:[%s7821_s1 + $0x26c] ss:$16 sps:$4 sm:$0xff]   ;;  %v5210_v16 = vld [vmem:[%s7821_s1 + $0x260] ss:$16 sps:$4 sm:$0xff]  }
  0x1c   :  { %3595 = vmatprep.subr.bf16.mxu0 %v5135_v28  ;;  %3982 = vmatprep.subr.bf16.mxu1 %v5137_v29  ;;  %v5213_v17 = vld [vmem:[%s7821_s1 + $0x268] ss:$16 sps:$4 sm:$0xff]   ;;  %v5218_v18 = vld [vmem:[%s7821_s1 + $0x284] ss:$16 sps:$4 sm:$0xff]   ;;  %v5221_v19 = vld [vmem:[%s7821_s1 + $0x28c] ss:$16 sps:$4 sm:$0xff]  }
  0x1d   :  { %v5216_v20 = vld [vmem:[%s7821_s1 + $0x280] ss:$16 sps:$4 sm:$0xff]   ;;  %v5219_v21 = vld [vmem:[%s7821_s1 + $0x288] ss:$16 sps:$4 sm:$0xff]   ;;  %v5224_v22 = vld [vmem:[%s7821_s1 + $0x2a4] ss:$16 sps:$4 sm:$0xff]  }
  0x1e   :  { %v5227_v23 = vld [vmem:[%s7821_s1 + $0x2ac] ss:$16 sps:$4 sm:$0xff]   ;;  %v5222_v24 = vld [vmem:[%s7821_s1 + $0x2a0] ss:$16 sps:$4 sm:$0xff]   ;;  %v5225_v25 = vld [vmem:[%s7821_s1 + $0x2a8] ss:$16 sps:$4 sm:$0xff]  }
  0x1f   :  { %3596 = vmatpush1.bf16.msra.mxu0 %v5139_v30  ;;  %3983 = vmatpush1.bf16.msra.mxu1 %v5140_v31  ;;  %v5230_v26 = vld [vmem:[%s7821_s1 + $0x2c4] ss:$16 sps:$4 sm:$0xff]   ;;  %v5233_v27 = vld [vmem:[%s7821_s1 + $0x2cc] ss:$16 sps:$4 sm:$0xff]   ;;  %v5228_v28 = vld [vmem:[%s7821_s1 + $0x2c0] ss:$16 sps:$4 sm:$0xff]  }
  0x20   :  { %3597 = vmatprep.subr.bf16.mxu0 %v5141_v32  ;;  %3984 = vmatprep.subr.bf16.mxu1 %v5143_v33  ;;  %v5231_v29 = vld [vmem:[%s7821_s1 + $0x2c8] ss:$16 sps:$4 sm:$0xff]   ;;  %v5290_v30 = vld [vmem:[%s7822_s0 + $0xc] ss:$72 sps:$4 sm:$0xff]   ;;  %v5234_v33 = vld [vmem:[%s7821_s1 + $0x2e0] ss:$16 sps:$4 sm:$0xff]  }
  0x21   :  { %v5236_v31 = vld [vmem:[%s7821_s1 + $0x2e4] ss:$16 sps:$4 sm:$0xff]   ;;  %v5239_v32 = vld [vmem:[%s7821_s1 + $0x2ec] ss:$16 sps:$4 sm:$0xff]  }
  0x22   :  { %v5263_v48 = vld [vmem:[%s7821_s1 + $0x36c] ss:$16 sps:$4 sm:$0xff]  }
  0x23   :  { %3598 = vmatpush1.bf16.msra.mxu0 %v5145_v34  ;;  %3985 = vmatpush1.bf16.msra.mxu1 %v5146_v35  ;;  %v5237_v34 = vld [vmem:[%s7821_s1 + $0x2e8] ss:$16 sps:$4 sm:$0xff]   ;;  %v5242_v35 = vld [vmem:[%s7821_s1 + $0x304] ss:$16 sps:$4 sm:$0xff]  }
  0x24   :  { %3599 = vmatprep.subr.bf16.mxu0 %v5147_v36  ;;  %3986 = vmatprep.subr.bf16.mxu1 %v5149_v37  ;;  %v5245_v36 = vld [vmem:[%s7821_s1 + $0x30c] ss:$16 sps:$4 sm:$0xff]   ;;  %v5240_v37 = vld [vmem:[%s7821_s1 + $0x300] ss:$16 sps:$4 sm:$0xff]  }
  0x27   :  { %3600 = vmatpush1.bf16.msra.mxu0 %v5151_v38  ;;  %3987 = vmatpush1.bf16.msra.mxu1 %v5152_v39  ;;  %v5243_v38 = vld [vmem:[%s7821_s1 + $0x308] ss:$16 sps:$4 sm:$0xff]   ;;  %v5248_v39 = vld [vmem:[%s7821_s1 + $0x324] ss:$16 sps:$4 sm:$0xff]  }
  0x28   :  { %3601 = vmatprep.subr.bf16.mxu0 %v5153_v40  ;;  %3988 = vmatprep.subr.bf16.mxu1 %v5155_v41  ;;  %v5251_v40 = vld [vmem:[%s7821_s1 + $0x32c] ss:$16 sps:$4 sm:$0xff]   ;;  %v5246_v41 = vld [vmem:[%s7821_s1 + $0x320] ss:$16 sps:$4 sm:$0xff]  }
  0x2b   :  { %3602 = vmatpush1.bf16.msra.mxu0 %v5157_v42  ;;  %3989 = vmatpush1.bf16.msra.mxu1 %v5158_v43  ;;  %v5249_v42 = vld [vmem:[%s7821_s1 + $0x328] ss:$16 sps:$4 sm:$0xff]   ;;  %v5254_v43 = vld [vmem:[%s7821_s1 + $0x344] ss:$16 sps:$4 sm:$0xff]  }
  0x2c   :  { %3603 = vmatprep.subr.bf16.mxu0 %v5159_v44  ;;  %3990 = vmatprep.subr.bf16.mxu1 %v5161_v45  ;;  %v5257_v44 = vld [vmem:[%s7821_s1 + $0x34c] ss:$16 sps:$4 sm:$0xff]   ;;  %v5252_v45 = vld [vmem:[%s7821_s1 + $0x340] ss:$16 sps:$4 sm:$0xff]  }
  0x2f   :  { %3604 = vmatpush1.bf16.msra.mxu0 %v5163_v46  ;;  %3991 = vmatpush1.bf16.msra.mxu1 %v5164_v47  ;;  %v5255_v46 = vld [vmem:[%s7821_s1 + $0x348] ss:$16 sps:$4 sm:$0xff]   ;;  %v5260_v47 = vld [vmem:[%s7821_s1 + $0x364] ss:$16 sps:$4 sm:$0xff]  }
  0x30   :  { %3605 = vmatprep.subr.bf16.mxu0 %v5165_v49  ;;  %3992 = vmatprep.subr.bf16.mxu1 %v5167_v50  ;;  %v5258_v49 = vld [vmem:[%s7821_s1 + $0x360] ss:$16 sps:$4 sm:$0xff]   ;;  %v5261_v50 = vld [vmem:[%s7821_s1 + $0x368] ss:$16 sps:$4 sm:$0xff]  }
  0x33   :  { %3606 = vmatpush1.bf16.msra.mxu0 %v5169_v51  ;;  %3993 = vmatpush1.bf16.msra.mxu1 %v5170_v52  ;;  %v5266_v51 = vld [vmem:[%s7821_s1 + $0x384] ss:$16 sps:$4 sm:$0xff]   ;;  %v5269_v52 = vld [vmem:[%s7821_s1 + $0x38c] ss:$16 sps:$4 sm:$0xff]  }
  0x34   :  { %3607 = vmatprep.subr.bf16.mxu0 %v5171_v53  ;;  %3994 = vmatprep.subr.bf16.mxu1 %v5173_v54  ;;  %v5264_v53 = vld [vmem:[%s7821_s1 + $0x380] ss:$16 sps:$4 sm:$0xff]   ;;  %v5267_v54 = vld [vmem:[%s7821_s1 + $0x388] ss:$16 sps:$4 sm:$0xff]  }
  0x37   :  { %3608 = vmatpush1.bf16.msra.mxu0 %v5175_v55  ;;  %3995 = vmatpush1.bf16.msra.mxu1 %v5176_v56  ;;  %v5272_v55 = vld [vmem:[%s7821_s1 + $0x3a4] ss:$16 sps:$4 sm:$0xff]   ;;  %v5275_v56 = vld [vmem:[%s7821_s1 + $0x3ac] ss:$16 sps:$4 sm:$0xff]  }
  0x38   :  { %3609 = vmatprep.subr.bf16.mxu0 %v5177_v57  ;;  %3996 = vmatprep.subr.bf16.mxu1 %v5179_v58  ;;  %v5270_v57 = vld [vmem:[%s7821_s1 + $0x3a0] ss:$16 sps:$4 sm:$0xff]   ;;  %v5273_v58 = vld [vmem:[%s7821_s1 + $0x3a8] ss:$16 sps:$4 sm:$0xff]  }
  0x3b   :  { %3610 = vmatpush1.bf16.msra.mxu0 %v5181_v59  ;;  %3997 = vmatpush1.bf16.msra.mxu1 %v5182_v60  ;;  %v5278_v59 = vld [vmem:[%s7821_s1 + $0x3c4] ss:$16 sps:$4 sm:$0xff]   ;;  %v5281_v60 = vld [vmem:[%s7821_s1 + $0x3cc] ss:$16 sps:$4 sm:$0xff]  }
  0x3c   :  { %3611 = vmatprep.subr.bf16.mxu0 %v5183_v61  ;;  %3998 = vmatprep.subr.bf16.mxu1 %v5185_v62  ;;  %v5276_v61 = vld [vmem:[%s7821_s1 + $0x3c0] ss:$16 sps:$4 sm:$0xff]   ;;  %v5279_v62 = vld [vmem:[%s7821_s1 + $0x3c8] ss:$16 sps:$4 sm:$0xff]  }
  0x3f   :  { %3612 = vmatpush1.bf16.msra.mxu0 %v5187_v63  ;;  %3999 = vmatpush1.bf16.msra.mxu1 %v5188_v0  ;;  %v5284_v63 = vld [vmem:[%s7821_s1 + $0x3e4] ss:$16 sps:$4 sm:$0xff]   ;;  %v5287_v0 = vld [vmem:[%s7821_s1 + $0x3ec] ss:$16 sps:$4 sm:$0xff]  }
  0x40   :  { %3624 = vmatprep.subr.bf16.mxu0 %v5194_v1  ;;  %4011 = vmatprep.subr.bf16.mxu1 %v5197_v2  ;;  %v5282_v1 = vld [vmem:[%s7821_s1 + $0x3e0] ss:$16 sps:$4 sm:$0xff]   ;;  %v5285_v2 = vld [vmem:[%s7821_s1 + $0x3e8] ss:$16 sps:$4 sm:$0xff]  }
  0x42   :  { %3614 = vmatmul.mubr.bf16.vlgmr.msra.gmra.mrb[0].mxu0 %v5189_v3  ;;  %4001 = vmatmul.mubr.bf16.vlgmr.msra.gmra.mrb[0].mxu1 %v5189_v3  ;;  %v5293_v3 = vld [vmem:[%s7821_s1 + $0x404] ss:$16 sps:$4 sm:$0xff]  }
  0x43   :  { %3625 = vmatpush1.bf16.msra.mxu0 %v5192_v4  ;;  %4012 = vmatpush1.bf16.msra.mxu1 %v5195_v5  ;;  %v5296_v4 = vld [vmem:[%s7821_s1 + $0x40c] ss:$16 sps:$4 sm:$0xff]   ;;  %v5288_v5 = vld [vmem:[%s7822_s0 + $0x8] ss:$72 sps:$4 sm:$0xff]  }
  0x44   :  { %3626 = vmatprep.subr.bf16.mxu0 %v5200_v6  ;;  %4013 = vmatprep.subr.bf16.mxu1 %v5203_v7  ;;  %v5291_v6 = vld [vmem:[%s7821_s1 + $0x400] ss:$16 sps:$4 sm:$0xff]   ;;  %v5294_v7 = vld [vmem:[%s7821_s1 + $0x408] ss:$16 sps:$4 sm:$0xff]  }
  0x45   :  { %3656 = vmatprep.mubr.bf16.mxu0 %v5290_v30  ;;  %4043 = vmatprep.mubr.bf16.mxu1 %v5290_v30  ;;  %v5332_v30 = vld [vmem:[%s7821_s1 + $0x4cc] ss:$16 sps:$4 sm:$0xff]  }
  0x47   :  { %3627 = vmatpush1.bf16.msra.mxu0 %v5198_v8  ;;  %4014 = vmatpush1.bf16.msra.mxu1 %v5201_v9  ;;  %v5299_v8 = vld [vmem:[%s7821_s1 + $0x424] ss:$16 sps:$4 sm:$0xff]   ;;  %v5302_v9 = vld [vmem:[%s7821_s1 + $0x42c] ss:$16 sps:$4 sm:$0xff]  }
  0x48   :  { %3628 = vmatprep.subr.bf16.mxu0 %v5206_v10  ;;  %4015 = vmatprep.subr.bf16.mxu1 %v5209_v11  ;;  %v5297_v10 = vld [vmem:[%s7821_s1 + $0x420] ss:$16 sps:$4 sm:$0xff]   ;;  %v5300_v11 = vld [vmem:[%s7821_s1 + $0x428] ss:$16 sps:$4 sm:$0xff]  }
  0x4b   :  { %3629 = vmatpush1.bf16.msra.mxu0 %v5204_v12  ;;  %4016 = vmatpush1.bf16.msra.mxu1 %v5207_v13  ;;  %v5389_v12 = vld [vmem:[%s7822_s0 + $0x14] ss:$72 sps:$4 sm:$0xff]  }
  0x4c   :  { %3630 = vmatprep.subr.bf16.mxu0 %v5212_v14  ;;  %4017 = vmatprep.subr.bf16.mxu1 %v5215_v15  ;;  %v5305_v13 = vld [vmem:[%s7821_s1 + $0x444] ss:$16 sps:$4 sm:$0xff]   ;;  %v5308_v14 = vld [vmem:[%s7821_s1 + $0x44c] ss:$16 sps:$4 sm:$0xff]   ;;  %v5303_v15 = vld [vmem:[%s7821_s1 + $0x440] ss:$16 sps:$4 sm:$0xff]  }
  0x4f   :  { %3631 = vmatpush1.bf16.msra.mxu0 %v5210_v16  ;;  %4018 = vmatpush1.bf16.msra.mxu1 %v5213_v17  ;;  %v5306_v16 = vld [vmem:[%s7821_s1 + $0x448] ss:$16 sps:$4 sm:$0xff]   ;;  %v5311_v17 = vld [vmem:[%s7821_s1 + $0x464] ss:$16 sps:$4 sm:$0xff]  }
  0x50   :  { %3632 = vmatprep.subr.bf16.mxu0 %v5218_v18  ;;  %4019 = vmatprep.subr.bf16.mxu1 %v5221_v19  ;;  %v5314_v18 = vld [vmem:[%s7821_s1 + $0x46c] ss:$16 sps:$4 sm:$0xff]   ;;  %v5309_v19 = vld [vmem:[%s7821_s1 + $0x460] ss:$16 sps:$4 sm:$0xff]  }
  0x53   :  { %3633 = vmatpush1.bf16.msra.mxu0 %v5216_v20  ;;  %4020 = vmatpush1.bf16.msra.mxu1 %v5219_v21  ;;  %v5312_v20 = vld [vmem:[%s7821_s1 + $0x468] ss:$16 sps:$4 sm:$0xff]   ;;  %v5317_v21 = vld [vmem:[%s7821_s1 + $0x484] ss:$16 sps:$4 sm:$0xff]  }
  0x54   :  { %3634 = vmatprep.subr.bf16.mxu0 %v5224_v22  ;;  %4021 = vmatprep.subr.bf16.mxu1 %v5227_v23  ;;  %v5320_v22 = vld [vmem:[%s7821_s1 + $0x48c] ss:$16 sps:$4 sm:$0xff]   ;;  %v5315_v23 = vld [vmem:[%s7821_s1 + $0x480] ss:$16 sps:$4 sm:$0xff]  }
  0x57   :  { %3635 = vmatpush1.bf16.msra.mxu0 %v5222_v24  ;;  %4022 = vmatpush1.bf16.msra.mxu1 %v5225_v25  ;;  %v5318_v24 = vld [vmem:[%s7821_s1 + $0x488] ss:$16 sps:$4 sm:$0xff]   ;;  %v5323_v25 = vld [vmem:[%s7821_s1 + $0x4a4] ss:$16 sps:$4 sm:$0xff]  }
  0x58   :  { %3636 = vmatprep.subr.bf16.mxu0 %v5230_v26  ;;  %4023 = vmatprep.subr.bf16.mxu1 %v5233_v27  ;;  %v5326_v26 = vld [vmem:[%s7821_s1 + $0x4ac] ss:$16 sps:$4 sm:$0xff]   ;;  %v5321_v27 = vld [vmem:[%s7821_s1 + $0x4a0] ss:$16 sps:$4 sm:$0xff]  }
  0x5b   :  { %3637 = vmatpush1.bf16.msra.mxu0 %v5228_v28  ;;  %4024 = vmatpush1.bf16.msra.mxu1 %v5231_v29  ;;  %v5324_v28 = vld [vmem:[%s7821_s1 + $0x4a8] ss:$16 sps:$4 sm:$0xff]   ;;  %v5329_v29 = vld [vmem:[%s7821_s1 + $0x4c4] ss:$16 sps:$4 sm:$0xff]  }
  0x5c   :  { %3638 = vmatprep.subr.bf16.mxu0 %v5236_v31  ;;  %4025 = vmatprep.subr.bf16.mxu1 %v5239_v32  ;;  %v5327_v31 = vld [vmem:[%s7821_s1 + $0x4c0] ss:$16 sps:$4 sm:$0xff]   ;;  %v5330_v32 = vld [vmem:[%s7821_s1 + $0x4c8] ss:$16 sps:$4 sm:$0xff]  }
  0x5f   :  { %3639 = vmatpush1.bf16.msra.mxu0 %v5234_v33  ;;  %4026 = vmatpush1.bf16.msra.mxu1 %v5237_v34  ;;  %v5335_v33 = vld [vmem:[%s7821_s1 + $0x4e4] ss:$16 sps:$4 sm:$0xff]   ;;  %v5338_v34 = vld [vmem:[%s7821_s1 + $0x4ec] ss:$16 sps:$4 sm:$0xff]  }
  0x60   :  { %3640 = vmatprep.subr.bf16.mxu0 %v5242_v35  ;;  %4027 = vmatprep.subr.bf16.mxu1 %v5245_v36  ;;  %v5333_v35 = vld [vmem:[%s7821_s1 + $0x4e0] ss:$16 sps:$4 sm:$0xff]   ;;  %v5336_v36 = vld [vmem:[%s7821_s1 + $0x4e8] ss:$16 sps:$4 sm:$0xff]  }
  0x63   :  { %3641 = vmatpush1.bf16.msra.mxu0 %v5240_v37  ;;  %4028 = vmatpush1.bf16.msra.mxu1 %v5243_v38  ;;  %v5341_v37 = vld [vmem:[%s7821_s1 + $0x504] ss:$16 sps:$4 sm:$0xff]   ;;  %v5344_v38 = vld [vmem:[%s7821_s1 + $0x50c] ss:$16 sps:$4 sm:$0xff]  }
  0x64   :  { %3642 = vmatprep.subr.bf16.mxu0 %v5248_v39  ;;  %4029 = vmatprep.subr.bf16.mxu1 %v5251_v40  ;;  %v5339_v39 = vld [vmem:[%s7821_s1 + $0x500] ss:$16 sps:$4 sm:$0xff]   ;;  %v5342_v40 = vld [vmem:[%s7821_s1 + $0x508] ss:$16 sps:$4 sm:$0xff]  }
  0x67   :  { %3643 = vmatpush1.bf16.msra.mxu0 %v5246_v41  ;;  %4030 = vmatpush1.bf16.msra.mxu1 %v5249_v42  ;;  %v5347_v41 = vld [vmem:[%s7821_s1 + $0x524] ss:$16 sps:$4 sm:$0xff]   ;;  %v5350_v42 = vld [vmem:[%s7821_s1 + $0x52c] ss:$16 sps:$4 sm:$0xff]  }
  0x68   :  { %3644 = vmatprep.subr.bf16.mxu0 %v5254_v43  ;;  %4031 = vmatprep.subr.bf16.mxu1 %v5257_v44  ;;  %v5345_v43 = vld [vmem:[%s7821_s1 + $0x520] ss:$16 sps:$4 sm:$0xff]   ;;  %v5348_v44 = vld [vmem:[%s7821_s1 + $0x528] ss:$16 sps:$4 sm:$0xff]  }
  0x6b   :  { %3645 = vmatpush1.bf16.msra.mxu0 %v5252_v45  ;;  %4032 = vmatpush1.bf16.msra.mxu1 %v5255_v46  ;;  %v5353_v45 = vld [vmem:[%s7821_s1 + $0x544] ss:$16 sps:$4 sm:$0xff]   ;;  %v5356_v46 = vld [vmem:[%s7821_s1 + $0x54c] ss:$16 sps:$4 sm:$0xff]  }
  0x6c   :  { %3646 = vmatprep.subr.bf16.mxu0 %v5260_v47  ;;  %4033 = vmatprep.subr.bf16.mxu1 %v5263_v48  ;;  %v5351_v47 = vld [vmem:[%s7821_s1 + $0x540] ss:$16 sps:$4 sm:$0xff]   ;;  %v5354_v48 = vld [vmem:[%s7821_s1 + $0x548] ss:$16 sps:$4 sm:$0xff]  }
  0x6f   :  { %3647 = vmatpush1.bf16.msra.mxu0 %v5258_v49  ;;  %4034 = vmatpush1.bf16.msra.mxu1 %v5261_v50  ;;  %v5359_v49 = vld [vmem:[%s7821_s1 + $0x564] ss:$16 sps:$4 sm:$0xff]   ;;  %v5362_v50 = vld [vmem:[%s7821_s1 + $0x56c] ss:$16 sps:$4 sm:$0xff]  }
  0x70   :  { %3648 = vmatprep.subr.bf16.mxu0 %v5266_v51  ;;  %4035 = vmatprep.subr.bf16.mxu1 %v5269_v52  ;;  %v5357_v51 = vld [vmem:[%s7821_s1 + $0x560] ss:$16 sps:$4 sm:$0xff]   ;;  %v5360_v52 = vld [vmem:[%s7821_s1 + $0x568] ss:$16 sps:$4 sm:$0xff]  }
  0x73   :  { %3649 = vmatpush1.bf16.msra.mxu0 %v5264_v53  ;;  %4036 = vmatpush1.bf16.msra.mxu1 %v5267_v54  ;;  %v5365_v53 = vld [vmem:[%s7821_s1 + $0x584] ss:$16 sps:$4 sm:$0xff]   ;;  %v5368_v54 = vld [vmem:[%s7821_s1 + $0x58c] ss:$16 sps:$4 sm:$0xff]  }
  0x74   :  { %3650 = vmatprep.subr.bf16.mxu0 %v5272_v55  ;;  %4037 = vmatprep.subr.bf16.mxu1 %v5275_v56  ;;  %v5363_v55 = vld [vmem:[%s7821_s1 + $0x580] ss:$16 sps:$4 sm:$0xff]   ;;  %v5366_v56 = vld [vmem:[%s7821_s1 + $0x588] ss:$16 sps:$4 sm:$0xff]  }
  0x77   :  { %3651 = vmatpush1.bf16.msra.mxu0 %v5270_v57  ;;  %4038 = vmatpush1.bf16.msra.mxu1 %v5273_v58  ;;  %v5371_v57 = vld [vmem:[%s7821_s1 + $0x5a4] ss:$16 sps:$4 sm:$0xff]   ;;  %v5374_v58 = vld [vmem:[%s7821_s1 + $0x5ac] ss:$16 sps:$4 sm:$0xff]  }
  0x78   :  { %3652 = vmatprep.subr.bf16.mxu0 %v5278_v59  ;;  %4039 = vmatprep.subr.bf16.mxu1 %v5281_v60  ;;  %v5369_v59 = vld [vmem:[%s7821_s1 + $0x5a0] ss:$16 sps:$4 sm:$0xff]   ;;  %v5372_v60 = vld [vmem:[%s7821_s1 + $0x5a8] ss:$16 sps:$4 sm:$0xff]  }
  0x7b   :  { %3653 = vmatpush1.bf16.msra.mxu0 %v5276_v61  ;;  %4040 = vmatpush1.bf16.msra.mxu1 %v5279_v62  ;;  %v5377_v61 = vld [vmem:[%s7821_s1 + $0x5c4] ss:$16 sps:$4 sm:$0xff]   ;;  %v5380_v62 = vld [vmem:[%s7821_s1 + $0x5cc] ss:$16 sps:$4 sm:$0xff]  }
  0x7c   :  { %3654 = vmatprep.subr.bf16.mxu0 %v5284_v63  ;;  %4041 = vmatprep.subr.bf16.mxu1 %v5287_v0  ;;  %v5375_v63 = vld [vmem:[%s7821_s1 + $0x5c0] ss:$16 sps:$4 sm:$0xff]   ;;  %v5378_v0 = vld [vmem:[%s7821_s1 + $0x5c8] ss:$16 sps:$4 sm:$0xff]  }
  0x7f   :  { %3655 = vmatpush1.bf16.msra.mxu0 %v5282_v1  ;;  %4042 = vmatpush1.bf16.msra.mxu1 %v5285_v2  ;;  %v5383_v1 = vld [vmem:[%s7821_s1 + $0x5e4] ss:$16 sps:$4 sm:$0xff]   ;;  %v5386_v2 = vld [vmem:[%s7821_s1 + $0x5ec] ss:$16 sps:$4 sm:$0xff]  }
  0x80   :  { %3667 = vmatprep.subr.bf16.mxu0 %v5293_v3  ;;  %4054 = vmatprep.subr.bf16.mxu1 %v5296_v4  ;;  %v5381_v3 = vld [vmem:[%s7821_s1 + $0x5e0] ss:$16 sps:$4 sm:$0xff]   ;;  %v5384_v4 = vld [vmem:[%s7821_s1 + $0x5e8] ss:$16 sps:$4 sm:$0xff]  }
  0x82   :  { %3657 = vmatmul.mubr.bf16.vlgmr.msra.gmra.mrb[0].mxu0 %v5288_v5  ;;  %4044 = vmatmul.mubr.bf16.vlgmr.msra.gmra.mrb[0].mxu1 %v5288_v5  ;;  %v5392_v5 = vld [vmem:[%s7821_s1 + $0x604] ss:$16 sps:$4 sm:$0xff]  }
  0x83   :  { %3668 = vmatpush1.bf16.msra.mxu0 %v5291_v6  ;;  %4055 = vmatpush1.bf16.msra.mxu1 %v5294_v7  ;;  %v5395_v6 = vld [vmem:[%s7821_s1 + $0x60c] ss:$16 sps:$4 sm:$0xff]   ;;  %v5387_v7 = vld [vmem:[%s7822_s0 + $0x10] ss:$72 sps:$4 sm:$0xff]  }
  0x84   :  { %3669 = vmatprep.subr.bf16.mxu0 %v5299_v8  ;;  %4056 = vmatprep.subr.bf16.mxu1 %v5302_v9  ;;  %v5390_v8 = vld [vmem:[%s7821_s1 + $0x600] ss:$16 sps:$4 sm:$0xff]   ;;  %v5393_v9 = vld [vmem:[%s7821_s1 + $0x608] ss:$16 sps:$4 sm:$0xff]  }
  0x85   :  { %3699 = vmatprep.mubr.bf16.mxu0 %v5389_v12  ;;  %4086 = vmatprep.mubr.bf16.mxu1 %v5389_v12  ;;  %v5488_v12 = vld [vmem:[%s7822_s0 + $0x1c] ss:$72 sps:$4 sm:$0xff]  }
  0x87   :  { %3670 = vmatpush1.bf16.msra.mxu0 %v5297_v10  ;;  %4057 = vmatpush1.bf16.msra.mxu1 %v5300_v11  ;;  %v5398_v10 = vld [vmem:[%s7821_s1 + $0x624] ss:$16 sps:$4 sm:$0xff]   ;;  %v5401_v11 = vld [vmem:[%s7821_s1 + $0x62c] ss:$16 sps:$4 sm:$0xff]  }
  0x88   :  { %3671 = vmatprep.subr.bf16.mxu0 %v5305_v13  ;;  %4058 = vmatprep.subr.bf16.mxu1 %v5308_v14  ;;  %v5396_v13 = vld [vmem:[%s7821_s1 + $0x620] ss:$16 sps:$4 sm:$0xff]   ;;  %v5399_v14 = vld [vmem:[%s7821_s1 + $0x628] ss:$16 sps:$4 sm:$0xff]  }
  0x8b   :  { %3672 = vmatpush1.bf16.msra.mxu0 %v5303_v15  ;;  %4059 = vmatpush1.bf16.msra.mxu1 %v5306_v16  ;;  %v5404_v15 = vld [vmem:[%s7821_s1 + $0x644] ss:$16 sps:$4 sm:$0xff]   ;;  %v5407_v16 = vld [vmem:[%s7821_s1 + $0x64c] ss:$16 sps:$4 sm:$0xff]  }
  0x8c   :  { %3673 = vmatprep.subr.bf16.mxu0 %v5311_v17  ;;  %4060 = vmatprep.subr.bf16.mxu1 %v5314_v18  ;;  %v5402_v17 = vld [vmem:[%s7821_s1 + $0x640] ss:$16 sps:$4 sm:$0xff]   ;;  %v5405_v18 = vld [vmem:[%s7821_s1 + $0x648] ss:$16 sps:$4 sm:$0xff]  }
  0x8f   :  { %3674 = vmatpush1.bf16.msra.mxu0 %v5309_v19  ;;  %4061 = vmatpush1.bf16.msra.mxu1 %v5312_v20  ;;  %v5410_v19 = vld [vmem:[%s7821_s1 + $0x664] ss:$16 sps:$4 sm:$0xff]   ;;  %v5413_v20 = vld [vmem:[%s7821_s1 + $0x66c] ss:$16 sps:$4 sm:$0xff]  }
  0x90   :  { %3675 = vmatprep.subr.bf16.mxu0 %v5317_v21  ;;  %4062 = vmatprep.subr.bf16.mxu1 %v5320_v22  ;;  %v5408_v21 = vld [vmem:[%s7821_s1 + $0x660] ss:$16 sps:$4 sm:$0xff]   ;;  %v5411_v22 = vld [vmem:[%s7821_s1 + $0x668] ss:$16 sps:$4 sm:$0xff]  }
  0x93   :  { %3676 = vmatpush1.bf16.msra.mxu0 %v5315_v23  ;;  %4063 = vmatpush1.bf16.msra.mxu1 %v5318_v24  ;;  %v5416_v23 = vld [vmem:[%s7821_s1 + $0x684] ss:$16 sps:$4 sm:$0xff]   ;;  %v5419_v24 = vld [vmem:[%s7821_s1 + $0x68c] ss:$16 sps:$4 sm:$0xff]  }
  0x94   :  { %3677 = vmatprep.subr.bf16.mxu0 %v5323_v25  ;;  %4064 = vmatprep.subr.bf16.mxu1 %v5326_v26  ;;  %v5414_v25 = vld [vmem:[%s7821_s1 + $0x680] ss:$16 sps:$4 sm:$0xff]   ;;  %v5417_v26 = vld [vmem:[%s7821_s1 + $0x688] ss:$16 sps:$4 sm:$0xff]  }
  0x97   :  { %3678 = vmatpush1.bf16.msra.mxu0 %v5321_v27  ;;  %4065 = vmatpush1.bf16.msra.mxu1 %v5324_v28  ;;  %v5422_v27 = vld [vmem:[%s7821_s1 + $0x6a4] ss:$16 sps:$4 sm:$0xff]   ;;  %v5425_v28 = vld [vmem:[%s7821_s1 + $0x6ac] ss:$16 sps:$4 sm:$0xff]  }
  0x98   :  { %3679 = vmatprep.subr.bf16.mxu0 %v5329_v29  ;;  %4066 = vmatprep.subr.bf16.mxu1 %v5332_v30  ;;  %v5420_v29 = vld [vmem:[%s7821_s1 + $0x6a0] ss:$16 sps:$4 sm:$0xff]   ;;  %v5423_v30 = vld [vmem:[%s7821_s1 + $0x6a8] ss:$16 sps:$4 sm:$0xff]  }
  0x9b   :  { %3680 = vmatpush1.bf16.msra.mxu0 %v5327_v31  ;;  %4067 = vmatpush1.bf16.msra.mxu1 %v5330_v32  ;;  %v5428_v31 = vld [vmem:[%s7821_s1 + $0x6c4] ss:$16 sps:$4 sm:$0xff]   ;;  %v5431_v32 = vld [vmem:[%s7821_s1 + $0x6cc] ss:$16 sps:$4 sm:$0xff]  }
  0x9c   :  { %3681 = vmatprep.subr.bf16.mxu0 %v5335_v33  ;;  %4068 = vmatprep.subr.bf16.mxu1 %v5338_v34  ;;  %v5426_v33 = vld [vmem:[%s7821_s1 + $0x6c0] ss:$16 sps:$4 sm:$0xff]   ;;  %v5429_v34 = vld [vmem:[%s7821_s1 + $0x6c8] ss:$16 sps:$4 sm:$0xff]  }
  0x9f   :  { %3682 = vmatpush1.bf16.msra.mxu0 %v5333_v35  ;;  %4069 = vmatpush1.bf16.msra.mxu1 %v5336_v36  ;;  %v5434_v35 = vld [vmem:[%s7821_s1 + $0x6e4] ss:$16 sps:$4 sm:$0xff]   ;;  %v5437_v36 = vld [vmem:[%s7821_s1 + $0x6ec] ss:$16 sps:$4 sm:$0xff]  }
  0xa0   :  { %3683 = vmatprep.subr.bf16.mxu0 %v5341_v37  ;;  %4070 = vmatprep.subr.bf16.mxu1 %v5344_v38  ;;  %v5432_v37 = vld [vmem:[%s7821_s1 + $0x6e0] ss:$16 sps:$4 sm:$0xff]   ;;  %v5435_v38 = vld [vmem:[%s7821_s1 + $0x6e8] ss:$16 sps:$4 sm:$0xff]  }
  0xa3   :  { %3684 = vmatpush1.bf16.msra.mxu0 %v5339_v39  ;;  %4071 = vmatpush1.bf16.msra.mxu1 %v5342_v40  ;;  %v5440_v39 = vld [vmem:[%s7821_s1 + $0x704] ss:$16 sps:$4 sm:$0xff]   ;;  %v5443_v40 = vld [vmem:[%s7821_s1 + $0x70c] ss:$16 sps:$4 sm:$0xff]  }
  0xa4   :  { %3685 = vmatprep.subr.bf16.mxu0 %v5347_v41  ;;  %4072 = vmatprep.subr.bf16.mxu1 %v5350_v42  ;;  %v5438_v41 = vld [vmem:[%s7821_s1 + $0x700] ss:$16 sps:$4 sm:$0xff]   ;;  %v5441_v42 = vld [vmem:[%s7821_s1 + $0x708] ss:$16 sps:$4 sm:$0xff]  }
  0xa7   :  { %3686 = vmatpush1.bf16.msra.mxu0 %v5345_v43  ;;  %4073 = vmatpush1.bf16.msra.mxu1 %v5348_v44  ;;  %v5446_v43 = vld [vmem:[%s7821_s1 + $0x724] ss:$16 sps:$4 sm:$0xff]   ;;  %v5449_v44 = vld [vmem:[%s7821_s1 + $0x72c] ss:$16 sps:$4 sm:$0xff]  }
  0xa8   :  { %3687 = vmatprep.subr.bf16.mxu0 %v5353_v45  ;;  %4074 = vmatprep.subr.bf16.mxu1 %v5356_v46  ;;  %v5444_v45 = vld [vmem:[%s7821_s1 + $0x720] ss:$16 sps:$4 sm:$0xff]   ;;  %v5447_v46 = vld [vmem:[%s7821_s1 + $0x728] ss:$16 sps:$4 sm:$0xff]  }
  0xab   :  { %3688 = vmatpush1.bf16.msra.mxu0 %v5351_v47  ;;  %4075 = vmatpush1.bf16.msra.mxu1 %v5354_v48  ;;  %v5452_v47 = vld [vmem:[%s7821_s1 + $0x744] ss:$16 sps:$4 sm:$0xff]   ;;  %v5455_v48 = vld [vmem:[%s7821_s1 + $0x74c] ss:$16 sps:$4 sm:$0xff]  }
  0xac   :  { %3689 = vmatprep.subr.bf16.mxu0 %v5359_v49  ;;  %4076 = vmatprep.subr.bf16.mxu1 %v5362_v50  ;;  %v5450_v49 = vld [vmem:[%s7821_s1 + $0x740] ss:$16 sps:$4 sm:$0xff]   ;;  %v5453_v50 = vld [vmem:[%s7821_s1 + $0x748] ss:$16 sps:$4 sm:$0xff]  }
  0xaf   :  { %3690 = vmatpush1.bf16.msra.mxu0 %v5357_v51  ;;  %4077 = vmatpush1.bf16.msra.mxu1 %v5360_v52  ;;  %v5458_v51 = vld [vmem:[%s7821_s1 + $0x764] ss:$16 sps:$4 sm:$0xff]   ;;  %v5461_v52 = vld [vmem:[%s7821_s1 + $0x76c] ss:$16 sps:$4 sm:$0xff]  }
  0xb0   :  { %3691 = vmatprep.subr.bf16.mxu0 %v5365_v53  ;;  %4078 = vmatprep.subr.bf16.mxu1 %v5368_v54  ;;  %v5456_v53 = vld [vmem:[%s7821_s1 + $0x760] ss:$16 sps:$4 sm:$0xff]   ;;  %v5459_v54 = vld [vmem:[%s7821_s1 + $0x768] ss:$16 sps:$4 sm:$0xff]  }
  0xb3   :  { %3692 = vmatpush1.bf16.msra.mxu0 %v5363_v55  ;;  %4079 = vmatpush1.bf16.msra.mxu1 %v5366_v56  ;;  %v5464_v55 = vld [vmem:[%s7821_s1 + $0x784] ss:$16 sps:$4 sm:$0xff]   ;;  %v5467_v56 = vld [vmem:[%s7821_s1 + $0x78c] ss:$16 sps:$4 sm:$0xff]  }
  0xb4   :  { %3693 = vmatprep.subr.bf16.mxu0 %v5371_v57  ;;  %4080 = vmatprep.subr.bf16.mxu1 %v5374_v58  ;;  %v5462_v57 = vld [vmem:[%s7821_s1 + $0x780] ss:$16 sps:$4 sm:$0xff]   ;;  %v5465_v58 = vld [vmem:[%s7821_s1 + $0x788] ss:$16 sps:$4 sm:$0xff]  }
  0xb7   :  { %3694 = vmatpush1.bf16.msra.mxu0 %v5369_v59  ;;  %4081 = vmatpush1.bf16.msra.mxu1 %v5372_v60  ;;  %v5470_v59 = vld [vmem:[%s7821_s1 + $0x7a4] ss:$16 sps:$4 sm:$0xff]   ;;  %v5473_v60 = vld [vmem:[%s7821_s1 + $0x7ac] ss:$16 sps:$4 sm:$0xff]  }
  0xb8   :  { %3695 = vmatprep.subr.bf16.mxu0 %v5377_v61  ;;  %4082 = vmatprep.subr.bf16.mxu1 %v5380_v62  ;;  %v5468_v61 = vld [vmem:[%s7821_s1 + $0x7a0] ss:$16 sps:$4 sm:$0xff]   ;;  %v5471_v62 = vld [vmem:[%s7821_s1 + $0x7a8] ss:$16 sps:$4 sm:$0xff]  }
  0xbb   :  { %3696 = vmatpush1.bf16.msra.mxu0 %v5375_v63  ;;  %4083 = vmatpush1.bf16.msra.mxu1 %v5378_v0  ;;  %v5476_v63 = vld [vmem:[%s7821_s1 + $0x7c4] ss:$16 sps:$4 sm:$0xff]   ;;  %v5479_v0 = vld [vmem:[%s7821_s1 + $0x7cc] ss:$16 sps:$4 sm:$0xff]  }
  0xbc   :  { %3697 = vmatprep.subr.bf16.mxu0 %v5383_v1  ;;  %4084 = vmatprep.subr.bf16.mxu1 %v5386_v2  ;;  %v5474_v1 = vld [vmem:[%s7821_s1 + $0x7c0] ss:$16 sps:$4 sm:$0xff]   ;;  %v5477_v2 = vld [vmem:[%s7821_s1 + $0x7c8] ss:$16 sps:$4 sm:$0xff]  }
  0xbf   :  { %3698 = vmatpush1.bf16.msra.mxu0 %v5381_v3  ;;  %4085 = vmatpush1.bf16.msra.mxu1 %v5384_v4  ;;  %v5482_v3 = vld [vmem:[%s7821_s1 + $0x7e4] ss:$16 sps:$4 sm:$0xff]   ;;  %v5485_v4 = vld [vmem:[%s7821_s1 + $0x7ec] ss:$16 sps:$4 sm:$0xff]  }
  0xc0   :  { %3710 = vmatprep.subr.bf16.mxu0 %v5392_v5  ;;  %4097 = vmatprep.subr.bf16.mxu1 %v5395_v6  ;;  %v5480_v5 = vld [vmem:[%s7821_s1 + $0x7e0] ss:$16 sps:$4 sm:$0xff]   ;;  %v5483_v6 = vld [vmem:[%s7821_s1 + $0x7e8] ss:$16 sps:$4 sm:$0xff]  }
  0xc2   :  { %3700 = vmatmul.mubr.bf16.vlgmr.msra.gmra.mrb[0].mxu0 %v5387_v7  ;;  %4087 = vmatmul.mubr.bf16.vlgmr.msra.gmra.mrb[0].mxu1 %v5387_v7  ;;  %v5491_v7 = vld [vmem:[%s7821_s1 + $0x804] ss:$16 sps:$4 sm:$0xff]  }
  0xc3   :  { %3711 = vmatpush1.bf16.msra.mxu0 %v5390_v8  ;;  %4098 = vmatpush1.bf16.msra.mxu1 %v5393_v9  ;;  %v5494_v8 = vld [vmem:[%s7821_s1 + $0x80c] ss:$16 sps:$4 sm:$0xff]   ;;  %v5486_v9 = vld [vmem:[%s7822_s0 + $0x18] ss:$72 sps:$4 sm:$0xff]  }
  0xc4   :  { %3712 = vmatprep.subr.bf16.mxu0 %v5398_v10  ;;  %4099 = vmatprep.subr.bf16.mxu1 %v5401_v11  ;;  %v5489_v10 = vld [vmem:[%s7821_s1 + $0x800] ss:$16 sps:$4 sm:$0xff]   ;;  %v5492_v11 = vld [vmem:[%s7821_s1 + $0x808] ss:$16 sps:$4 sm:$0xff]  }
  0xc5   :  { %3742 = vmatprep.mubr.bf16.mxu0 %v5488_v12  ;;  %4129 = vmatprep.mubr.bf16.mxu1 %v5488_v12  ;;  %v5497_v12 = vld [vmem:[%s7821_s1 + $0x824] ss:$16 sps:$4 sm:$0xff]  }
  0xc7   :  { %3713 = vmatpush1.bf16.msra.mxu0 %v5396_v13  ;;  %4100 = vmatpush1.bf16.msra.mxu1 %v5399_v14  ;;  %v5500_v13 = vld [vmem:[%s7821_s1 + $0x82c] ss:$16 sps:$4 sm:$0xff]  }
  0xc8   :  { %3714 = vmatprep.subr.bf16.mxu0 %v5404_v15  ;;  %4101 = vmatprep.subr.bf16.mxu1 %v5407_v16  ;;  %v5587_v14 = vld [vmem:[%s7822_s0 + $0x24] ss:$72 sps:$4 sm:$0xff]   ;;  %v5495_v15 = vld [vmem:[%s7821_s1 + $0x820] ss:$16 sps:$4 sm:$0xff]   ;;  %v5498_v16 = vld [vmem:[%s7821_s1 + $0x828] ss:$16 sps:$4 sm:$0xff]  }
  0xcb   :  { %3715 = vmatpush1.bf16.msra.mxu0 %v5402_v17  ;;  %4102 = vmatpush1.bf16.msra.mxu1 %v5405_v18  ;;  %v5503_v17 = vld [vmem:[%s7821_s1 + $0x844] ss:$16 sps:$4 sm:$0xff]   ;;  %v5506_v18 = vld [vmem:[%s7821_s1 + $0x84c] ss:$16 sps:$4 sm:$0xff]  }
  0xcc   :  { %3716 = vmatprep.subr.bf16.mxu0 %v5410_v19  ;;  %4103 = vmatprep.subr.bf16.mxu1 %v5413_v20  ;;  %v5501_v19 = vld [vmem:[%s7821_s1 + $0x840] ss:$16 sps:$4 sm:$0xff]   ;;  %v5504_v20 = vld [vmem:[%s7821_s1 + $0x848] ss:$16 sps:$4 sm:$0xff]  }
  0xcf   :  { %3717 = vmatpush1.bf16.msra.mxu0 %v5408_v21  ;;  %4104 = vmatpush1.bf16.msra.mxu1 %v5411_v22  ;;  %v5509_v21 = vld [vmem:[%s7821_s1 + $0x864] ss:$16 sps:$4 sm:$0xff]   ;;  %v5512_v22 = vld [vmem:[%s7821_s1 + $0x86c] ss:$16 sps:$4 sm:$0xff]  }
  0xd0   :  { %3718 = vmatprep.subr.bf16.mxu0 %v5416_v23  ;;  %4105 = vmatprep.subr.bf16.mxu1 %v5419_v24  ;;  %v5507_v23 = vld [vmem:[%s7821_s1 + $0x860] ss:$16 sps:$4 sm:$0xff]   ;;  %v5510_v24 = vld [vmem:[%s7821_s1 + $0x868] ss:$16 sps:$4 sm:$0xff]  }
  0xd3   :  { %3719 = vmatpush1.bf16.msra.mxu0 %v5414_v25  ;;  %4106 = vmatpush1.bf16.msra.mxu1 %v5417_v26  ;;  %v5515_v25 = vld [vmem:[%s7821_s1 + $0x884] ss:$16 sps:$4 sm:$0xff]   ;;  %v5518_v26 = vld [vmem:[%s7821_s1 + $0x88c] ss:$16 sps:$4 sm:$0xff]  }
  0xd4   :  { %3720 = vmatprep.subr.bf16.mxu0 %v5422_v27  ;;  %4107 = vmatprep.subr.bf16.mxu1 %v5425_v28  ;;  %v5513_v27 = vld [vmem:[%s7821_s1 + $0x880] ss:$16 sps:$4 sm:$0xff]   ;;  %v5516_v28 = vld [vmem:[%s7821_s1 + $0x888] ss:$16 sps:$4 sm:$0xff]  }
  0xd7   :  { %3721 = vmatpush1.bf16.msra.mxu0 %v5420_v29  ;;  %4108 = vmatpush1.bf16.msra.mxu1 %v5423_v30  ;;  %v5521_v29 = vld [vmem:[%s7821_s1 + $0x8a4] ss:$16 sps:$4 sm:$0xff]   ;;  %v5524_v30 = vld [vmem:[%s7821_s1 + $0x8ac] ss:$16 sps:$4 sm:$0xff]  }
  0xd8   :  { %3722 = vmatprep.subr.bf16.mxu0 %v5428_v31  ;;  %4109 = vmatprep.subr.bf16.mxu1 %v5431_v32  ;;  %v5519_v31 = vld [vmem:[%s7821_s1 + $0x8a0] ss:$16 sps:$4 sm:$0xff]   ;;  %v5522_v32 = vld [vmem:[%s7821_s1 + $0x8a8] ss:$16 sps:$4 sm:$0xff]  }
  0xdb   :  { %3723 = vmatpush1.bf16.msra.mxu0 %v5426_v33  ;;  %4110 = vmatpush1.bf16.msra.mxu1 %v5429_v34  ;;  %v5527_v33 = vld [vmem:[%s7821_s1 + $0x8c4] ss:$16 sps:$4 sm:$0xff]   ;;  %v5530_v34 = vld [vmem:[%s7821_s1 + $0x8cc] ss:$16 sps:$4 sm:$0xff]  }
  0xdc   :  { %3724 = vmatprep.subr.bf16.mxu0 %v5434_v35  ;;  %4111 = vmatprep.subr.bf16.mxu1 %v5437_v36  ;;  %v5525_v35 = vld [vmem:[%s7821_s1 + $0x8c0] ss:$16 sps:$4 sm:$0xff]   ;;  %v5528_v36 = vld [vmem:[%s7821_s1 + $0x8c8] ss:$16 sps:$4 sm:$0xff]  }
  0xdf   :  { %3725 = vmatpush1.bf16.msra.mxu0 %v5432_v37  ;;  %4112 = vmatpush1.bf16.msra.mxu1 %v5435_v38  ;;  %v5533_v37 = vld [vmem:[%s7821_s1 + $0x8e4] ss:$16 sps:$4 sm:$0xff]   ;;  %v5536_v38 = vld [vmem:[%s7821_s1 + $0x8ec] ss:$16 sps:$4 sm:$0xff]  }
  0xe0   :  { %3726 = vmatprep.subr.bf16.mxu0 %v5440_v39  ;;  %4113 = vmatprep.subr.bf16.mxu1 %v5443_v40  ;;  %v5531_v39 = vld [vmem:[%s7821_s1 + $0x8e0] ss:$16 sps:$4 sm:$0xff]   ;;  %v5534_v40 = vld [vmem:[%s7821_s1 + $0x8e8] ss:$16 sps:$4 sm:$0xff]  }
  0xe3   :  { %3727 = vmatpush1.bf16.msra.mxu0 %v5438_v41  ;;  %4114 = vmatpush1.bf16.msra.mxu1 %v5441_v42  ;;  %v5539_v41 = vld [vmem:[%s7821_s1 + $0x904] ss:$16 sps:$4 sm:$0xff]   ;;  %v5542_v42 = vld [vmem:[%s7821_s1 + $0x90c] ss:$16 sps:$4 sm:$0xff]  }
  0xe4   :  { %3728 = vmatprep.subr.bf16.mxu0 %v5446_v43  ;;  %4115 = vmatprep.subr.bf16.mxu1 %v5449_v44  ;;  %v5537_v43 = vld [vmem:[%s7821_s1 + $0x900] ss:$16 sps:$4 sm:$0xff]   ;;  %v5540_v44 = vld [vmem:[%s7821_s1 + $0x908] ss:$16 sps:$4 sm:$0xff]  }
  0xe7   :  { %3729 = vmatpush1.bf16.msra.mxu0 %v5444_v45  ;;  %4116 = vmatpush1.bf16.msra.mxu1 %v5447_v46  ;;  %v5545_v45 = vld [vmem:[%s7821_s1 + $0x924] ss:$16 sps:$4 sm:$0xff]   ;;  %v5548_v46 = vld [vmem:[%s7821_s1 + $0x92c] ss:$16 sps:$4 sm:$0xff]  }
  0xe8   :  { %3730 = vmatprep.subr.bf16.mxu0 %v5452_v47  ;;  %4117 = vmatprep.subr.bf16.mxu1 %v5455_v48  ;;  %v5543_v47 = vld [vmem:[%s7821_s1 + $0x920] ss:$16 sps:$4 sm:$0xff]   ;;  %v5546_v48 = vld [vmem:[%s7821_s1 + $0x928] ss:$16 sps:$4 sm:$0xff]  }
  0xeb   :  { %3731 = vmatpush1.bf16.msra.mxu0 %v5450_v49  ;;  %4118 = vmatpush1.bf16.msra.mxu1 %v5453_v50  ;;  %v5551_v49 = vld [vmem:[%s7821_s1 + $0x944] ss:$16 sps:$4 sm:$0xff]   ;;  %v5554_v50 = vld [vmem:[%s7821_s1 + $0x94c] ss:$16 sps:$4 sm:$0xff]  }
  0xec   :  { %3732 = vmatprep.subr.bf16.mxu0 %v5458_v51  ;;  %4119 = vmatprep.subr.bf16.mxu1 %v5461_v52  ;;  %v5549_v51 = vld [vmem:[%s7821_s1 + $0x940] ss:$16 sps:$4 sm:$0xff]   ;;  %v5552_v52 = vld [vmem:[%s7821_s1 + $0x948] ss:$16 sps:$4 sm:$0xff]  }
  0xef   :  { %3733 = vmatpush1.bf16.msra.mxu0 %v5456_v53  ;;  %4120 = vmatpush1.bf16.msra.mxu1 %v5459_v54  ;;  %v5557_v53 = vld [vmem:[%s7821_s1 + $0x964] ss:$16 sps:$4 sm:$0xff]   ;;  %v5560_v54 = vld [vmem:[%s7821_s1 + $0x96c] ss:$16 sps:$4 sm:$0xff]  }
  0xf0   :  { %3734 = vmatprep.subr.bf16.mxu0 %v5464_v55  ;;  %4121 = vmatprep.subr.bf16.mxu1 %v5467_v56  ;;  %v5555_v55 = vld [vmem:[%s7821_s1 + $0x960] ss:$16 sps:$4 sm:$0xff]   ;;  %v5558_v56 = vld [vmem:[%s7821_s1 + $0x968] ss:$16 sps:$4 sm:$0xff]  }
  0xf3   :  { %3735 = vmatpush1.bf16.msra.mxu0 %v5462_v57  ;;  %4122 = vmatpush1.bf16.msra.mxu1 %v5465_v58  ;;  %v5563_v57 = vld [vmem:[%s7821_s1 + $0x984] ss:$16 sps:$4 sm:$0xff]   ;;  %v5566_v58 = vld [vmem:[%s7821_s1 + $0x98c] ss:$16 sps:$4 sm:$0xff]  }
  0xf4   :  { %3736 = vmatprep.subr.bf16.mxu0 %v5470_v59  ;;  %4123 = vmatprep.subr.bf16.mxu1 %v5473_v60  ;;  %v5561_v59 = vld [vmem:[%s7821_s1 + $0x980] ss:$16 sps:$4 sm:$0xff]   ;;  %v5564_v60 = vld [vmem:[%s7821_s1 + $0x988] ss:$16 sps:$4 sm:$0xff]  }
  0xf7   :  { %3737 = vmatpush1.bf16.msra.mxu0 %v5468_v61  ;;  %4124 = vmatpush1.bf16.msra.mxu1 %v5471_v62  ;;  %v5569_v61 = vld [vmem:[%s7821_s1 + $0x9a4] ss:$16 sps:$4 sm:$0xff]   ;;  %v5572_v62 = vld [vmem:[%s7821_s1 + $0x9ac] ss:$16 sps:$4 sm:$0xff]  }
  0xf8   :  { %3738 = vmatprep.subr.bf16.mxu0 %v5476_v63  ;;  %4125 = vmatprep.subr.bf16.mxu1 %v5479_v0  ;;  %v5567_v63 = vld [vmem:[%s7821_s1 + $0x9a0] ss:$16 sps:$4 sm:$0xff]   ;;  %v5570_v0 = vld [vmem:[%s7821_s1 + $0x9a8] ss:$16 sps:$4 sm:$0xff]  }
  0xfb   :  { %3739 = vmatpush1.bf16.msra.mxu0 %v5474_v1  ;;  %4126 = vmatpush1.bf16.msra.mxu1 %v5477_v2  ;;  %v5575_v1 = vld [vmem:[%s7821_s1 + $0x9c4] ss:$16 sps:$4 sm:$0xff]   ;;  %v5578_v2 = vld [vmem:[%s7821_s1 + $0x9cc] ss:$16 sps:$4 sm:$0xff]  }
  0xfc   :  { %3740 = vmatprep.subr.bf16.mxu0 %v5482_v3  ;;  %4127 = vmatprep.subr.bf16.mxu1 %v5485_v4  ;;  %v5573_v3 = vld [vmem:[%s7821_s1 + $0x9c0] ss:$16 sps:$4 sm:$0xff]   ;;  %v5576_v4 = vld [vmem:[%s7821_s1 + $0x9c8] ss:$16 sps:$4 sm:$0xff]  }
  0xff   :  { %3741 = vmatpush1.bf16.msra.mxu0 %v5480_v5  ;;  %4128 = vmatpush1.bf16.msra.mxu1 %v5483_v6  ;;  %v5581_v5 = vld [vmem:[%s7821_s1 + $0x9e4] ss:$16 sps:$4 sm:$0xff]   ;;  %v5584_v6 = vld [vmem:[%s7821_s1 + $0x9ec] ss:$16 sps:$4 sm:$0xff]  }
 0x100   :  { %3753 = vmatprep.subr.bf16.mxu0 %v5491_v7  ;;  %4140 = vmatprep.subr.bf16.mxu1 %v5494_v8  ;;  %v5579_v7 = vld [vmem:[%s7821_s1 + $0x9e0] ss:$16 sps:$4 sm:$0xff]   ;;  %v5582_v8 = vld [vmem:[%s7821_s1 + $0x9e8] ss:$16 sps:$4 sm:$0xff]  }
 0x102   :  { %3743 = vmatmul.mubr.bf16.vlgmr.msra.gmra.mrb[0].mxu0 %v5486_v9  ;;  %4130 = vmatmul.mubr.bf16.vlgmr.msra.gmra.mrb[0].mxu1 %v5486_v9  ;;  %v5585_v9 = vld [vmem:[%s7822_s0 + $0x20] ss:$72 sps:$4 sm:$0xff]  }
 0x103   :  { %3754 = vmatpush1.bf16.msra.mxu0 %v5489_v10  ;;  %4141 = vmatpush1.bf16.msra.mxu1 %v5492_v11  ;;  %v5590_v10 = vld [vmem:[%s7821_s1 + $0xa04] ss:$16 sps:$4 sm:$0xff]   ;;  %v5593_v11 = vld [vmem:[%s7821_s1 + $0xa0c] ss:$16 sps:$4 sm:$0xff]  }
 0x104   :  { %3755 = vmatprep.subr.bf16.mxu0 %v5497_v12  ;;  %4142 = vmatprep.subr.bf16.mxu1 %v5500_v13  ;;  %v5588_v12 = vld [vmem:[%s7821_s1 + $0xa00] ss:$16 sps:$4 sm:$0xff]   ;;  %v5591_v13 = vld [vmem:[%s7821_s1 + $0xa08] ss:$16 sps:$4 sm:$0xff]  }
 0x105   :  { %3785 = vmatprep.mubr.bf16.mxu0 %v5587_v14  ;;  %4172 = vmatprep.mubr.bf16.mxu1 %v5587_v14  ;;  %v5596_v14 = vld [vmem:[%s7821_s1 + $0xa24] ss:$16 sps:$4 sm:$0xff]  }
 0x107   :  { %3756 = vmatpush1.bf16.msra.mxu0 %v5495_v15  ;;  %4143 = vmatpush1.bf16.msra.mxu1 %v5498_v16  ;;  %v5599_v15 = vld [vmem:[%s7821_s1 + $0xa2c] ss:$16 sps:$4 sm:$0xff]  }
 0x108   :  { %3757 = vmatprep.subr.bf16.mxu0 %v5503_v17  ;;  %4144 = vmatprep.subr.bf16.mxu1 %v5506_v18  ;;  %v5686_v16 = vld [vmem:[%s7822_s0 + $0x2c] ss:$72 sps:$4 sm:$0xff]   ;;  %v5594_v17 = vld [vmem:[%s7821_s1 + $0xa20] ss:$16 sps:$4 sm:$0xff]   ;;  %v5597_v18 = vld [vmem:[%s7821_s1 + $0xa28] ss:$16 sps:$4 sm:$0xff]  }
 0x10b   :  { %3758 = vmatpush1.bf16.msra.mxu0 %v5501_v19  ;;  %4145 = vmatpush1.bf16.msra.mxu1 %v5504_v20  ;;  %v5602_v19 = vld [vmem:[%s7821_s1 + $0xa44] ss:$16 sps:$4 sm:$0xff]   ;;  %v5605_v20 = vld [vmem:[%s7821_s1 + $0xa4c] ss:$16 sps:$4 sm:$0xff]  }
 0x10c   :  { %3759 = vmatprep.subr.bf16.mxu0 %v5509_v21  ;;  %4146 = vmatprep.subr.bf16.mxu1 %v5512_v22  ;;  %v5600_v21 = vld [vmem:[%s7821_s1 + $0xa40] ss:$16 sps:$4 sm:$0xff]   ;;  %v5603_v22 = vld [vmem:[%s7821_s1 + $0xa48] ss:$16 sps:$4 sm:$0xff]  }
 0x10f   :  { %3760 = vmatpush1.bf16.msra.mxu0 %v5507_v23  ;;  %4147 = vmatpush1.bf16.msra.mxu1 %v5510_v24  ;;  %v5608_v23 = vld [vmem:[%s7821_s1 + $0xa64] ss:$16 sps:$4 sm:$0xff]   ;;  %v5611_v24 = vld [vmem:[%s7821_s1 + $0xa6c] ss:$16 sps:$4 sm:$0xff]  }
 0x110   :  { %3761 = vmatprep.subr.bf16.mxu0 %v5515_v25  ;;  %4148 = vmatprep.subr.bf16.mxu1 %v5518_v26  ;;  %v5606_v25 = vld [vmem:[%s7821_s1 + $0xa60] ss:$16 sps:$4 sm:$0xff]   ;;  %v5609_v26 = vld [vmem:[%s7821_s1 + $0xa68] ss:$16 sps:$4 sm:$0xff]  }
 0x113   :  { %3762 = vmatpush1.bf16.msra.mxu0 %v5513_v27  ;;  %4149 = vmatpush1.bf16.msra.mxu1 %v5516_v28  ;;  %v5614_v27 = vld [vmem:[%s7821_s1 + $0xa84] ss:$16 sps:$4 sm:$0xff]   ;;  %v5617_v28 = vld [vmem:[%s7821_s1 + $0xa8c] ss:$16 sps:$4 sm:$0xff]  }
 0x114   :  { %3763 = vmatprep.subr.bf16.mxu0 %v5521_v29  ;;  %4150 = vmatprep.subr.bf16.mxu1 %v5524_v30  ;;  %v5612_v29 = vld [vmem:[%s7821_s1 + $0xa80] ss:$16 sps:$4 sm:$0xff]   ;;  %v5615_v30 = vld [vmem:[%s7821_s1 + $0xa88] ss:$16 sps:$4 sm:$0xff]  }
 0x117   :  { %3764 = vmatpush1.bf16.msra.mxu0 %v5519_v31  ;;  %4151 = vmatpush1.bf16.msra.mxu1 %v5522_v32  ;;  %v5620_v31 = vld [vmem:[%s7821_s1 + $0xaa4] ss:$16 sps:$4 sm:$0xff]   ;;  %v5623_v32 = vld [vmem:[%s7821_s1 + $0xaac] ss:$16 sps:$4 sm:$0xff]  }
 0x118   :  { %3765 = vmatprep.subr.bf16.mxu0 %v5527_v33  ;;  %4152 = vmatprep.subr.bf16.mxu1 %v5530_v34  ;;  %v5618_v33 = vld [vmem:[%s7821_s1 + $0xaa0] ss:$16 sps:$4 sm:$0xff]   ;;  %v5621_v34 = vld [vmem:[%s7821_s1 + $0xaa8] ss:$16 sps:$4 sm:$0xff]  }
 0x11b   :  { %3766 = vmatpush1.bf16.msra.mxu0 %v5525_v35  ;;  %4153 = vmatpush1.bf16.msra.mxu1 %v5528_v36  ;;  %v5626_v35 = vld [vmem:[%s7821_s1 + $0xac4] ss:$16 sps:$4 sm:$0xff]   ;;  %v5629_v36 = vld [vmem:[%s7821_s1 + $0xacc] ss:$16 sps:$4 sm:$0xff]  }
 0x11c   :  { %3767 = vmatprep.subr.bf16.mxu0 %v5533_v37  ;;  %4154 = vmatprep.subr.bf16.mxu1 %v5536_v38  ;;  %v5624_v37 = vld [vmem:[%s7821_s1 + $0xac0] ss:$16 sps:$4 sm:$0xff]   ;;  %v5627_v38 = vld [vmem:[%s7821_s1 + $0xac8] ss:$16 sps:$4 sm:$0xff]  }
 0x11f   :  { %3768 = vmatpush1.bf16.msra.mxu0 %v5531_v39  ;;  %4155 = vmatpush1.bf16.msra.mxu1 %v5534_v40  ;;  %v5632_v39 = vld [vmem:[%s7821_s1 + $0xae4] ss:$16 sps:$4 sm:$0xff]   ;;  %v5635_v40 = vld [vmem:[%s7821_s1 + $0xaec] ss:$16 sps:$4 sm:$0xff]  }
 0x120   :  { %3769 = vmatprep.subr.bf16.mxu0 %v5539_v41  ;;  %4156 = vmatprep.subr.bf16.mxu1 %v5542_v42  ;;  %v5630_v41 = vld [vmem:[%s7821_s1 + $0xae0] ss:$16 sps:$4 sm:$0xff]   ;;  %v5633_v42 = vld [vmem:[%s7821_s1 + $0xae8] ss:$16 sps:$4 sm:$0xff]  }
 0x123   :  { %3770 = vmatpush1.bf16.msra.mxu0 %v5537_v43  ;;  %4157 = vmatpush1.bf16.msra.mxu1 %v5540_v44  ;;  %v5638_v43 = vld [vmem:[%s7821_s1 + $0xb04] ss:$16 sps:$4 sm:$0xff]   ;;  %v5641_v44 = vld [vmem:[%s7821_s1 + $0xb0c] ss:$16 sps:$4 sm:$0xff]  }
 0x124   :  { %3771 = vmatprep.subr.bf16.mxu0 %v5545_v45  ;;  %4158 = vmatprep.subr.bf16.mxu1 %v5548_v46  ;;  %v5636_v45 = vld [vmem:[%s7821_s1 + $0xb00] ss:$16 sps:$4 sm:$0xff]   ;;  %v5639_v46 = vld [vmem:[%s7821_s1 + $0xb08] ss:$16 sps:$4 sm:$0xff]  }
 0x127   :  { %3772 = vmatpush1.bf16.msra.mxu0 %v5543_v47  ;;  %4159 = vmatpush1.bf16.msra.mxu1 %v5546_v48  ;;  %v5644_v47 = vld [vmem:[%s7821_s1 + $0xb24] ss:$16 sps:$4 sm:$0xff]   ;;  %v5647_v48 = vld [vmem:[%s7821_s1 + $0xb2c] ss:$16 sps:$4 sm:$0xff]  }
 0x128   :  { %3773 = vmatprep.subr.bf16.mxu0 %v5551_v49  ;;  %4160 = vmatprep.subr.bf16.mxu1 %v5554_v50  ;;  %v5642_v49 = vld [vmem:[%s7821_s1 + $0xb20] ss:$16 sps:$4 sm:$0xff]   ;;  %v5645_v50 = vld [vmem:[%s7821_s1 + $0xb28] ss:$16 sps:$4 sm:$0xff]  }
 0x12b   :  { %3774 = vmatpush1.bf16.msra.mxu0 %v5549_v51  ;;  %4161 = vmatpush1.bf16.msra.mxu1 %v5552_v52  ;;  %v5650_v51 = vld [vmem:[%s7821_s1 + $0xb44] ss:$16 sps:$4 sm:$0xff]   ;;  %v5653_v52 = vld [vmem:[%s7821_s1 + $0xb4c] ss:$16 sps:$4 sm:$0xff]  }
 0x12c   :  { %3775 = vmatprep.subr.bf16.mxu0 %v5557_v53  ;;  %4162 = vmatprep.subr.bf16.mxu1 %v5560_v54  ;;  %v5648_v53 = vld [vmem:[%s7821_s1 + $0xb40] ss:$16 sps:$4 sm:$0xff]   ;;  %v5651_v54 = vld [vmem:[%s7821_s1 + $0xb48] ss:$16 sps:$4 sm:$0xff]  }
 0x12f   :  { %3776 = vmatpush1.bf16.msra.mxu0 %v5555_v55  ;;  %4163 = vmatpush1.bf16.msra.mxu1 %v5558_v56  ;;  %v5656_v55 = vld [vmem:[%s7821_s1 + $0xb64] ss:$16 sps:$4 sm:$0xff]   ;;  %v5659_v56 = vld [vmem:[%s7821_s1 + $0xb6c] ss:$16 sps:$4 sm:$0xff]  }
 0x130   :  { %3777 = vmatprep.subr.bf16.mxu0 %v5563_v57  ;;  %4164 = vmatprep.subr.bf16.mxu1 %v5566_v58  ;;  %v5654_v57 = vld [vmem:[%s7821_s1 + $0xb60] ss:$16 sps:$4 sm:$0xff]   ;;  %v5657_v58 = vld [vmem:[%s7821_s1 + $0xb68] ss:$16 sps:$4 sm:$0xff]  }
 0x133   :  { %3778 = vmatpush1.bf16.msra.mxu0 %v5561_v59  ;;  %4165 = vmatpush1.bf16.msra.mxu1 %v5564_v60  ;;  %v5662_v59 = vld [vmem:[%s7821_s1 + $0xb84] ss:$16 sps:$4 sm:$0xff]   ;;  %v5665_v60 = vld [vmem:[%s7821_s1 + $0xb8c] ss:$16 sps:$4 sm:$0xff]  }
 0x134   :  { %3779 = vmatprep.subr.bf16.mxu0 %v5569_v61  ;;  %4166 = vmatprep.subr.bf16.mxu1 %v5572_v62  ;;  %v5660_v61 = vld [vmem:[%s7821_s1 + $0xb80] ss:$16 sps:$4 sm:$0xff]   ;;  %v5663_v62 = vld [vmem:[%s7821_s1 + $0xb88] ss:$16 sps:$4 sm:$0xff]  }
 0x137   :  { %3780 = vmatpush1.bf16.msra.mxu0 %v5567_v63  ;;  %4167 = vmatpush1.bf16.msra.mxu1 %v5570_v0  ;;  %v5668_v63 = vld [vmem:[%s7821_s1 + $0xba4] ss:$16 sps:$4 sm:$0xff]   ;;  %v5671_v0 = vld [vmem:[%s7821_s1 + $0xbac] ss:$16 sps:$4 sm:$0xff]  }
 0x138   :  { %3781 = vmatprep.subr.bf16.mxu0 %v5575_v1  ;;  %4168 = vmatprep.subr.bf16.mxu1 %v5578_v2  ;;  %v5666_v1 = vld [vmem:[%s7821_s1 + $0xba0] ss:$16 sps:$4 sm:$0xff]   ;;  %v5669_v2 = vld [vmem:[%s7821_s1 + $0xba8] ss:$16 sps:$4 sm:$0xff]  }
 0x13b   :  { %3782 = vmatpush1.bf16.msra.mxu0 %v5573_v3  ;;  %4169 = vmatpush1.bf16.msra.mxu1 %v5576_v4  ;;  %v5674_v3 = vld [vmem:[%s7821_s1 + $0xbc4] ss:$16 sps:$4 sm:$0xff]   ;;  %v5677_v4 = vld [vmem:[%s7821_s1 + $0xbcc] ss:$16 sps:$4 sm:$0xff]  }
 0x13c   :  { %3783 = vmatprep.subr.bf16.mxu0 %v5581_v5  ;;  %4170 = vmatprep.subr.bf16.mxu1 %v5584_v6  ;;  %v5672_v5 = vld [vmem:[%s7821_s1 + $0xbc0] ss:$16 sps:$4 sm:$0xff]   ;;  %v5675_v6 = vld [vmem:[%s7821_s1 + $0xbc8] ss:$16 sps:$4 sm:$0xff]  }
 0x13f   :  { %3784 = vmatpush1.bf16.msra.mxu0 %v5579_v7  ;;  %4171 = vmatpush1.bf16.msra.mxu1 %v5582_v8  ;;  %v5680_v7 = vld [vmem:[%s7821_s1 + $0xbe4] ss:$16 sps:$4 sm:$0xff]   ;;  %v5683_v8 = vld [vmem:[%s7821_s1 + $0xbec] ss:$16 sps:$4 sm:$0xff]  }
 0x140   :  { %3796 = vmatprep.subr.bf16.mxu0 %v5590_v10  ;;  %4183 = vmatprep.subr.bf16.mxu1 %v5593_v11  ;;  %v5681_v10 = vld [vmem:[%s7821_s1 + $0xbe8] ss:$16 sps:$4 sm:$0xff]   ;;  %v5689_v11 = vld [vmem:[%s7821_s1 + $0xc04] ss:$16 sps:$4 sm:$0xff]  }
 0x142   :  { %3786 = vmatmul.mubr.bf16.vlgmr.msra.gmra.mrb[0].mxu0 %v5585_v9  ;;  %4173 = vmatmul.mubr.bf16.vlgmr.msra.gmra.mrb[0].mxu1 %v5585_v9  ;;  %v5678_v9 = vld [vmem:[%s7821_s1 + $0xbe0] ss:$16 sps:$4 sm:$0xff]  }
 0x143   :  { %3797 = vmatpush1.bf16.msra.mxu0 %v5588_v12  ;;  %4184 = vmatpush1.bf16.msra.mxu1 %v5591_v13  ;;  %v5692_v12 = vld [vmem:[%s7821_s1 + $0xc0c] ss:$16 sps:$4 sm:$0xff]   ;;  %v5684_v13 = vld [vmem:[%s7822_s0 + $0x28] ss:$72 sps:$4 sm:$0xff]  }
 0x144   :  { %3798 = vmatprep.subr.bf16.mxu0 %v5596_v14  ;;  %4185 = vmatprep.subr.bf16.mxu1 %v5599_v15  ;;  %v5687_v14 = vld [vmem:[%s7821_s1 + $0xc00] ss:$16 sps:$4 sm:$0xff]   ;;  %v5690_v15 = vld [vmem:[%s7821_s1 + $0xc08] ss:$16 sps:$4 sm:$0xff]  }
 0x145   :  { %3828 = vmatprep.mubr.bf16.mxu0 %v5686_v16  ;;  %4215 = vmatprep.mubr.bf16.mxu1 %v5686_v16  ;;  %v5695_v16 = vld [vmem:[%s7821_s1 + $0xc24] ss:$16 sps:$4 sm:$0xff]  }
 0x147   :  { %3799 = vmatpush1.bf16.msra.mxu0 %v5594_v17  ;;  %4186 = vmatpush1.bf16.msra.mxu1 %v5597_v18  ;;  %v5698_v17 = vld [vmem:[%s7821_s1 + $0xc2c] ss:$16 sps:$4 sm:$0xff]  }
 0x148   :  { %3800 = vmatprep.subr.bf16.mxu0 %v5602_v19  ;;  %4187 = vmatprep.subr.bf16.mxu1 %v5605_v20  ;;  %v5785_v18 = vld [vmem:[%s7822_s0 + $0x34] ss:$72 sps:$4 sm:$0xff]   ;;  %v5693_v19 = vld [vmem:[%s7821_s1 + $0xc20] ss:$16 sps:$4 sm:$0xff]   ;;  %v5696_v20 = vld [vmem:[%s7821_s1 + $0xc28] ss:$16 sps:$4 sm:$0xff]  }
 0x14b   :  { %3801 = vmatpush1.bf16.msra.mxu0 %v5600_v21  ;;  %4188 = vmatpush1.bf16.msra.mxu1 %v5603_v22  ;;  %v5701_v21 = vld [vmem:[%s7821_s1 + $0xc44] ss:$16 sps:$4 sm:$0xff]   ;;  %v5704_v22 = vld [vmem:[%s7821_s1 + $0xc4c] ss:$16 sps:$4 sm:$0xff]  }
 0x14c   :  { %3802 = vmatprep.subr.bf16.mxu0 %v5608_v23  ;;  %4189 = vmatprep.subr.bf16.mxu1 %v5611_v24  ;;  %v5699_v23 = vld [vmem:[%s7821_s1 + $0xc40] ss:$16 sps:$4 sm:$0xff]   ;;  %v5702_v24 = vld [vmem:[%s7821_s1 + $0xc48] ss:$16 sps:$4 sm:$0xff]  }
 0x14f   :  { %3803 = vmatpush1.bf16.msra.mxu0 %v5606_v25  ;;  %4190 = vmatpush1.bf16.msra.mxu1 %v5609_v26  ;;  %v5707_v25 = vld [vmem:[%s7821_s1 + $0xc64] ss:$16 sps:$4 sm:$0xff]   ;;  %v5710_v26 = vld [vmem:[%s7821_s1 + $0xc6c] ss:$16 sps:$4 sm:$0xff]  }
 0x150   :  { %3804 = vmatprep.subr.bf16.mxu0 %v5614_v27  ;;  %4191 = vmatprep.subr.bf16.mxu1 %v5617_v28  ;;  %v5705_v27 = vld [vmem:[%s7821_s1 + $0xc60] ss:$16 sps:$4 sm:$0xff]   ;;  %v5708_v28 = vld [vmem:[%s7821_s1 + $0xc68] ss:$16 sps:$4 sm:$0xff]  }
 0x153   :  { %3805 = vmatpush1.bf16.msra.mxu0 %v5612_v29  ;;  %4192 = vmatpush1.bf16.msra.mxu1 %v5615_v30  ;;  %v5713_v29 = vld [vmem:[%s7821_s1 + $0xc84] ss:$16 sps:$4 sm:$0xff]   ;;  %v5716_v30 = vld [vmem:[%s7821_s1 + $0xc8c] ss:$16 sps:$4 sm:$0xff]  }
 0x154   :  { %3806 = vmatprep.subr.bf16.mxu0 %v5620_v31  ;;  %4193 = vmatprep.subr.bf16.mxu1 %v5623_v32  ;;  %v5711_v31 = vld [vmem:[%s7821_s1 + $0xc80] ss:$16 sps:$4 sm:$0xff]   ;;  %v5714_v32 = vld [vmem:[%s7821_s1 + $0xc88] ss:$16 sps:$4 sm:$0xff]  }
 0x157   :  { %3807 = vmatpush1.bf16.msra.mxu0 %v5618_v33  ;;  %4194 = vmatpush1.bf16.msra.mxu1 %v5621_v34  ;;  %v5719_v33 = vld [vmem:[%s7821_s1 + $0xca4] ss:$16 sps:$4 sm:$0xff]   ;;  %v5722_v34 = vld [vmem:[%s7821_s1 + $0xcac] ss:$16 sps:$4 sm:$0xff]  }
 0x158   :  { %3808 = vmatprep.subr.bf16.mxu0 %v5626_v35  ;;  %4195 = vmatprep.subr.bf16.mxu1 %v5629_v36  ;;  %v5717_v35 = vld [vmem:[%s7821_s1 + $0xca0] ss:$16 sps:$4 sm:$0xff]   ;;  %v5720_v36 = vld [vmem:[%s7821_s1 + $0xca8] ss:$16 sps:$4 sm:$0xff]  }
 0x15b   :  { %3809 = vmatpush1.bf16.msra.mxu0 %v5624_v37  ;;  %4196 = vmatpush1.bf16.msra.mxu1 %v5627_v38  ;;  %v5725_v37 = vld [vmem:[%s7821_s1 + $0xcc4] ss:$16 sps:$4 sm:$0xff]   ;;  %v5728_v38 = vld [vmem:[%s7821_s1 + $0xccc] ss:$16 sps:$4 sm:$0xff]  }
 0x15c   :  { %3810 = vmatprep.subr.bf16.mxu0 %v5632_v39  ;;  %4197 = vmatprep.subr.bf16.mxu1 %v5635_v40  ;;  %v5723_v39 = vld [vmem:[%s7821_s1 + $0xcc0] ss:$16 sps:$4 sm:$0xff]   ;;  %v5726_v40 = vld [vmem:[%s7821_s1 + $0xcc8] ss:$16 sps:$4 sm:$0xff]  }
 0x15f   :  { %3811 = vmatpush1.bf16.msra.mxu0 %v5630_v41  ;;  %4198 = vmatpush1.bf16.msra.mxu1 %v5633_v42  ;;  %v5731_v41 = vld [vmem:[%s7821_s1 + $0xce4] ss:$16 sps:$4 sm:$0xff]   ;;  %v5734_v42 = vld [vmem:[%s7821_s1 + $0xcec] ss:$16 sps:$4 sm:$0xff]  }
 0x160   :  { %3812 = vmatprep.subr.bf16.mxu0 %v5638_v43  ;;  %4199 = vmatprep.subr.bf16.mxu1 %v5641_v44  ;;  %v5729_v43 = vld [vmem:[%s7821_s1 + $0xce0] ss:$16 sps:$4 sm:$0xff]   ;;  %v5732_v44 = vld [vmem:[%s7821_s1 + $0xce8] ss:$16 sps:$4 sm:$0xff]  }
 0x163   :  { %3813 = vmatpush1.bf16.msra.mxu0 %v5636_v45  ;;  %4200 = vmatpush1.bf16.msra.mxu1 %v5639_v46  ;;  %v5737_v45 = vld [vmem:[%s7821_s1 + $0xd04] ss:$16 sps:$4 sm:$0xff]   ;;  %v5740_v46 = vld [vmem:[%s7821_s1 + $0xd0c] ss:$16 sps:$4 sm:$0xff]  }
 0x164   :  { %3814 = vmatprep.subr.bf16.mxu0 %v5644_v47  ;;  %4201 = vmatprep.subr.bf16.mxu1 %v5647_v48  ;;  %v5735_v47 = vld [vmem:[%s7821_s1 + $0xd00] ss:$16 sps:$4 sm:$0xff]   ;;  %v5738_v48 = vld [vmem:[%s7821_s1 + $0xd08] ss:$16 sps:$4 sm:$0xff]  }
 0x167   :  { %3815 = vmatpush1.bf16.msra.mxu0 %v5642_v49  ;;  %4202 = vmatpush1.bf16.msra.mxu1 %v5645_v50  ;;  %v5743_v49 = vld [vmem:[%s7821_s1 + $0xd24] ss:$16 sps:$4 sm:$0xff]   ;;  %v5746_v50 = vld [vmem:[%s7821_s1 + $0xd2c] ss:$16 sps:$4 sm:$0xff]  }
 0x168   :  { %3816 = vmatprep.subr.bf16.mxu0 %v5650_v51  ;;  %4203 = vmatprep.subr.bf16.mxu1 %v5653_v52  ;;  %v5741_v51 = vld [vmem:[%s7821_s1 + $0xd20] ss:$16 sps:$4 sm:$0xff]   ;;  %v5744_v52 = vld [vmem:[%s7821_s1 + $0xd28] ss:$16 sps:$4 sm:$0xff]  }
 0x16b   :  { %3817 = vmatpush1.bf16.msra.mxu0 %v5648_v53  ;;  %4204 = vmatpush1.bf16.msra.mxu1 %v5651_v54  ;;  %v5749_v53 = vld [vmem:[%s7821_s1 + $0xd44] ss:$16 sps:$4 sm:$0xff]   ;;  %v5752_v54 = vld [vmem:[%s7821_s1 + $0xd4c] ss:$16 sps:$4 sm:$0xff]  }
 0x16c   :  { %3818 = vmatprep.subr.bf16.mxu0 %v5656_v55  ;;  %4205 = vmatprep.subr.bf16.mxu1 %v5659_v56  ;;  %v5747_v55 = vld [vmem:[%s7821_s1 + $0xd40] ss:$16 sps:$4 sm:$0xff]   ;;  %v5750_v56 = vld [vmem:[%s7821_s1 + $0xd48] ss:$16 sps:$4 sm:$0xff]  }
 0x16f   :  { %3819 = vmatpush1.bf16.msra.mxu0 %v5654_v57  ;;  %4206 = vmatpush1.bf16.msra.mxu1 %v5657_v58  ;;  %v5755_v57 = vld [vmem:[%s7821_s1 + $0xd64] ss:$16 sps:$4 sm:$0xff]   ;;  %v5758_v58 = vld [vmem:[%s7821_s1 + $0xd6c] ss:$16 sps:$4 sm:$0xff]  }
 0x170   :  { %3820 = vmatprep.subr.bf16.mxu0 %v5662_v59  ;;  %4207 = vmatprep.subr.bf16.mxu1 %v5665_v60  ;;  %v5753_v59 = vld [vmem:[%s7821_s1 + $0xd60] ss:$16 sps:$4 sm:$0xff]   ;;  %v5756_v60 = vld [vmem:[%s7821_s1 + $0xd68] ss:$16 sps:$4 sm:$0xff]  }
 0x173   :  { %3821 = vmatpush1.bf16.msra.mxu0 %v5660_v61  ;;  %4208 = vmatpush1.bf16.msra.mxu1 %v5663_v62  ;;  %v5761_v61 = vld [vmem:[%s7821_s1 + $0xd84] ss:$16 sps:$4 sm:$0xff]   ;;  %v5764_v62 = vld [vmem:[%s7821_s1 + $0xd8c] ss:$16 sps:$4 sm:$0xff]  }
 0x174   :  { %3822 = vmatprep.subr.bf16.mxu0 %v5668_v63  ;;  %4209 = vmatprep.subr.bf16.mxu1 %v5671_v0  ;;  %v5759_v63 = vld [vmem:[%s7821_s1 + $0xd80] ss:$16 sps:$4 sm:$0xff]   ;;  %v5762_v0 = vld [vmem:[%s7821_s1 + $0xd88] ss:$16 sps:$4 sm:$0xff]  }
 0x177   :  { %3823 = vmatpush1.bf16.msra.mxu0 %v5666_v1  ;;  %4210 = vmatpush1.bf16.msra.mxu1 %v5669_v2  ;;  %v5767_v1 = vld [vmem:[%s7821_s1 + $0xda4] ss:$16 sps:$4 sm:$0xff]   ;;  %v5770_v2 = vld [vmem:[%s7821_s1 + $0xdac] ss:$16 sps:$4 sm:$0xff]  }
 0x178   :  { %3824 = vmatprep.subr.bf16.mxu0 %v5674_v3  ;;  %4211 = vmatprep.subr.bf16.mxu1 %v5677_v4  ;;  %v5765_v3 = vld [vmem:[%s7821_s1 + $0xda0] ss:$16 sps:$4 sm:$0xff]   ;;  %v5768_v4 = vld [vmem:[%s7821_s1 + $0xda8] ss:$16 sps:$4 sm:$0xff]  }
 0x17b   :  { %3825 = vmatpush1.bf16.msra.mxu0 %v5672_v5  ;;  %4212 = vmatpush1.bf16.msra.mxu1 %v5675_v6  ;;  %v5773_v5 = vld [vmem:[%s7821_s1 + $0xdc4] ss:$16 sps:$4 sm:$0xff]   ;;  %v5776_v6 = vld [vmem:[%s7821_s1 + $0xdcc] ss:$16 sps:$4 sm:$0xff]  }
 0x17c   :  { %3826 = vmatprep.subr.bf16.mxu0 %v5680_v7  ;;  %4213 = vmatprep.subr.bf16.mxu1 %v5683_v8  ;;  %v5771_v7 = vld [vmem:[%s7821_s1 + $0xdc0] ss:$16 sps:$4 sm:$0xff]   ;;  %v5774_v8 = vld [vmem:[%s7821_s1 + $0xdc8] ss:$16 sps:$4 sm:$0xff]  }
 0x17f   :  { %3827 = vmatpush1.bf16.msra.mxu0 %v5678_v9  ;;  %4214 = vmatpush1.bf16.msra.mxu1 %v5681_v10  ;;  %v5779_v9 = vld [vmem:[%s7821_s1 + $0xde4] ss:$16 sps:$4 sm:$0xff]   ;;  %v5782_v10 = vld [vmem:[%s7821_s1 + $0xdec] ss:$16 sps:$4 sm:$0xff]  }
 0x180   :  { %3839 = vmatprep.subr.bf16.mxu0 %v5689_v11  ;;  %4226 = vmatprep.subr.bf16.mxu1 %v5692_v12  ;;  %v5777_v11 = vld [vmem:[%s7821_s1 + $0xde0] ss:$16 sps:$4 sm:$0xff]   ;;  %v5780_v12 = vld [vmem:[%s7821_s1 + $0xde8] ss:$16 sps:$4 sm:$0xff]  }
 0x182   :  { %3829 = vmatmul.mubr.bf16.vlgmr.msra.gmra.mrb[0].mxu0 %v5684_v13  ;;  %4216 = vmatmul.mubr.bf16.vlgmr.msra.gmra.mrb[0].mxu1 %v5684_v13  ;;  %v5788_v13 = vld [vmem:[%s7821_s1 + $0xe04] ss:$16 sps:$4 sm:$0xff]  }
 0x183   :  { %3840 = vmatpush1.bf16.msra.mxu0 %v5687_v14  ;;  %4227 = vmatpush1.bf16.msra.mxu1 %v5690_v15  ;;  %v5791_v14 = vld [vmem:[%s7821_s1 + $0xe0c] ss:$16 sps:$4 sm:$0xff]   ;;  %v5783_v15 = vld [vmem:[%s7822_s0 + $0x30] ss:$72 sps:$4 sm:$0xff]  }
 0x184   :  { %3841 = vmatprep.subr.bf16.mxu0 %v5695_v16  ;;  %4228 = vmatprep.subr.bf16.mxu1 %v5698_v17  ;;  %v5786_v16 = vld [vmem:[%s7821_s1 + $0xe00] ss:$16 sps:$4 sm:$0xff]   ;;  %v5789_v17 = vld [vmem:[%s7821_s1 + $0xe08] ss:$16 sps:$4 sm:$0xff]  }
 0x185   :  { %3871 = vmatprep.mubr.bf16.mxu0 %v5785_v18  ;;  %4258 = vmatprep.mubr.bf16.mxu1 %v5785_v18  ;;  %v5794_v18 = vld [vmem:[%s7821_s1 + $0xe24] ss:$16 sps:$4 sm:$0xff]  }
 0x187   :  { %3842 = vmatpush1.bf16.msra.mxu0 %v5693_v19  ;;  %4229 = vmatpush1.bf16.msra.mxu1 %v5696_v20  ;;  %v5797_v19 = vld [vmem:[%s7821_s1 + $0xe2c] ss:$16 sps:$4 sm:$0xff]  }
 0x188   :  { %3843 = vmatprep.subr.bf16.mxu0 %v5701_v21  ;;  %4230 = vmatprep.subr.bf16.mxu1 %v5704_v22  ;;  %v5884_v20 = vld [vmem:[%s7822_s0 + $0x3c] ss:$72 sps:$4 sm:$0xff]   ;;  %v5792_v21 = vld [vmem:[%s7821_s1 + $0xe20] ss:$16 sps:$4 sm:$0xff]   ;;  %v5795_v22 = vld [vmem:[%s7821_s1 + $0xe28] ss:$16 sps:$4 sm:$0xff]  }
 0x18b   :  { %3844 = vmatpush1.bf16.msra.mxu0 %v5699_v23  ;;  %4231 = vmatpush1.bf16.msra.mxu1 %v5702_v24  ;;  %v5800_v23 = vld [vmem:[%s7821_s1 + $0xe44] ss:$16 sps:$4 sm:$0xff]   ;;  %v5803_v24 = vld [vmem:[%s7821_s1 + $0xe4c] ss:$16 sps:$4 sm:$0xff]  }
 0x18c   :  { %3845 = vmatprep.subr.bf16.mxu0 %v5707_v25  ;;  %4232 = vmatprep.subr.bf16.mxu1 %v5710_v26  ;;  %v5798_v25 = vld [vmem:[%s7821_s1 + $0xe40] ss:$16 sps:$4 sm:$0xff]   ;;  %v5801_v26 = vld [vmem:[%s7821_s1 + $0xe48] ss:$16 sps:$4 sm:$0xff]  }
 0x18f   :  { %3846 = vmatpush1.bf16.msra.mxu0 %v5705_v27  ;;  %4233 = vmatpush1.bf16.msra.mxu1 %v5708_v28  ;;  %v5806_v27 = vld [vmem:[%s7821_s1 + $0xe64] ss:$16 sps:$4 sm:$0xff]   ;;  %v5809_v28 = vld [vmem:[%s7821_s1 + $0xe6c] ss:$16 sps:$4 sm:$0xff]  }
 0x190   :  { %3847 = vmatprep.subr.bf16.mxu0 %v5713_v29  ;;  %4234 = vmatprep.subr.bf16.mxu1 %v5716_v30  ;;  %v5804_v29 = vld [vmem:[%s7821_s1 + $0xe60] ss:$16 sps:$4 sm:$0xff]   ;;  %v5807_v30 = vld [vmem:[%s7821_s1 + $0xe68] ss:$16 sps:$4 sm:$0xff]  }
 0x193   :  { %3848 = vmatpush1.bf16.msra.mxu0 %v5711_v31  ;;  %4235 = vmatpush1.bf16.msra.mxu1 %v5714_v32  ;;  %v5812_v31 = vld [vmem:[%s7821_s1 + $0xe84] ss:$16 sps:$4 sm:$0xff]   ;;  %v5815_v32 = vld [vmem:[%s7821_s1 + $0xe8c] ss:$16 sps:$4 sm:$0xff]  }
 0x194   :  { %3849 = vmatprep.subr.bf16.mxu0 %v5719_v33  ;;  %4236 = vmatprep.subr.bf16.mxu1 %v5722_v34  ;;  %v5810_v33 = vld [vmem:[%s7821_s1 + $0xe80] ss:$16 sps:$4 sm:$0xff]   ;;  %v5813_v34 = vld [vmem:[%s7821_s1 + $0xe88] ss:$16 sps:$4 sm:$0xff]  }
 0x197   :  { %3850 = vmatpush1.bf16.msra.mxu0 %v5717_v35  ;;  %4237 = vmatpush1.bf16.msra.mxu1 %v5720_v36  ;;  %v5818_v35 = vld [vmem:[%s7821_s1 + $0xea4] ss:$16 sps:$4 sm:$0xff]   ;;  %v5821_v36 = vld [vmem:[%s7821_s1 + $0xeac] ss:$16 sps:$4 sm:$0xff]  }
 0x198   :  { %3851 = vmatprep.subr.bf16.mxu0 %v5725_v37  ;;  %4238 = vmatprep.subr.bf16.mxu1 %v5728_v38  ;;  %v5816_v37 = vld [vmem:[%s7821_s1 + $0xea0] ss:$16 sps:$4 sm:$0xff]   ;;  %v5819_v38 = vld [vmem:[%s7821_s1 + $0xea8] ss:$16 sps:$4 sm:$0xff]  }
 0x19b   :  { %3852 = vmatpush1.bf16.msra.mxu0 %v5723_v39  ;;  %4239 = vmatpush1.bf16.msra.mxu1 %v5726_v40  ;;  %v5824_v39 = vld [vmem:[%s7821_s1 + $0xec4] ss:$16 sps:$4 sm:$0xff]   ;;  %v5827_v40 = vld [vmem:[%s7821_s1 + $0xecc] ss:$16 sps:$4 sm:$0xff]  }
 0x19c   :  { %3853 = vmatprep.subr.bf16.mxu0 %v5731_v41  ;;  %4240 = vmatprep.subr.bf16.mxu1 %v5734_v42  ;;  %v5822_v41 = vld [vmem:[%s7821_s1 + $0xec0] ss:$16 sps:$4 sm:$0xff]   ;;  %v5825_v42 = vld [vmem:[%s7821_s1 + $0xec8] ss:$16 sps:$4 sm:$0xff]  }
 0x19f   :  { %3854 = vmatpush1.bf16.msra.mxu0 %v5729_v43  ;;  %4241 = vmatpush1.bf16.msra.mxu1 %v5732_v44  ;;  %v5830_v43 = vld [vmem:[%s7821_s1 + $0xee4] ss:$16 sps:$4 sm:$0xff]   ;;  %v5833_v44 = vld [vmem:[%s7821_s1 + $0xeec] ss:$16 sps:$4 sm:$0xff]  }
 0x1a0   :  { %3855 = vmatprep.subr.bf16.mxu0 %v5737_v45  ;;  %4242 = vmatprep.subr.bf16.mxu1 %v5740_v46  ;;  %v5828_v45 = vld [vmem:[%s7821_s1 + $0xee0] ss:$16 sps:$4 sm:$0xff]   ;;  %v5831_v46 = vld [vmem:[%s7821_s1 + $0xee8] ss:$16 sps:$4 sm:$0xff]  }
 0x1a3   :  { %3856 = vmatpush1.bf16.msra.mxu0 %v5735_v47  ;;  %4243 = vmatpush1.bf16.msra.mxu1 %v5738_v48  ;;  %v5836_v47 = vld [vmem:[%s7821_s1 + $0xf04] ss:$16 sps:$4 sm:$0xff]   ;;  %v5839_v48 = vld [vmem:[%s7821_s1 + $0xf0c] ss:$16 sps:$4 sm:$0xff]  }
 0x1a4   :  { %3857 = vmatprep.subr.bf16.mxu0 %v5743_v49  ;;  %4244 = vmatprep.subr.bf16.mxu1 %v5746_v50  ;;  %v5834_v49 = vld [vmem:[%s7821_s1 + $0xf00] ss:$16 sps:$4 sm:$0xff]   ;;  %v5837_v50 = vld [vmem:[%s7821_s1 + $0xf08] ss:$16 sps:$4 sm:$0xff]  }
 0x1a7   :  { %3858 = vmatpush1.bf16.msra.mxu0 %v5741_v51  ;;  %4245 = vmatpush1.bf16.msra.mxu1 %v5744_v52  ;;  %v5842_v51 = vld [vmem:[%s7821_s1 + $0xf24] ss:$16 sps:$4 sm:$0xff]   ;;  %v5845_v52 = vld [vmem:[%s7821_s1 + $0xf2c] ss:$16 sps:$4 sm:$0xff]  }
 0x1a8   :  { %3859 = vmatprep.subr.bf16.mxu0 %v5749_v53  ;;  %4246 = vmatprep.subr.bf16.mxu1 %v5752_v54  ;;  %v5840_v53 = vld [vmem:[%s7821_s1 + $0xf20] ss:$16 sps:$4 sm:$0xff]   ;;  %v5843_v54 = vld [vmem:[%s7821_s1 + $0xf28] ss:$16 sps:$4 sm:$0xff]  }
 0x1ab   :  { %3860 = vmatpush1.bf16.msra.mxu0 %v5747_v55  ;;  %4247 = vmatpush1.bf16.msra.mxu1 %v5750_v56  ;;  %v5848_v55 = vld [vmem:[%s7821_s1 + $0xf44] ss:$16 sps:$4 sm:$0xff]   ;;  %v5851_v56 = vld [vmem:[%s7821_s1 + $0xf4c] ss:$16 sps:$4 sm:$0xff]  }
 0x1ac   :  { %3861 = vmatprep.subr.bf16.mxu0 %v5755_v57  ;;  %4248 = vmatprep.subr.bf16.mxu1 %v5758_v58  ;;  %v5846_v57 = vld [vmem:[%s7821_s1 + $0xf40] ss:$16 sps:$4 sm:$0xff]   ;;  %v5849_v58 = vld [vmem:[%s7821_s1 + $0xf48] ss:$16 sps:$4 sm:$0xff]  }
 0x1af   :  { %3862 = vmatpush1.bf16.msra.mxu0 %v5753_v59  ;;  %4249 = vmatpush1.bf16.msra.mxu1 %v5756_v60  ;;  %v5854_v59 = vld [vmem:[%s7821_s1 + $0xf64] ss:$16 sps:$4 sm:$0xff]   ;;  %v5857_v60 = vld [vmem:[%s7821_s1 + $0xf6c] ss:$16 sps:$4 sm:$0xff]  }
 0x1b0   :  { %3863 = vmatprep.subr.bf16.mxu0 %v5761_v61  ;;  %4250 = vmatprep.subr.bf16.mxu1 %v5764_v62  ;;  %v5852_v61 = vld [vmem:[%s7821_s1 + $0xf60] ss:$16 sps:$4 sm:$0xff]   ;;  %v5855_v62 = vld [vmem:[%s7821_s1 + $0xf68] ss:$16 sps:$4 sm:$0xff]  }
 0x1b3   :  { %3864 = vmatpush1.bf16.msra.mxu0 %v5759_v63  ;;  %4251 = vmatpush1.bf16.msra.mxu1 %v5762_v0  ;;  %v5860_v63 = vld [vmem:[%s7821_s1 + $0xf84] ss:$16 sps:$4 sm:$0xff]   ;;  %v5863_v0 = vld [vmem:[%s7821_s1 + $0xf8c] ss:$16 sps:$4 sm:$0xff]  }
 0x1b4   :  { %3865 = vmatprep.subr.bf16.mxu0 %v5767_v1  ;;  %4252 = vmatprep.subr.bf16.mxu1 %v5770_v2  ;;  %v5858_v1 = vld [vmem:[%s7821_s1 + $0xf80] ss:$16 sps:$4 sm:$0xff]   ;;  %v5861_v2 = vld [vmem:[%s7821_s1 + $0xf88] ss:$16 sps:$4 sm:$0xff]  }
 0x1b7   :  { %3866 = vmatpush1.bf16.msra.mxu0 %v5765_v3  ;;  %4253 = vmatpush1.bf16.msra.mxu1 %v5768_v4  ;;  %v5866_v3 = vld [vmem:[%s7821_s1 + $0xfa4] ss:$16 sps:$4 sm:$0xff]   ;;  %v5869_v4 = vld [vmem:[%s7821_s1 + $0xfac] ss:$16 sps:$4 sm:$0xff]  }
 0x1b8   :  { %3867 = vmatprep.subr.bf16.mxu0 %v5773_v5  ;;  %4254 = vmatprep.subr.bf16.mxu1 %v5776_v6  ;;  %v5864_v5 = vld [vmem:[%s7821_s1 + $0xfa0] ss:$16 sps:$4 sm:$0xff]   ;;  %v5867_v6 = vld [vmem:[%s7821_s1 + $0xfa8] ss:$16 sps:$4 sm:$0xff]  }
 0x1bb   :  { %3868 = vmatpush1.bf16.msra.mxu0 %v5771_v7  ;;  %4255 = vmatpush1.bf16.msra.mxu1 %v5774_v8  ;;  %v5872_v7 = vld [vmem:[%s7821_s1 + $0xfc4] ss:$16 sps:$4 sm:$0xff]   ;;  %v5875_v8 = vld [vmem:[%s7821_s1 + $0xfcc] ss:$16 sps:$4 sm:$0xff]  }
 0x1bc   :  { %3869 = vmatprep.subr.bf16.mxu0 %v5779_v9  ;;  %4256 = vmatprep.subr.bf16.mxu1 %v5782_v10  ;;  %v5870_v9 = vld [vmem:[%s7821_s1 + $0xfc0] ss:$16 sps:$4 sm:$0xff]   ;;  %v5873_v10 = vld [vmem:[%s7821_s1 + $0xfc8] ss:$16 sps:$4 sm:$0xff]  }
 0x1bf   :  { %3870 = vmatpush1.bf16.msra.mxu0 %v5777_v11  ;;  %4257 = vmatpush1.bf16.msra.mxu1 %v5780_v12  ;;  %v5878_v11 = vld [vmem:[%s7821_s1 + $0xfe4] ss:$16 sps:$4 sm:$0xff]   ;;  %v5881_v12 = vld [vmem:[%s7821_s1 + $0xfec] ss:$16 sps:$4 sm:$0xff]  }
 0x1c0   :  { %3882 = vmatprep.subr.bf16.mxu0 %v5788_v13  ;;  %4269 = vmatprep.subr.bf16.mxu1 %v5791_v14  ;;  %v5876_v13 = vld [vmem:[%s7821_s1 + $0xfe0] ss:$16 sps:$4 sm:$0xff]   ;;  %v5879_v14 = vld [vmem:[%s7821_s1 + $0xfe8] ss:$16 sps:$4 sm:$0xff]  }
 0x1c2   :  { %3872 = vmatmul.mubr.bf16.vlgmr.msra.gmra.mrb[0].mxu0 %v5783_v15  ;;  %4259 = vmatmul.mubr.bf16.vlgmr.msra.gmra.mrb[0].mxu1 %v5783_v15  ;;  %v5887_v15 = vld [vmem:[%s7821_s1 + $0x1004] ss:$16 sps:$4 sm:$0xff]  }
 0x1c3   :  { %3883 = vmatpush1.bf16.msra.mxu0 %v5786_v16  ;;  %4270 = vmatpush1.bf16.msra.mxu1 %v5789_v17  ;;  %v5890_v16 = vld [vmem:[%s7821_s1 + $0x100c] ss:$16 sps:$4 sm:$0xff]   ;;  %v5882_v17 = vld [vmem:[%s7822_s0 + $0x38] ss:$72 sps:$4 sm:$0xff]  }
 0x1c4   :  { %3884 = vmatprep.subr.bf16.mxu0 %v5794_v18  ;;  %4271 = vmatprep.subr.bf16.mxu1 %v5797_v19  ;;  %v5885_v18 = vld [vmem:[%s7821_s1 + $0x1000] ss:$16 sps:$4 sm:$0xff]   ;;  %v5888_v19 = vld [vmem:[%s7821_s1 + $0x1008] ss:$16 sps:$4 sm:$0xff]  }
 0x1c5   :  { %3914 = vmatprep.mubr.bf16.mxu0 %v5884_v20  ;;  %4301 = vmatprep.mubr.bf16.mxu1 %v5884_v20  ;;  %v5893_v20 = vld [vmem:[%s7821_s1 + $0x1024] ss:$16 sps:$4 sm:$0xff]  }
 0x1c7   :  { %3885 = vmatpush1.bf16.msra.mxu0 %v5792_v21  ;;  %4272 = vmatpush1.bf16.msra.mxu1 %v5795_v22  ;;  %v5896_v21 = vld [vmem:[%s7821_s1 + $0x102c] ss:$16 sps:$4 sm:$0xff]  }
 0x1c8   :  { %3886 = vmatprep.subr.bf16.mxu0 %v5800_v23  ;;  %4273 = vmatprep.subr.bf16.mxu1 %v5803_v24  ;;  %v5983_v22 = vld [vmem:[%s7822_s0 + $0x44] ss:$72 sps:$4 sm:$0xff]   ;;  %v5891_v23 = vld [vmem:[%s7821_s1 + $0x1020] ss:$16 sps:$4 sm:$0xff]   ;;  %v5894_v24 = vld [vmem:[%s7821_s1 + $0x1028] ss:$16 sps:$4 sm:$0xff]  }
 0x1cb   :  { %3887 = vmatpush1.bf16.msra.mxu0 %v5798_v25  ;;  %4274 = vmatpush1.bf16.msra.mxu1 %v5801_v26  ;;  %v5899_v25 = vld [vmem:[%s7821_s1 + $0x1044] ss:$16 sps:$4 sm:$0xff]   ;;  %v5902_v26 = vld [vmem:[%s7821_s1 + $0x104c] ss:$16 sps:$4 sm:$0xff]  }
 0x1cc   :  { %3888 = vmatprep.subr.bf16.mxu0 %v5806_v27  ;;  %4275 = vmatprep.subr.bf16.mxu1 %v5809_v28  ;;  %v5897_v27 = vld [vmem:[%s7821_s1 + $0x1040] ss:$16 sps:$4 sm:$0xff]   ;;  %v5900_v28 = vld [vmem:[%s7821_s1 + $0x1048] ss:$16 sps:$4 sm:$0xff]  }
 0x1cf   :  { %3889 = vmatpush1.bf16.msra.mxu0 %v5804_v29  ;;  %4276 = vmatpush1.bf16.msra.mxu1 %v5807_v30  ;;  %v5905_v29 = vld [vmem:[%s7821_s1 + $0x1064] ss:$16 sps:$4 sm:$0xff]   ;;  %v5908_v30 = vld [vmem:[%s7821_s1 + $0x106c] ss:$16 sps:$4 sm:$0xff]  }
 0x1d0   :  { %3890 = vmatprep.subr.bf16.mxu0 %v5812_v31  ;;  %4277 = vmatprep.subr.bf16.mxu1 %v5815_v32  ;;  %v5903_v31 = vld [vmem:[%s7821_s1 + $0x1060] ss:$16 sps:$4 sm:$0xff]   ;;  %v5906_v32 = vld [vmem:[%s7821_s1 + $0x1068] ss:$16 sps:$4 sm:$0xff]  }
 0x1d3   :  { %3891 = vmatpush1.bf16.msra.mxu0 %v5810_v33  ;;  %4278 = vmatpush1.bf16.msra.mxu1 %v5813_v34  ;;  %v5911_v33 = vld [vmem:[%s7821_s1 + $0x1084] ss:$16 sps:$4 sm:$0xff]   ;;  %v5914_v34 = vld [vmem:[%s7821_s1 + $0x108c] ss:$16 sps:$4 sm:$0xff]  }
 0x1d4   :  { %3892 = vmatprep.subr.bf16.mxu0 %v5818_v35  ;;  %4279 = vmatprep.subr.bf16.mxu1 %v5821_v36  ;;  %v5909_v35 = vld [vmem:[%s7821_s1 + $0x1080] ss:$16 sps:$4 sm:$0xff]   ;;  %v5912_v36 = vld [vmem:[%s7821_s1 + $0x1088] ss:$16 sps:$4 sm:$0xff]  }
 0x1d7   :  { %3893 = vmatpush1.bf16.msra.mxu0 %v5816_v37  ;;  %4280 = vmatpush1.bf16.msra.mxu1 %v5819_v38  ;;  %v5917_v37 = vld [vmem:[%s7821_s1 + $0x10a4] ss:$16 sps:$4 sm:$0xff]   ;;  %v5920_v38 = vld [vmem:[%s7821_s1 + $0x10ac] ss:$16 sps:$4 sm:$0xff]  }
 0x1d8   :  { %3894 = vmatprep.subr.bf16.mxu0 %v5824_v39  ;;  %4281 = vmatprep.subr.bf16.mxu1 %v5827_v40  ;;  %v5915_v39 = vld [vmem:[%s7821_s1 + $0x10a0] ss:$16 sps:$4 sm:$0xff]   ;;  %v5918_v40 = vld [vmem:[%s7821_s1 + $0x10a8] ss:$16 sps:$4 sm:$0xff]  }
 0x1db   :  { %3895 = vmatpush1.bf16.msra.mxu0 %v5822_v41  ;;  %4282 = vmatpush1.bf16.msra.mxu1 %v5825_v42  ;;  %v5923_v41 = vld [vmem:[%s7821_s1 + $0x10c4] ss:$16 sps:$4 sm:$0xff]   ;;  %v5926_v42 = vld [vmem:[%s7821_s1 + $0x10cc] ss:$16 sps:$4 sm:$0xff]  }
 0x1dc   :  { %3896 = vmatprep.subr.bf16.mxu0 %v5830_v43  ;;  %4283 = vmatprep.subr.bf16.mxu1 %v5833_v44  ;;  %v5921_v43 = vld [vmem:[%s7821_s1 + $0x10c0] ss:$16 sps:$4 sm:$0xff]   ;;  %v5924_v44 = vld [vmem:[%s7821_s1 + $0x10c8] ss:$16 sps:$4 sm:$0xff]  }
 0x1df   :  { %3897 = vmatpush1.bf16.msra.mxu0 %v5828_v45  ;;  %4284 = vmatpush1.bf16.msra.mxu1 %v5831_v46  ;;  %v5929_v45 = vld [vmem:[%s7821_s1 + $0x10e4] ss:$16 sps:$4 sm:$0xff]   ;;  %v5932_v46 = vld [vmem:[%s7821_s1 + $0x10ec] ss:$16 sps:$4 sm:$0xff]  }
 0x1e0   :  { %3898 = vmatprep.subr.bf16.mxu0 %v5836_v47  ;;  %4285 = vmatprep.subr.bf16.mxu1 %v5839_v48  ;;  %v5927_v47 = vld [vmem:[%s7821_s1 + $0x10e0] ss:$16 sps:$4 sm:$0xff]   ;;  %v5930_v48 = vld [vmem:[%s7821_s1 + $0x10e8] ss:$16 sps:$4 sm:$0xff]  }
 0x1e3   :  { %3899 = vmatpush1.bf16.msra.mxu0 %v5834_v49  ;;  %4286 = vmatpush1.bf16.msra.mxu1 %v5837_v50  ;;  %v5935_v49 = vld [vmem:[%s7821_s1 + $0x1104] ss:$16 sps:$4 sm:$0xff]   ;;  %v5938_v50 = vld [vmem:[%s7821_s1 + $0x110c] ss:$16 sps:$4 sm:$0xff]  }
 0x1e4   :  { %3900 = vmatprep.subr.bf16.mxu0 %v5842_v51  ;;  %4287 = vmatprep.subr.bf16.mxu1 %v5845_v52  ;;  %v5933_v51 = vld [vmem:[%s7821_s1 + $0x1100] ss:$16 sps:$4 sm:$0xff]   ;;  %v5936_v52 = vld [vmem:[%s7821_s1 + $0x1108] ss:$16 sps:$4 sm:$0xff]  }
 0x1e7   :  { %3901 = vmatpush1.bf16.msra.mxu0 %v5840_v53  ;;  %4288 = vmatpush1.bf16.msra.mxu1 %v5843_v54  ;;  %v5941_v53 = vld [vmem:[%s7821_s1 + $0x1124] ss:$16 sps:$4 sm:$0xff]   ;;  %v5944_v54 = vld [vmem:[%s7821_s1 + $0x112c] ss:$16 sps:$4 sm:$0xff]  }
 0x1e8   :  { %3902 = vmatprep.subr.bf16.mxu0 %v5848_v55  ;;  %4289 = vmatprep.subr.bf16.mxu1 %v5851_v56  ;;  %v5939_v55 = vld [vmem:[%s7821_s1 + $0x1120] ss:$16 sps:$4 sm:$0xff]   ;;  %v5942_v56 = vld [vmem:[%s7821_s1 + $0x1128] ss:$16 sps:$4 sm:$0xff]  }
 0x1eb   :  { %3903 = vmatpush1.bf16.msra.mxu0 %v5846_v57  ;;  %4290 = vmatpush1.bf16.msra.mxu1 %v5849_v58  ;;  %v5947_v57 = vld [vmem:[%s7821_s1 + $0x1144] ss:$16 sps:$4 sm:$0xff]   ;;  %v5950_v58 = vld [vmem:[%s7821_s1 + $0x114c] ss:$16 sps:$4 sm:$0xff]  }
 0x1ec   :  { %3904 = vmatprep.subr.bf16.mxu0 %v5854_v59  ;;  %4291 = vmatprep.subr.bf16.mxu1 %v5857_v60  ;;  %v5945_v59 = vld [vmem:[%s7821_s1 + $0x1140] ss:$16 sps:$4 sm:$0xff]   ;;  %v5948_v60 = vld [vmem:[%s7821_s1 + $0x1148] ss:$16 sps:$4 sm:$0xff]  }
 0x1ef   :  { %3905 = vmatpush1.bf16.msra.mxu0 %v5852_v61  ;;  %4292 = vmatpush1.bf16.msra.mxu1 %v5855_v62  ;;  %v5953_v61 = vld [vmem:[%s7821_s1 + $0x1164] ss:$16 sps:$4 sm:$0xff]   ;;  %v5956_v62 = vld [vmem:[%s7821_s1 + $0x116c] ss:$16 sps:$4 sm:$0xff]  }
 0x1f0   :  { %3906 = vmatprep.subr.bf16.mxu0 %v5860_v63  ;;  %4293 = vmatprep.subr.bf16.mxu1 %v5863_v0  ;;  %v5951_v63 = vld [vmem:[%s7821_s1 + $0x1160] ss:$16 sps:$4 sm:$0xff]   ;;  %v5954_v0 = vld [vmem:[%s7821_s1 + $0x1168] ss:$16 sps:$4 sm:$0xff]  }
 0x1f3   :  { %3907 = vmatpush1.bf16.msra.mxu0 %v5858_v1  ;;  %4294 = vmatpush1.bf16.msra.mxu1 %v5861_v2  ;;  %v5959_v1 = vld [vmem:[%s7821_s1 + $0x1184] ss:$16 sps:$4 sm:$0xff]   ;;  %v5962_v2 = vld [vmem:[%s7821_s1 + $0x118c] ss:$16 sps:$4 sm:$0xff]  }
 0x1f4   :  { %3908 = vmatprep.subr.bf16.mxu0 %v5866_v3  ;;  %4295 = vmatprep.subr.bf16.mxu1 %v5869_v4  ;;  %v5957_v3 = vld [vmem:[%s7821_s1 + $0x1180] ss:$16 sps:$4 sm:$0xff]   ;;  %v5960_v4 = vld [vmem:[%s7821_s1 + $0x1188] ss:$16 sps:$4 sm:$0xff]  }
 0x1f7   :  { %3909 = vmatpush1.bf16.msra.mxu0 %v5864_v5  ;;  %4296 = vmatpush1.bf16.msra.mxu1 %v5867_v6  ;;  %v5965_v5 = vld [vmem:[%s7821_s1 + $0x11a4] ss:$16 sps:$4 sm:$0xff]   ;;  %v5968_v6 = vld [vmem:[%s7821_s1 + $0x11ac] ss:$16 sps:$4 sm:$0xff]  }
 0x1f8   :  { %3910 = vmatprep.subr.bf16.mxu0 %v5872_v7  ;;  %4297 = vmatprep.subr.bf16.mxu1 %v5875_v8  ;;  %v5963_v7 = vld [vmem:[%s7821_s1 + $0x11a0] ss:$16 sps:$4 sm:$0xff]   ;;  %v5966_v8 = vld [vmem:[%s7821_s1 + $0x11a8] ss:$16 sps:$4 sm:$0xff]  }
 0x1fb   :  { %3911 = vmatpush1.bf16.msra.mxu0 %v5870_v9  ;;  %4298 = vmatpush1.bf16.msra.mxu1 %v5873_v10  ;;  %v5971_v9 = vld [vmem:[%s7821_s1 + $0x11c4] ss:$16 sps:$4 sm:$0xff]   ;;  %v5974_v10 = vld [vmem:[%s7821_s1 + $0x11cc] ss:$16 sps:$4 sm:$0xff]  }
 0x1fc   :  { %3912 = vmatprep.subr.bf16.mxu0 %v5878_v11  ;;  %4299 = vmatprep.subr.bf16.mxu1 %v5881_v12  ;;  %v5969_v11 = vld [vmem:[%s7821_s1 + $0x11c0] ss:$16 sps:$4 sm:$0xff]   ;;  %v5972_v12 = vld [vmem:[%s7821_s1 + $0x11c8] ss:$16 sps:$4 sm:$0xff]  }
 0x1ff   :  { %3913 = vmatpush1.bf16.msra.mxu0 %v5876_v13  ;;  %4300 = vmatpush1.bf16.msra.mxu1 %v5879_v14  ;;  %v5977_v13 = vld [vmem:[%s7821_s1 + $0x11e4] ss:$16 sps:$4 sm:$0xff]   ;;  %v5980_v14 = vld [vmem:[%s7821_s1 + $0x11ec] ss:$16 sps:$4 sm:$0xff]  }
 0x200   :  { %3925 = vmatprep.subr.bf16.mxu0 %v5887_v15  ;;  %4312 = vmatprep.subr.bf16.mxu1 %v5890_v16  ;;  %v5975_v15 = vld [vmem:[%s7821_s1 + $0x11e0] ss:$16 sps:$4 sm:$0xff]   ;;  %v5978_v16 = vld [vmem:[%s7821_s1 + $0x11e8] ss:$16 sps:$4 sm:$0xff]  }
 0x202   :  { %3915 = vmatmul.mubr.bf16.vlgmr.msra.gmra.mrb[0].mxu0 %v5882_v17  ;;  %4302 = vmatmul.mubr.bf16.vlgmr.msra.gmra.mrb[0].mxu1 %v5882_v17  ;;  %v5981_v17 = vld [vmem:[%s7822_s0 + $0x40] ss:$72 sps:$4 sm:$0xff]  }
 0x203   :  { %3926 = vmatpush1.bf16.msra.mxu0 %v5885_v18  ;;  %4313 = vmatpush1.bf16.msra.mxu1 %v5888_v19  ;;  %v4357_v18 = vlaneseq }
 0x204   :  { %3927 = vmatprep.subr.bf16.mxu0 %v5893_v20  ;;  %4314 = vmatprep.subr.bf16.mxu1 %v5896_v21 }
 0x205   :  { %3957 = vmatprep.mubr.bf16.mxu0 %v5983_v22  ;;  %4344 = vmatprep.mubr.bf16.mxu1 %v5983_v22  ;;  %v4358_v19 = vshrl.u32 %v4357_v18, 7  ;;  %v4355_v22 = vld [vmem:[%s7823_s2] sm:$0xf] }
 0x207   :  { %3928 = vmatpush1.bf16.msra.mxu0 %v5891_v23  ;;  %4315 = vmatpush1.bf16.msra.mxu1 %v5894_v24  ;;  %v4359_v20 = vsub.s32 0, %v4358_v19  ;;  %v4367_v21 = vsub.s32 2, %v4358_v19  ;;  %v4363_v23 = vsub.s32 1, %v4358_v19  ;;  %v4371_v24 = vsub.s32 3, %v4358_v19 }
 0x208   :  { %3929 = vmatprep.subr.bf16.mxu0 %v5899_v25  ;;  %4316 = vmatprep.subr.bf16.mxu1 %v5902_v26  ;;  %v4385_v25 = vld [vmem:[%s7824_s3] sm:$0xf] }
 0x209   :  { %v4360_v26 = vrot.slane %v4355_v22, %v4359_v20 }
 0x20b   :  { %3930 = vmatpush1.bf16.msra.mxu0 %v5897_v27  ;;  %4317 = vmatpush1.bf16.msra.mxu1 %v5900_v28  ;;  %v4368_v27 = vrot.slane %v4355_v22, %v4367_v21  ;;  %v4364_v28 = vrot.slane %v4355_v22, %v4363_v23 }
 0x20c   :  { %3931 = vmatprep.subr.bf16.mxu0 %v5905_v29  ;;  %4318 = vmatprep.subr.bf16.mxu1 %v5908_v30  ;;  %v4372_v29 = vrot.slane %v4355_v22, %v4371_v24  ;;  %v4390_v30 = vrot.slane %v4385_v25, %v4359_v20 }
 0x20f   :  { %3932 = vmatpush1.bf16.msra.mxu0 %v5903_v31  ;;  %4319 = vmatpush1.bf16.msra.mxu1 %v5906_v32  ;;  %v4398_v31 = vrot.slane %v4385_v25, %v4367_v21 }
 0x210   :  { %3933 = vmatprep.subr.bf16.mxu0 %v5911_v33  ;;  %4320 = vmatprep.subr.bf16.mxu1 %v5914_v34  ;;  %v4394_v34 = vrot.slane %v4385_v25, %v4363_v23 }
 0x213   :  { %3934 = vmatpush1.bf16.msra.mxu0 %v5909_v35  ;;  %4321 = vmatpush1.bf16.msra.mxu1 %v5912_v36  ;;  %v4402_v35 = vrot.slane %v4385_v25, %v4371_v24 }
 0x214   :  { %3935 = vmatprep.subr.bf16.mxu0 %v5917_v37  ;;  %4322 = vmatprep.subr.bf16.mxu1 %v5920_v38 }
 0x217   :  { %3936 = vmatpush1.bf16.msra.mxu0 %v5915_v39  ;;  %4323 = vmatpush1.bf16.msra.mxu1 %v5918_v40 }
 0x218   :  { %3937 = vmatprep.subr.bf16.mxu0 %v5923_v41  ;;  %4324 = vmatprep.subr.bf16.mxu1 %v5926_v42 }
 0x21b   :  { %3938 = vmatpush1.bf16.msra.mxu0 %v5921_v43  ;;  %4325 = vmatpush1.bf16.msra.mxu1 %v5924_v44 }
 0x21c   :  { %3939 = vmatprep.subr.bf16.mxu0 %v5929_v45  ;;  %4326 = vmatprep.subr.bf16.mxu1 %v5932_v46 }
 0x21f   :  { %3940 = vmatpush1.bf16.msra.mxu0 %v5927_v47  ;;  %4327 = vmatpush1.bf16.msra.mxu1 %v5930_v48 }
 0x220   :  { %3941 = vmatprep.subr.bf16.mxu0 %v5935_v49  ;;  %4328 = vmatprep.subr.bf16.mxu1 %v5938_v50 }
 0x223   :  { %3942 = vmatpush1.bf16.msra.mxu0 %v5933_v51  ;;  %4329 = vmatpush1.bf16.msra.mxu1 %v5936_v52 }
 0x224   :  { %3943 = vmatprep.subr.bf16.mxu0 %v5941_v53  ;;  %4330 = vmatprep.subr.bf16.mxu1 %v5944_v54 }
 0x227   :  { %3944 = vmatpush1.bf16.msra.mxu0 %v5939_v55  ;;  %4331 = vmatpush1.bf16.msra.mxu1 %v5942_v56 }
 0x228   :  { %3945 = vmatprep.subr.bf16.mxu0 %v5947_v57  ;;  %4332 = vmatprep.subr.bf16.mxu1 %v5950_v58 }
 0x22b   :  { %3946 = vmatpush1.bf16.msra.mxu0 %v5945_v59  ;;  %4333 = vmatpush1.bf16.msra.mxu1 %v5948_v60 }
 0x22c   :  { %3947 = vmatprep.subr.bf16.mxu0 %v5953_v61  ;;  %4334 = vmatprep.subr.bf16.mxu1 %v5956_v62 }
 0x22f   :  { %3948 = vmatpush1.bf16.msra.mxu0 %v5951_v63  ;;  %4335 = vmatpush1.bf16.msra.mxu1 %v5954_v0 }
 0x230   :  { %3949 = vmatprep.subr.bf16.mxu0 %v5959_v1  ;;  %4336 = vmatprep.subr.bf16.mxu1 %v5962_v2 }
 0x233   :  { %3950 = vmatpush1.bf16.msra.mxu0 %v5957_v3  ;;  %4337 = vmatpush1.bf16.msra.mxu1 %v5960_v4 }
 0x234   :  { %3951 = vmatprep.subr.bf16.mxu0 %v5965_v5  ;;  %4338 = vmatprep.subr.bf16.mxu1 %v5968_v6 }
 0x237   :  { %3952 = vmatpush1.bf16.msra.mxu0 %v5963_v7  ;;  %4339 = vmatpush1.bf16.msra.mxu1 %v5966_v8 }
 0x238   :  { %3953 = vmatprep.subr.bf16.mxu0 %v5971_v9  ;;  %4340 = vmatprep.subr.bf16.mxu1 %v5974_v10 }
 0x23b   :  { %3954 = vmatpush1.bf16.msra.mxu0 %v5969_v11  ;;  %4341 = vmatpush1.bf16.msra.mxu1 %v5972_v12 }
 0x23c   :  { %3955 = vmatprep.subr.bf16.mxu0 %v5977_v13  ;;  %4342 = vmatprep.subr.bf16.mxu1 %v5980_v14 }
 0x23f   :  { %3956 = vmatpush1.bf16.msra.mxu0 %v5975_v15  ;;  %4343 = vmatpush1.bf16.msra.mxu1 %v5978_v16 }
 0x242   :  { %3958 = vmatmul.mubr.bf16.vlgmr.msra.gmra.mrb[0].mxu0 %v5981_v17  ;;  %4345 = vmatmul.mubr.bf16.vlgmr.msra.gmra.mrb[0].mxu1 %v5981_v17 }
 0x315   :  { %v3959_v32 = vpop.f32.mrb[0].mxu0  ;;  %v4346_v33 = vpop.f32.mrb[0].mxu1 }
 0x316   :  { %v4377_v36 = vmul.f32 %v4360_v26, %v3959_v32  ;;  %v4379_v37 = vmul.f32 %v4368_v27, %v4346_v33  ;;  %v3961_v38 = vpop.f32.mrb[1].mxu0  ;;  %v4348_v39 = vpop.f32.mrb[1].mxu1 }
 0x317   :  { %v4378_v40 = vmul.f32 %v4364_v28, %v3961_v38  ;;  %v4380_v41 = vmul.f32 %v4372_v29, %v4348_v39  ;;  %v3963_v42 = vpop.f32.mrb[2].mxu0  ;;  %v4350_v43 = vpop.f32.mrb[2].mxu1 }
 0x318   :  { %v4407_v44 = vadd.f32 %v4390_v30, %v4377_v36  ;;  %v4409_v45 = vadd.f32 %v4398_v31, %v4379_v37  ;;  %v4381_v46 = vmul.f32 %v4360_v26, %v3963_v42  ;;  %v4383_v47 = vmul.f32 %v4368_v27, %v4350_v43  ;;  %v3965_v48 = vpop.f32.mrb[3].mxu0  ;;  %v4352_v49 = vpop.f32.mrb[3].mxu1 }
 0x319   :  { %v4408_v50 = vadd.f32 %v4394_v34, %v4378_v40  ;;  %v4410_v51 = vadd.f32 %v4402_v35, %v4380_v41  ;;  %v4382_v52 = vmul.f32 %v4364_v28, %v3965_v48  ;;  %v4384_v53 = vmul.f32 %v4372_v29, %v4352_v49 }
 0x31a   :  { %v4415_v54 = vmax.f32 %v4407_v44, 0.0  ;;  %v4417_v55 = vmax.f32 %v4409_v45, 0.0  ;;  %v4411_v56 = vadd.f32 %v4390_v30, %v4381_v46  ;;  %v4413_v57 = vadd.f32 %v4398_v31, %v4383_v47 }
 0x31b   :  { %v4416_v58 = vmax.f32 %v4408_v50, 0.0  ;;  %v4418_v59 = vmax.f32 %v4410_v51, 0.0  ;;  %v4412_v60 = vadd.f32 %v4394_v34, %v4382_v52  ;;  %v4414_v61 = vadd.f32 %v4402_v35, %v4384_v53 }
 0x31c   :  { %4423 = vst [vmem:[%s7825_s4] sm:$0xff] %v4415_v54  ;;  %4425 = vst [vmem:[%s7825_s4 + $0x10] sm:$0xff] %v4417_v55  ;;  %v4419_v62 = vmax.f32 %v4411_v56, 0.0  ;;  %v4421_v63 = vmax.f32 %v4413_v57, 0.0 }
 0x31d   :  { %4424 = vst [vmem:[%s7825_s4 + $0x8] sm:$0xff] %v4416_v58  ;;  %4426 = vst [vmem:[%s7825_s4 + $0x18] sm:$0xff] %v4418_v59  ;;  %v4420_v0 = vmax.f32 %v4412_v60, 0.0  ;;  %v4422_v1 = vmax.f32 %v4414_v61, 0.0 }
 0x31e   :  { %4427 = vst [vmem:[%s7825_s4 + $0x20] sm:$0xff] %v4419_v62  ;;  %4429 = vst [vmem:[%s7825_s4 + $0x30] sm:$0xff] %v4421_v63 }
 0x31f   :  { %4428 = vst [vmem:[%s7825_s4 + $0x28] sm:$0xff] %v4420_v0  ;;  %4430 = vst [vmem:[%s7825_s4 + $0x38] sm:$0xff] %v4422_v1 }

// kernel: simple_net5_forward.17
= control target key start
LH: loop header
LB: loop body
LE: loop exit
PB: predicated region body
PF: predicated region fallthrough
CT: control target
= control target key end

     0   :  { %s1074_s1 = inlined_call_operand.vmem [shape: bf16[512,256], index: 1, kind: input, shape index: {}]   ;;  %s1075_s0 = inlined_call_operand.vmem [shape: bf16[32,512], index: 0, kind: input, shape index: {}]   ;;  %s1076_s2 = inlined_call_operand.vmem [shape: f32[1,256], index: 2, kind: input, shape index: {}]   ;;  %s1077_s3 = inlined_call_operand.vmem [shape: f32[1,256], index: 3, kind: input, shape index: {}]   ;;  %s1078_s4 = inlined_call_operand.vmem [shape: f32[32,256], index: 4, kind: output, shape index: {}]  }
   0x1   :  { %v695_v0 = vld [vmem:[%s1074_s1 + $0x4] ss:$8 sps:$4 sm:$0xff]   ;;  %v699_v2 = vld [vmem:[%s1074_s1] ss:$8 sps:$4 sm:$0xff]   ;;  %v701_v4 = vld [vmem:[%s1074_s1 + $0x14] ss:$8 sps:$4 sm:$0xff]  }
   0x2   :  { %v697_v1 = vld [vmem:[%s1074_s1 + $0x104] ss:$8 sps:$4 sm:$0xff]   ;;  %449 = vmatprep.subr.bf16.mxu1 %v695_v0  ;;  %v700_v3 = vld [vmem:[%s1074_s1 + $0x100] ss:$8 sps:$4 sm:$0xff]   ;;  %v703_v5 = vld [vmem:[%s1074_s1 + $0x114] ss:$8 sps:$4 sm:$0xff]  }
   0x3   :  { %502 = vmatprep.subr.bf16.mxu0 %v697_v1  ;;  %450 = vmatpush1.bf16.msra.mxu1 %v699_v2  ;;  %v705_v6 = vld [vmem:[%s1074_s1 + $0x10] ss:$8 sps:$4 sm:$0xff]   ;;  %v707_v8 = vld [vmem:[%s1074_s1 + $0x24] ss:$8 sps:$4 sm:$0xff]   ;;  %v711_v10 = vld [vmem:[%s1074_s1 + $0x20] ss:$8 sps:$4 sm:$0xff]  }
   0x4   :  { %503 = vmatpush1.bf16.msra.mxu0 %v700_v3  ;;  %451 = vmatprep.subr.bf16.mxu1 %v701_v4  ;;  %v706_v7 = vld [vmem:[%s1074_s1 + $0x110] ss:$8 sps:$4 sm:$0xff]   ;;  %v709_v9 = vld [vmem:[%s1074_s1 + $0x124] ss:$8 sps:$4 sm:$0xff]   ;;  %v712_v11 = vld [vmem:[%s1074_s1 + $0x120] ss:$8 sps:$4 sm:$0xff]  }
   0x5   :  { %504 = vmatprep.subr.bf16.mxu0 %v703_v5  ;;  %v713_v12 = vld [vmem:[%s1074_s1 + $0x34] ss:$8 sps:$4 sm:$0xff]   ;;  %v717_v14 = vld [vmem:[%s1074_s1 + $0x30] ss:$8 sps:$4 sm:$0xff]   ;;  %v719_v16 = vld [vmem:[%s1074_s1 + $0x44] ss:$8 sps:$4 sm:$0xff]  }
   0x6   :  { %v715_v13 = vld [vmem:[%s1074_s1 + $0x134] ss:$8 sps:$4 sm:$0xff]   ;;  %v718_v15 = vld [vmem:[%s1074_s1 + $0x130] ss:$8 sps:$4 sm:$0xff]   ;;  %v721_v17 = vld [vmem:[%s1074_s1 + $0x144] ss:$8 sps:$4 sm:$0xff]  }
   0x7   :  { %452 = vmatpush1.bf16.msra.mxu1 %v705_v6  ;;  %v723_v18 = vld [vmem:[%s1074_s1 + $0x40] ss:$8 sps:$4 sm:$0xff]   ;;  %v725_v20 = vld [vmem:[%s1074_s1 + $0x54] ss:$8 sps:$4 sm:$0xff]   ;;  %v729_v22 = vld [vmem:[%s1074_s1 + $0x50] ss:$8 sps:$4 sm:$0xff]  }
   0x8   :  { %505 = vmatpush1.bf16.msra.mxu0 %v706_v7  ;;  %453 = vmatprep.subr.bf16.mxu1 %v707_v8  ;;  %v724_v19 = vld [vmem:[%s1074_s1 + $0x140] ss:$8 sps:$4 sm:$0xff]   ;;  %v727_v21 = vld [vmem:[%s1074_s1 + $0x154] ss:$8 sps:$4 sm:$0xff]   ;;  %v730_v23 = vld [vmem:[%s1074_s1 + $0x150] ss:$8 sps:$4 sm:$0xff]   ;;  %v557_v8 = vlaneseq }
   0x9   :  { %506 = vmatprep.subr.bf16.mxu0 %v709_v9  ;;  %v731_v24 = vld [vmem:[%s1074_s1 + $0x64] ss:$8 sps:$4 sm:$0xff]   ;;  %v735_v26 = vld [vmem:[%s1074_s1 + $0x60] ss:$8 sps:$4 sm:$0xff]   ;;  %v737_v28 = vld [vmem:[%s1074_s1 + $0x74] ss:$8 sps:$4 sm:$0xff]  }
   0xa   :  { %v733_v25 = vld [vmem:[%s1074_s1 + $0x164] ss:$8 sps:$4 sm:$0xff]   ;;  %v736_v27 = vld [vmem:[%s1074_s1 + $0x160] ss:$8 sps:$4 sm:$0xff]   ;;  %v739_v29 = vld [vmem:[%s1074_s1 + $0x174] ss:$8 sps:$4 sm:$0xff]  }
   0xb   :  { %454 = vmatpush1.bf16.msra.mxu1 %v711_v10  ;;  %v741_v30 = vld [vmem:[%s1074_s1 + $0x70] ss:$8 sps:$4 sm:$0xff]   ;;  %v743_v32 = vld [vmem:[%s1074_s1 + $0x84] ss:$8 sps:$4 sm:$0xff]   ;;  %v747_v34 = vld [vmem:[%s1074_s1 + $0x80] ss:$8 sps:$4 sm:$0xff]  }
   0xc   :  { %507 = vmatpush1.bf16.msra.mxu0 %v712_v11  ;;  %455 = vmatprep.subr.bf16.mxu1 %v713_v12  ;;  %v742_v31 = vld [vmem:[%s1074_s1 + $0x170] ss:$8 sps:$4 sm:$0xff]   ;;  %v745_v33 = vld [vmem:[%s1074_s1 + $0x184] ss:$8 sps:$4 sm:$0xff]   ;;  %v748_v35 = vld [vmem:[%s1074_s1 + $0x180] ss:$8 sps:$4 sm:$0xff]  }
   0xd   :  { %508 = vmatprep.subr.bf16.mxu0 %v715_v13  ;;  %v749_v36 = vld [vmem:[%s1074_s1 + $0x94] ss:$8 sps:$4 sm:$0xff]   ;;  %v753_v38 = vld [vmem:[%s1074_s1 + $0x90] ss:$8 sps:$4 sm:$0xff]   ;;  %v755_v40 = vld [vmem:[%s1074_s1 + $0xa4] ss:$8 sps:$4 sm:$0xff]  }
   0xe   :  { %v751_v37 = vld [vmem:[%s1074_s1 + $0x194] ss:$8 sps:$4 sm:$0xff]   ;;  %v754_v39 = vld [vmem:[%s1074_s1 + $0x190] ss:$8 sps:$4 sm:$0xff]   ;;  %v757_v41 = vld [vmem:[%s1074_s1 + $0x1a4] ss:$8 sps:$4 sm:$0xff]  }
   0xf   :  { %456 = vmatpush1.bf16.msra.mxu1 %v717_v14  ;;  %v759_v42 = vld [vmem:[%s1074_s1 + $0xa0] ss:$8 sps:$4 sm:$0xff]   ;;  %v761_v44 = vld [vmem:[%s1074_s1 + $0xb4] ss:$8 sps:$4 sm:$0xff]   ;;  %v765_v46 = vld [vmem:[%s1074_s1 + $0xb0] ss:$8 sps:$4 sm:$0xff]  }
  0x10   :  { %509 = vmatpush1.bf16.msra.mxu0 %v718_v15  ;;  %457 = vmatprep.subr.bf16.mxu1 %v719_v16  ;;  %v760_v43 = vld [vmem:[%s1074_s1 + $0x1a0] ss:$8 sps:$4 sm:$0xff]   ;;  %v763_v45 = vld [vmem:[%s1074_s1 + $0x1b4] ss:$8 sps:$4 sm:$0xff]   ;;  %v766_v47 = vld [vmem:[%s1074_s1 + $0x1b0] ss:$8 sps:$4 sm:$0xff]  }
  0x11   :  { %510 = vmatprep.subr.bf16.mxu0 %v721_v17  ;;  %v767_v48 = vld [vmem:[%s1074_s1 + $0xc4] ss:$8 sps:$4 sm:$0xff]   ;;  %v771_v52 = vld [vmem:[%s1074_s1 + $0xc0] ss:$8 sps:$4 sm:$0xff]   ;;  %v773_v54 = vld [vmem:[%s1074_s1 + $0xd4] ss:$8 sps:$4 sm:$0xff]  }
  0x12   :  { %v793_v49 = vld [vmem:[%s1075_s0 + $0x4] ss:$16 sps:$4 sm:$0xff]   ;;  %v796_v51 = vld [vmem:[%s1075_s0 + $0xc] ss:$16 sps:$4 sm:$0xff]   ;;  %v772_v53 = vld [vmem:[%s1074_s1 + $0x1c0] ss:$8 sps:$4 sm:$0xff]  }
  0x13   :  { %458 = vmatpush1.bf16.msra.mxu1 %v723_v18  ;;  %v769_v50 = vld [vmem:[%s1074_s1 + $0x1c4] ss:$8 sps:$4 sm:$0xff]   ;;  %481 = vmatprep.mubr.bf16.mxu1 %v793_v49  ;;  %v775_v55 = vld [vmem:[%s1074_s1 + $0x1d4] ss:$8 sps:$4 sm:$0xff]   ;;  %v777_v56 = vld [vmem:[%s1074_s1 + $0xd0] ss:$8 sps:$4 sm:$0xff]  }
  0x14   :  { %511 = vmatpush1.bf16.msra.mxu0 %v724_v19  ;;  %459 = vmatprep.subr.bf16.mxu1 %v725_v20  ;;  %v778_v57 = vld [vmem:[%s1074_s1 + $0x1d0] ss:$8 sps:$4 sm:$0xff]   ;;  %v779_v58 = vld [vmem:[%s1074_s1 + $0xe4] ss:$8 sps:$4 sm:$0xff]   ;;  %v783_v60 = vld [vmem:[%s1074_s1 + $0xe0] ss:$8 sps:$4 sm:$0xff]  }
  0x15   :  { %512 = vmatprep.subr.bf16.mxu0 %v727_v21  ;;  %534 = vmatprep.mubr.bf16.mxu0 %v796_v51  ;;  %v781_v59 = vld [vmem:[%s1074_s1 + $0x1e4] ss:$8 sps:$4 sm:$0xff]   ;;  %v784_v61 = vld [vmem:[%s1074_s1 + $0x1e0] ss:$8 sps:$4 sm:$0xff]   ;;  %v785_v62 = vld [vmem:[%s1074_s1 + $0xf4] ss:$8 sps:$4 sm:$0xff]  }
  0x16   :  { %v787_v63 = vld [vmem:[%s1074_s1 + $0x1f4] ss:$8 sps:$4 sm:$0xff]   ;;  %v789_v0 = vld [vmem:[%s1074_s1 + $0xf0] ss:$8 sps:$4 sm:$0xff]   ;;  %v558_v9 = vshrl.u32 %v557_v8, 7 }
  0x17   :  { %460 = vmatpush1.bf16.msra.mxu1 %v729_v22  ;;  %v790_v1 = vld [vmem:[%s1074_s1 + $0x1f0] ss:$8 sps:$4 sm:$0xff]   ;;  %v797_v4 = vld [vmem:[%s1075_s0 + $0x24] ss:$16 sps:$4 sm:$0xff]   ;;  %v799_v5 = vld [vmem:[%s1075_s0 + $0x2c] ss:$16 sps:$4 sm:$0xff]  }
  0x18   :  { %513 = vmatpush1.bf16.msra.mxu0 %v730_v23  ;;  %461 = vmatprep.subr.bf16.mxu1 %v731_v24  ;;  %v791_v2 = vld [vmem:[%s1075_s0] ss:$16 sps:$4 sm:$0xff]   ;;  %v794_v3 = vld [vmem:[%s1075_s0 + $0x8] ss:$16 sps:$4 sm:$0xff]   ;;  %v559_v10 = vsub.s32 0, %v558_v9  ;;  %v563_v12 = vsub.s32 1, %v558_v9 }
  0x19   :  { %514 = vmatprep.subr.bf16.mxu0 %v733_v25  ;;  %v801_v6 = vld [vmem:[%s1075_s0 + $0x20] ss:$16 sps:$4 sm:$0xff]   ;;  %v802_v7 = vld [vmem:[%s1075_s0 + $0x28] ss:$16 sps:$4 sm:$0xff]  }
  0x1a   :  { %v555_v11 = vld [vmem:[%s1076_s2] sm:$0x3] }
  0x1b   :  { %462 = vmatpush1.bf16.msra.mxu1 %v735_v26  ;;  %v575_v13 = vld [vmem:[%s1077_s3] sm:$0x3]  ;;  %v560_v14 = vrot.slane %v555_v11, %v559_v10  ;;  %v564_v17 = vrot.slane %v555_v11, %v563_v12 }
  0x1c   :  { %515 = vmatpush1.bf16.msra.mxu0 %v736_v27  ;;  %463 = vmatprep.subr.bf16.mxu1 %v737_v28  ;;  %v580_v19 = vrot.slane %v575_v13, %v559_v10  ;;  %v584_v23 = vrot.slane %v575_v13, %v563_v12 }
  0x1d   :  { %516 = vmatprep.subr.bf16.mxu0 %v739_v29 }
  0x1f   :  { %464 = vmatpush1.bf16.msra.mxu1 %v741_v30 }
  0x20   :  { %517 = vmatpush1.bf16.msra.mxu0 %v742_v31  ;;  %465 = vmatprep.subr.bf16.mxu1 %v743_v32 }
  0x21   :  { %518 = vmatprep.subr.bf16.mxu0 %v745_v33 }
  0x23   :  { %466 = vmatpush1.bf16.msra.mxu1 %v747_v34 }
  0x24   :  { %519 = vmatpush1.bf16.msra.mxu0 %v748_v35  ;;  %467 = vmatprep.subr.bf16.mxu1 %v749_v36 }
  0x25   :  { %520 = vmatprep.subr.bf16.mxu0 %v751_v37 }
  0x27   :  { %468 = vmatpush1.bf16.msra.mxu1 %v753_v38 }
  0x28   :  { %521 = vmatpush1.bf16.msra.mxu0 %v754_v39  ;;  %469 = vmatprep.subr.bf16.mxu1 %v755_v40 }
  0x29   :  { %522 = vmatprep.subr.bf16.mxu0 %v757_v41 }
  0x2b   :  { %470 = vmatpush1.bf16.msra.mxu1 %v759_v42 }
  0x2c   :  { %523 = vmatpush1.bf16.msra.mxu0 %v760_v43  ;;  %471 = vmatprep.subr.bf16.mxu1 %v761_v44 }
  0x2d   :  { %524 = vmatprep.subr.bf16.mxu0 %v763_v45 }
  0x2f   :  { %472 = vmatpush1.bf16.msra.mxu1 %v765_v46 }
  0x30   :  { %525 = vmatpush1.bf16.msra.mxu0 %v766_v47  ;;  %473 = vmatprep.subr.bf16.mxu1 %v767_v48 }
  0x31   :  { %526 = vmatprep.subr.bf16.mxu0 %v769_v50 }
  0x33   :  { %474 = vmatpush1.bf16.msra.mxu1 %v771_v52 }
  0x34   :  { %527 = vmatpush1.bf16.msra.mxu0 %v772_v53  ;;  %475 = vmatprep.subr.bf16.mxu1 %v773_v54 }
  0x35   :  { %528 = vmatprep.subr.bf16.mxu0 %v775_v55 }
  0x37   :  { %476 = vmatpush1.bf16.msra.mxu1 %v777_v56 }
  0x38   :  { %529 = vmatpush1.bf16.msra.mxu0 %v778_v57  ;;  %477 = vmatprep.subr.bf16.mxu1 %v779_v58 }
  0x39   :  { %530 = vmatprep.subr.bf16.mxu0 %v781_v59 }
  0x3b   :  { %478 = vmatpush1.bf16.msra.mxu1 %v783_v60 }
  0x3c   :  { %531 = vmatpush1.bf16.msra.mxu0 %v784_v61  ;;  %479 = vmatprep.subr.bf16.mxu1 %v785_v62 }
  0x3d   :  { %532 = vmatprep.subr.bf16.mxu0 %v787_v63 }
  0x3f   :  { %480 = vmatpush1.bf16.msra.mxu1 %v789_v0 }
  0x40   :  { %533 = vmatpush1.bf16.msra.mxu0 %v790_v1 }
  0x42   :  { %482 = vmatmul.mubr.bf16.vlgmr.msra.gmra.mrb[0].mxu1 %v791_v2 }
  0x43   :  { %535 = vmatmul.mubr.bf16.vlgmr.msra.gmra.mrb[0].mxu0 %v794_v3  ;;  %491 = vmatprep.mubr.bf16.mxu1 %v797_v4 }
  0x44   :  { %544 = vmatprep.mubr.bf16.mxu0 %v799_v5 }
  0x4a   :  { %492 = vmatmul.mubr.bf16.gmra.mrb[4].mxu1 %v801_v6 }
  0x4b   :  { %545 = vmatmul.mubr.bf16.gmra.mrb[4].mxu0 %v802_v7 }
 0x115   :  { %v483_v15 = vpop.f32.mrb[0].mxu1 }
 0x116   :  { %v536_v16 = vpop.f32.mrb[0].mxu0  ;;  %v485_v20 = vpop.f32.mrb[1].mxu1 }
 0x117   :  { %v537_v18 = vadd.f32 %v536_v16, %v483_v15  ;;  %v538_v21 = vpop.f32.mrb[1].mxu0  ;;  %v487_v24 = vpop.f32.mrb[2].mxu1 }
 0x118   :  { %v539_v22 = vadd.f32 %v538_v21, %v485_v20  ;;  %v540_v25 = vpop.f32.mrb[2].mxu0  ;;  %v489_v28 = vpop.f32.mrb[3].mxu1 }
 0x119   :  { %v567_v26 = vmul.f32 %v560_v14, %v537_v18  ;;  %v541_v27 = vadd.f32 %v540_v25, %v487_v24  ;;  %v542_v29 = vpop.f32.mrb[3].mxu0 }
 0x11a   :  { %v568_v30 = vmul.f32 %v564_v17, %v539_v22  ;;  %v543_v31 = vadd.f32 %v542_v29, %v489_v28 }
 0x11b   :  { %v587_v32 = vadd.f32 %v580_v19, %v567_v26  ;;  %v569_v33 = vmul.f32 %v560_v14, %v541_v27 }
 0x11c   :  { %v588_v34 = vadd.f32 %v584_v23, %v568_v30  ;;  %v570_v35 = vmul.f32 %v564_v17, %v543_v31 }
 0x11d   :  { %v595_v36 = vmax.f32 %v587_v32, 0.0  ;;  %v589_v37 = vadd.f32 %v580_v19, %v569_v33  ;;  %v493_v40 = vpop.f32.mrb[4].mxu1 }
 0x11e   :  { %v596_v38 = vmax.f32 %v588_v34, 0.0  ;;  %v590_v39 = vadd.f32 %v584_v23, %v570_v35  ;;  %v546_v41 = vpop.f32.mrb[4].mxu0  ;;  %v495_v44 = vpop.f32.mrb[5].mxu1 }
 0x11f   :  { %603 = vst [vmem:[%s1078_s4] sm:$0xff] %v595_v36  ;;  %v597_v42 = vmax.f32 %v589_v37, 0.0  ;;  %v547_v43 = vadd.f32 %v546_v41, %v493_v40  ;;  %v548_v45 = vpop.f32.mrb[5].mxu0  ;;  %v497_v48 = vpop.f32.mrb[6].mxu1 }
 0x120   :  { %604 = vst [vmem:[%s1078_s4 + $0x8] sm:$0xff] %v596_v38  ;;  %v598_v46 = vmax.f32 %v590_v39, 0.0  ;;  %v549_v47 = vadd.f32 %v548_v45, %v495_v44  ;;  %v550_v49 = vpop.f32.mrb[6].mxu0  ;;  %v499_v52 = vpop.f32.mrb[7].mxu1 }
 0x121   :  { %605 = vst [vmem:[%s1078_s4 + $0x10] sm:$0xff] %v597_v42  ;;  %v571_v50 = vmul.f32 %v560_v14, %v547_v43  ;;  %v551_v51 = vadd.f32 %v550_v49, %v497_v48  ;;  %v552_v53 = vpop.f32.mrb[7].mxu0 }
 0x122   :  { %606 = vst [vmem:[%s1078_s4 + $0x18] sm:$0xff] %v598_v46  ;;  %v572_v54 = vmul.f32 %v564_v17, %v549_v47  ;;  %v553_v55 = vadd.f32 %v552_v53, %v499_v52 }
 0x123   :  { %v591_v56 = vadd.f32 %v580_v19, %v571_v50  ;;  %v573_v57 = vmul.f32 %v560_v14, %v551_v51 }
 0x124   :  { %v592_v58 = vadd.f32 %v584_v23, %v572_v54  ;;  %v574_v59 = vmul.f32 %v564_v17, %v553_v55 }
 0x125   :  { %v599_v60 = vmax.f32 %v591_v56, 0.0  ;;  %v593_v61 = vadd.f32 %v580_v19, %v573_v57 }
 0x126   :  { %v600_v62 = vmax.f32 %v592_v58, 0.0  ;;  %v594_v63 = vadd.f32 %v584_v23, %v574_v59 }
 0x127   :  { %607 = vst [vmem:[%s1078_s4 + $0x20] sm:$0xff] %v599_v60  ;;  %v601_v0 = vmax.f32 %v593_v61, 0.0 }
 0x128   :  { %608 = vst [vmem:[%s1078_s4 + $0x28] sm:$0xff] %v600_v62  ;;  %v602_v1 = vmax.f32 %v594_v63, 0.0 }
 0x129   :  { %609 = vst [vmem:[%s1078_s4 + $0x30] sm:$0xff] %v601_v0 }
 0x12a   :  { %610 = vst [vmem:[%s1078_s4 + $0x38] sm:$0xff] %v602_v1 }

// kernel: simple_net5_forward.18
= control target key start
LH: loop header
LB: loop body
LE: loop exit
PB: predicated region body
PF: predicated region fallthrough
CT: control target
= control target key end

     0   :  { %s786_s1 = inlined_call_operand.vmem [shape: bf16[256,128], index: 1, kind: input, shape index: {}]   ;;  %s787_s0 = inlined_call_operand.vmem [shape: bf16[128,256], index: 0, kind: input, shape index: {}]   ;;  %s788_s2 = inlined_call_operand.vmem [shape: f32[1,128], index: 2, kind: input, shape index: {}]   ;;  %s789_s3 = inlined_call_operand.vmem [shape: f32[1,128], index: 3, kind: input, shape index: {}]   ;;  %s790_s4 = inlined_call_operand.vmem [shape: f32[128,128], index: 4, kind: output, shape index: {}]  }
   0x1   :  { %v535_v0 = vld [vmem:[%s786_s1 + $0x40] sm:$0xff]   ;;  %v537_v2 = vld [vmem:[%s786_s1 + $0x48] sm:$0xff]   ;;  %v539_v4 = vld [vmem:[%s786_s1 + $0x50] sm:$0xff]  }
   0x2   :  { %v536_v1 = vld [vmem:[%s786_s1] sm:$0xff]   ;;  %455 = vmatprep.subr.bf16.mxu0 %v535_v0  ;;  %519 = vmatprep.subr.bf16.mxu1 %v535_v0  ;;  %v538_v3 = vld [vmem:[%s786_s1 + $0x8] sm:$0xff]   ;;  %v540_v5 = vld [vmem:[%s786_s1 + $0x10] sm:$0xff]  }
   0x3   :  { %456 = vmatpush3.bf16.msra.mxu0 %v536_v1  ;;  %527 = vmatpush3.bf16.msra.mxu1 %v536_v1  ;;  %v541_v6 = vld [vmem:[%s786_s1 + $0x58] sm:$0xff]   ;;  %v543_v8 = vld [vmem:[%s786_s1 + $0x60] sm:$0xff]   ;;  %v545_v10 = vld [vmem:[%s786_s1 + $0x68] sm:$0xff]  }
   0x4   :  { %457 = vmatprep.subr.bf16.mxu0 %v537_v2  ;;  %520 = vmatprep.subr.bf16.mxu1 %v537_v2  ;;  %v542_v7 = vld [vmem:[%s786_s1 + $0x18] sm:$0xff]   ;;  %v544_v9 = vld [vmem:[%s786_s1 + $0x20] sm:$0xff]   ;;  %v546_v13 = vld [vmem:[%s786_s1 + $0x28] sm:$0xff]  }
   0x5   :  { %v553_v11 = vld [vmem:[%s787_s0 + $0x4] ss:$8 sps:$4 sm:$0xff]   ;;  %v547_v14 = vld [vmem:[%s786_s1 + $0x70] sm:$0xff]   ;;  %v549_v16 = vld [vmem:[%s786_s1 + $0x78] sm:$0xff]  }
   0x6   :  { %v556_v12 = vld [vmem:[%s787_s0 + $0x44] ss:$8 sps:$4 sm:$0xff]   ;;  %274 = vmatprep.mubr.bf16.mxu0 %v553_v11  ;;  %v548_v15 = vld [vmem:[%s786_s1 + $0x30] sm:$0xff]   ;;  %v550_v17 = vld [vmem:[%s786_s1 + $0x38] sm:$0xff]  }
   0x7   :  { %458 = vmatpush3.bf16.msra.mxu0 %v538_v3  ;;  %528 = vmatpush3.bf16.msra.mxu1 %v538_v3  ;;  %v551_v18 = vld [vmem:[%s787_s0] ss:$8 sps:$4 sm:$0xff]   ;;  %v557_v20 = vld [vmem:[%s787_s0 + $0x14] ss:$8 sps:$4 sm:$0xff]   ;;  %v561_v22 = vld [vmem:[%s787_s0 + $0x10] ss:$8 sps:$4 sm:$0xff]  }
   0x8   :  { %459 = vmatprep.subr.bf16.mxu0 %v539_v4  ;;  %521 = vmatprep.subr.bf16.mxu1 %v539_v4  ;;  %v554_v19 = vld [vmem:[%s787_s0 + $0x40] ss:$8 sps:$4 sm:$0xff]   ;;  %v559_v21 = vld [vmem:[%s787_s0 + $0x54] ss:$8 sps:$4 sm:$0xff]   ;;  %v562_v23 = vld [vmem:[%s787_s0 + $0x50] ss:$8 sps:$4 sm:$0xff]  }
   0x9   :  { %306 = vmatprep.mubr.bf16.mxu1 %v556_v12  ;;  %v563_v24 = vld [vmem:[%s787_s0 + $0x24] ss:$8 sps:$4 sm:$0xff]   ;;  %v567_v26 = vld [vmem:[%s787_s0 + $0x20] ss:$8 sps:$4 sm:$0xff]   ;;  %v569_v28 = vld [vmem:[%s787_s0 + $0x34] ss:$8 sps:$4 sm:$0xff]  }
   0xa   :  { %v565_v25 = vld [vmem:[%s787_s0 + $0x64] ss:$8 sps:$4 sm:$0xff]   ;;  %v568_v27 = vld [vmem:[%s787_s0 + $0x60] ss:$8 sps:$4 sm:$0xff]   ;;  %v571_v29 = vld [vmem:[%s787_s0 + $0x74] ss:$8 sps:$4 sm:$0xff]  }
   0xb   :  { %460 = vmatpush3.bf16.msra.mxu0 %v540_v5  ;;  %529 = vmatpush3.bf16.msra.mxu1 %v540_v5  ;;  %v573_v30 = vld [vmem:[%s787_s0 + $0x30] ss:$8 sps:$4 sm:$0xff]   ;;  %v699_v35 = vld [vmem:[%s788_s2] ss:$0 sm:$0xff] }
   0xc   :  { %461 = vmatprep.subr.bf16.mxu0 %v541_v6  ;;  %522 = vmatprep.subr.bf16.mxu1 %v541_v6  ;;  %v574_v31 = vld [vmem:[%s787_s0 + $0x70] ss:$8 sps:$4 sm:$0xff]   ;;  %v704_v41 = vld [vmem:[%s789_s3] ss:$0 sm:$0xff] }
   0xf   :  { %462 = vmatpush3.bf16.msra.mxu0 %v542_v7  ;;  %530 = vmatpush3.bf16.msra.mxu1 %v542_v7 }
  0x10   :  { %463 = vmatprep.subr.bf16.mxu0 %v543_v8  ;;  %523 = vmatprep.subr.bf16.mxu1 %v543_v8 }
  0x13   :  { %464 = vmatpush3.bf16.msra.mxu0 %v544_v9  ;;  %531 = vmatpush3.bf16.msra.mxu1 %v544_v9 }
  0x14   :  { %465 = vmatprep.subr.bf16.mxu0 %v545_v10  ;;  %524 = vmatprep.subr.bf16.mxu1 %v545_v10 }
  0x17   :  { %466 = vmatpush3.bf16.msra.mxu0 %v546_v13  ;;  %532 = vmatpush3.bf16.msra.mxu1 %v546_v13 }
  0x18   :  { %467 = vmatprep.subr.bf16.mxu0 %v547_v14  ;;  %525 = vmatprep.subr.bf16.mxu1 %v547_v14 }
  0x1b   :  { %468 = vmatpush3.bf16.msra.mxu0 %v548_v15  ;;  %533 = vmatpush3.bf16.msra.mxu1 %v548_v15 }
  0x1c   :  { %469 = vmatprep.subr.bf16.mxu0 %v549_v16  ;;  %526 = vmatprep.subr.bf16.mxu1 %v549_v16 }
  0x1f   :  { %470 = vmatpush3.bf16.msra.mxu0 %v550_v17  ;;  %534 = vmatpush3.bf16.msra.mxu1 %v550_v17 }
  0x22   :  { %275 = vmatmul.mubr.bf16.vlgmr.msra.gmra.mrb[0].mxu0 %v551_v18  ;;  %307 = vmatmul.mubr.bf16.vlgmr.msra.gmra.mrb[0].mxu1 %v554_v19 }
  0x23   :  { %282 = vmatprep.mubr.bf16.mxu0 %v557_v20  ;;  %314 = vmatprep.mubr.bf16.mxu1 %v559_v21 }
  0x2a   :  { %283 = vmatmul.mubr.bf16.gmra.mrb[4].mxu0 %v561_v22  ;;  %315 = vmatmul.mubr.bf16.gmra.mrb[4].mxu1 %v562_v23 }
  0x2b   :  { %290 = vmatprep.mubr.bf16.mxu0 %v563_v24  ;;  %322 = vmatprep.mubr.bf16.mxu1 %v565_v25 }
  0x32   :  { %291 = vmatmul.mubr.bf16.gmra.mrb[8].mxu0 %v567_v26  ;;  %323 = vmatmul.mubr.bf16.gmra.mrb[8].mxu1 %v568_v27 }
  0x33   :  { %298 = vmatprep.mubr.bf16.mxu0 %v569_v28  ;;  %330 = vmatprep.mubr.bf16.mxu1 %v571_v29 }
  0x3a   :  { %299 = vmatmul.mubr.bf16.gmra.mrb[12].mxu0 %v573_v30  ;;  %331 = vmatmul.mubr.bf16.gmra.mrb[12].mxu1 %v574_v31 }
  0xf5   :  { %v471_v32 = vpop.f32.mrb[0].mxu0  ;;  %v495_v33 = vpop.f32.mrb[0].mxu1 }
  0xf6   :  { %v472_v34 = vpop.f32.mrb[1].mxu0  ;;  %v496_v36 = vpop.f32.mrb[1].mxu1 }
  0xf7   :  { %v473_v37 = vadd.f32 %v472_v34, %v471_v32  ;;  %v497_v38 = vadd.f32 %v496_v36, %v495_v33  ;;  %v474_v39 = vpop.f32.mrb[2].mxu0  ;;  %v498_v40 = vpop.f32.mrb[2].mxu1 }
  0xf8   :  { %v475_v42 = vpop.f32.mrb[3].mxu0  ;;  %v499_v43 = vpop.f32.mrb[3].mxu1 }
  0xf9   :  { %v346_v44 = vmul.f32 %v473_v37, %v699_v35  ;;  %v354_v45 = vmul.f32 %v497_v38, %v699_v35  ;;  %v476_v46 = vadd.f32 %v475_v42, %v474_v39  ;;  %v500_v47 = vadd.f32 %v499_v43, %v498_v40 }
  0xfb   :  { %v369_v48 = vadd.f32 %v704_v41, %v346_v44  ;;  %v377_v49 = vadd.f32 %v704_v41, %v354_v45  ;;  %v347_v50 = vmul.f32 %v476_v46, %v699_v35  ;;  %v355_v51 = vmul.f32 %v500_v47, %v699_v35 }
  0xfd   :  { %v385_v52 = vmax.f32 %v369_v48, 0.0  ;;  %v393_v53 = vmax.f32 %v377_v49, 0.0  ;;  %v370_v54 = vadd.f32 %v704_v41, %v347_v50  ;;  %v378_v55 = vadd.f32 %v704_v41, %v355_v51  ;;  %v477_v56 = vpop.f32.mrb[4].mxu0  ;;  %v501_v57 = vpop.f32.mrb[4].mxu1 }
  0xfe   :  { %v478_v58 = vpop.f32.mrb[5].mxu0  ;;  %v502_v59 = vpop.f32.mrb[5].mxu1 }
  0xff   :  { %401 = vst [vmem:[%s790_s4] sm:$0xff] %v385_v52  ;;  %409 = vst [vmem:[%s790_s4 + $0x40] sm:$0xff] %v393_v53  ;;  %v386_v60 = vmax.f32 %v370_v54, 0.0  ;;  %v394_v61 = vmax.f32 %v378_v55, 0.0  ;;  %v479_v62 = vadd.f32 %v478_v58, %v477_v56  ;;  %v503_v63 = vadd.f32 %v502_v59, %v501_v57  ;;  %v480_v0 = vpop.f32.mrb[6].mxu0  ;;  %v504_v1 = vpop.f32.mrb[6].mxu1 }
 0x100   :  { %v481_v2 = vpop.f32.mrb[7].mxu0  ;;  %v505_v3 = vpop.f32.mrb[7].mxu1 }
 0x101   :  { %402 = vst [vmem:[%s790_s4 + $0x8] sm:$0xff] %v386_v60  ;;  %410 = vst [vmem:[%s790_s4 + $0x48] sm:$0xff] %v394_v61  ;;  %v348_v4 = vmul.f32 %v479_v62, %v699_v35  ;;  %v356_v5 = vmul.f32 %v503_v63, %v699_v35  ;;  %v482_v6 = vadd.f32 %v481_v2, %v480_v0 }
 0x102   :  { %v506_v7 = vadd.f32 %v505_v3, %v504_v1 }
 0x103   :  { %v371_v8 = vadd.f32 %v704_v41, %v348_v4  ;;  %v379_v9 = vadd.f32 %v704_v41, %v356_v5  ;;  %v349_v10 = vmul.f32 %v482_v6, %v699_v35 }
 0x104   :  { %v357_v11 = vmul.f32 %v506_v7, %v699_v35 }
 0x105   :  { %v387_v12 = vmax.f32 %v371_v8, 0.0  ;;  %v395_v13 = vmax.f32 %v379_v9, 0.0  ;;  %v372_v14 = vadd.f32 %v704_v41, %v349_v10  ;;  %v483_v16 = vpop.f32.mrb[8].mxu0  ;;  %v507_v17 = vpop.f32.mrb[8].mxu1 }
 0x106   :  { %v380_v15 = vadd.f32 %v704_v41, %v357_v11  ;;  %v484_v18 = vpop.f32.mrb[9].mxu0  ;;  %v508_v19 = vpop.f32.mrb[9].mxu1 }
 0x107   :  { %403 = vst [vmem:[%s790_s4 + $0x10] sm:$0xff] %v387_v12  ;;  %411 = vst [vmem:[%s790_s4 + $0x50] sm:$0xff] %v395_v13  ;;  %v388_v20 = vmax.f32 %v372_v14, 0.0  ;;  %v485_v22 = vadd.f32 %v484_v18, %v483_v16  ;;  %v509_v23 = vadd.f32 %v508_v19, %v507_v17  ;;  %v486_v24 = vpop.f32.mrb[10].mxu0  ;;  %v510_v25 = vpop.f32.mrb[10].mxu1 }
 0x108   :  { %v396_v21 = vmax.f32 %v380_v15, 0.0  ;;  %v487_v26 = vpop.f32.mrb[11].mxu0  ;;  %v511_v27 = vpop.f32.mrb[11].mxu1 }
 0x109   :  { %404 = vst [vmem:[%s790_s4 + $0x18] sm:$0xff] %v388_v20  ;;  %v350_v28 = vmul.f32 %v485_v22, %v699_v35  ;;  %v358_v29 = vmul.f32 %v509_v23, %v699_v35  ;;  %v488_v30 = vadd.f32 %v487_v26, %v486_v24  ;;  %v512_v31 = vadd.f32 %v511_v27, %v510_v25 }
 0x10a   :  { %412 = vst [vmem:[%s790_s4 + $0x58] sm:$0xff] %v396_v21 }
 0x10b   :  { %v373_v32 = vadd.f32 %v704_v41, %v350_v28  ;;  %v381_v33 = vadd.f32 %v704_v41, %v358_v29  ;;  %v351_v34 = vmul.f32 %v488_v30, %v699_v35  ;;  %v359_v36 = vmul.f32 %v512_v31, %v699_v35 }
 0x10d   :  { %v389_v37 = vmax.f32 %v373_v32, 0.0  ;;  %v397_v38 = vmax.f32 %v381_v33, 0.0  ;;  %v374_v39 = vadd.f32 %v704_v41, %v351_v34  ;;  %v382_v40 = vadd.f32 %v704_v41, %v359_v36  ;;  %v489_v42 = vpop.f32.mrb[12].mxu0  ;;  %v513_v43 = vpop.f32.mrb[12].mxu1 }
 0x10e   :  { %v490_v44 = vpop.f32.mrb[13].mxu0  ;;  %v514_v45 = vpop.f32.mrb[13].mxu1 }
 0x10f   :  { %405 = vst [vmem:[%s790_s4 + $0x20] sm:$0xff] %v389_v37  ;;  %413 = vst [vmem:[%s790_s4 + $0x60] sm:$0xff] %v397_v38  ;;  %v390_v46 = vmax.f32 %v374_v39, 0.0  ;;  %v398_v47 = vmax.f32 %v382_v40, 0.0  ;;  %v491_v48 = vadd.f32 %v490_v44, %v489_v42  ;;  %v515_v49 = vadd.f32 %v514_v45, %v513_v43  ;;  %v492_v50 = vpop.f32.mrb[14].mxu0  ;;  %v516_v51 = vpop.f32.mrb[14].mxu1 }
 0x110   :  { %v493_v52 = vpop.f32.mrb[15].mxu0  ;;  %v517_v53 = vpop.f32.mrb[15].mxu1 }
 0x111   :  { %406 = vst [vmem:[%s790_s4 + $0x28] sm:$0xff] %v390_v46  ;;  %414 = vst [vmem:[%s790_s4 + $0x68] sm:$0xff] %v398_v47  ;;  %v352_v54 = vmul.f32 %v491_v48, %v699_v35  ;;  %v360_v55 = vmul.f32 %v515_v49, %v699_v35  ;;  %v494_v56 = vadd.f32 %v493_v52, %v492_v50 }
 0x112   :  { %v518_v57 = vadd.f32 %v517_v53, %v516_v51 }
 0x113   :  { %v375_v58 = vadd.f32 %v704_v41, %v352_v54  ;;  %v383_v59 = vadd.f32 %v704_v41, %v360_v55  ;;  %v353_v60 = vmul.f32 %v494_v56, %v699_v35 }
 0x114   :  { %v361_v61 = vmul.f32 %v518_v57, %v699_v35 }
 0x115   :  { %v391_v62 = vmax.f32 %v375_v58, 0.0  ;;  %v399_v63 = vmax.f32 %v383_v59, 0.0  ;;  %v376_v0 = vadd.f32 %v704_v41, %v353_v60 }
 0x116   :  { %v384_v1 = vadd.f32 %v704_v41, %v361_v61 }
 0x117   :  { %407 = vst [vmem:[%s790_s4 + $0x30] sm:$0xff] %v391_v62  ;;  %415 = vst [vmem:[%s790_s4 + $0x70] sm:$0xff] %v399_v63  ;;  %v392_v2 = vmax.f32 %v376_v0, 0.0 }
 0x118   :  { %v400_v3 = vmax.f32 %v384_v1, 0.0 }
 0x119   :  { %408 = vst [vmem:[%s790_s4 + $0x38] sm:$0xff] %v392_v2 }
 0x11a   :  { %416 = vst [vmem:[%s790_s4 + $0x78] sm:$0xff] %v400_v3 }

// kernel: simple_net5_forward.19
= control target key start
LH: loop header
LB: loop body
LE: loop exit
PB: predicated region body
PF: predicated region fallthrough
CT: control target
= control target key end

     0   :  { %s1041_s21 = smov 0   ;;  %s1187_s0 = inlined_call_operand.vmem [shape: bf16[512,128], index: 0, kind: input, shape index: {}]   ;;  %s1188_s1 = inlined_call_operand.vmem [shape: bf16[128,32], index: 1, kind: input, shape index: {}]   ;;  %s1189_s2 = inlined_call_operand.vmem [shape: f32[1,32], index: 2, kind: input, shape index: {}]   ;;  %s1190_s3 = inlined_call_operand.vmem [shape: f32[1,32], index: 3, kind: input, shape index: {}]   ;;  %s1191_s4 = inlined_call_operand.vmem [shape: f32[32,128], index: 4, kind: input, shape index: {}]   ;;  %s1192_s5 = inlined_call_operand.vmem [shape: f32[1,128], index: 5, kind: input, shape index: {}]   ;;  %s1193_s6 = inlined_call_operand.vmem [shape: f32[512,128], index: 6, kind: output, shape index: {}]  }
   0x1 LB: > { %s820_s22 = sadd.s32 4294967295, %s1004_s21   ;;  %p824_p0 = scmp.ge.s32.totalorder %s1004_s21, 1  ;;  %s1004_s21 = sphi %s1041_s21, %s16_s21  }
   0x2   : > { %p213_p1 = scmp.lt.s32.totalorder %s1004_s21, 5 }
   0x4   : > { %p214_p2 = pnand %p824_p0, %p213_p1 }
   0x5   : > { %v982_v0 = vld [vmem:[%s1188_s1] sm:$0xff] (!%p214_p2)   ;;  %s825_s25 = sshll.u32 (!%p214_p2), %s820_s22, 4  ;;  %v983_v1 = vld [vmem:[%s1188_s1 + $0x8] sm:$0xff] (!%p214_p2)   ;;  %v984_v2 = vld [vmem:[%s1188_s1 + $0x10] sm:$0xff] (!%p214_p2)   ;;  %vm554_vm0 = vcmask (!%p214_p2), 261120  }
   0x6   : > { %217 = sbr.rel (%p214_p2) target bundleno = 503 (0x1f7), region = 44  ;;  %p244_p3 = scmp.lt.s32.totalorder (!%p214_p2), %s825_s25, 63  ;;  %902 = vmatprep.subr.bf16.mxu0 (!%p214_p2), %v982_v0  ;;  %v985_v3 = vld [vmem:[%s1188_s1 + $0x18] sm:$0xff] (!%p214_p2)   ;;  %v986_v5 = vld [vmem:[%s1188_s1 + $0x20] sm:$0xff] (!%p214_p2)   ;;  %v987_v6 = vld [vmem:[%s1188_s1 + $0x28] sm:$0xff] (!%p214_p2)  }
   0x7   : > { %903 = vmatpush3.bf16.msra.mxu0 (!%p214_p2), %v982_v0  ;;  %v988_v7 = vld [vmem:[%s1188_s1 + $0x30] sm:$0xff] (!%p214_p2)   ;;  %v989_v8 = vld [vmem:[%s1188_s1 + $0x38] sm:$0xff] (!%p214_p2)   ;;  %v543_v16 = vld [vmem:[%s1191_s4] sm:$0xff] (!%p214_p2) }
   0x8   : > { %904 = vmatprep.subr.bf16.mxu0 (!%p214_p2), %v983_v1  ;;  %v544_v17 = vld [vmem:[%s1191_s4 + $0x8] sm:$0xff] (!%p214_p2)  ;;  %v545_v19 = vld [vmem:[%s1191_s4 + $0x10] sm:$0xff] (!%p214_p2)  ;;  %v546_v20 = vld [vmem:[%s1191_s4 + $0x18] sm:$0xff] (!%p214_p2) }
   0x9   : > { %v966_v18 = vpack.c.bf16 (!%p214_p2), %v544_v17, %v543_v16  ;;  %v970_v21 = vpack.c.bf16 (!%p214_p2), %v546_v20, %v545_v19  ;;  %v1104_v22 = vld [vmem:[%s1189_s2] ss:$0 sm:$0xff] (!%p214_p2) }
   0xa   : > { %v1110_v25 = vld [vmem:[%s1190_s3] ss:$0 sm:$0xff] (!%p214_p2) }
   0xb   : > { %905 = vmatpush3.bf16.msra.mxu0 (!%p214_p2), %v983_v1  ;;  %967 = vmatprep.subr.bf16.mxu1 (!%p214_p2), %v966_v18 }
   0xc   : > { %906 = vmatprep.subr.bf16.mxu0 (!%p214_p2), %v984_v2  ;;  %969 = vmatpush3.bf16.msra.mxu1 (!%p214_p2), %v966_v18 }
   0xd   : > { %s1195_s25 = smov (!%p244_p3, %s825_s25), 63  ;;  %971 = vmatprep.subr.bf16.mxu1 %v970_v21 }
   0xe   : > { %s826_s30 = sshll.u32 %s1195_s25, 2  ;;  %s828_s10 = sshll.u32 %s1195_s25, 3 }
   0xf   : > { %s1064_s9 = scalar_lea.vmem %s1187_s0, %s826_s30  ;;  %907 = vmatpush3.bf16.msra.mxu0 %v984_v2  ;;  %s1166_s15 = scalar_lea.vmem %s1193_s6, %s828_s10 }
  0x10   : > { %v990_v4 = vld [vmem:[%s1064_s9] sm:$0xff]   ;;  %908 = vmatprep.subr.bf16.mxu0 %v985_v3  ;;  %v991_v9 = vld [vmem:[%s1064_s9 + $0x8] sm:$0xff]   ;;  %v992_v10 = vld [vmem:[%s1064_s9 + $0x10] sm:$0xff]   ;;  %973 = vmatpush3.bf16.msra.mxu1 %v970_v21 }
  0x11   : > { %918 = vmatprep.mubr.bf16.mxu0 %v990_v4  ;;  %v993_v11 = vld [vmem:[%s1064_s9 + $0x18] sm:$0xff]   ;;  %v994_v12 = vld [vmem:[%s1064_s9 + $0x20] sm:$0xff]   ;;  %v995_v13 = vld [vmem:[%s1064_s9 + $0x28] sm:$0xff]  }
  0x12   : > { %v996_v14 = vld [vmem:[%s1064_s9 + $0x30] sm:$0xff]   ;;  %v997_v15 = vld [vmem:[%s1064_s9 + $0x38] sm:$0xff]  }
  0x13   : > { %909 = vmatpush3.bf16.msra.mxu0 %v985_v3 }
  0x14   : > { %910 = vmatprep.subr.bf16.mxu0 %v986_v5 }
  0x17   : > { %911 = vmatpush3.bf16.msra.mxu0 %v986_v5 }
  0x18   : > { %912 = vmatprep.subr.bf16.mxu0 %v987_v6 }
  0x1b   : > { %913 = vmatpush3.bf16.msra.mxu0 %v987_v6 }
  0x1c   : > { %914 = vmatprep.subr.bf16.mxu0 %v988_v7 }
  0x1f   : > { %915 = vmatpush3.bf16.msra.mxu0 %v988_v7 }
  0x20   : > { %916 = vmatprep.subr.bf16.mxu0 %v989_v8 }
  0x23   : > { %917 = vmatpush3.bf16.msra.mxu0 %v989_v8 }
  0x26   : > { %919 = vmatmul.mubr.bf16.vlgmr.msra.gmra.mrb[0].mxu0 %v991_v9 }
  0x27   : > { %922 = vmatprep.mubr.bf16.mxu0 %v992_v10 }
  0x2e   : > { %923 = vmatmul.mubr.bf16.gmra.mrb[4].mxu0 %v993_v11 }
  0x2f   : > { %926 = vmatprep.mubr.bf16.mxu0 %v994_v12 }
  0x36   : > { %927 = vmatmul.mubr.bf16.gmra.mrb[8].mxu0 %v995_v13 }
  0x37   : > { %930 = vmatprep.mubr.bf16.mxu0 %v996_v14 }
  0x3e   : > { %931 = vmatmul.mubr.bf16.gmra.mrb[12].mxu0 %v997_v15 }
  0xf9   : > { %v920_v23 = vpop.f32.mrb[0].mxu0 }
  0xfa   : > { %v490_v24 = vmul.f32 %v920_v23, %v1104_v22  ;;  %v418_v26 = vpop.f32.mrb[1].mxu0 }
  0xfb   : > { %v488_v27 = vmul.f32 %v1104_v22, %v418_v26  ;;  %v921_v28 = vpop.f32.mrb[2].mxu0 }
  0xfc   : > { %v421_v29 = vpop.f32.mrb[3].mxu0  ;;  %v491_v30 = vmul.f32 %v921_v28, %v1104_v22  ;;  %v513_v33 = vadd.f32 %v1110_v25, %v490_v24 }
  0xfd   : > { %v489_v31 = vmul.f32 %v1104_v22, %v421_v29  ;;  %v511_v32 = vadd.f32 %v1110_v25, %v488_v27 }
  0xfe   : > { %v514_v36 = vadd.f32 %v1110_v25, %v491_v30  ;;  %v529_v39 = vmax.f32 %v513_v33, 0.0 }
  0xff   : > { %v512_v34 = vadd.f32 %v1110_v25, %v489_v31  ;;  %v527_v35 = vmax.f32 %v511_v32, 0.0 }
 0x100   : > { %v530_v45 = vmax.f32 %v514_v36, 0.0 }
 0x101   : > { %v528_v37 = vmax.f32 %v512_v34, 0.0  ;;  %v924_v38 = vpop.f32.mrb[4].mxu0  ;;  %942 = vmatprep.mubr.msk.f32.mxu1 %vm554_vm0, %v527_v35 }
 0x102   : > { %v494_v40 = vmul.f32 %v924_v38, %v1104_v22  ;;  %v434_v41 = vpop.f32.mrb[5].mxu0 }
 0x103   : > { %v492_v42 = vmul.f32 %v1104_v22, %v434_v41  ;;  %v925_v43 = vpop.f32.mrb[6].mxu0  ;;  %943 = vmatmul.mubr.msk.f32.vlgmr.msra.gmra.mrb[0].mxu1 %vm554_vm0, %v528_v37 }
 0x104   : > { %v437_v44 = vpop.f32.mrb[7].mxu0  ;;  %945 = vmatprep.mubr.msk.f32.mxu1 %vm554_vm0, %v529_v39  ;;  %v495_v47 = vmul.f32 %v925_v43, %v1104_v22  ;;  %v517_v49 = vadd.f32 %v1110_v25, %v494_v40 }
 0x105   : > { %v515_v46 = vadd.f32 %v1110_v25, %v492_v42  ;;  %v493_v48 = vmul.f32 %v1104_v22, %v437_v44 }
 0x106   : > { %v518_v52 = vadd.f32 %v1110_v25, %v495_v47  ;;  %v533_v55 = vmax.f32 %v517_v49, 0.0 }
 0x107   : > { %v531_v50 = vmax.f32 %v515_v46, 0.0  ;;  %v516_v51 = vadd.f32 %v1110_v25, %v493_v48  ;;  %946 = vmatmul.mubr.msk.f32.gmra.mrb[2].mxu1 %vm554_vm0, %v530_v45 }
 0x108   : > { %v534_v61 = vmax.f32 %v518_v52, 0.0 }
 0x109   : > { %v532_v53 = vmax.f32 %v516_v51, 0.0  ;;  %v928_v54 = vpop.f32.mrb[8].mxu0  ;;  %948 = vmatprep.mubr.msk.f32.mxu1 %vm554_vm0, %v531_v50 }
 0x10a   : > { %v498_v56 = vmul.f32 %v928_v54, %v1104_v22  ;;  %v450_v57 = vpop.f32.mrb[9].mxu0 }
 0x10b   : > { %v496_v58 = vmul.f32 %v1104_v22, %v450_v57  ;;  %v929_v59 = vpop.f32.mrb[10].mxu0  ;;  %949 = vmatmul.mubr.msk.f32.gmra.mrb[4].mxu1 %vm554_vm0, %v532_v53 }
 0x10c   : > { %v453_v60 = vpop.f32.mrb[11].mxu0  ;;  %951 = vmatprep.mubr.msk.f32.mxu1 %vm554_vm0, %v533_v55  ;;  %v499_v63 = vmul.f32 %v929_v59, %v1104_v22  ;;  %v521_v1 = vadd.f32 %v1110_v25, %v498_v56 }
 0x10d   : > { %v519_v62 = vadd.f32 %v1110_v25, %v496_v58  ;;  %v497_v0 = vmul.f32 %v1104_v22, %v453_v60 }
 0x10e   : > { %v522_v4 = vadd.f32 %v1110_v25, %v499_v63  ;;  %v537_v7 = vmax.f32 %v521_v1, 0.0 }
 0x10f   : > { %v535_v2 = vmax.f32 %v519_v62, 0.0  ;;  %v520_v3 = vadd.f32 %v1110_v25, %v497_v0  ;;  %952 = vmatmul.mubr.msk.f32.gmra.mrb[6].mxu1 %vm554_vm0, %v534_v61 }
 0x110   : > { %v538_v13 = vmax.f32 %v522_v4, 0.0 }
 0x111   : > { %v536_v5 = vmax.f32 %v520_v3, 0.0  ;;  %v932_v6 = vpop.f32.mrb[12].mxu0  ;;  %954 = vmatprep.mubr.msk.f32.mxu1 %vm554_vm0, %v535_v2 }
 0x112   : > { %v502_v8 = vmul.f32 %v932_v6, %v1104_v22  ;;  %v466_v9 = vpop.f32.mrb[13].mxu0 }
 0x113   : > { %v500_v10 = vmul.f32 %v1104_v22, %v466_v9  ;;  %v933_v11 = vpop.f32.mrb[14].mxu0  ;;  %955 = vmatmul.mubr.msk.f32.gmra.mrb[8].mxu1 %vm554_vm0, %v536_v5 }
 0x114   : > { %v469_v12 = vpop.f32.mrb[15].mxu0  ;;  %957 = vmatprep.mubr.msk.f32.mxu1 %vm554_vm0, %v537_v7  ;;  %v503_v15 = vmul.f32 %v933_v11, %v1104_v22  ;;  %v525_v17 = vadd.f32 %v1110_v25, %v502_v8 }
 0x115   : > { %v523_v14 = vadd.f32 %v1110_v25, %v500_v10  ;;  %v501_v16 = vmul.f32 %v1104_v22, %v469_v12  ;;  %v847_v22 = vld [vmem:[%s1192_s5] ss:$0 sm:$0xff] }
 0x116   : > { %v526_v20 = vadd.f32 %v1110_v25, %v503_v15  ;;  %v541_v23 = vmax.f32 %v525_v17, 0.0 }
 0x117   : > { %v539_v18 = vmax.f32 %v523_v14, 0.0  ;;  %v524_v19 = vadd.f32 %v1110_v25, %v501_v16  ;;  %958 = vmatmul.mubr.msk.f32.gmra.mrb[10].mxu1 %vm554_vm0, %v538_v13 }
 0x118   : > { %v542_v24 = vmax.f32 %v526_v20, 0.0 }
 0x119   : > { %v540_v21 = vmax.f32 %v524_v19, 0.0  ;;  %960 = vmatprep.mubr.msk.f32.mxu1 %vm554_vm0, %v539_v18 }
 0x11b   : > { %961 = vmatmul.mubr.msk.f32.gmra.mrb[12].mxu1 %vm554_vm0, %v540_v21 }
 0x11c   : > { %963 = vmatprep.mubr.msk.f32.mxu1 %vm554_vm0, %v541_v23 }
 0x11f   : > { %964 = vmatmul.mubr.msk.f32.gmra.mrb[14].mxu1 %vm554_vm0, %v542_v24 }
 0x1d6   : > { %v944_v25 = vpop.f32.mrb[0].mxu1 }
 0x1d7   : > { %v675_v26 = vadd.f32 %v944_v25, %v847_v22  ;;  %v669_v27 = vpop.f32.mrb[1].mxu1 }
 0x1d8   : > { %v670_v28 = vadd.f32 %v847_v22, %v669_v27 }
 0x1d9   : > { %749 = vst [vmem:[%s1166_s15 + $0x8] sm:$0xff] %v675_v26 }
 0x1da   : > { %748 = vst [vmem:[%s1166_s15] sm:$0xff] %v670_v28  ;;  %v947_v29 = vpop.f32.mrb[2].mxu1 }
 0x1db   : > { %v685_v30 = vadd.f32 %v947_v29, %v847_v22  ;;  %v679_v31 = vpop.f32.mrb[3].mxu1 }
 0x1dc   : > { %v680_v32 = vadd.f32 %v847_v22, %v679_v31 }
 0x1dd   : > { %751 = vst [vmem:[%s1166_s15 + $0x18] sm:$0xff] %v685_v30 }
 0x1de   : > { %750 = vst [vmem:[%s1166_s15 + $0x10] sm:$0xff] %v680_v32  ;;  %v950_v33 = vpop.f32.mrb[4].mxu1 }
 0x1df   : > { %v695_v34 = vadd.f32 %v950_v33, %v847_v22  ;;  %v689_v35 = vpop.f32.mrb[5].mxu1 }
 0x1e0   : > { %v690_v36 = vadd.f32 %v847_v22, %v689_v35 }
 0x1e1   : > { %753 = vst [vmem:[%s1166_s15 + $0x28] sm:$0xff] %v695_v34 }
 0x1e2   : > { %752 = vst [vmem:[%s1166_s15 + $0x20] sm:$0xff] %v690_v36  ;;  %v953_v37 = vpop.f32.mrb[6].mxu1 }
 0x1e3   : > { %v705_v38 = vadd.f32 %v953_v37, %v847_v22  ;;  %v699_v39 = vpop.f32.mrb[7].mxu1 }
 0x1e4   : > { %v700_v40 = vadd.f32 %v847_v22, %v699_v39 }
 0x1e5   : > { %755 = vst [vmem:[%s1166_s15 + $0x38] sm:$0xff] %v705_v38 }
 0x1e6   : > { %754 = vst [vmem:[%s1166_s15 + $0x30] sm:$0xff] %v700_v40  ;;  %v956_v41 = vpop.f32.mrb[8].mxu1 }
 0x1e7   : > { %v715_v42 = vadd.f32 %v956_v41, %v847_v22  ;;  %v709_v43 = vpop.f32.mrb[9].mxu1 }
 0x1e8   : > { %v710_v44 = vadd.f32 %v847_v22, %v709_v43 }
 0x1e9   : > { %757 = vst [vmem:[%s1166_s15 + $0x48] sm:$0xff] %v715_v42 }
 0x1ea   : > { %756 = vst [vmem:[%s1166_s15 + $0x40] sm:$0xff] %v710_v44  ;;  %v959_v45 = vpop.f32.mrb[10].mxu1 }
 0x1eb   : > { %v725_v46 = vadd.f32 %v959_v45, %v847_v22  ;;  %v719_v47 = vpop.f32.mrb[11].mxu1 }
 0x1ec   : > { %v720_v48 = vadd.f32 %v847_v22, %v719_v47 }
 0x1ed   : > { %759 = vst [vmem:[%s1166_s15 + $0x58] sm:$0xff] %v725_v46 }
 0x1ee   : > { %758 = vst [vmem:[%s1166_s15 + $0x50] sm:$0xff] %v720_v48  ;;  %v962_v49 = vpop.f32.mrb[12].mxu1 }
 0x1ef   : > { %v735_v50 = vadd.f32 %v962_v49, %v847_v22  ;;  %v729_v51 = vpop.f32.mrb[13].mxu1 }
 0x1f0   : > { %v730_v52 = vadd.f32 %v847_v22, %v729_v51 }
 0x1f1   : > { %761 = vst [vmem:[%s1166_s15 + $0x68] sm:$0xff] %v735_v50 }
 0x1f2   : > { %760 = vst [vmem:[%s1166_s15 + $0x60] sm:$0xff] %v730_v52  ;;  %v965_v53 = vpop.f32.mrb[14].mxu1 }
 0x1f3   : > { %v745_v54 = vadd.f32 %v965_v53, %v847_v22  ;;  %v739_v55 = vpop.f32.mrb[15].mxu1 }
 0x1f4   : > { %v740_v56 = vadd.f32 %v847_v22, %v739_v55 }
 0x1f5   : > { %763 = vst [vmem:[%s1166_s15 + $0x78] sm:$0xff] %v745_v54 }
 0x1f6   : > { %762 = vst [vmem:[%s1166_s15 + $0x70] sm:$0xff] %v740_v56 }
 0x1f7 PF: > { %s16_s21 = sadd.s32 1, %s1004_s21  }
 0x1f8   : > { %p13_p4 = scmp.ge.s32.totalorder %s16_s21, 6  }
 0x1fa   :  { %15 = sbr.rel (!%p13_p4) target bundleno = 1 (0x1), region = 74 }

// kernel: simple_net5_forward.15
= control target key start
LH: loop header
LB: loop body
LE: loop exit
PB: predicated region body
PF: predicated region fallthrough
CT: control target
= control target key end

     0   :  { %s12346_s1 = inlined_call_operand.vmem [shape: bf16[2048,1024], index: 1, kind: input, shape index: {}]   ;;  %s12347_s0 = inlined_call_operand.vmem [shape: bf16[16,2048], index: 0, kind: input, shape index: {}]   ;;  %s12348_s2 = inlined_call_operand.vmem [shape: f32[1,1024], index: 2, kind: input, shape index: {}]   ;;  %s12349_s3 = inlined_call_operand.vmem [shape: f32[1,1024], index: 3, kind: input, shape index: {}]   ;;  %s12350_s4 = inlined_call_operand.vmem [shape: f32[16,1024], index: 4, kind: output, shape index: {}]  }
   0x1   :  { %v33_v0 = vld [vmem:[%s12346_s1] sm:$0xff]  ;;  %v34_v2 = vld [vmem:[%s12346_s1 + $0x8] sm:$0xff] }
   0x2   :  { %v37_v1 = vld [vmem:[%s12346_s1 + $0x20] sm:$0xff]  ;;  %v38_v4 = vld [vmem:[%s12346_s1 + $0x28] sm:$0xff] }
   0x3   :  { %v7802_v3 = vcombine.high %v33_v0, %v37_v1  ;;  %v7801_v5 = vcombine.low %v33_v0, %v37_v1  ;;  %v41_v6 = vld [vmem:[%s12346_s1 + $0x40] sm:$0xff]  ;;  %v7804_v8 = vcombine.high %v34_v2, %v38_v4  ;;  %v7803_v9 = vcombine.low %v34_v2, %v38_v4  ;;  %v42_v11 = vld [vmem:[%s12346_s1 + $0x48] sm:$0xff] }
   0x4   :  { %v45_v7 = vld [vmem:[%s12346_s1 + $0x60] sm:$0xff]  ;;  %v46_v12 = vld [vmem:[%s12346_s1 + $0x68] sm:$0xff] }
   0x5   :  { %v7810_v10 = vcombine.high %v41_v6, %v45_v7  ;;  %v49_v13 = vld [vmem:[%s12346_s1 + $0x80] sm:$0xff]  ;;  %6257 = vmatprep.subr.bf16.mxu0 %v7802_v3  ;;  %v7812_v14 = vcombine.high %v42_v11, %v46_v12  ;;  %v50_v16 = vld [vmem:[%s12346_s1 + $0x88] sm:$0xff]  ;;  %6601 = vmatprep.subr.bf16.mxu1 %v7804_v8  ;;  %v7809_v18 = vcombine.low %v41_v6, %v45_v7 }
   0x6   :  { %v53_v15 = vld [vmem:[%s12346_s1 + $0xa0] sm:$0xff]  ;;  %v54_v17 = vld [vmem:[%s12346_s1 + $0xa8] sm:$0xff]  ;;  %6258 = vmatpush1.bf16.msra.mxu0 %v7801_v5  ;;  %6602 = vmatpush1.bf16.msra.mxu1 %v7803_v9  ;;  %v7811_v19 = vcombine.low %v42_v11, %v46_v12 }
   0x7   :  { %6259 = vmatprep.subr.bf16.mxu0 %v7810_v10  ;;  %v7818_v20 = vcombine.high %v49_v13, %v53_v15  ;;  %6603 = vmatprep.subr.bf16.mxu1 %v7812_v14  ;;  %v7820_v21 = vcombine.high %v50_v16, %v54_v17  ;;  %v57_v22 = vld [vmem:[%s12346_s1 + $0xc0] sm:$0xff]  ;;  %v58_v24 = vld [vmem:[%s12346_s1 + $0xc8] sm:$0xff]  ;;  %v7817_v26 = vcombine.low %v49_v13, %v53_v15 }
   0x8   :  { %v61_v23 = vld [vmem:[%s12346_s1 + $0xe0] sm:$0xff]  ;;  %v62_v25 = vld [vmem:[%s12346_s1 + $0xe8] sm:$0xff]  ;;  %v7819_v27 = vcombine.low %v50_v16, %v54_v17 }
   0x9   :  { %v7826_v28 = vcombine.high %v57_v22, %v61_v23  ;;  %v7828_v29 = vcombine.high %v58_v24, %v62_v25  ;;  %v65_v30 = vld [vmem:[%s12346_s1 + $0x100] sm:$0xff]  ;;  %v66_v32 = vld [vmem:[%s12346_s1 + $0x108] sm:$0xff]  ;;  %v7825_v34 = vcombine.low %v57_v22, %v61_v23  ;;  %v7827_v35 = vcombine.low %v58_v24, %v62_v25 }
   0xa   :  { %6260 = vmatpush1.bf16.msra.mxu0 %v7809_v18  ;;  %6604 = vmatpush1.bf16.msra.mxu1 %v7811_v19  ;;  %v69_v31 = vld [vmem:[%s12346_s1 + $0x120] sm:$0xff]  ;;  %v70_v33 = vld [vmem:[%s12346_s1 + $0x128] sm:$0xff] }
   0xb   :  { %6261 = vmatprep.subr.bf16.mxu0 %v7818_v20  ;;  %6605 = vmatprep.subr.bf16.mxu1 %v7820_v21  ;;  %v7834_v36 = vcombine.high %v65_v30, %v69_v31  ;;  %v7836_v37 = vcombine.high %v66_v32, %v70_v33  ;;  %v73_v38 = vld [vmem:[%s12346_s1 + $0x140] sm:$0xff]  ;;  %v74_v40 = vld [vmem:[%s12346_s1 + $0x148] sm:$0xff]  ;;  %v7833_v42 = vcombine.low %v65_v30, %v69_v31 }
   0xc   :  { %v77_v39 = vld [vmem:[%s12346_s1 + $0x160] sm:$0xff]  ;;  %v78_v41 = vld [vmem:[%s12346_s1 + $0x168] sm:$0xff]  ;;  %v7835_v43 = vcombine.low %v66_v32, %v70_v33 }
   0xd   :  { %v7842_v44 = vcombine.high %v73_v38, %v77_v39  ;;  %v7844_v45 = vcombine.high %v74_v40, %v78_v41  ;;  %v81_v46 = vld [vmem:[%s12346_s1 + $0x180] sm:$0xff]  ;;  %v82_v48 = vld [vmem:[%s12346_s1 + $0x188] sm:$0xff]  ;;  %v7841_v50 = vcombine.low %v73_v38, %v77_v39  ;;  %v7843_v51 = vcombine.low %v74_v40, %v78_v41 }
   0xe   :  { %6262 = vmatpush1.bf16.msra.mxu0 %v7817_v26  ;;  %6606 = vmatpush1.bf16.msra.mxu1 %v7819_v27  ;;  %v85_v47 = vld [vmem:[%s12346_s1 + $0x1a0] sm:$0xff]  ;;  %v86_v49 = vld [vmem:[%s12346_s1 + $0x1a8] sm:$0xff] }
   0xf   :  { %6263 = vmatprep.subr.bf16.mxu0 %v7826_v28  ;;  %6607 = vmatprep.subr.bf16.mxu1 %v7828_v29  ;;  %v7850_v52 = vcombine.high %v81_v46, %v85_v47  ;;  %v9051_v53 = vld [vmem:[%s12347_s0] sm:$0xff]  ;;  %v7852_v55 = vcombine.high %v82_v48, %v86_v49  ;;  %v90_v59 = vld [vmem:[%s12346_s1 + $0x1c8] sm:$0xff]  ;;  %v7849_v61 = vcombine.low %v81_v46, %v85_v47 }
  0x10   :  { %v9056_v54 = vld [vmem:[%s12347_s0 + $0x40] sm:$0xff]  ;;  %v94_v60 = vld [vmem:[%s12346_s1 + $0x1e8] sm:$0xff]  ;;  %v7851_v62 = vcombine.low %v82_v48, %v86_v49 }
  0x11   :  { %v89_v56 = vld [vmem:[%s12346_s1 + $0x1c0] sm:$0xff]  ;;  %v9066_v58 = vcombine.high %v9051_v53, %v9056_v54  ;;  %v7860_v0 = vcombine.high %v90_v59, %v94_v60  ;;  %v98_v3 = vld [vmem:[%s12346_s1 + $0x208] sm:$0xff]  ;;  %v7859_v6 = vcombine.low %v90_v59, %v94_v60 }
  0x12   :  { %6264 = vmatpush1.bf16.msra.mxu0 %v7825_v34  ;;  %6608 = vmatpush1.bf16.msra.mxu1 %v7827_v35  ;;  %v93_v57 = vld [vmem:[%s12346_s1 + $0x1e0] sm:$0xff]  ;;  %v102_v4 = vld [vmem:[%s12346_s1 + $0x228] sm:$0xff] }
  0x13   :  { %6265 = vmatprep.subr.bf16.mxu0 %v7834_v36  ;;  %6609 = vmatprep.subr.bf16.mxu1 %v7836_v37  ;;  %v7858_v63 = vcombine.high %v89_v56, %v93_v57  ;;  %v97_v1 = vld [vmem:[%s12346_s1 + $0x200] sm:$0xff]  ;;  %v7857_v5 = vcombine.low %v89_v56, %v93_v57  ;;  %v7868_v8 = vcombine.high %v98_v3, %v102_v4  ;;  %v106_v11 = vld [vmem:[%s12346_s1 + $0x248] sm:$0xff] }
  0x14   :  { %6289 = vmatprep.mubr.bf16.mxu0 %v9066_v58  ;;  %v101_v2 = vld [vmem:[%s12346_s1 + $0x220] sm:$0xff]  ;;  %6633 = vmatprep.mubr.bf16.mxu1 %v9066_v58  ;;  %v110_v12 = vld [vmem:[%s12346_s1 + $0x268] sm:$0xff]  ;;  %v7867_v14 = vcombine.low %v98_v3, %v102_v4 }
  0x15   :  { %v7866_v7 = vcombine.high %v97_v1, %v101_v2  ;;  %v105_v9 = vld [vmem:[%s12346_s1 + $0x240] sm:$0xff]  ;;  %v7865_v13 = vcombine.low %v97_v1, %v101_v2  ;;  %v7876_v16 = vcombine.high %v106_v11, %v110_v12  ;;  %v114_v19 = vld [vmem:[%s12346_s1 + $0x288] sm:$0xff]  ;;  %v7875_v22 = vcombine.low %v106_v11, %v110_v12 }
  0x16   :  { %6266 = vmatpush1.bf16.msra.mxu0 %v7833_v42  ;;  %6610 = vmatpush1.bf16.msra.mxu1 %v7835_v43  ;;  %v109_v10 = vld [vmem:[%s12346_s1 + $0x260] sm:$0xff]  ;;  %v118_v20 = vld [vmem:[%s12346_s1 + $0x2a8] sm:$0xff] }
  0x17   :  { %6267 = vmatprep.subr.bf16.mxu0 %v7842_v44  ;;  %6611 = vmatprep.subr.bf16.mxu1 %v7844_v45  ;;  %v7874_v15 = vcombine.high %v105_v9, %v109_v10  ;;  %v113_v17 = vld [vmem:[%s12346_s1 + $0x280] sm:$0xff]  ;;  %v7873_v21 = vcombine.low %v105_v9, %v109_v10  ;;  %v7884_v24 = vcombine.high %v114_v19, %v118_v20  ;;  %v122_v27 = vld [vmem:[%s12346_s1 + $0x2c8] sm:$0xff] }
  0x18   :  { %v117_v18 = vld [vmem:[%s12346_s1 + $0x2a0] sm:$0xff]  ;;  %v126_v28 = vld [vmem:[%s12346_s1 + $0x2e8] sm:$0xff]  ;;  %v7883_v30 = vcombine.low %v114_v19, %v118_v20 }
  0x19   :  { %v7882_v23 = vcombine.high %v113_v17, %v117_v18  ;;  %v121_v25 = vld [vmem:[%s12346_s1 + $0x2c0] sm:$0xff]  ;;  %v7881_v29 = vcombine.low %v113_v17, %v117_v18  ;;  %v7892_v32 = vcombine.high %v122_v27, %v126_v28  ;;  %v130_v35 = vld [vmem:[%s12346_s1 + $0x308] sm:$0xff]  ;;  %v7891_v38 = vcombine.low %v122_v27, %v126_v28 }
  0x1a   :  { %6268 = vmatpush1.bf16.msra.mxu0 %v7841_v50  ;;  %6612 = vmatpush1.bf16.msra.mxu1 %v7843_v51  ;;  %v125_v26 = vld [vmem:[%s12346_s1 + $0x2e0] sm:$0xff]  ;;  %v134_v36 = vld [vmem:[%s12346_s1 + $0x328] sm:$0xff] }
  0x1b   :  { %6269 = vmatprep.subr.bf16.mxu0 %v7850_v52  ;;  %6613 = vmatprep.subr.bf16.mxu1 %v7852_v55  ;;  %v7890_v31 = vcombine.high %v121_v25, %v125_v26  ;;  %v129_v33 = vld [vmem:[%s12346_s1 + $0x300] sm:$0xff]  ;;  %v7889_v37 = vcombine.low %v121_v25, %v125_v26  ;;  %v7900_v40 = vcombine.high %v130_v35, %v134_v36  ;;  %v138_v43 = vld [vmem:[%s12346_s1 + $0x348] sm:$0xff] }
  0x1c   :  { %v133_v34 = vld [vmem:[%s12346_s1 + $0x320] sm:$0xff]  ;;  %v142_v44 = vld [vmem:[%s12346_s1 + $0x368] sm:$0xff]  ;;  %v7899_v46 = vcombine.low %v130_v35, %v134_v36 }
  0x1d   :  { %v7898_v39 = vcombine.high %v129_v33, %v133_v34  ;;  %v137_v41 = vld [vmem:[%s12346_s1 + $0x340] sm:$0xff]  ;;  %v7897_v45 = vcombine.low %v129_v33, %v133_v34  ;;  %v7908_v48 = vcombine.high %v138_v43, %v142_v44  ;;  %v146_v51 = vld [vmem:[%s12346_s1 + $0x388] sm:$0xff]  ;;  %v7907_v56 = vcombine.low %v138_v43, %v142_v44 }
  0x1e   :  { %6270 = vmatpush1.bf16.msra.mxu0 %v7849_v61  ;;  %6614 = vmatpush1.bf16.msra.mxu1 %v7851_v62  ;;  %v141_v42 = vld [vmem:[%s12346_s1 + $0x360] sm:$0xff]  ;;  %v150_v52 = vld [vmem:[%s12346_s1 + $0x3a8] sm:$0xff] }
  0x1f   :  { %6271 = vmatprep.subr.bf16.mxu0 %v7858_v63  ;;  %6615 = vmatprep.subr.bf16.mxu1 %v7860_v0  ;;  %v7906_v47 = vcombine.high %v137_v41, %v141_v42  ;;  %v145_v49 = vld [vmem:[%s12346_s1 + $0x380] sm:$0xff]  ;;  %v7905_v55 = vcombine.low %v137_v41, %v141_v42  ;;  %v7916_v59 = vcombine.high %v146_v51, %v150_v52  ;;  %v154_v62 = vld [vmem:[%s12346_s1 + $0x3c8] sm:$0xff] }
  0x20   :  { %v149_v50 = vld [vmem:[%s12346_s1 + $0x3a0] sm:$0xff]  ;;  %v158_v63 = vld [vmem:[%s12346_s1 + $0x3e8] sm:$0xff]  ;;  %v7915_v1 = vcombine.low %v146_v51, %v150_v52 }
  0x21   :  { %v7914_v57 = vcombine.high %v145_v49, %v149_v50  ;;  %v153_v60 = vld [vmem:[%s12346_s1 + $0x3c0] sm:$0xff]  ;;  %v7913_v0 = vcombine.low %v145_v49, %v149_v50  ;;  %v7924_v3 = vcombine.high %v154_v62, %v158_v63  ;;  %v7923_v9 = vcombine.low %v154_v62, %v158_v63  ;;  %v9203_v17 = vld [vmem:[%s12347_s0 + $0x8] sm:$0xff] }
  0x22   :  { %6272 = vmatpush1.bf16.msra.mxu0 %v7857_v5  ;;  %6616 = vmatpush1.bf16.msra.mxu1 %v7859_v6  ;;  %v157_v61 = vld [vmem:[%s12346_s1 + $0x3e0] sm:$0xff]  ;;  %v162_v6 = vld [vmem:[%s12346_s1 + $0x408] sm:$0xff] }
  0x23   :  { %6273 = vmatprep.subr.bf16.mxu0 %v7866_v7  ;;  %6617 = vmatprep.subr.bf16.mxu1 %v7868_v8  ;;  %v7922_v2 = vcombine.high %v153_v60, %v157_v61  ;;  %v161_v4 = vld [vmem:[%s12346_s1 + $0x400] sm:$0xff]  ;;  %v166_v7 = vld [vmem:[%s12346_s1 + $0x428] sm:$0xff]  ;;  %v7921_v8 = vcombine.low %v153_v60, %v157_v61 }
  0x24   :  { %v165_v5 = vld [vmem:[%s12346_s1 + $0x420] sm:$0xff]  ;;  %v7932_v11 = vcombine.high %v162_v6, %v166_v7  ;;  %v9208_v18 = vld [vmem:[%s12347_s0 + $0x48] sm:$0xff] }
  0x25   :  { %v7930_v10 = vcombine.high %v161_v4, %v165_v5  ;;  %v169_v12 = vld [vmem:[%s12346_s1 + $0x440] sm:$0xff]  ;;  %v7929_v19 = vcombine.low %v161_v4, %v165_v5  ;;  %v182_v25 = vld [vmem:[%s12346_s1 + $0x4a8] sm:$0xff] }
  0x26   :  { %6274 = vmatpush1.bf16.msra.mxu0 %v7865_v13  ;;  %6618 = vmatpush1.bf16.msra.mxu1 %v7867_v14  ;;  %v173_v13 = vld [vmem:[%s12346_s1 + $0x460] sm:$0xff]  ;;  %v170_v14 = vld [vmem:[%s12346_s1 + $0x448] sm:$0xff] }
  0x27   :  { %6275 = vmatprep.subr.bf16.mxu0 %v7874_v15  ;;  %6619 = vmatprep.subr.bf16.mxu1 %v7876_v16  ;;  %v9195_v15 = vcombine.low %v9051_v53, %v9056_v54  ;;  %v174_v16 = vld [vmem:[%s12346_s1 + $0x468] sm:$0xff]  ;;  %v7931_v53 = vcombine.low %v162_v6, %v166_v7  ;;  %v7938_v54 = vcombine.high %v169_v12, %v173_v13 }
  0x28   :  { %v7940_v20 = vcombine.high %v170_v14, %v174_v16  ;;  %v7937_v26 = vcombine.low %v169_v12, %v173_v13  ;;  %v7939_v27 = vcombine.low %v170_v14, %v174_v16  ;;  %v190_v33 = vld [vmem:[%s12346_s1 + $0x4e8] sm:$0xff] }
  0x29   :  { %v198_v41 = vld [vmem:[%s12346_s1 + $0x528] sm:$0xff] }
  0x2a   :  { %6276 = vmatpush1.bf16.msra.mxu0 %v7873_v21  ;;  %6620 = vmatpush1.bf16.msra.mxu1 %v7875_v22  ;;  %v177_v21 = vld [vmem:[%s12346_s1 + $0x480] sm:$0xff]  ;;  %v206_v49 = vld [vmem:[%s12346_s1 + $0x568] sm:$0xff] }
  0x2b   :  { %6277 = vmatprep.subr.bf16.mxu0 %v7882_v23  ;;  %6621 = vmatprep.subr.bf16.mxu1 %v7884_v24  ;;  %v181_v22 = vld [vmem:[%s12346_s1 + $0x4a0] sm:$0xff]  ;;  %v9218_v23 = vcombine.high %v9203_v17, %v9208_v18  ;;  %v178_v24 = vld [vmem:[%s12346_s1 + $0x488] sm:$0xff] }
  0x2c   :  { %v7946_v28 = vcombine.high %v177_v21, %v181_v22  ;;  %v7945_v34 = vcombine.low %v177_v21, %v181_v22  ;;  %v7947_v35 = vcombine.low %v178_v24, %v182_v25  ;;  %v214_v60 = vld [vmem:[%s12346_s1 + $0x5a8] sm:$0xff] }
  0x2d   :  { %v222_v4 = vld [vmem:[%s12346_s1 + $0x5e8] sm:$0xff] }
  0x2e   :  { %6278 = vmatpush1.bf16.msra.mxu0 %v7881_v29  ;;  %6622 = vmatpush1.bf16.msra.mxu1 %v7883_v30  ;;  %v7948_v29 = vcombine.high %v178_v24, %v182_v25  ;;  %v185_v30 = vld [vmem:[%s12346_s1 + $0x4c0] sm:$0xff]  ;;  %v230_v12 = vld [vmem:[%s12346_s1 + $0x628] sm:$0xff] }
  0x2f   :  { %6279 = vmatprep.subr.bf16.mxu0 %v7890_v31  ;;  %6623 = vmatprep.subr.bf16.mxu1 %v7892_v32  ;;  %v189_v31 = vld [vmem:[%s12346_s1 + $0x4e0] sm:$0xff]  ;;  %v186_v32 = vld [vmem:[%s12346_s1 + $0x4c8] sm:$0xff] }
  0x30   :  { %v7954_v36 = vcombine.high %v185_v30, %v189_v31  ;;  %v7953_v42 = vcombine.low %v185_v30, %v189_v31  ;;  %v7955_v43 = vcombine.low %v186_v32, %v190_v33  ;;  %v238_v21 = vld [vmem:[%s12346_s1 + $0x668] sm:$0xff] }
  0x31   :  { %v246_v30 = vld [vmem:[%s12346_s1 + $0x6a8] sm:$0xff] }
  0x32   :  { %6280 = vmatpush1.bf16.msra.mxu0 %v7889_v37  ;;  %6624 = vmatpush1.bf16.msra.mxu1 %v7891_v38  ;;  %v7956_v37 = vcombine.high %v186_v32, %v190_v33  ;;  %v193_v38 = vld [vmem:[%s12346_s1 + $0x500] sm:$0xff] }
  0x33   :  { %6281 = vmatprep.subr.bf16.mxu0 %v7898_v39  ;;  %6625 = vmatprep.subr.bf16.mxu1 %v7900_v40  ;;  %v197_v39 = vld [vmem:[%s12346_s1 + $0x520] sm:$0xff]  ;;  %v194_v40 = vld [vmem:[%s12346_s1 + $0x508] sm:$0xff] }
  0x34   :  { %v7962_v44 = vcombine.high %v193_v38, %v197_v39  ;;  %v7961_v50 = vcombine.low %v193_v38, %v197_v39  ;;  %v7963_v51 = vcombine.low %v194_v40, %v198_v41  ;;  %v254_v38 = vld [vmem:[%s12346_s1 + $0x6e8] sm:$0xff] }
  0x36   :  { %6282 = vmatpush1.bf16.msra.mxu0 %v7897_v45  ;;  %6626 = vmatpush1.bf16.msra.mxu1 %v7899_v46  ;;  %v7964_v45 = vcombine.high %v194_v40, %v198_v41  ;;  %v201_v46 = vld [vmem:[%s12346_s1 + $0x540] sm:$0xff] }
  0x37   :  { %6283 = vmatprep.subr.bf16.mxu0 %v7906_v47  ;;  %6627 = vmatprep.subr.bf16.mxu1 %v7908_v48  ;;  %v205_v47 = vld [vmem:[%s12346_s1 + $0x560] sm:$0xff]  ;;  %v202_v48 = vld [vmem:[%s12346_s1 + $0x548] sm:$0xff] }
  0x38   :  { %v7970_v52 = vcombine.high %v201_v46, %v205_v47  ;;  %v7969_v61 = vcombine.low %v201_v46, %v205_v47  ;;  %v7971_v62 = vcombine.low %v202_v48, %v206_v49  ;;  %v262_v46 = vld [vmem:[%s12346_s1 + $0x728] sm:$0xff] }
  0x3a   :  { %6284 = vmatpush1.bf16.msra.mxu0 %v7905_v55  ;;  %6628 = vmatpush1.bf16.msra.mxu1 %v7907_v56  ;;  %v7972_v55 = vcombine.high %v202_v48, %v206_v49  ;;  %v209_v56 = vld [vmem:[%s12346_s1 + $0x580] sm:$0xff] }
  0x3b   :  { %6285 = vmatprep.subr.bf16.mxu0 %v7914_v57  ;;  %6629 = vmatprep.subr.bf16.mxu1 %v7916_v59  ;;  %v213_v57 = vld [vmem:[%s12346_s1 + $0x5a0] sm:$0xff]  ;;  %v210_v59 = vld [vmem:[%s12346_s1 + $0x588] sm:$0xff] }
  0x3c   :  { %v7978_v63 = vcombine.high %v209_v56, %v213_v57  ;;  %v7977_v5 = vcombine.low %v209_v56, %v213_v57  ;;  %v7979_v6 = vcombine.low %v210_v59, %v214_v60  ;;  %v270_v56 = vld [vmem:[%s12346_s1 + $0x768] sm:$0xff] }
  0x3e   :  { %6286 = vmatpush1.bf16.msra.mxu0 %v7913_v0  ;;  %6630 = vmatpush1.bf16.msra.mxu1 %v7915_v1  ;;  %v7980_v0 = vcombine.high %v210_v59, %v214_v60  ;;  %v217_v1 = vld [vmem:[%s12346_s1 + $0x5c0] sm:$0xff] }
  0x3f   :  { %6287 = vmatprep.subr.bf16.mxu0 %v7922_v2  ;;  %6631 = vmatprep.subr.bf16.mxu1 %v7924_v3  ;;  %v221_v2 = vld [vmem:[%s12346_s1 + $0x5e0] sm:$0xff]  ;;  %v218_v3 = vld [vmem:[%s12346_s1 + $0x5c8] sm:$0xff] }
  0x40   :  { %v7986_v7 = vcombine.high %v217_v1, %v221_v2  ;;  %v7985_v13 = vcombine.low %v217_v1, %v221_v2  ;;  %v7987_v14 = vcombine.low %v218_v3, %v222_v4  ;;  %v278_v1 = vld [vmem:[%s12346_s1 + $0x7a8] sm:$0xff] }
  0x42   :  { %6288 = vmatpush1.bf16.msra.mxu0 %v7921_v8  ;;  %6632 = vmatpush1.bf16.msra.mxu1 %v7923_v9  ;;  %v7988_v8 = vcombine.high %v218_v3, %v222_v4  ;;  %v225_v9 = vld [vmem:[%s12346_s1 + $0x600] sm:$0xff] }
  0x43   :  { %6300 = vmatprep.subr.bf16.mxu0 %v7930_v10  ;;  %6644 = vmatprep.subr.bf16.mxu1 %v7932_v11  ;;  %v229_v10 = vld [vmem:[%s12346_s1 + $0x620] sm:$0xff]  ;;  %v226_v11 = vld [vmem:[%s12346_s1 + $0x608] sm:$0xff] }
  0x44   :  { %v7994_v16 = vcombine.high %v225_v9, %v229_v10  ;;  %v7993_v22 = vcombine.low %v225_v9, %v229_v10  ;;  %v7995_v24 = vcombine.low %v226_v11, %v230_v12  ;;  %v286_v9 = vld [vmem:[%s12346_s1 + $0x7e8] sm:$0xff] }
  0x45   :  { %6290 = vmatmul.mubr.bf16.vlgmr.msra.gmra.mrb[0].mxu0 %v9195_v15  ;;  %6634 = vmatmul.mubr.bf16.vlgmr.msra.gmra.mrb[0].mxu1 %v9195_v15 }
  0x46   :  { %6301 = vmatpush1.bf16.msra.mxu0 %v7929_v19  ;;  %6645 = vmatpush1.bf16.msra.mxu1 %v7931_v53  ;;  %v7996_v19 = vcombine.high %v226_v11, %v230_v12  ;;  %v233_v53 = vld [vmem:[%s12346_s1 + $0x640] sm:$0xff] }
  0x47   :  { %6302 = vmatprep.subr.bf16.mxu0 %v7938_v54  ;;  %6646 = vmatprep.subr.bf16.mxu1 %v7940_v20  ;;  %v237_v54 = vld [vmem:[%s12346_s1 + $0x660] sm:$0xff]  ;;  %v234_v20 = vld [vmem:[%s12346_s1 + $0x648] sm:$0xff] }
  0x48   :  { %6332 = vmatprep.mubr.bf16.mxu0 %v9218_v23  ;;  %6676 = vmatprep.mubr.bf16.mxu1 %v9218_v23  ;;  %v8002_v25 = vcombine.high %v233_v53, %v237_v54  ;;  %v8001_v31 = vcombine.low %v233_v53, %v237_v54  ;;  %v8003_v32 = vcombine.low %v234_v20, %v238_v21  ;;  %v294_v53 = vld [vmem:[%s12346_s1 + $0x828] sm:$0xff] }
  0x4a   :  { %6303 = vmatpush1.bf16.msra.mxu0 %v7937_v26  ;;  %6647 = vmatpush1.bf16.msra.mxu1 %v7939_v27  ;;  %v8004_v26 = vcombine.high %v234_v20, %v238_v21  ;;  %v241_v27 = vld [vmem:[%s12346_s1 + $0x680] sm:$0xff] }
  0x4b   :  { %6304 = vmatprep.subr.bf16.mxu0 %v7946_v28  ;;  %6648 = vmatprep.subr.bf16.mxu1 %v7948_v29  ;;  %v245_v28 = vld [vmem:[%s12346_s1 + $0x6a0] sm:$0xff]  ;;  %v242_v29 = vld [vmem:[%s12346_s1 + $0x688] sm:$0xff] }
  0x4c   :  { %v8010_v33 = vcombine.high %v241_v27, %v245_v28  ;;  %v8009_v39 = vcombine.low %v241_v27, %v245_v28  ;;  %v8011_v40 = vcombine.low %v242_v29, %v246_v30  ;;  %v9409_v27 = vcombine.low %v9203_v17, %v9208_v18  ;;  %v302_v28 = vld [vmem:[%s12346_s1 + $0x868] sm:$0xff] }
  0x4e   :  { %6305 = vmatpush1.bf16.msra.mxu0 %v7945_v34  ;;  %6649 = vmatpush1.bf16.msra.mxu1 %v7947_v35  ;;  %v8012_v34 = vcombine.high %v242_v29, %v246_v30  ;;  %v249_v35 = vld [vmem:[%s12346_s1 + $0x6c0] sm:$0xff]  ;;  %v9417_v29 = vld [vmem:[%s12347_s0 + $0x10] sm:$0xff] }
  0x4f   :  { %6306 = vmatprep.subr.bf16.mxu0 %v7954_v36  ;;  %6650 = vmatprep.subr.bf16.mxu1 %v7956_v37  ;;  %v253_v36 = vld [vmem:[%s12346_s1 + $0x6e0] sm:$0xff]  ;;  %v250_v37 = vld [vmem:[%s12346_s1 + $0x6c8] sm:$0xff]  ;;  %v9422_v30 = vld [vmem:[%s12347_s0 + $0x50] sm:$0xff] }
  0x50   :  { %v8018_v41 = vcombine.high %v249_v35, %v253_v36  ;;  %v8017_v47 = vcombine.low %v249_v35, %v253_v36  ;;  %v8019_v48 = vcombine.low %v250_v37, %v254_v38  ;;  %v9432_v35 = vcombine.high %v9417_v29, %v9422_v30  ;;  %v306_v36 = vld [vmem:[%s12346_s1 + $0x888] sm:$0xff] }
  0x52   :  { %6307 = vmatpush1.bf16.msra.mxu0 %v7953_v42  ;;  %6651 = vmatpush1.bf16.msra.mxu1 %v7955_v43  ;;  %v8020_v42 = vcombine.high %v250_v37, %v254_v38  ;;  %v257_v43 = vld [vmem:[%s12346_s1 + $0x700] sm:$0xff]  ;;  %v310_v37 = vld [vmem:[%s12346_s1 + $0x8a8] sm:$0xff] }
  0x53   :  { %6308 = vmatprep.subr.bf16.mxu0 %v7962_v44  ;;  %6652 = vmatprep.subr.bf16.mxu1 %v7964_v45  ;;  %v261_v44 = vld [vmem:[%s12346_s1 + $0x720] sm:$0xff]  ;;  %v258_v45 = vld [vmem:[%s12346_s1 + $0x708] sm:$0xff] }
  0x54   :  { %v8026_v49 = vcombine.high %v257_v43, %v261_v44  ;;  %v8025_v57 = vcombine.low %v257_v43, %v261_v44  ;;  %v8027_v59 = vcombine.low %v258_v45, %v262_v46  ;;  %v317_v43 = vld [vmem:[%s12346_s1 + $0x8e0] sm:$0xff]  ;;  %v314_v44 = vld [vmem:[%s12346_s1 + $0x8c8] sm:$0xff] }
  0x56   :  { %6309 = vmatpush1.bf16.msra.mxu0 %v7961_v50  ;;  %6653 = vmatpush1.bf16.msra.mxu1 %v7963_v51  ;;  %v8028_v50 = vcombine.high %v258_v45, %v262_v46  ;;  %v265_v51 = vld [vmem:[%s12346_s1 + $0x740] sm:$0xff]  ;;  %v318_v45 = vld [vmem:[%s12346_s1 + $0x8e8] sm:$0xff] }
  0x57   :  { %6310 = vmatprep.subr.bf16.mxu0 %v7970_v52  ;;  %6654 = vmatprep.subr.bf16.mxu1 %v7972_v55  ;;  %v269_v52 = vld [vmem:[%s12346_s1 + $0x760] sm:$0xff]  ;;  %v266_v55 = vld [vmem:[%s12346_s1 + $0x748] sm:$0xff] }
  0x58   :  { %v8034_v60 = vcombine.high %v265_v51, %v269_v52  ;;  %v8033_v2 = vcombine.low %v265_v51, %v269_v52  ;;  %v8035_v3 = vcombine.low %v266_v55, %v270_v56  ;;  %v325_v51 = vld [vmem:[%s12346_s1 + $0x920] sm:$0xff]  ;;  %v322_v52 = vld [vmem:[%s12346_s1 + $0x908] sm:$0xff] }
  0x5a   :  { %6311 = vmatpush1.bf16.msra.mxu0 %v7969_v61  ;;  %6655 = vmatpush1.bf16.msra.mxu1 %v7971_v62  ;;  %v8036_v61 = vcombine.high %v266_v55, %v270_v56  ;;  %v273_v62 = vld [vmem:[%s12346_s1 + $0x780] sm:$0xff]  ;;  %v326_v55 = vld [vmem:[%s12346_s1 + $0x928] sm:$0xff] }
  0x5b   :  { %6312 = vmatprep.subr.bf16.mxu0 %v7978_v63  ;;  %6656 = vmatprep.subr.bf16.mxu1 %v7980_v0  ;;  %v277_v63 = vld [vmem:[%s12346_s1 + $0x7a0] sm:$0xff]  ;;  %v274_v0 = vld [vmem:[%s12346_s1 + $0x788] sm:$0xff] }
  0x5c   :  { %v8042_v4 = vcombine.high %v273_v62, %v277_v63  ;;  %v8041_v10 = vcombine.low %v273_v62, %v277_v63  ;;  %v8043_v11 = vcombine.low %v274_v0, %v278_v1  ;;  %v333_v62 = vld [vmem:[%s12346_s1 + $0x960] sm:$0xff]  ;;  %v330_v63 = vld [vmem:[%s12346_s1 + $0x948] sm:$0xff] }
  0x5e   :  { %6313 = vmatpush1.bf16.msra.mxu0 %v7977_v5  ;;  %6657 = vmatpush1.bf16.msra.mxu1 %v7979_v6  ;;  %v8044_v5 = vcombine.high %v274_v0, %v278_v1  ;;  %v281_v6 = vld [vmem:[%s12346_s1 + $0x7c0] sm:$0xff]  ;;  %v334_v0 = vld [vmem:[%s12346_s1 + $0x968] sm:$0xff] }
  0x5f   :  { %6314 = vmatprep.subr.bf16.mxu0 %v7986_v7  ;;  %6658 = vmatprep.subr.bf16.mxu1 %v7988_v8  ;;  %v285_v7 = vld [vmem:[%s12346_s1 + $0x7e0] sm:$0xff]  ;;  %v282_v8 = vld [vmem:[%s12346_s1 + $0x7c8] sm:$0xff] }
  0x60   :  { %v8050_v12 = vcombine.high %v281_v6, %v285_v7  ;;  %v8049_v54 = vcombine.low %v281_v6, %v285_v7  ;;  %v8051_v20 = vcombine.low %v282_v8, %v286_v9  ;;  %v341_v6 = vld [vmem:[%s12346_s1 + $0x9a0] sm:$0xff]  ;;  %v338_v7 = vld [vmem:[%s12346_s1 + $0x988] sm:$0xff] }
  0x62   :  { %6315 = vmatpush1.bf16.msra.mxu0 %v7985_v13  ;;  %6659 = vmatpush1.bf16.msra.mxu1 %v7987_v14  ;;  %v8052_v13 = vcombine.high %v282_v8, %v286_v9  ;;  %v289_v14 = vld [vmem:[%s12346_s1 + $0x800] sm:$0xff]  ;;  %v342_v8 = vld [vmem:[%s12346_s1 + $0x9a8] sm:$0xff] }
  0x63   :  { %6316 = vmatprep.subr.bf16.mxu0 %v7994_v16  ;;  %6660 = vmatprep.subr.bf16.mxu1 %v7996_v19  ;;  %v293_v16 = vld [vmem:[%s12346_s1 + $0x820] sm:$0xff]  ;;  %v290_v19 = vld [vmem:[%s12346_s1 + $0x808] sm:$0xff] }
  0x64   :  { %v8058_v21 = vcombine.high %v289_v14, %v293_v16  ;;  %v8059_v17 = vcombine.low %v290_v19, %v294_v53 }
  0x66   :  { %6317 = vmatpush1.bf16.msra.mxu0 %v7993_v22  ;;  %6661 = vmatpush1.bf16.msra.mxu1 %v7995_v24  ;;  %v8060_v22 = vcombine.high %v290_v19, %v294_v53  ;;  %v297_v24 = vld [vmem:[%s12346_s1 + $0x840] sm:$0xff]  ;;  %v350_v19 = vld [vmem:[%s12346_s1 + $0x9e8] sm:$0xff] }
  0x67   :  { %6318 = vmatprep.subr.bf16.mxu0 %v8002_v25  ;;  %6662 = vmatprep.subr.bf16.mxu1 %v8004_v26  ;;  %v301_v25 = vld [vmem:[%s12346_s1 + $0x860] sm:$0xff]  ;;  %v298_v26 = vld [vmem:[%s12346_s1 + $0x848] sm:$0xff] }
  0x68   :  { %v8066_v18 = vcombine.high %v297_v24, %v301_v25  ;;  %v8065_v38 = vcombine.low %v297_v24, %v301_v25  ;;  %v357_v24 = vld [vmem:[%s12346_s1 + $0xa20] sm:$0xff]  ;;  %v354_v25 = vld [vmem:[%s12346_s1 + $0xa08] sm:$0xff] }
  0x6a   :  { %6319 = vmatpush1.bf16.msra.mxu0 %v8001_v31  ;;  %6663 = vmatpush1.bf16.msra.mxu1 %v8003_v32  ;;  %v8057_v31 = vcombine.low %v289_v14, %v293_v16  ;;  %v8068_v32 = vcombine.high %v298_v26, %v302_v28  ;;  %v349_v14 = vld [vmem:[%s12346_s1 + $0x9e0] sm:$0xff]  ;;  %v346_v16 = vld [vmem:[%s12346_s1 + $0x9c8] sm:$0xff] }
  0x6b   :  { %6320 = vmatprep.subr.bf16.mxu0 %v8010_v33  ;;  %6664 = vmatprep.subr.bf16.mxu1 %v8012_v34  ;;  %v305_v33 = vld [vmem:[%s12346_s1 + $0x880] sm:$0xff] }
  0x6c   :  { %v309_v34 = vld [vmem:[%s12346_s1 + $0x8a0] sm:$0xff] }
  0x6d   :  { %v8073_v46 = vcombine.low %v305_v33, %v309_v34 }
  0x6e   :  { %6321 = vmatpush1.bf16.msra.mxu0 %v8009_v39  ;;  %6665 = vmatpush1.bf16.msra.mxu1 %v8011_v40  ;;  %v8067_v39 = vcombine.low %v298_v26, %v302_v28  ;;  %v8074_v40 = vcombine.high %v305_v33, %v309_v34  ;;  %v358_v26 = vld [vmem:[%s12346_s1 + $0xa28] sm:$0xff]  ;;  %v365_v33 = vld [vmem:[%s12346_s1 + $0xa60] sm:$0xff] }
  0x6f   :  { %6322 = vmatprep.subr.bf16.mxu0 %v8018_v41  ;;  %6666 = vmatprep.subr.bf16.mxu1 %v8020_v42  ;;  %v8076_v41 = vcombine.high %v306_v36, %v310_v37  ;;  %v313_v42 = vld [vmem:[%s12346_s1 + $0x8c0] sm:$0xff]  ;;  %v362_v34 = vld [vmem:[%s12346_s1 + $0xa48] sm:$0xff] }
  0x70   :  { %v8081_v56 = vcombine.low %v313_v42, %v317_v43 }
  0x72   :  { %6323 = vmatpush1.bf16.msra.mxu0 %v8017_v47  ;;  %6667 = vmatpush1.bf16.msra.mxu1 %v8019_v48  ;;  %v8075_v47 = vcombine.low %v306_v36, %v310_v37  ;;  %v8082_v48 = vcombine.high %v313_v42, %v317_v43  ;;  %v366_v36 = vld [vmem:[%s12346_s1 + $0xa68] sm:$0xff]  ;;  %v373_v42 = vld [vmem:[%s12346_s1 + $0xaa0] sm:$0xff] }
  0x73   :  { %6324 = vmatprep.subr.bf16.mxu0 %v8026_v49  ;;  %6668 = vmatprep.subr.bf16.mxu1 %v8028_v50  ;;  %v8084_v49 = vcombine.high %v314_v44, %v318_v45  ;;  %v321_v50 = vld [vmem:[%s12346_s1 + $0x900] sm:$0xff]  ;;  %v370_v43 = vld [vmem:[%s12346_s1 + $0xa88] sm:$0xff] }
  0x74   :  { %v8089_v1 = vcombine.low %v321_v50, %v325_v51 }
  0x76   :  { %6325 = vmatpush1.bf16.msra.mxu0 %v8025_v57  ;;  %6669 = vmatpush1.bf16.msra.mxu1 %v8027_v59  ;;  %v8083_v57 = vcombine.low %v314_v44, %v318_v45  ;;  %v8090_v59 = vcombine.high %v321_v50, %v325_v51  ;;  %v374_v44 = vld [vmem:[%s12346_s1 + $0xaa8] sm:$0xff]  ;;  %v381_v50 = vld [vmem:[%s12346_s1 + $0xae0] sm:$0xff] }
  0x77   :  { %6326 = vmatprep.subr.bf16.mxu0 %v8034_v60  ;;  %6670 = vmatprep.subr.bf16.mxu1 %v8036_v61  ;;  %v8092_v60 = vcombine.high %v322_v52, %v326_v55  ;;  %v329_v61 = vld [vmem:[%s12346_s1 + $0x940] sm:$0xff]  ;;  %v378_v51 = vld [vmem:[%s12346_s1 + $0xac8] sm:$0xff] }
  0x78   :  { %v8097_v9 = vcombine.low %v329_v61, %v333_v62 }
  0x7a   :  { %6327 = vmatpush1.bf16.msra.mxu0 %v8033_v2  ;;  %6671 = vmatpush1.bf16.msra.mxu1 %v8035_v3  ;;  %v8091_v2 = vcombine.low %v322_v52, %v326_v55  ;;  %v8098_v3 = vcombine.high %v329_v61, %v333_v62  ;;  %v382_v52 = vld [vmem:[%s12346_s1 + $0xae8] sm:$0xff]  ;;  %v389_v61 = vld [vmem:[%s12346_s1 + $0xb20] sm:$0xff] }
  0x7b   :  { %6328 = vmatprep.subr.bf16.mxu0 %v8042_v4  ;;  %6672 = vmatprep.subr.bf16.mxu1 %v8044_v5  ;;  %v8100_v4 = vcombine.high %v330_v63, %v334_v0  ;;  %v337_v5 = vld [vmem:[%s12346_s1 + $0x980] sm:$0xff]  ;;  %v386_v62 = vld [vmem:[%s12346_s1 + $0xb08] sm:$0xff] }
  0x7c   :  { %v8105_v53 = vcombine.low %v337_v5, %v341_v6 }
  0x7e   :  { %6329 = vmatpush1.bf16.msra.mxu0 %v8041_v10  ;;  %6673 = vmatpush1.bf16.msra.mxu1 %v8043_v11  ;;  %v8099_v10 = vcombine.low %v330_v63, %v334_v0  ;;  %v8106_v11 = vcombine.high %v337_v5, %v341_v6  ;;  %v390_v63 = vld [vmem:[%s12346_s1 + $0xb28] sm:$0xff]  ;;  %v397_v5 = vld [vmem:[%s12346_s1 + $0xb60] sm:$0xff] }
  0x7f   :  { %6330 = vmatprep.subr.bf16.mxu0 %v8050_v12  ;;  %6674 = vmatprep.subr.bf16.mxu1 %v8052_v13  ;;  %v8108_v12 = vcombine.high %v338_v7, %v342_v8  ;;  %v345_v13 = vld [vmem:[%s12346_s1 + $0x9c0] sm:$0xff]  ;;  %v394_v6 = vld [vmem:[%s12346_s1 + $0xb48] sm:$0xff] }
  0x80   :  { %v8113_v28 = vcombine.low %v345_v13, %v349_v14 }
  0x82   :  { %6331 = vmatpush1.bf16.msra.mxu0 %v8049_v54  ;;  %6675 = vmatpush1.bf16.msra.mxu1 %v8051_v20  ;;  %v8107_v54 = vcombine.low %v338_v7, %v342_v8  ;;  %v8114_v20 = vcombine.high %v345_v13, %v349_v14  ;;  %v398_v7 = vld [vmem:[%s12346_s1 + $0xb68] sm:$0xff]  ;;  %v405_v13 = vld [vmem:[%s12346_s1 + $0xba0] sm:$0xff] }
  0x83   :  { %6343 = vmatprep.subr.bf16.mxu0 %v8058_v21  ;;  %6687 = vmatprep.subr.bf16.mxu1 %v8060_v22  ;;  %v8116_v21 = vcombine.high %v346_v16, %v350_v19  ;;  %v353_v22 = vld [vmem:[%s12346_s1 + $0xa00] sm:$0xff]  ;;  %v402_v14 = vld [vmem:[%s12346_s1 + $0xb88] sm:$0xff] }
  0x84   :  { %v8121_v37 = vcombine.low %v353_v22, %v357_v24 }
  0x85   :  { %6333 = vmatmul.mubr.bf16.vlgmr.msra.gmra.mrb[0].mxu0 %v9409_v27  ;;  %6677 = vmatmul.mubr.bf16.vlgmr.msra.gmra.mrb[0].mxu1 %v9409_v27 }
  0x86   :  { %6344 = vmatpush1.bf16.msra.mxu0 %v8057_v31  ;;  %6688 = vmatpush1.bf16.msra.mxu1 %v8059_v17  ;;  %v8115_v31 = vcombine.low %v346_v16, %v350_v19  ;;  %v8122_v17 = vcombine.high %v353_v22, %v357_v24  ;;  %v406_v16 = vld [vmem:[%s12346_s1 + $0xba8] sm:$0xff]  ;;  %v413_v22 = vld [vmem:[%s12346_s1 + $0xbe0] sm:$0xff] }
  0x87   :  { %6345 = vmatprep.subr.bf16.mxu0 %v8066_v18  ;;  %6689 = vmatprep.subr.bf16.mxu1 %v8068_v32  ;;  %v8124_v18 = vcombine.high %v354_v25, %v358_v26  ;;  %v361_v32 = vld [vmem:[%s12346_s1 + $0xa40] sm:$0xff]  ;;  %v410_v24 = vld [vmem:[%s12346_s1 + $0xbc8] sm:$0xff] }
  0x88   :  { %6375 = vmatprep.mubr.bf16.mxu0 %v9432_v35  ;;  %6719 = vmatprep.mubr.bf16.mxu1 %v9432_v35  ;;  %v8129_v45 = vcombine.low %v361_v32, %v365_v33 }
  0x8a   :  { %6346 = vmatpush1.bf16.msra.mxu0 %v8065_v38  ;;  %6690 = vmatpush1.bf16.msra.mxu1 %v8067_v39  ;;  %v8123_v38 = vcombine.low %v354_v25, %v358_v26  ;;  %v8130_v39 = vcombine.high %v361_v32, %v365_v33  ;;  %v414_v25 = vld [vmem:[%s12346_s1 + $0xbe8] sm:$0xff]  ;;  %v421_v32 = vld [vmem:[%s12346_s1 + $0xc20] sm:$0xff] }
  0x8b   :  { %6347 = vmatprep.subr.bf16.mxu0 %v8074_v40  ;;  %6691 = vmatprep.subr.bf16.mxu1 %v8076_v41  ;;  %v8132_v40 = vcombine.high %v362_v34, %v366_v36  ;;  %v369_v41 = vld [vmem:[%s12346_s1 + $0xa80] sm:$0xff]  ;;  %v418_v33 = vld [vmem:[%s12346_s1 + $0xc08] sm:$0xff] }
  0x8c   :  { %v8137_v55 = vcombine.low %v369_v41, %v373_v42 }
  0x8e   :  { %6348 = vmatpush1.bf16.msra.mxu0 %v8073_v46  ;;  %6692 = vmatpush1.bf16.msra.mxu1 %v8075_v47  ;;  %v8131_v46 = vcombine.low %v362_v34, %v366_v36  ;;  %v8138_v47 = vcombine.high %v369_v41, %v373_v42  ;;  %v422_v34 = vld [vmem:[%s12346_s1 + $0xc28] sm:$0xff]  ;;  %v429_v41 = vld [vmem:[%s12346_s1 + $0xc60] sm:$0xff] }
  0x8f   :  { %6349 = vmatprep.subr.bf16.mxu0 %v8082_v48  ;;  %6693 = vmatprep.subr.bf16.mxu1 %v8084_v49  ;;  %v8140_v48 = vcombine.high %v370_v43, %v374_v44  ;;  %v377_v49 = vld [vmem:[%s12346_s1 + $0xac0] sm:$0xff]  ;;  %v426_v42 = vld [vmem:[%s12346_s1 + $0xc48] sm:$0xff] }
  0x90   :  { %v8145_v0 = vcombine.low %v377_v49, %v381_v50 }
  0x92   :  { %6350 = vmatpush1.bf16.msra.mxu0 %v8081_v56  ;;  %6694 = vmatpush1.bf16.msra.mxu1 %v8083_v57  ;;  %v8139_v56 = vcombine.low %v370_v43, %v374_v44  ;;  %v8146_v57 = vcombine.high %v377_v49, %v381_v50  ;;  %v9623_v43 = vcombine.low %v9417_v29, %v9422_v30  ;;  %v430_v44 = vld [vmem:[%s12346_s1 + $0xc68] sm:$0xff]  ;;  %v433_v49 = vld [vmem:[%s12346_s1 + $0xc80] sm:$0xff] }
  0x93   :  { %6351 = vmatprep.subr.bf16.mxu0 %v8090_v59  ;;  %6695 = vmatprep.subr.bf16.mxu1 %v8092_v60  ;;  %v8148_v59 = vcombine.high %v378_v51, %v382_v52  ;;  %v385_v60 = vld [vmem:[%s12346_s1 + $0xb00] sm:$0xff]  ;;  %v8187_v29 = vcombine.low %v418_v33, %v422_v34 }
  0x94   :  { %v8153_v8 = vcombine.low %v385_v60, %v389_v61  ;;  %v437_v50 = vld [vmem:[%s12346_s1 + $0xca0] sm:$0xff] }
  0x96   :  { %6352 = vmatpush1.bf16.msra.mxu0 %v8089_v1  ;;  %6696 = vmatpush1.bf16.msra.mxu1 %v8091_v2  ;;  %v8147_v1 = vcombine.low %v378_v51, %v382_v52  ;;  %v8154_v2 = vcombine.high %v385_v60, %v389_v61  ;;  %v434_v52 = vld [vmem:[%s12346_s1 + $0xc88] sm:$0xff]  ;;  %v441_v61 = vld [vmem:[%s12346_s1 + $0xcc0] sm:$0xff] }
  0x97   :  { %6353 = vmatprep.subr.bf16.mxu0 %v8098_v3  ;;  %6697 = vmatprep.subr.bf16.mxu1 %v8100_v4  ;;  %v8156_v3 = vcombine.high %v386_v62, %v390_v63  ;;  %v393_v4 = vld [vmem:[%s12346_s1 + $0xb40] sm:$0xff] }
  0x98   :  { %v8161_v19 = vcombine.low %v393_v4, %v397_v5 }
  0x9a   :  { %6354 = vmatpush1.bf16.msra.mxu0 %v8097_v9  ;;  %6698 = vmatpush1.bf16.msra.mxu1 %v8099_v10  ;;  %v8155_v9 = vcombine.low %v386_v62, %v390_v63  ;;  %v8162_v10 = vcombine.high %v393_v4, %v397_v5  ;;  %v445_v62 = vld [vmem:[%s12346_s1 + $0xce0] sm:$0xff]  ;;  %v442_v63 = vld [vmem:[%s12346_s1 + $0xcc8] sm:$0xff] }
  0x9b   :  { %6355 = vmatprep.subr.bf16.mxu0 %v8106_v11  ;;  %6699 = vmatprep.subr.bf16.mxu1 %v8108_v12  ;;  %v8164_v11 = vcombine.high %v394_v6, %v398_v7  ;;  %v401_v12 = vld [vmem:[%s12346_s1 + $0xb80] sm:$0xff] }
  0x9c   :  { %v8169_v26 = vcombine.low %v401_v12, %v405_v13  ;;  %v449_v5 = vld [vmem:[%s12346_s1 + $0xd00] sm:$0xff] }
  0x9e   :  { %6356 = vmatpush1.bf16.msra.mxu0 %v8105_v53  ;;  %6700 = vmatpush1.bf16.msra.mxu1 %v8107_v54  ;;  %v8163_v53 = vcombine.low %v394_v6, %v398_v7  ;;  %v8170_v54 = vcombine.high %v401_v12, %v405_v13  ;;  %v453_v6 = vld [vmem:[%s12346_s1 + $0xd20] sm:$0xff]  ;;  %v450_v7 = vld [vmem:[%s12346_s1 + $0xd08] sm:$0xff] }
  0x9f   :  { %6357 = vmatprep.subr.bf16.mxu0 %v8114_v20  ;;  %6701 = vmatprep.subr.bf16.mxu1 %v8116_v21  ;;  %v8172_v20 = vcombine.high %v402_v14, %v406_v16  ;;  %v409_v21 = vld [vmem:[%s12346_s1 + $0xbc0] sm:$0xff] }
  0xa0   :  { %v8177_v36 = vcombine.low %v409_v21, %v413_v22  ;;  %v457_v13 = vld [vmem:[%s12346_s1 + $0xd40] sm:$0xff] }
  0xa2   :  { %6358 = vmatpush1.bf16.msra.mxu0 %v8113_v28  ;;  %6702 = vmatpush1.bf16.msra.mxu1 %v8115_v31  ;;  %v8171_v28 = vcombine.low %v402_v14, %v406_v16  ;;  %v8178_v31 = vcombine.high %v409_v21, %v413_v22  ;;  %v461_v14 = vld [vmem:[%s12346_s1 + $0xd60] sm:$0xff]  ;;  %v458_v16 = vld [vmem:[%s12346_s1 + $0xd48] sm:$0xff] }
  0xa3   :  { %6359 = vmatprep.subr.bf16.mxu0 %v8122_v17  ;;  %6703 = vmatprep.subr.bf16.mxu1 %v8124_v18  ;;  %v8180_v17 = vcombine.high %v410_v24, %v414_v25  ;;  %v417_v18 = vld [vmem:[%s12346_s1 + $0xc00] sm:$0xff] }
  0xa4   :  { %v465_v22 = vld [vmem:[%s12346_s1 + $0xd80] sm:$0xff] }
  0xa6   :  { %6360 = vmatpush1.bf16.msra.mxu0 %v8121_v37  ;;  %6704 = vmatpush1.bf16.msra.mxu1 %v8123_v38  ;;  %v8179_v37 = vcombine.low %v410_v24, %v414_v25  ;;  %v8186_v38 = vcombine.high %v417_v18, %v421_v32  ;;  %v469_v24 = vld [vmem:[%s12346_s1 + $0xda0] sm:$0xff]  ;;  %v466_v25 = vld [vmem:[%s12346_s1 + $0xd88] sm:$0xff] }
  0xa7   :  { %6361 = vmatprep.subr.bf16.mxu0 %v8130_v39  ;;  %6705 = vmatprep.subr.bf16.mxu1 %v8132_v40  ;;  %v8188_v39 = vcombine.high %v418_v33, %v422_v34  ;;  %v425_v40 = vld [vmem:[%s12346_s1 + $0xc40] sm:$0xff]  ;;  %v474_v34 = vld [vmem:[%s12346_s1 + $0xdc8] sm:$0xff] }
  0xa8   :  { %v8194_v30 = vcombine.high %v425_v40, %v429_v41  ;;  %v477_v33 = vld [vmem:[%s12346_s1 + $0xde0] sm:$0xff] }
  0xaa   :  { %6362 = vmatpush1.bf16.msra.mxu0 %v8129_v45  ;;  %6706 = vmatpush1.bf16.msra.mxu1 %v8131_v46  ;;  %v9631_v45 = vld [vmem:[%s12347_s0 + $0x18] sm:$0xff] }
  0xab   :  { %6363 = vmatprep.subr.bf16.mxu0 %v8138_v47  ;;  %6707 = vmatprep.subr.bf16.mxu1 %v8140_v48  ;;  %v9636_v46 = vld [vmem:[%s12347_s0 + $0x58] sm:$0xff]  ;;  %v8185_v47 = vcombine.low %v417_v18, %v421_v32  ;;  %v8196_v48 = vcombine.high %v426_v42, %v430_v44  ;;  %v473_v32 = vld [vmem:[%s12346_s1 + $0xdc0] sm:$0xff] }
  0xac   :  { %v9646_v51 = vcombine.high %v9631_v45, %v9636_v46 }
  0xae   :  { %6364 = vmatpush1.bf16.msra.mxu0 %v8137_v55  ;;  %6708 = vmatpush1.bf16.msra.mxu1 %v8139_v56  ;;  %v438_v55 = vld [vmem:[%s12346_s1 + $0xca8] sm:$0xff]  ;;  %v8193_v56 = vcombine.low %v425_v40, %v429_v41  ;;  %v481_v41 = vld [vmem:[%s12346_s1 + $0xe00] sm:$0xff] }
  0xaf   :  { %6365 = vmatprep.subr.bf16.mxu0 %v8146_v57  ;;  %6709 = vmatprep.subr.bf16.mxu1 %v8148_v59  ;;  %v8195_v57 = vcombine.low %v426_v42, %v430_v44  ;;  %v8202_v59 = vcombine.high %v433_v49, %v437_v50  ;;  %v8204_v60 = vcombine.high %v434_v52, %v438_v55  ;;  %v485_v42 = vld [vmem:[%s12346_s1 + $0xe20] sm:$0xff]  ;;  %v482_v44 = vld [vmem:[%s12346_s1 + $0xe08] sm:$0xff] }
  0xb2   :  { %6366 = vmatpush1.bf16.msra.mxu0 %v8145_v0  ;;  %6710 = vmatpush1.bf16.msra.mxu1 %v8147_v1  ;;  %v446_v0 = vld [vmem:[%s12346_s1 + $0xce8] sm:$0xff]  ;;  %v8201_v1 = vcombine.low %v433_v49, %v437_v50  ;;  %v489_v50 = vld [vmem:[%s12346_s1 + $0xe40] sm:$0xff] }
  0xb3   :  { %6367 = vmatprep.subr.bf16.mxu0 %v8154_v2  ;;  %6711 = vmatprep.subr.bf16.mxu1 %v8156_v3  ;;  %v8203_v2 = vcombine.low %v434_v52, %v438_v55  ;;  %v8210_v3 = vcombine.high %v441_v61, %v445_v62  ;;  %v8212_v4 = vcombine.high %v442_v63, %v446_v0  ;;  %v493_v52 = vld [vmem:[%s12346_s1 + $0xe60] sm:$0xff]  ;;  %v490_v55 = vld [vmem:[%s12346_s1 + $0xe48] sm:$0xff] }
  0xb6   :  { %6368 = vmatpush1.bf16.msra.mxu0 %v8153_v8  ;;  %6712 = vmatpush1.bf16.msra.mxu1 %v8155_v9  ;;  %v454_v8 = vld [vmem:[%s12346_s1 + $0xd28] sm:$0xff]  ;;  %v8209_v9 = vcombine.low %v441_v61, %v445_v62  ;;  %v497_v62 = vld [vmem:[%s12346_s1 + $0xe80] sm:$0xff] }
  0xb7   :  { %6369 = vmatprep.subr.bf16.mxu0 %v8162_v10  ;;  %6713 = vmatprep.subr.bf16.mxu1 %v8164_v11  ;;  %v8211_v10 = vcombine.low %v442_v63, %v446_v0  ;;  %v8218_v11 = vcombine.high %v449_v5, %v453_v6  ;;  %v8220_v12 = vcombine.high %v450_v7, %v454_v8  ;;  %v501_v63 = vld [vmem:[%s12346_s1 + $0xea0] sm:$0xff]  ;;  %v498_v0 = vld [vmem:[%s12346_s1 + $0xe88] sm:$0xff] }
  0xba   :  { %6370 = vmatpush1.bf16.msra.mxu0 %v8161_v19  ;;  %6714 = vmatpush1.bf16.msra.mxu1 %v8163_v53  ;;  %v462_v19 = vld [vmem:[%s12346_s1 + $0xd68] sm:$0xff]  ;;  %v8217_v53 = vcombine.low %v449_v5, %v453_v6  ;;  %v505_v6 = vld [vmem:[%s12346_s1 + $0xec0] sm:$0xff] }
  0xbb   :  { %6371 = vmatprep.subr.bf16.mxu0 %v8170_v54  ;;  %6715 = vmatprep.subr.bf16.mxu1 %v8172_v20  ;;  %v8219_v54 = vcombine.low %v450_v7, %v454_v8  ;;  %v8226_v20 = vcombine.high %v457_v13, %v461_v14  ;;  %v8228_v21 = vcombine.high %v458_v16, %v462_v19  ;;  %v509_v7 = vld [vmem:[%s12346_s1 + $0xee0] sm:$0xff]  ;;  %v506_v8 = vld [vmem:[%s12346_s1 + $0xec8] sm:$0xff] }
  0xbe   :  { %6372 = vmatpush1.bf16.msra.mxu0 %v8169_v26  ;;  %6716 = vmatpush1.bf16.msra.mxu1 %v8171_v28  ;;  %v470_v26 = vld [vmem:[%s12346_s1 + $0xda8] sm:$0xff]  ;;  %v8225_v28 = vcombine.low %v457_v13, %v461_v14  ;;  %v513_v14 = vld [vmem:[%s12346_s1 + $0xf00] sm:$0xff] }
  0xbf   :  { %6373 = vmatprep.subr.bf16.mxu0 %v8178_v31  ;;  %6717 = vmatprep.subr.bf16.mxu1 %v8180_v17  ;;  %v8227_v31 = vcombine.low %v458_v16, %v462_v19  ;;  %v8234_v17 = vcombine.high %v465_v22, %v469_v24  ;;  %v8236_v18 = vcombine.high %v466_v25, %v470_v26  ;;  %v517_v16 = vld [vmem:[%s12346_s1 + $0xf20] sm:$0xff]  ;;  %v514_v19 = vld [vmem:[%s12346_s1 + $0xf08] sm:$0xff] }
  0xc2   :  { %6374 = vmatpush1.bf16.msra.mxu0 %v8177_v36  ;;  %6718 = vmatpush1.bf16.msra.mxu1 %v8179_v37  ;;  %v478_v36 = vld [vmem:[%s12346_s1 + $0xde8] sm:$0xff]  ;;  %v8233_v37 = vcombine.low %v465_v22, %v469_v24  ;;  %v521_v24 = vld [vmem:[%s12346_s1 + $0xf40] sm:$0xff] }
  0xc3   :  { %6386 = vmatprep.subr.bf16.mxu0 %v8186_v38  ;;  %6730 = vmatprep.subr.bf16.mxu1 %v8188_v39  ;;  %v8235_v38 = vcombine.low %v466_v25, %v470_v26  ;;  %v8242_v39 = vcombine.high %v473_v32, %v477_v33  ;;  %v8244_v40 = vcombine.high %v474_v34, %v478_v36  ;;  %v525_v25 = vld [vmem:[%s12346_s1 + $0xf60] sm:$0xff]  ;;  %v522_v26 = vld [vmem:[%s12346_s1 + $0xf48] sm:$0xff] }
  0xc5   :  { %6376 = vmatmul.mubr.bf16.vlgmr.msra.gmra.mrb[0].mxu0 %v9623_v43  ;;  %6720 = vmatmul.mubr.bf16.vlgmr.msra.gmra.mrb[0].mxu1 %v9623_v43 }
  0xc6   :  { %6387 = vmatpush1.bf16.msra.mxu0 %v8185_v47  ;;  %6731 = vmatpush1.bf16.msra.mxu1 %v8187_v29  ;;  %v486_v47 = vld [vmem:[%s12346_s1 + $0xe28] sm:$0xff]  ;;  %v8241_v29 = vcombine.low %v473_v32, %v477_v33  ;;  %v529_v33 = vld [vmem:[%s12346_s1 + $0xf80] sm:$0xff] }
  0xc7   :  { %6388 = vmatprep.subr.bf16.mxu0 %v8194_v30  ;;  %6732 = vmatprep.subr.bf16.mxu1 %v8196_v48  ;;  %v8243_v30 = vcombine.low %v474_v34, %v478_v36  ;;  %v8250_v48 = vcombine.high %v481_v41, %v485_v42  ;;  %v8252_v49 = vcombine.high %v482_v44, %v486_v47  ;;  %v533_v34 = vld [vmem:[%s12346_s1 + $0xfa0] sm:$0xff]  ;;  %v530_v36 = vld [vmem:[%s12346_s1 + $0xf88] sm:$0xff] }
  0xc8   :  { %6418 = vmatprep.mubr.bf16.mxu0 %v9646_v51  ;;  %6762 = vmatprep.mubr.bf16.mxu1 %v9646_v51 }
  0xca   :  { %6389 = vmatpush1.bf16.msra.mxu0 %v8193_v56  ;;  %6733 = vmatpush1.bf16.msra.mxu1 %v8195_v57  ;;  %v494_v56 = vld [vmem:[%s12346_s1 + $0xe68] sm:$0xff]  ;;  %v8249_v57 = vcombine.low %v481_v41, %v485_v42  ;;  %v537_v42 = vld [vmem:[%s12346_s1 + $0xfc0] sm:$0xff] }
  0xcb   :  { %6390 = vmatprep.subr.bf16.mxu0 %v8202_v59  ;;  %6734 = vmatprep.subr.bf16.mxu1 %v8204_v60  ;;  %v8251_v59 = vcombine.low %v482_v44, %v486_v47  ;;  %v8258_v60 = vcombine.high %v489_v50, %v493_v52  ;;  %v8260_v61 = vcombine.high %v490_v55, %v494_v56  ;;  %v541_v44 = vld [vmem:[%s12346_s1 + $0xfe0] sm:$0xff]  ;;  %v538_v47 = vld [vmem:[%s12346_s1 + $0xfc8] sm:$0xff] }
  0xce   :  { %6391 = vmatpush1.bf16.msra.mxu0 %v8201_v1  ;;  %6735 = vmatpush1.bf16.msra.mxu1 %v8203_v2  ;;  %v502_v1 = vld [vmem:[%s12346_s1 + $0xea8] sm:$0xff]  ;;  %v8257_v2 = vcombine.low %v489_v50, %v493_v52  ;;  %v545_v52 = vld [vmem:[%s12346_s1 + $0x1000] sm:$0xff] }
  0xcf   :  { %6392 = vmatprep.subr.bf16.mxu0 %v8210_v3  ;;  %6736 = vmatprep.subr.bf16.mxu1 %v8212_v4  ;;  %v8259_v3 = vcombine.low %v490_v55, %v494_v56  ;;  %v8266_v4 = vcombine.high %v497_v62, %v501_v63  ;;  %v8268_v5 = vcombine.high %v498_v0, %v502_v1  ;;  %v549_v55 = vld [vmem:[%s12346_s1 + $0x1020] sm:$0xff]  ;;  %v546_v56 = vld [vmem:[%s12346_s1 + $0x1008] sm:$0xff] }
  0xd2   :  { %6393 = vmatpush1.bf16.msra.mxu0 %v8209_v9  ;;  %6737 = vmatpush1.bf16.msra.mxu1 %v8211_v10  ;;  %v510_v9 = vld [vmem:[%s12346_s1 + $0xee8] sm:$0xff]  ;;  %v8265_v10 = vcombine.low %v497_v62, %v501_v63  ;;  %v553_v63 = vld [vmem:[%s12346_s1 + $0x1040] sm:$0xff] }
  0xd3   :  { %6394 = vmatprep.subr.bf16.mxu0 %v8218_v11  ;;  %6738 = vmatprep.subr.bf16.mxu1 %v8220_v12  ;;  %v8267_v11 = vcombine.low %v498_v0, %v502_v1  ;;  %v8274_v12 = vcombine.high %v505_v6, %v509_v7  ;;  %v8276_v13 = vcombine.high %v506_v8, %v510_v9  ;;  %v557_v0 = vld [vmem:[%s12346_s1 + $0x1060] sm:$0xff]  ;;  %v554_v1 = vld [vmem:[%s12346_s1 + $0x1048] sm:$0xff] }
  0xd6   :  { %6395 = vmatpush1.bf16.msra.mxu0 %v8217_v53  ;;  %6739 = vmatpush1.bf16.msra.mxu1 %v8219_v54  ;;  %v518_v53 = vld [vmem:[%s12346_s1 + $0xf28] sm:$0xff]  ;;  %v8273_v54 = vcombine.low %v505_v6, %v509_v7  ;;  %v8313_v6 = vcombine.low %v545_v52, %v549_v55 }
  0xd7   :  { %6396 = vmatprep.subr.bf16.mxu0 %v8226_v20  ;;  %6740 = vmatprep.subr.bf16.mxu1 %v8228_v21  ;;  %v8275_v20 = vcombine.low %v506_v8, %v510_v9  ;;  %v8282_v21 = vcombine.high %v513_v14, %v517_v16  ;;  %v8284_v22 = vcombine.high %v514_v19, %v518_v53  ;;  %v561_v8 = vld [vmem:[%s12346_s1 + $0x1080] sm:$0xff] }
  0xd8   :  { %v565_v9 = vld [vmem:[%s12346_s1 + $0x10a0] sm:$0xff] }
  0xda   :  { %6397 = vmatpush1.bf16.msra.mxu0 %v8225_v28  ;;  %6741 = vmatpush1.bf16.msra.mxu1 %v8227_v31  ;;  %v526_v28 = vld [vmem:[%s12346_s1 + $0xf68] sm:$0xff]  ;;  %v8281_v31 = vcombine.low %v513_v14, %v517_v16  ;;  %v8330_v16 = vcombine.high %v561_v8, %v565_v9 }
  0xdb   :  { %6398 = vmatprep.subr.bf16.mxu0 %v8234_v17  ;;  %6742 = vmatprep.subr.bf16.mxu1 %v8236_v18  ;;  %v8283_v17 = vcombine.low %v514_v19, %v518_v53  ;;  %v8290_v18 = vcombine.high %v521_v24, %v525_v25  ;;  %v8292_v32 = vcombine.high %v522_v26, %v526_v28  ;;  %v569_v53 = vld [vmem:[%s12346_s1 + $0x10c0] sm:$0xff] }
  0xde   :  { %6399 = vmatpush1.bf16.msra.mxu0 %v8233_v37  ;;  %6743 = vmatpush1.bf16.msra.mxu1 %v8235_v38  ;;  %v534_v37 = vld [vmem:[%s12346_s1 + $0xfa8] sm:$0xff]  ;;  %v8289_v38 = vcombine.low %v521_v24, %v525_v25 }
  0xdf   :  { %6400 = vmatprep.subr.bf16.mxu0 %v8242_v39  ;;  %6744 = vmatprep.subr.bf16.mxu1 %v8244_v40  ;;  %v8291_v39 = vcombine.low %v522_v26, %v526_v28  ;;  %v8298_v40 = vcombine.high %v529_v33, %v533_v34  ;;  %v8300_v41 = vcombine.high %v530_v36, %v534_v37  ;;  %v577_v28 = vld [vmem:[%s12346_s1 + $0x1100] sm:$0xff] }
  0xe2   :  { %6401 = vmatpush1.bf16.msra.mxu0 %v8241_v29  ;;  %6745 = vmatpush1.bf16.msra.mxu1 %v8243_v30  ;;  %v542_v29 = vld [vmem:[%s12346_s1 + $0xfe8] sm:$0xff]  ;;  %v8297_v30 = vcombine.low %v529_v33, %v533_v34 }
  0xe3   :  { %6402 = vmatprep.subr.bf16.mxu0 %v8250_v48  ;;  %6746 = vmatprep.subr.bf16.mxu1 %v8252_v49  ;;  %v8299_v48 = vcombine.low %v530_v36, %v534_v37  ;;  %v8306_v49 = vcombine.high %v537_v42, %v541_v44  ;;  %v8308_v50 = vcombine.high %v538_v47, %v542_v29  ;;  %v585_v37 = vld [vmem:[%s12346_s1 + $0x1140] sm:$0xff] }
  0xe6   :  { %6403 = vmatpush1.bf16.msra.mxu0 %v8249_v57  ;;  %6747 = vmatpush1.bf16.msra.mxu1 %v8251_v59  ;;  %v550_v57 = vld [vmem:[%s12346_s1 + $0x1028] sm:$0xff]  ;;  %v8305_v59 = vcombine.low %v537_v42, %v541_v44 }
  0xe7   :  { %6404 = vmatprep.subr.bf16.mxu0 %v8258_v60  ;;  %6748 = vmatprep.subr.bf16.mxu1 %v8260_v61  ;;  %v8307_v60 = vcombine.low %v538_v47, %v542_v29  ;;  %v8314_v61 = vcombine.high %v545_v52, %v549_v55  ;;  %v8316_v62 = vcombine.high %v546_v56, %v550_v57  ;;  %v593_v29 = vld [vmem:[%s12346_s1 + $0x1180] sm:$0xff] }
  0xea   :  { %6405 = vmatpush1.bf16.msra.mxu0 %v8257_v2  ;;  %6749 = vmatpush1.bf16.msra.mxu1 %v8259_v3  ;;  %v9837_v2 = vcombine.low %v9631_v45, %v9636_v46  ;;  %v558_v3 = vld [vmem:[%s12346_s1 + $0x1068] sm:$0xff]  ;;  %v8315_v45 = vcombine.low %v546_v56, %v550_v57  ;;  %v8322_v46 = vcombine.high %v553_v63, %v557_v0  ;;  %v601_v57 = vld [vmem:[%s12346_s1 + $0x11c0] sm:$0xff] }
  0xeb   :  { %6406 = vmatprep.subr.bf16.mxu0 %v8266_v4  ;;  %6750 = vmatprep.subr.bf16.mxu1 %v8268_v5  ;;  %v9845_v4 = vld [vmem:[%s12347_s0 + $0x20] sm:$0xff]  ;;  %v8324_v7 = vcombine.high %v554_v1, %v558_v3  ;;  %v8323_v14 = vcombine.low %v554_v1, %v558_v3 }
  0xec   :  { %v9850_v5 = vld [vmem:[%s12347_s0 + $0x60] sm:$0xff] }
  0xed   :  { %v609_v3 = vld [vmem:[%s12346_s1 + $0x1200] sm:$0xff] }
  0xee   :  { %6407 = vmatpush1.bf16.msra.mxu0 %v8265_v10  ;;  %6751 = vmatpush1.bf16.msra.mxu1 %v8267_v11  ;;  %v9860_v10 = vcombine.high %v9845_v4, %v9850_v5  ;;  %v562_v11 = vld [vmem:[%s12346_s1 + $0x1088] sm:$0xff] }
  0xef   :  { %6408 = vmatprep.subr.bf16.mxu0 %v8274_v12  ;;  %6752 = vmatprep.subr.bf16.mxu1 %v8276_v13  ;;  %v566_v12 = vld [vmem:[%s12346_s1 + $0x10a8] sm:$0xff]  ;;  %v8321_v13 = vcombine.low %v553_v63, %v557_v0 }
  0xf0   :  { %v8332_v19 = vcombine.high %v562_v11, %v566_v12  ;;  %v8331_v24 = vcombine.low %v562_v11, %v566_v12  ;;  %v617_v12 = vld [vmem:[%s12346_s1 + $0x1240] sm:$0xff] }
  0xf2   :  { %6409 = vmatpush1.bf16.msra.mxu0 %v8273_v54  ;;  %6753 = vmatpush1.bf16.msra.mxu1 %v8275_v20  ;;  %v573_v54 = vld [vmem:[%s12346_s1 + $0x10e0] sm:$0xff]  ;;  %v570_v20 = vld [vmem:[%s12346_s1 + $0x10c8] sm:$0xff] }
  0xf3   :  { %6410 = vmatprep.subr.bf16.mxu0 %v8282_v21  ;;  %6754 = vmatprep.subr.bf16.mxu1 %v8284_v22  ;;  %v574_v21 = vld [vmem:[%s12346_s1 + $0x10e8] sm:$0xff]  ;;  %v8329_v22 = vcombine.low %v561_v8, %v565_v9  ;;  %v8338_v25 = vcombine.high %v569_v53, %v573_v54 }
  0xf4   :  { %v8340_v26 = vcombine.high %v570_v20, %v574_v21  ;;  %v8339_v33 = vcombine.low %v570_v20, %v574_v21  ;;  %v625_v21 = vld [vmem:[%s12346_s1 + $0x1280] sm:$0xff] }
  0xf6   :  { %6411 = vmatpush1.bf16.msra.mxu0 %v8281_v31  ;;  %6755 = vmatpush1.bf16.msra.mxu1 %v8283_v17  ;;  %v581_v31 = vld [vmem:[%s12346_s1 + $0x1120] sm:$0xff]  ;;  %v578_v17 = vld [vmem:[%s12346_s1 + $0x1108] sm:$0xff] }
  0xf7   :  { %6412 = vmatprep.subr.bf16.mxu0 %v8290_v18  ;;  %6756 = vmatprep.subr.bf16.mxu1 %v8292_v32  ;;  %v582_v18 = vld [vmem:[%s12346_s1 + $0x1128] sm:$0xff]  ;;  %v8337_v32 = vcombine.low %v569_v53, %v573_v54  ;;  %v8346_v34 = vcombine.high %v577_v28, %v581_v31 }
  0xf8   :  { %v8348_v36 = vcombine.high %v578_v17, %v582_v18  ;;  %v8347_v42 = vcombine.low %v578_v17, %v582_v18  ;;  %v633_v18 = vld [vmem:[%s12346_s1 + $0x12c0] sm:$0xff] }
  0xfa   :  { %6413 = vmatpush1.bf16.msra.mxu0 %v8289_v38  ;;  %6757 = vmatpush1.bf16.msra.mxu1 %v8291_v39  ;;  %v589_v38 = vld [vmem:[%s12346_s1 + $0x1160] sm:$0xff]  ;;  %v586_v39 = vld [vmem:[%s12346_s1 + $0x1148] sm:$0xff] }
  0xfb   :  { %6414 = vmatprep.subr.bf16.mxu0 %v8298_v40  ;;  %6758 = vmatprep.subr.bf16.mxu1 %v8300_v41  ;;  %v590_v40 = vld [vmem:[%s12346_s1 + $0x1168] sm:$0xff]  ;;  %v8345_v41 = vcombine.low %v577_v28, %v581_v31  ;;  %v8354_v44 = vcombine.high %v585_v37, %v589_v38 }
  0xfc   :  { %v8356_v47 = vcombine.high %v586_v39, %v590_v40  ;;  %v8355_v52 = vcombine.low %v586_v39, %v590_v40  ;;  %v641_v40 = vld [vmem:[%s12346_s1 + $0x1300] sm:$0xff] }
  0xfe   :  { %6415 = vmatpush1.bf16.msra.mxu0 %v8297_v30  ;;  %6759 = vmatpush1.bf16.msra.mxu1 %v8299_v48  ;;  %v597_v30 = vld [vmem:[%s12346_s1 + $0x11a0] sm:$0xff]  ;;  %v594_v48 = vld [vmem:[%s12346_s1 + $0x1188] sm:$0xff] }
  0xff   :  { %6416 = vmatprep.subr.bf16.mxu0 %v8306_v49  ;;  %6760 = vmatprep.subr.bf16.mxu1 %v8308_v50  ;;  %v598_v49 = vld [vmem:[%s12346_s1 + $0x11a8] sm:$0xff]  ;;  %v8353_v50 = vcombine.low %v585_v37, %v589_v38  ;;  %v8362_v55 = vcombine.high %v593_v29, %v597_v30 }
 0x100   :  { %v8364_v56 = vcombine.high %v594_v48, %v598_v49  ;;  %v8363_v63 = vcombine.low %v594_v48, %v598_v49  ;;  %v649_v49 = vld [vmem:[%s12346_s1 + $0x1340] sm:$0xff] }
 0x102   :  { %6417 = vmatpush1.bf16.msra.mxu0 %v8305_v59  ;;  %6761 = vmatpush1.bf16.msra.mxu1 %v8307_v60  ;;  %v605_v59 = vld [vmem:[%s12346_s1 + $0x11e0] sm:$0xff]  ;;  %v602_v60 = vld [vmem:[%s12346_s1 + $0x11c8] sm:$0xff] }
 0x103   :  { %6429 = vmatprep.subr.bf16.mxu0 %v8314_v61  ;;  %6773 = vmatprep.subr.bf16.mxu1 %v8316_v62  ;;  %v606_v61 = vld [vmem:[%s12346_s1 + $0x11e8] sm:$0xff]  ;;  %v8361_v62 = vcombine.low %v593_v29, %v597_v30  ;;  %v8370_v0 = vcombine.high %v601_v57, %v605_v59 }
 0x104   :  { %v8372_v1 = vcombine.high %v602_v60, %v606_v61  ;;  %v8371_v8 = vcombine.low %v602_v60, %v606_v61  ;;  %v657_v61 = vld [vmem:[%s12346_s1 + $0x1380] sm:$0xff] }
 0x105   :  { %6419 = vmatmul.mubr.bf16.vlgmr.msra.gmra.mrb[0].mxu0 %v9837_v2  ;;  %6763 = vmatmul.mubr.bf16.vlgmr.msra.gmra.mrb[0].mxu1 %v9837_v2 }
 0x106   :  { %6430 = vmatpush1.bf16.msra.mxu0 %v8313_v6  ;;  %6774 = vmatpush1.bf16.msra.mxu1 %v8315_v45  ;;  %v613_v6 = vld [vmem:[%s12346_s1 + $0x1220] sm:$0xff]  ;;  %v610_v45 = vld [vmem:[%s12346_s1 + $0x1208] sm:$0xff] }
 0x107   :  { %6431 = vmatprep.subr.bf16.mxu0 %v8322_v46  ;;  %6775 = vmatprep.subr.bf16.mxu1 %v8324_v7  ;;  %v614_v46 = vld [vmem:[%s12346_s1 + $0x1228] sm:$0xff]  ;;  %v8369_v7 = vcombine.low %v601_v57, %v605_v59  ;;  %v8378_v9 = vcombine.high %v609_v3, %v613_v6 }
 0x108   :  { %6461 = vmatprep.mubr.bf16.mxu0 %v9860_v10  ;;  %6805 = vmatprep.mubr.bf16.mxu1 %v9860_v10  ;;  %v8380_v11 = vcombine.high %v610_v45, %v614_v46  ;;  %v8379_v53 = vcombine.low %v610_v45, %v614_v46  ;;  %v665_v46 = vld [vmem:[%s12346_s1 + $0x13c0] sm:$0xff] }
 0x10a   :  { %6432 = vmatpush1.bf16.msra.mxu0 %v8321_v13  ;;  %6776 = vmatpush1.bf16.msra.mxu1 %v8323_v14  ;;  %v621_v13 = vld [vmem:[%s12346_s1 + $0x1260] sm:$0xff]  ;;  %v618_v14 = vld [vmem:[%s12346_s1 + $0x1248] sm:$0xff] }
 0x10b   :  { %6433 = vmatprep.subr.bf16.mxu0 %v8330_v16  ;;  %6777 = vmatprep.subr.bf16.mxu1 %v8332_v19  ;;  %v622_v16 = vld [vmem:[%s12346_s1 + $0x1268] sm:$0xff]  ;;  %v8377_v19 = vcombine.low %v609_v3, %v613_v6  ;;  %v8386_v54 = vcombine.high %v617_v12, %v621_v13 }
 0x10c   :  { %v8388_v20 = vcombine.high %v618_v14, %v622_v16  ;;  %v8387_v28 = vcombine.low %v618_v14, %v622_v16  ;;  %v673_v16 = vld [vmem:[%s12346_s1 + $0x1400] sm:$0xff] }
 0x10e   :  { %6434 = vmatpush1.bf16.msra.mxu0 %v8329_v22  ;;  %6778 = vmatpush1.bf16.msra.mxu1 %v8331_v24  ;;  %v629_v22 = vld [vmem:[%s12346_s1 + $0x12a0] sm:$0xff]  ;;  %v626_v24 = vld [vmem:[%s12346_s1 + $0x1288] sm:$0xff] }
 0x10f   :  { %6435 = vmatprep.subr.bf16.mxu0 %v8338_v25  ;;  %6779 = vmatprep.subr.bf16.mxu1 %v8340_v26  ;;  %v630_v25 = vld [vmem:[%s12346_s1 + $0x12a8] sm:$0xff]  ;;  %v8385_v26 = vcombine.low %v617_v12, %v621_v13  ;;  %v8394_v31 = vcombine.high %v625_v21, %v629_v22 }
 0x110   :  { %v8396_v17 = vcombine.high %v626_v24, %v630_v25  ;;  %v8395_v37 = vcombine.low %v626_v24, %v630_v25  ;;  %v681_v25 = vld [vmem:[%s12346_s1 + $0x1440] sm:$0xff] }
 0x112   :  { %6436 = vmatpush1.bf16.msra.mxu0 %v8337_v32  ;;  %6780 = vmatpush1.bf16.msra.mxu1 %v8339_v33  ;;  %v637_v32 = vld [vmem:[%s12346_s1 + $0x12e0] sm:$0xff]  ;;  %v634_v33 = vld [vmem:[%s12346_s1 + $0x12c8] sm:$0xff] }
 0x113   :  { %6437 = vmatprep.subr.bf16.mxu0 %v8346_v34  ;;  %6781 = vmatprep.subr.bf16.mxu1 %v8348_v36  ;;  %v638_v34 = vld [vmem:[%s12346_s1 + $0x12e8] sm:$0xff]  ;;  %v8393_v36 = vcombine.low %v625_v21, %v629_v22  ;;  %v8402_v38 = vcombine.high %v633_v18, %v637_v32 }
 0x114   :  { %v8404_v39 = vcombine.high %v634_v33, %v638_v34  ;;  %v8403_v29 = vcombine.low %v634_v33, %v638_v34 }
 0x116   :  { %6438 = vmatpush1.bf16.msra.mxu0 %v8345_v41  ;;  %6782 = vmatpush1.bf16.msra.mxu1 %v8347_v42  ;;  %v645_v41 = vld [vmem:[%s12346_s1 + $0x1320] sm:$0xff]  ;;  %v642_v42 = vld [vmem:[%s12346_s1 + $0x1308] sm:$0xff] }
 0x117   :  { %6439 = vmatprep.subr.bf16.mxu0 %v8354_v44  ;;  %6783 = vmatprep.subr.bf16.mxu1 %v8356_v47  ;;  %v646_v44 = vld [vmem:[%s12346_s1 + $0x1328] sm:$0xff]  ;;  %v8401_v47 = vcombine.low %v633_v18, %v637_v32  ;;  %v8410_v30 = vcombine.high %v641_v40, %v645_v41 }
 0x118   :  { %v8412_v48 = vcombine.high %v642_v42, %v646_v44  ;;  %v8411_v57 = vcombine.low %v642_v42, %v646_v44  ;;  %v10059_v18 = vld [vmem:[%s12347_s0 + $0x28] sm:$0xff] }
 0x119   :  { %v10064_v32 = vld [vmem:[%s12347_s0 + $0x68] sm:$0xff] }
 0x11a   :  { %6440 = vmatpush1.bf16.msra.mxu0 %v8353_v50  ;;  %6784 = vmatpush1.bf16.msra.mxu1 %v8355_v52  ;;  %v653_v50 = vld [vmem:[%s12346_s1 + $0x1360] sm:$0xff]  ;;  %v650_v52 = vld [vmem:[%s12346_s1 + $0x1348] sm:$0xff] }
 0x11b   :  { %6441 = vmatprep.subr.bf16.mxu0 %v8362_v55  ;;  %6785 = vmatprep.subr.bf16.mxu1 %v8364_v56  ;;  %v654_v55 = vld [vmem:[%s12346_s1 + $0x1368] sm:$0xff]  ;;  %v8409_v56 = vcombine.low %v641_v40, %v645_v41  ;;  %v8418_v59 = vcombine.high %v649_v49, %v653_v50 }
 0x11c   :  { %v8420_v60 = vcombine.high %v650_v52, %v654_v55  ;;  %v8419_v3 = vcombine.low %v650_v52, %v654_v55  ;;  %v694_v40 = vld [vmem:[%s12346_s1 + $0x14a8] sm:$0xff] }
 0x11e   :  { %6442 = vmatpush1.bf16.msra.mxu0 %v8361_v62  ;;  %6786 = vmatpush1.bf16.msra.mxu1 %v8363_v63  ;;  %v661_v62 = vld [vmem:[%s12346_s1 + $0x13a0] sm:$0xff]  ;;  %v658_v63 = vld [vmem:[%s12346_s1 + $0x1388] sm:$0xff] }
 0x11f   :  { %6443 = vmatprep.subr.bf16.mxu0 %v8370_v0  ;;  %6787 = vmatprep.subr.bf16.mxu1 %v8372_v1  ;;  %v662_v0 = vld [vmem:[%s12346_s1 + $0x13a8] sm:$0xff]  ;;  %v8417_v1 = vcombine.low %v649_v49, %v653_v50  ;;  %v8426_v6 = vcombine.high %v657_v61, %v661_v62 }
 0x120   :  { %v8428_v45 = vcombine.high %v658_v63, %v662_v0  ;;  %v8427_v12 = vcombine.low %v658_v63, %v662_v0  ;;  %v702_v49 = vld [vmem:[%s12346_s1 + $0x14e8] sm:$0xff] }
 0x122   :  { %6444 = vmatpush1.bf16.msra.mxu0 %v8369_v7  ;;  %6788 = vmatpush1.bf16.msra.mxu1 %v8371_v8  ;;  %v669_v7 = vld [vmem:[%s12346_s1 + $0x13e0] sm:$0xff]  ;;  %v666_v8 = vld [vmem:[%s12346_s1 + $0x13c8] sm:$0xff] }
 0x123   :  { %6445 = vmatprep.subr.bf16.mxu0 %v8378_v9  ;;  %6789 = vmatprep.subr.bf16.mxu1 %v8380_v11  ;;  %v670_v9 = vld [vmem:[%s12346_s1 + $0x13e8] sm:$0xff]  ;;  %v8425_v11 = vcombine.low %v657_v61, %v661_v62  ;;  %v8434_v13 = vcombine.high %v665_v46, %v669_v7 }
 0x124   :  { %v8436_v14 = vcombine.high %v666_v8, %v670_v9  ;;  %v8435_v21 = vcombine.low %v666_v8, %v670_v9  ;;  %v710_v61 = vld [vmem:[%s12346_s1 + $0x1528] sm:$0xff] }
 0x126   :  { %6446 = vmatpush1.bf16.msra.mxu0 %v8377_v19  ;;  %6790 = vmatpush1.bf16.msra.mxu1 %v8379_v53  ;;  %v677_v19 = vld [vmem:[%s12346_s1 + $0x1420] sm:$0xff]  ;;  %v674_v53 = vld [vmem:[%s12346_s1 + $0x1408] sm:$0xff] }
 0x127   :  { %6447 = vmatprep.subr.bf16.mxu0 %v8386_v54  ;;  %6791 = vmatprep.subr.bf16.mxu1 %v8388_v20  ;;  %v678_v54 = vld [vmem:[%s12346_s1 + $0x1428] sm:$0xff]  ;;  %v8433_v20 = vcombine.low %v665_v46, %v669_v7  ;;  %v8442_v22 = vcombine.high %v673_v16, %v677_v19  ;;  %v8441_v33 = vcombine.low %v673_v16, %v677_v19 }
 0x128   :  { %v8444_v24 = vcombine.high %v674_v53, %v678_v54  ;;  %v718_v46 = vld [vmem:[%s12346_s1 + $0x1568] sm:$0xff] }
 0x129   :  { %v726_v16 = vld [vmem:[%s12346_s1 + $0x15a8] sm:$0xff] }
 0x12a   :  { %6448 = vmatpush1.bf16.msra.mxu0 %v8385_v26  ;;  %6792 = vmatpush1.bf16.msra.mxu1 %v8387_v28  ;;  %v685_v26 = vld [vmem:[%s12346_s1 + $0x1460] sm:$0xff]  ;;  %v682_v28 = vld [vmem:[%s12346_s1 + $0x1448] sm:$0xff] }
 0x12b   :  { %6449 = vmatprep.subr.bf16.mxu0 %v8394_v31  ;;  %6793 = vmatprep.subr.bf16.mxu1 %v8396_v17  ;;  %v10051_v31 = vcombine.low %v9845_v4, %v9850_v5  ;;  %v686_v17 = vld [vmem:[%s12346_s1 + $0x1468] sm:$0xff]  ;;  %v8443_v4 = vcombine.low %v674_v53, %v678_v54  ;;  %v8450_v5 = vcombine.high %v681_v25, %v685_v26 }
 0x12c   :  { %v8452_v34 = vcombine.high %v682_v28, %v686_v17  ;;  %v8449_v41 = vcombine.low %v681_v25, %v685_v26  ;;  %v8451_v42 = vcombine.low %v682_v28, %v686_v17  ;;  %v734_v25 = vld [vmem:[%s12346_s1 + $0x15e8] sm:$0xff] }
 0x12e   :  { %6450 = vmatpush1.bf16.msra.mxu0 %v8393_v36  ;;  %6794 = vmatpush1.bf16.msra.mxu1 %v8395_v37  ;;  %v689_v36 = vld [vmem:[%s12346_s1 + $0x1480] sm:$0xff] }
 0x12f   :  { %6451 = vmatprep.subr.bf16.mxu0 %v8402_v38  ;;  %6795 = vmatprep.subr.bf16.mxu1 %v8404_v39  ;;  %v693_v37 = vld [vmem:[%s12346_s1 + $0x14a0] sm:$0xff]  ;;  %v10074_v38 = vcombine.high %v10059_v18, %v10064_v32  ;;  %v690_v39 = vld [vmem:[%s12346_s1 + $0x1488] sm:$0xff] }
 0x130   :  { %v8458_v44 = vcombine.high %v689_v36, %v693_v37  ;;  %v8457_v50 = vcombine.low %v689_v36, %v693_v37  ;;  %v8459_v52 = vcombine.low %v690_v39, %v694_v40  ;;  %v742_v36 = vld [vmem:[%s12346_s1 + $0x1628] sm:$0xff] }
 0x132   :  { %6452 = vmatpush1.bf16.msra.mxu0 %v8401_v47  ;;  %6796 = vmatpush1.bf16.msra.mxu1 %v8403_v29  ;;  %v8460_v47 = vcombine.high %v690_v39, %v694_v40  ;;  %v697_v29 = vld [vmem:[%s12346_s1 + $0x14c0] sm:$0xff] }
 0x133   :  { %6453 = vmatprep.subr.bf16.mxu0 %v8410_v30  ;;  %6797 = vmatprep.subr.bf16.mxu1 %v8412_v48  ;;  %v701_v30 = vld [vmem:[%s12346_s1 + $0x14e0] sm:$0xff]  ;;  %v698_v48 = vld [vmem:[%s12346_s1 + $0x14c8] sm:$0xff] }
 0x134   :  { %v8466_v55 = vcombine.high %v697_v29, %v701_v30  ;;  %v8465_v62 = vcombine.low %v697_v29, %v701_v30  ;;  %v8467_v63 = vcombine.low %v698_v48, %v702_v49  ;;  %v750_v29 = vld [vmem:[%s12346_s1 + $0x1668] sm:$0xff] }
 0x136   :  { %6454 = vmatpush1.bf16.msra.mxu0 %v8409_v56  ;;  %6798 = vmatpush1.bf16.msra.mxu1 %v8411_v57  ;;  %v8468_v56 = vcombine.high %v698_v48, %v702_v49  ;;  %v705_v57 = vld [vmem:[%s12346_s1 + $0x1500] sm:$0xff] }
 0x137   :  { %6455 = vmatprep.subr.bf16.mxu0 %v8418_v59  ;;  %6799 = vmatprep.subr.bf16.mxu1 %v8420_v60  ;;  %v709_v59 = vld [vmem:[%s12346_s1 + $0x1520] sm:$0xff]  ;;  %v706_v60 = vld [vmem:[%s12346_s1 + $0x1508] sm:$0xff] }
 0x138   :  { %v8474_v0 = vcombine.high %v705_v57, %v709_v59  ;;  %v8473_v7 = vcombine.low %v705_v57, %v709_v59  ;;  %v8475_v8 = vcombine.low %v706_v60, %v710_v61  ;;  %v758_v57 = vld [vmem:[%s12346_s1 + $0x16a8] sm:$0xff] }
 0x13a   :  { %6456 = vmatpush1.bf16.msra.mxu0 %v8417_v1  ;;  %6800 = vmatpush1.bf16.msra.mxu1 %v8419_v3  ;;  %v8476_v1 = vcombine.high %v706_v60, %v710_v61  ;;  %v713_v3 = vld [vmem:[%s12346_s1 + $0x1540] sm:$0xff] }
 0x13b   :  { %6457 = vmatprep.subr.bf16.mxu0 %v8426_v6  ;;  %6801 = vmatprep.subr.bf16.mxu1 %v8428_v45  ;;  %v717_v6 = vld [vmem:[%s12346_s1 + $0x1560] sm:$0xff]  ;;  %v714_v45 = vld [vmem:[%s12346_s1 + $0x1548] sm:$0xff] }
 0x13c   :  { %v8482_v9 = vcombine.high %v713_v3, %v717_v6  ;;  %v8481_v19 = vcombine.low %v713_v3, %v717_v6  ;;  %v8483_v53 = vcombine.low %v714_v45, %v718_v46  ;;  %v766_v3 = vld [vmem:[%s12346_s1 + $0x16e8] sm:$0xff] }
 0x13e   :  { %6458 = vmatpush1.bf16.msra.mxu0 %v8425_v11  ;;  %6802 = vmatpush1.bf16.msra.mxu1 %v8427_v12  ;;  %v8484_v11 = vcombine.high %v714_v45, %v718_v46  ;;  %v721_v12 = vld [vmem:[%s12346_s1 + $0x1580] sm:$0xff] }
 0x13f   :  { %6459 = vmatprep.subr.bf16.mxu0 %v8434_v13  ;;  %6803 = vmatprep.subr.bf16.mxu1 %v8436_v14  ;;  %v725_v13 = vld [vmem:[%s12346_s1 + $0x15a0] sm:$0xff]  ;;  %v722_v14 = vld [vmem:[%s12346_s1 + $0x1588] sm:$0xff] }
 0x140   :  { %v8490_v54 = vcombine.high %v721_v12, %v725_v13  ;;  %v8489_v26 = vcombine.low %v721_v12, %v725_v13  ;;  %v8491_v28 = vcombine.low %v722_v14, %v726_v16  ;;  %v774_v12 = vld [vmem:[%s12346_s1 + $0x1728] sm:$0xff] }
 0x142   :  { %6460 = vmatpush1.bf16.msra.mxu0 %v8433_v20  ;;  %6804 = vmatpush1.bf16.msra.mxu1 %v8435_v21  ;;  %v8492_v20 = vcombine.high %v722_v14, %v726_v16  ;;  %v729_v21 = vld [vmem:[%s12346_s1 + $0x15c0] sm:$0xff] }
 0x143   :  { %6472 = vmatprep.subr.bf16.mxu0 %v8442_v22  ;;  %6816 = vmatprep.subr.bf16.mxu1 %v8444_v24  ;;  %v733_v22 = vld [vmem:[%s12346_s1 + $0x15e0] sm:$0xff]  ;;  %v730_v24 = vld [vmem:[%s12346_s1 + $0x15c8] sm:$0xff] }
 0x144   :  { %v8498_v17 = vcombine.high %v729_v21, %v733_v22  ;;  %v8497_v37 = vcombine.low %v729_v21, %v733_v22  ;;  %v8499_v39 = vcombine.low %v730_v24, %v734_v25  ;;  %v782_v21 = vld [vmem:[%s12346_s1 + $0x1768] sm:$0xff] }
 0x145   :  { %6462 = vmatmul.mubr.bf16.vlgmr.msra.gmra.mrb[0].mxu0 %v10051_v31  ;;  %6806 = vmatmul.mubr.bf16.vlgmr.msra.gmra.mrb[0].mxu1 %v10051_v31 }
 0x146   :  { %6473 = vmatpush1.bf16.msra.mxu0 %v8441_v33  ;;  %6817 = vmatpush1.bf16.msra.mxu1 %v8443_v4  ;;  %v8500_v33 = vcombine.high %v730_v24, %v734_v25  ;;  %v737_v4 = vld [vmem:[%s12346_s1 + $0x1600] sm:$0xff] }
 0x147   :  { %6474 = vmatprep.subr.bf16.mxu0 %v8450_v5  ;;  %6818 = vmatprep.subr.bf16.mxu1 %v8452_v34  ;;  %v741_v5 = vld [vmem:[%s12346_s1 + $0x1620] sm:$0xff]  ;;  %v738_v34 = vld [vmem:[%s12346_s1 + $0x1608] sm:$0xff] }
 0x148   :  { %6504 = vmatprep.mubr.bf16.mxu0 %v10074_v38  ;;  %6848 = vmatprep.mubr.bf16.mxu1 %v10074_v38  ;;  %v8506_v40 = vcombine.high %v737_v4, %v741_v5  ;;  %v8505_v30 = vcombine.low %v737_v4, %v741_v5  ;;  %v8507_v48 = vcombine.low %v738_v34, %v742_v36  ;;  %v790_v4 = vld [vmem:[%s12346_s1 + $0x17a8] sm:$0xff] }
 0x14a   :  { %6475 = vmatpush1.bf16.msra.mxu0 %v8449_v41  ;;  %6819 = vmatpush1.bf16.msra.mxu1 %v8451_v42  ;;  %v8508_v41 = vcombine.high %v738_v34, %v742_v36  ;;  %v745_v42 = vld [vmem:[%s12346_s1 + $0x1640] sm:$0xff] }
 0x14b   :  { %6476 = vmatprep.subr.bf16.mxu0 %v8458_v44  ;;  %6820 = vmatprep.subr.bf16.mxu1 %v8460_v47  ;;  %v749_v44 = vld [vmem:[%s12346_s1 + $0x1660] sm:$0xff]  ;;  %v746_v47 = vld [vmem:[%s12346_s1 + $0x1648] sm:$0xff] }
 0x14c   :  { %v8514_v49 = vcombine.high %v745_v42, %v749_v44  ;;  %v8513_v59 = vcombine.low %v745_v42, %v749_v44  ;;  %v8515_v60 = vcombine.low %v746_v47, %v750_v29  ;;  %v798_v42 = vld [vmem:[%s12346_s1 + $0x17e8] sm:$0xff] }
 0x14e   :  { %6477 = vmatpush1.bf16.msra.mxu0 %v8457_v50  ;;  %6821 = vmatpush1.bf16.msra.mxu1 %v8459_v52  ;;  %v8516_v50 = vcombine.high %v746_v47, %v750_v29  ;;  %v753_v52 = vld [vmem:[%s12346_s1 + $0x1680] sm:$0xff] }
 0x14f   :  { %6478 = vmatprep.subr.bf16.mxu0 %v8466_v55  ;;  %6822 = vmatprep.subr.bf16.mxu1 %v8468_v56  ;;  %v757_v55 = vld [vmem:[%s12346_s1 + $0x16a0] sm:$0xff]  ;;  %v754_v56 = vld [vmem:[%s12346_s1 + $0x1688] sm:$0xff] }
 0x150   :  { %v8522_v61 = vcombine.high %v753_v52, %v757_v55  ;;  %v8521_v6 = vcombine.low %v753_v52, %v757_v55  ;;  %v8523_v45 = vcombine.low %v754_v56, %v758_v57  ;;  %v806_v52 = vld [vmem:[%s12346_s1 + $0x1828] sm:$0xff] }
 0x152   :  { %6479 = vmatpush1.bf16.msra.mxu0 %v8465_v62  ;;  %6823 = vmatpush1.bf16.msra.mxu1 %v8467_v63  ;;  %v8524_v62 = vcombine.high %v754_v56, %v758_v57  ;;  %v761_v63 = vld [vmem:[%s12346_s1 + $0x16c0] sm:$0xff] }
 0x153   :  { %6480 = vmatprep.subr.bf16.mxu0 %v8474_v0  ;;  %6824 = vmatprep.subr.bf16.mxu1 %v8476_v1  ;;  %v765_v0 = vld [vmem:[%s12346_s1 + $0x16e0] sm:$0xff]  ;;  %v762_v1 = vld [vmem:[%s12346_s1 + $0x16c8] sm:$0xff] }
 0x154   :  { %v8530_v46 = vcombine.high %v761_v63, %v765_v0  ;;  %v8529_v13 = vcombine.low %v761_v63, %v765_v0  ;;  %v8531_v14 = vcombine.low %v762_v1, %v766_v3  ;;  %v10265_v63 = vcombine.low %v10059_v18, %v10064_v32  ;;  %v814_v0 = vld [vmem:[%s12346_s1 + $0x1868] sm:$0xff] }
 0x156   :  { %6481 = vmatpush1.bf16.msra.mxu0 %v8473_v7  ;;  %6825 = vmatpush1.bf16.msra.mxu1 %v8475_v8  ;;  %v8532_v7 = vcombine.high %v762_v1, %v766_v3  ;;  %v769_v8 = vld [vmem:[%s12346_s1 + $0x1700] sm:$0xff]  ;;  %v10273_v1 = vld [vmem:[%s12347_s0 + $0x30] sm:$0xff] }
 0x157   :  { %6482 = vmatprep.subr.bf16.mxu0 %v8482_v9  ;;  %6826 = vmatprep.subr.bf16.mxu1 %v8484_v11  ;;  %v773_v9 = vld [vmem:[%s12346_s1 + $0x1720] sm:$0xff]  ;;  %v770_v11 = vld [vmem:[%s12346_s1 + $0x1708] sm:$0xff]  ;;  %v10278_v3 = vld [vmem:[%s12347_s0 + $0x70] sm:$0xff] }
 0x158   :  { %v8538_v16 = vcombine.high %v769_v8, %v773_v9  ;;  %v8537_v22 = vcombine.low %v769_v8, %v773_v9  ;;  %v8539_v24 = vcombine.low %v770_v11, %v774_v12  ;;  %v10288_v8 = vcombine.high %v10273_v1, %v10278_v3  ;;  %v818_v9 = vld [vmem:[%s12346_s1 + $0x1888] sm:$0xff] }
 0x15a   :  { %6483 = vmatpush1.bf16.msra.mxu0 %v8481_v19  ;;  %6827 = vmatpush1.bf16.msra.mxu1 %v8483_v53  ;;  %v8540_v19 = vcombine.high %v770_v11, %v774_v12  ;;  %v777_v53 = vld [vmem:[%s12346_s1 + $0x1740] sm:$0xff]  ;;  %v822_v11 = vld [vmem:[%s12346_s1 + $0x18a8] sm:$0xff] }
 0x15b   :  { %6484 = vmatprep.subr.bf16.mxu0 %v8490_v54  ;;  %6828 = vmatprep.subr.bf16.mxu1 %v8492_v20  ;;  %v781_v54 = vld [vmem:[%s12346_s1 + $0x1760] sm:$0xff]  ;;  %v778_v20 = vld [vmem:[%s12346_s1 + $0x1748] sm:$0xff] }
 0x15c   :  { %v8546_v25 = vcombine.high %v777_v53, %v781_v54  ;;  %v8545_v5 = vcombine.low %v777_v53, %v781_v54  ;;  %v8547_v34 = vcombine.low %v778_v20, %v782_v21  ;;  %v829_v53 = vld [vmem:[%s12346_s1 + $0x18e0] sm:$0xff]  ;;  %v826_v54 = vld [vmem:[%s12346_s1 + $0x18c8] sm:$0xff] }
 0x15e   :  { %6485 = vmatpush1.bf16.msra.mxu0 %v8489_v26  ;;  %6829 = vmatpush1.bf16.msra.mxu1 %v8491_v28  ;;  %v8548_v26 = vcombine.high %v778_v20, %v782_v21  ;;  %v785_v28 = vld [vmem:[%s12346_s1 + $0x1780] sm:$0xff]  ;;  %v830_v20 = vld [vmem:[%s12346_s1 + $0x18e8] sm:$0xff] }
 0x15f   :  { %6486 = vmatprep.subr.bf16.mxu0 %v8498_v17  ;;  %6830 = vmatprep.subr.bf16.mxu1 %v8500_v33  ;;  %v789_v17 = vld [vmem:[%s12346_s1 + $0x17a0] sm:$0xff]  ;;  %v786_v33 = vld [vmem:[%s12346_s1 + $0x1788] sm:$0xff] }
 0x160   :  { %v8554_v36 = vcombine.high %v785_v28, %v789_v17  ;;  %v8553_v44 = vcombine.low %v785_v28, %v789_v17  ;;  %v8555_v47 = vcombine.low %v786_v33, %v790_v4  ;;  %v837_v28 = vld [vmem:[%s12346_s1 + $0x1920] sm:$0xff]  ;;  %v834_v17 = vld [vmem:[%s12346_s1 + $0x1908] sm:$0xff] }
 0x162   :  { %6487 = vmatpush1.bf16.msra.mxu0 %v8497_v37  ;;  %6831 = vmatpush1.bf16.msra.mxu1 %v8499_v39  ;;  %v8556_v37 = vcombine.high %v786_v33, %v790_v4  ;;  %v793_v39 = vld [vmem:[%s12346_s1 + $0x17c0] sm:$0xff]  ;;  %v838_v33 = vld [vmem:[%s12346_s1 + $0x1928] sm:$0xff] }
 0x163   :  { %6488 = vmatprep.subr.bf16.mxu0 %v8506_v40  ;;  %6832 = vmatprep.subr.bf16.mxu1 %v8508_v41  ;;  %v797_v40 = vld [vmem:[%s12346_s1 + $0x17e0] sm:$0xff]  ;;  %v794_v41 = vld [vmem:[%s12346_s1 + $0x17c8] sm:$0xff] }
 0x164   :  { %v8562_v29 = vcombine.high %v793_v39, %v797_v40  ;;  %v8561_v55 = vcombine.low %v793_v39, %v797_v40  ;;  %v8563_v56 = vcombine.low %v794_v41, %v798_v42  ;;  %v845_v39 = vld [vmem:[%s12346_s1 + $0x1960] sm:$0xff]  ;;  %v842_v40 = vld [vmem:[%s12346_s1 + $0x1948] sm:$0xff] }
 0x166   :  { %6489 = vmatpush1.bf16.msra.mxu0 %v8505_v30  ;;  %6833 = vmatpush1.bf16.msra.mxu1 %v8507_v48  ;;  %v8564_v30 = vcombine.high %v794_v41, %v798_v42  ;;  %v801_v48 = vld [vmem:[%s12346_s1 + $0x1800] sm:$0xff]  ;;  %v846_v41 = vld [vmem:[%s12346_s1 + $0x1968] sm:$0xff] }
 0x167   :  { %6490 = vmatprep.subr.bf16.mxu0 %v8514_v49  ;;  %6834 = vmatprep.subr.bf16.mxu1 %v8516_v50  ;;  %v805_v49 = vld [vmem:[%s12346_s1 + $0x1820] sm:$0xff]  ;;  %v802_v50 = vld [vmem:[%s12346_s1 + $0x1808] sm:$0xff] }
 0x168   :  { %v8570_v57 = vcombine.high %v801_v48, %v805_v49  ;;  %v8571_v18 = vcombine.low %v802_v50, %v806_v52 }
 0x16a   :  { %6491 = vmatpush1.bf16.msra.mxu0 %v8513_v59  ;;  %6835 = vmatpush1.bf16.msra.mxu1 %v8515_v60  ;;  %v8572_v59 = vcombine.high %v802_v50, %v806_v52  ;;  %v809_v60 = vld [vmem:[%s12346_s1 + $0x1840] sm:$0xff]  ;;  %v854_v50 = vld [vmem:[%s12346_s1 + $0x19a8] sm:$0xff] }
 0x16b   :  { %6492 = vmatprep.subr.bf16.mxu0 %v8522_v61  ;;  %6836 = vmatprep.subr.bf16.mxu1 %v8524_v62  ;;  %v813_v61 = vld [vmem:[%s12346_s1 + $0x1860] sm:$0xff]  ;;  %v810_v62 = vld [vmem:[%s12346_s1 + $0x1848] sm:$0xff] }
 0x16c   :  { %v8578_v32 = vcombine.high %v809_v60, %v813_v61  ;;  %v8577_v12 = vcombine.low %v809_v60, %v813_v61  ;;  %v861_v60 = vld [vmem:[%s12346_s1 + $0x19e0] sm:$0xff]  ;;  %v858_v61 = vld [vmem:[%s12346_s1 + $0x19c8] sm:$0xff] }
 0x16e   :  { %6493 = vmatpush1.bf16.msra.mxu0 %v8521_v6  ;;  %6837 = vmatpush1.bf16.msra.mxu1 %v8523_v45  ;;  %v8569_v6 = vcombine.low %v801_v48, %v805_v49  ;;  %v8580_v45 = vcombine.high %v810_v62, %v814_v0  ;;  %v853_v48 = vld [vmem:[%s12346_s1 + $0x19a0] sm:$0xff]  ;;  %v850_v49 = vld [vmem:[%s12346_s1 + $0x1988] sm:$0xff] }
 0x16f   :  { %6494 = vmatprep.subr.bf16.mxu0 %v8530_v46  ;;  %6838 = vmatprep.subr.bf16.mxu1 %v8532_v7  ;;  %v817_v46 = vld [vmem:[%s12346_s1 + $0x1880] sm:$0xff] }
 0x170   :  { %v821_v7 = vld [vmem:[%s12346_s1 + $0x18a0] sm:$0xff] }
 0x171   :  { %v8585_v21 = vcombine.low %v817_v46, %v821_v7 }
 0x172   :  { %6495 = vmatpush1.bf16.msra.mxu0 %v8529_v13  ;;  %6839 = vmatpush1.bf16.msra.mxu1 %v8531_v14  ;;  %v8579_v13 = vcombine.low %v810_v62, %v814_v0  ;;  %v8586_v14 = vcombine.high %v817_v46, %v821_v7  ;;  %v862_v62 = vld [vmem:[%s12346_s1 + $0x19e8] sm:$0xff]  ;;  %v869_v46 = vld [vmem:[%s12346_s1 + $0x1a20] sm:$0xff] }
 0x173   :  { %6496 = vmatprep.subr.bf16.mxu0 %v8538_v16  ;;  %6840 = vmatprep.subr.bf16.mxu1 %v8540_v19  ;;  %v8588_v16 = vcombine.high %v818_v9, %v822_v11  ;;  %v825_v19 = vld [vmem:[%s12346_s1 + $0x18c0] sm:$0xff]  ;;  %v866_v7 = vld [vmem:[%s12346_s1 + $0x1a08] sm:$0xff] }
 0x174   :  { %v8593_v4 = vcombine.low %v825_v19, %v829_v53 }
 0x176   :  { %6497 = vmatpush1.bf16.msra.mxu0 %v8537_v22  ;;  %6841 = vmatpush1.bf16.msra.mxu1 %v8539_v24  ;;  %v8587_v22 = vcombine.low %v818_v9, %v822_v11  ;;  %v8594_v24 = vcombine.high %v825_v19, %v829_v53  ;;  %v870_v9 = vld [vmem:[%s12346_s1 + $0x1a28] sm:$0xff]  ;;  %v877_v19 = vld [vmem:[%s12346_s1 + $0x1a60] sm:$0xff] }
 0x177   :  { %6498 = vmatprep.subr.bf16.mxu0 %v8546_v25  ;;  %6842 = vmatprep.subr.bf16.mxu1 %v8548_v26  ;;  %v8596_v25 = vcombine.high %v826_v54, %v830_v20  ;;  %v833_v26 = vld [vmem:[%s12346_s1 + $0x1900] sm:$0xff]  ;;  %v874_v53 = vld [vmem:[%s12346_s1 + $0x1a48] sm:$0xff] }
 0x178   :  { %v8601_v42 = vcombine.low %v833_v26, %v837_v28 }
 0x17a   :  { %6499 = vmatpush1.bf16.msra.mxu0 %v8545_v5  ;;  %6843 = vmatpush1.bf16.msra.mxu1 %v8547_v34  ;;  %v8595_v5 = vcombine.low %v826_v54, %v830_v20  ;;  %v8602_v34 = vcombine.high %v833_v26, %v837_v28  ;;  %v878_v54 = vld [vmem:[%s12346_s1 + $0x1a68] sm:$0xff]  ;;  %v885_v26 = vld [vmem:[%s12346_s1 + $0x1aa0] sm:$0xff] }
 0x17b   :  { %6500 = vmatprep.subr.bf16.mxu0 %v8554_v36  ;;  %6844 = vmatprep.subr.bf16.mxu1 %v8556_v37  ;;  %v8604_v36 = vcombine.high %v834_v17, %v838_v33  ;;  %v841_v37 = vld [vmem:[%s12346_s1 + $0x1940] sm:$0xff]  ;;  %v882_v28 = vld [vmem:[%s12346_s1 + $0x1a88] sm:$0xff] }
 0x17c   :  { %v8609_v52 = vcombine.low %v841_v37, %v845_v39 }
 0x17e   :  { %6501 = vmatpush1.bf16.msra.mxu0 %v8553_v44  ;;  %6845 = vmatpush1.bf16.msra.mxu1 %v8555_v47  ;;  %v8603_v44 = vcombine.low %v834_v17, %v838_v33  ;;  %v8610_v47 = vcombine.high %v841_v37, %v845_v39  ;;  %v886_v17 = vld [vmem:[%s12346_s1 + $0x1aa8] sm:$0xff]  ;;  %v893_v37 = vld [vmem:[%s12346_s1 + $0x1ae0] sm:$0xff] }
 0x17f   :  { %6502 = vmatprep.subr.bf16.mxu0 %v8562_v29  ;;  %6846 = vmatprep.subr.bf16.mxu1 %v8564_v30  ;;  %v8612_v29 = vcombine.high %v842_v40, %v846_v41  ;;  %v849_v30 = vld [vmem:[%s12346_s1 + $0x1980] sm:$0xff]  ;;  %v890_v39 = vld [vmem:[%s12346_s1 + $0x1ac8] sm:$0xff] }
 0x180   :  { %v8617_v0 = vcombine.low %v849_v30, %v853_v48 }
 0x182   :  { %6503 = vmatpush1.bf16.msra.mxu0 %v8561_v55  ;;  %6847 = vmatpush1.bf16.msra.mxu1 %v8563_v56  ;;  %v8611_v55 = vcombine.low %v842_v40, %v846_v41  ;;  %v8618_v56 = vcombine.high %v849_v30, %v853_v48  ;;  %v894_v40 = vld [vmem:[%s12346_s1 + $0x1ae8] sm:$0xff]  ;;  %v901_v30 = vld [vmem:[%s12346_s1 + $0x1b20] sm:$0xff] }
 0x183   :  { %6515 = vmatprep.subr.bf16.mxu0 %v8570_v57  ;;  %6859 = vmatprep.subr.bf16.mxu1 %v8572_v59  ;;  %v8620_v57 = vcombine.high %v850_v49, %v854_v50  ;;  %v857_v59 = vld [vmem:[%s12346_s1 + $0x19c0] sm:$0xff]  ;;  %v898_v48 = vld [vmem:[%s12346_s1 + $0x1b08] sm:$0xff] }
 0x184   :  { %v8625_v11 = vcombine.low %v857_v59, %v861_v60 }
 0x185   :  { %6505 = vmatmul.mubr.bf16.vlgmr.msra.gmra.mrb[0].mxu0 %v10265_v63  ;;  %6849 = vmatmul.mubr.bf16.vlgmr.msra.gmra.mrb[0].mxu1 %v10265_v63 }
 0x186   :  { %6516 = vmatpush1.bf16.msra.mxu0 %v8569_v6  ;;  %6860 = vmatpush1.bf16.msra.mxu1 %v8571_v18  ;;  %v8619_v6 = vcombine.low %v850_v49, %v854_v50  ;;  %v8626_v18 = vcombine.high %v857_v59, %v861_v60  ;;  %v902_v49 = vld [vmem:[%s12346_s1 + $0x1b28] sm:$0xff]  ;;  %v909_v59 = vld [vmem:[%s12346_s1 + $0x1b60] sm:$0xff] }
 0x187   :  { %6517 = vmatprep.subr.bf16.mxu0 %v8578_v32  ;;  %6861 = vmatprep.subr.bf16.mxu1 %v8580_v45  ;;  %v8628_v32 = vcombine.high %v858_v61, %v862_v62  ;;  %v865_v45 = vld [vmem:[%s12346_s1 + $0x1a00] sm:$0xff]  ;;  %v906_v60 = vld [vmem:[%s12346_s1 + $0x1b48] sm:$0xff] }
 0x188   :  { %6547 = vmatprep.mubr.bf16.mxu0 %v10288_v8  ;;  %6891 = vmatprep.mubr.bf16.mxu1 %v10288_v8  ;;  %v8633_v20 = vcombine.low %v865_v45, %v869_v46 }
 0x18a   :  { %6518 = vmatpush1.bf16.msra.mxu0 %v8577_v12  ;;  %6862 = vmatpush1.bf16.msra.mxu1 %v8579_v13  ;;  %v8627_v12 = vcombine.low %v858_v61, %v862_v62  ;;  %v8634_v13 = vcombine.high %v865_v45, %v869_v46  ;;  %v910_v61 = vld [vmem:[%s12346_s1 + $0x1b68] sm:$0xff]  ;;  %v917_v45 = vld [vmem:[%s12346_s1 + $0x1ba0] sm:$0xff] }
 0x18b   :  { %6519 = vmatprep.subr.bf16.mxu0 %v8586_v14  ;;  %6863 = vmatprep.subr.bf16.mxu1 %v8588_v16  ;;  %v8636_v14 = vcombine.high %v866_v7, %v870_v9  ;;  %v873_v16 = vld [vmem:[%s12346_s1 + $0x1a40] sm:$0xff]  ;;  %v914_v46 = vld [vmem:[%s12346_s1 + $0x1b88] sm:$0xff] }
 0x18c   :  { %v8641_v33 = vcombine.low %v873_v16, %v877_v19 }
 0x18e   :  { %6520 = vmatpush1.bf16.msra.mxu0 %v8585_v21  ;;  %6864 = vmatpush1.bf16.msra.mxu1 %v8587_v22  ;;  %v8635_v21 = vcombine.low %v866_v7, %v870_v9  ;;  %v8642_v22 = vcombine.high %v873_v16, %v877_v19  ;;  %v918_v7 = vld [vmem:[%s12346_s1 + $0x1ba8] sm:$0xff]  ;;  %v925_v16 = vld [vmem:[%s12346_s1 + $0x1be0] sm:$0xff] }
 0x18f   :  { %6521 = vmatprep.subr.bf16.mxu0 %v8594_v24  ;;  %6865 = vmatprep.subr.bf16.mxu1 %v8596_v25  ;;  %v8644_v24 = vcombine.high %v874_v53, %v878_v54  ;;  %v881_v25 = vld [vmem:[%s12346_s1 + $0x1a80] sm:$0xff]  ;;  %v922_v19 = vld [vmem:[%s12346_s1 + $0x1bc8] sm:$0xff] }
 0x190   :  { %v8649_v41 = vcombine.low %v881_v25, %v885_v26 }
 0x192   :  { %6522 = vmatpush1.bf16.msra.mxu0 %v8593_v4  ;;  %6866 = vmatpush1.bf16.msra.mxu1 %v8595_v5  ;;  %v8643_v4 = vcombine.low %v874_v53, %v878_v54  ;;  %v8650_v5 = vcombine.high %v881_v25, %v885_v26  ;;  %v926_v53 = vld [vmem:[%s12346_s1 + $0x1be8] sm:$0xff]  ;;  %v933_v25 = vld [vmem:[%s12346_s1 + $0x1c20] sm:$0xff] }
 0x193   :  { %6523 = vmatprep.subr.bf16.mxu0 %v8602_v34  ;;  %6867 = vmatprep.subr.bf16.mxu1 %v8604_v36  ;;  %v8652_v34 = vcombine.high %v882_v28, %v886_v17  ;;  %v889_v36 = vld [vmem:[%s12346_s1 + $0x1ac0] sm:$0xff]  ;;  %v930_v26 = vld [vmem:[%s12346_s1 + $0x1c08] sm:$0xff] }
 0x194   :  { %v8657_v50 = vcombine.low %v889_v36, %v893_v37 }
 0x196   :  { %6524 = vmatpush1.bf16.msra.mxu0 %v8601_v42  ;;  %6868 = vmatpush1.bf16.msra.mxu1 %v8603_v44  ;;  %v8651_v42 = vcombine.low %v882_v28, %v886_v17  ;;  %v8658_v44 = vcombine.high %v889_v36, %v893_v37  ;;  %v934_v28 = vld [vmem:[%s12346_s1 + $0x1c28] sm:$0xff]  ;;  %v941_v36 = vld [vmem:[%s12346_s1 + $0x1c60] sm:$0xff] }
 0x197   :  { %6525 = vmatprep.subr.bf16.mxu0 %v8610_v47  ;;  %6869 = vmatprep.subr.bf16.mxu1 %v8612_v29  ;;  %v8660_v47 = vcombine.high %v890_v39, %v894_v40  ;;  %v897_v29 = vld [vmem:[%s12346_s1 + $0x1b00] sm:$0xff]  ;;  %v938_v37 = vld [vmem:[%s12346_s1 + $0x1c48] sm:$0xff] }
 0x198   :  { %v8665_v62 = vcombine.low %v897_v29, %v901_v30 }
 0x19a   :  { %6526 = vmatpush1.bf16.msra.mxu0 %v8609_v52  ;;  %6870 = vmatpush1.bf16.msra.mxu1 %v8611_v55  ;;  %v8659_v52 = vcombine.low %v890_v39, %v894_v40  ;;  %v8666_v55 = vcombine.high %v897_v29, %v901_v30  ;;  %v10479_v39 = vcombine.low %v10273_v1, %v10278_v3  ;;  %v942_v40 = vld [vmem:[%s12346_s1 + $0x1c68] sm:$0xff]  ;;  %v945_v29 = vld [vmem:[%s12346_s1 + $0x1c80] sm:$0xff] }
 0x19b   :  { %6527 = vmatprep.subr.bf16.mxu0 %v8618_v56  ;;  %6871 = vmatprep.subr.bf16.mxu1 %v8620_v57  ;;  %v8668_v56 = vcombine.high %v898_v48, %v902_v49  ;;  %v905_v57 = vld [vmem:[%s12346_s1 + $0x1b40] sm:$0xff]  ;;  %v8699_v1 = vcombine.low %v930_v26, %v934_v28 }
 0x19c   :  { %v8673_v9 = vcombine.low %v905_v57, %v909_v59  ;;  %v949_v30 = vld [vmem:[%s12346_s1 + $0x1ca0] sm:$0xff] }
 0x19e   :  { %6528 = vmatpush1.bf16.msra.mxu0 %v8617_v0  ;;  %6872 = vmatpush1.bf16.msra.mxu1 %v8619_v6  ;;  %v8667_v0 = vcombine.low %v898_v48, %v902_v49  ;;  %v8674_v6 = vcombine.high %v905_v57, %v909_v59  ;;  %v946_v49 = vld [vmem:[%s12346_s1 + $0x1c88] sm:$0xff]  ;;  %v953_v59 = vld [vmem:[%s12346_s1 + $0x1cc0] sm:$0xff] }
 0x19f   :  { %6529 = vmatprep.subr.bf16.mxu0 %v8626_v18  ;;  %6873 = vmatprep.subr.bf16.mxu1 %v8628_v32  ;;  %v8676_v18 = vcombine.high %v906_v60, %v910_v61  ;;  %v913_v32 = vld [vmem:[%s12346_s1 + $0x1b80] sm:$0xff] }
 0x1a0   :  { %v8681_v54 = vcombine.low %v913_v32, %v917_v45 }
 0x1a2   :  { %6530 = vmatpush1.bf16.msra.mxu0 %v8625_v11  ;;  %6874 = vmatpush1.bf16.msra.mxu1 %v8627_v12  ;;  %v8675_v11 = vcombine.low %v906_v60, %v910_v61  ;;  %v8682_v12 = vcombine.high %v913_v32, %v917_v45  ;;  %v957_v60 = vld [vmem:[%s12346_s1 + $0x1ce0] sm:$0xff]  ;;  %v954_v61 = vld [vmem:[%s12346_s1 + $0x1cc8] sm:$0xff] }
 0x1a3   :  { %6531 = vmatprep.subr.bf16.mxu0 %v8634_v13  ;;  %6875 = vmatprep.subr.bf16.mxu1 %v8636_v14  ;;  %v8684_v13 = vcombine.high %v914_v46, %v918_v7  ;;  %v921_v14 = vld [vmem:[%s12346_s1 + $0x1bc0] sm:$0xff] }
 0x1a4   :  { %v8689_v17 = vcombine.low %v921_v14, %v925_v16  ;;  %v961_v45 = vld [vmem:[%s12346_s1 + $0x1d00] sm:$0xff] }
 0x1a6   :  { %6532 = vmatpush1.bf16.msra.mxu0 %v8633_v20  ;;  %6876 = vmatpush1.bf16.msra.mxu1 %v8635_v21  ;;  %v8683_v20 = vcombine.low %v914_v46, %v918_v7  ;;  %v8690_v21 = vcombine.high %v921_v14, %v925_v16  ;;  %v965_v46 = vld [vmem:[%s12346_s1 + $0x1d20] sm:$0xff]  ;;  %v962_v7 = vld [vmem:[%s12346_s1 + $0x1d08] sm:$0xff] }
 0x1a7   :  { %6533 = vmatprep.subr.bf16.mxu0 %v8642_v22  ;;  %6877 = vmatprep.subr.bf16.mxu1 %v8644_v24  ;;  %v8692_v22 = vcombine.high %v922_v19, %v926_v53  ;;  %v929_v24 = vld [vmem:[%s12346_s1 + $0x1c00] sm:$0xff] }
 0x1a8   :  { %v969_v16 = vld [vmem:[%s12346_s1 + $0x1d40] sm:$0xff] }
 0x1aa   :  { %6534 = vmatpush1.bf16.msra.mxu0 %v8641_v33  ;;  %6878 = vmatpush1.bf16.msra.mxu1 %v8643_v4  ;;  %v8691_v33 = vcombine.low %v922_v19, %v926_v53  ;;  %v8698_v4 = vcombine.high %v929_v24, %v933_v25  ;;  %v973_v19 = vld [vmem:[%s12346_s1 + $0x1d60] sm:$0xff]  ;;  %v970_v53 = vld [vmem:[%s12346_s1 + $0x1d48] sm:$0xff] }
 0x1ab   :  { %6535 = vmatprep.subr.bf16.mxu0 %v8650_v5  ;;  %6879 = vmatprep.subr.bf16.mxu1 %v8652_v34  ;;  %v8700_v5 = vcombine.high %v930_v26, %v934_v28  ;;  %v937_v34 = vld [vmem:[%s12346_s1 + $0x1c40] sm:$0xff]  ;;  %v978_v28 = vld [vmem:[%s12346_s1 + $0x1d88] sm:$0xff] }
 0x1ac   :  { %v8706_v3 = vcombine.high %v937_v34, %v941_v36  ;;  %v981_v26 = vld [vmem:[%s12346_s1 + $0x1da0] sm:$0xff] }
 0x1ae   :  { %6536 = vmatpush1.bf16.msra.mxu0 %v8649_v41  ;;  %6880 = vmatpush1.bf16.msra.mxu1 %v8651_v42  ;;  %v10487_v41 = vld [vmem:[%s12347_s0 + $0x38] sm:$0xff] }
 0x1af   :  { %6537 = vmatprep.subr.bf16.mxu0 %v8658_v44  ;;  %6881 = vmatprep.subr.bf16.mxu1 %v8660_v47  ;;  %v10492_v42 = vld [vmem:[%s12347_s0 + $0x78] sm:$0xff]  ;;  %v8697_v44 = vcombine.low %v929_v24, %v933_v25  ;;  %v8708_v47 = vcombine.high %v938_v37, %v942_v40  ;;  %v977_v25 = vld [vmem:[%s12346_s1 + $0x1d80] sm:$0xff] }
 0x1b0   :  { %v10502_v48 = vcombine.high %v10487_v41, %v10492_v42 }
 0x1b2   :  { %6538 = vmatpush1.bf16.msra.mxu0 %v8657_v50  ;;  %6882 = vmatpush1.bf16.msra.mxu1 %v8659_v52  ;;  %v950_v50 = vld [vmem:[%s12346_s1 + $0x1ca8] sm:$0xff]  ;;  %v8705_v52 = vcombine.low %v937_v34, %v941_v36  ;;  %v985_v36 = vld [vmem:[%s12346_s1 + $0x1dc0] sm:$0xff] }
 0x1b3   :  { %6539 = vmatprep.subr.bf16.mxu0 %v8666_v55  ;;  %6883 = vmatprep.subr.bf16.mxu1 %v8668_v56  ;;  %v8707_v55 = vcombine.low %v938_v37, %v942_v40  ;;  %v8714_v56 = vcombine.high %v945_v29, %v949_v30  ;;  %v8716_v57 = vcombine.high %v946_v49, %v950_v50  ;;  %v989_v37 = vld [vmem:[%s12346_s1 + $0x1de0] sm:$0xff]  ;;  %v986_v40 = vld [vmem:[%s12346_s1 + $0x1dc8] sm:$0xff] }
 0x1b6   :  { %6540 = vmatpush1.bf16.msra.mxu0 %v8665_v62  ;;  %6884 = vmatpush1.bf16.msra.mxu1 %v8667_v0  ;;  %v958_v62 = vld [vmem:[%s12346_s1 + $0x1ce8] sm:$0xff]  ;;  %v8713_v0 = vcombine.low %v945_v29, %v949_v30  ;;  %v993_v30 = vld [vmem:[%s12346_s1 + $0x1e00] sm:$0xff] }
 0x1b7   :  { %6541 = vmatprep.subr.bf16.mxu0 %v8674_v6  ;;  %6885 = vmatprep.subr.bf16.mxu1 %v8676_v18  ;;  %v8715_v6 = vcombine.low %v946_v49, %v950_v50  ;;  %v8722_v18 = vcombine.high %v953_v59, %v957_v60  ;;  %v8724_v32 = vcombine.high %v954_v61, %v958_v62  ;;  %v997_v49 = vld [vmem:[%s12346_s1 + $0x1e20] sm:$0xff]  ;;  %v994_v50 = vld [vmem:[%s12346_s1 + $0x1e08] sm:$0xff] }
 0x1ba   :  { %6542 = vmatpush1.bf16.msra.mxu0 %v8673_v9  ;;  %6886 = vmatpush1.bf16.msra.mxu1 %v8675_v11  ;;  %v966_v9 = vld [vmem:[%s12346_s1 + $0x1d28] sm:$0xff]  ;;  %v8721_v11 = vcombine.low %v953_v59, %v957_v60  ;;  %v1001_v60 = vld [vmem:[%s12346_s1 + $0x1e40] sm:$0xff] }
 0x1bb   :  { %6543 = vmatprep.subr.bf16.mxu0 %v8682_v12  ;;  %6887 = vmatprep.subr.bf16.mxu1 %v8684_v13  ;;  %v8723_v12 = vcombine.low %v954_v61, %v958_v62  ;;  %v8730_v13 = vcombine.high %v961_v45, %v965_v46  ;;  %v8732_v14 = vcombine.high %v962_v7, %v966_v9  ;;  %v1005_v61 = vld [vmem:[%s12346_s1 + $0x1e60] sm:$0xff]  ;;  %v1002_v62 = vld [vmem:[%s12346_s1 + $0x1e48] sm:$0xff] }
 0x1be   :  { %6544 = vmatpush1.bf16.msra.mxu0 %v8681_v54  ;;  %6888 = vmatpush1.bf16.msra.mxu1 %v8683_v20  ;;  %v974_v54 = vld [vmem:[%s12346_s1 + $0x1d68] sm:$0xff]  ;;  %v8729_v20 = vcombine.low %v961_v45, %v965_v46  ;;  %v1009_v46 = vld [vmem:[%s12346_s1 + $0x1e80] sm:$0xff] }
 0x1bf   :  { %6545 = vmatprep.subr.bf16.mxu0 %v8690_v21  ;;  %6889 = vmatprep.subr.bf16.mxu1 %v8692_v22  ;;  %v8731_v21 = vcombine.low %v962_v7, %v966_v9  ;;  %v8738_v22 = vcombine.high %v969_v16, %v973_v19  ;;  %v8740_v24 = vcombine.high %v970_v53, %v974_v54  ;;  %v1013_v7 = vld [vmem:[%s12346_s1 + $0x1ea0] sm:$0xff]  ;;  %v1010_v9 = vld [vmem:[%s12346_s1 + $0x1e88] sm:$0xff] }
 0x1c2   :  { %6546 = vmatpush1.bf16.msra.mxu0 %v8689_v17  ;;  %6890 = vmatpush1.bf16.msra.mxu1 %v8691_v33  ;;  %v982_v17 = vld [vmem:[%s12346_s1 + $0x1da8] sm:$0xff]  ;;  %v8737_v33 = vcombine.low %v969_v16, %v973_v19  ;;  %v1017_v19 = vld [vmem:[%s12346_s1 + $0x1ec0] sm:$0xff] }
 0x1c3   :  { %6558 = vmatprep.subr.bf16.mxu0 %v8698_v4  ;;  %6902 = vmatprep.subr.bf16.mxu1 %v8700_v5  ;;  %v8739_v4 = vcombine.low %v970_v53, %v974_v54  ;;  %v8746_v5 = vcombine.high %v977_v25, %v981_v26  ;;  %v8748_v34 = vcombine.high %v978_v28, %v982_v17  ;;  %v1021_v53 = vld [vmem:[%s12346_s1 + $0x1ee0] sm:$0xff]  ;;  %v1018_v54 = vld [vmem:[%s12346_s1 + $0x1ec8] sm:$0xff] }
 0x1c5   :  { %6548 = vmatmul.mubr.bf16.vlgmr.msra.gmra.mrb[0].mxu0 %v10479_v39  ;;  %6892 = vmatmul.mubr.bf16.vlgmr.msra.gmra.mrb[0].mxu1 %v10479_v39 }
 0x1c6   :  { %6559 = vmatpush1.bf16.msra.mxu0 %v8697_v44  ;;  %6903 = vmatpush1.bf16.msra.mxu1 %v8699_v1  ;;  %v990_v44 = vld [vmem:[%s12346_s1 + $0x1de8] sm:$0xff]  ;;  %v8745_v1 = vcombine.low %v977_v25, %v981_v26  ;;  %v1025_v26 = vld [vmem:[%s12346_s1 + $0x1f00] sm:$0xff] }
 0x1c7   :  { %6560 = vmatprep.subr.bf16.mxu0 %v8706_v3  ;;  %6904 = vmatprep.subr.bf16.mxu1 %v8708_v47  ;;  %v8747_v3 = vcombine.low %v978_v28, %v982_v17  ;;  %v8754_v47 = vcombine.high %v985_v36, %v989_v37  ;;  %v8756_v29 = vcombine.high %v986_v40, %v990_v44  ;;  %v1029_v28 = vld [vmem:[%s12346_s1 + $0x1f20] sm:$0xff]  ;;  %v1026_v17 = vld [vmem:[%s12346_s1 + $0x1f08] sm:$0xff] }
 0x1c8   :  { %6590 = vmatprep.mubr.bf16.mxu0 %v10502_v48  ;;  %6934 = vmatprep.mubr.bf16.mxu1 %v10502_v48 }
 0x1ca   :  { %6561 = vmatpush1.bf16.msra.mxu0 %v8705_v52  ;;  %6905 = vmatpush1.bf16.msra.mxu1 %v8707_v55  ;;  %v998_v52 = vld [vmem:[%s12346_s1 + $0x1e28] sm:$0xff]  ;;  %v8753_v55 = vcombine.low %v985_v36, %v989_v37  ;;  %v1033_v37 = vld [vmem:[%s12346_s1 + $0x1f40] sm:$0xff] }
 0x1cb   :  { %6562 = vmatprep.subr.bf16.mxu0 %v8714_v56  ;;  %6906 = vmatprep.subr.bf16.mxu1 %v8716_v57  ;;  %v8755_v56 = vcombine.low %v986_v40, %v990_v44  ;;  %v8762_v57 = vcombine.high %v993_v30, %v997_v49  ;;  %v8764_v59 = vcombine.high %v994_v50, %v998_v52  ;;  %v1037_v40 = vld [vmem:[%s12346_s1 + $0x1f60] sm:$0xff]  ;;  %v1034_v44 = vld [vmem:[%s12346_s1 + $0x1f48] sm:$0xff] }
 0x1ce   :  { %6563 = vmatpush1.bf16.msra.mxu0 %v8713_v0  ;;  %6907 = vmatpush1.bf16.msra.mxu1 %v8715_v6  ;;  %v1006_v0 = vld [vmem:[%s12346_s1 + $0x1e68] sm:$0xff]  ;;  %v8761_v6 = vcombine.low %v993_v30, %v997_v49  ;;  %v1041_v49 = vld [vmem:[%s12346_s1 + $0x1f80] sm:$0xff] }
 0x1cf   :  { %6564 = vmatprep.subr.bf16.mxu0 %v8722_v18  ;;  %6908 = vmatprep.subr.bf16.mxu1 %v8724_v32  ;;  %v8763_v18 = vcombine.low %v994_v50, %v998_v52  ;;  %v8770_v32 = vcombine.high %v1001_v60, %v1005_v61  ;;  %v8772_v45 = vcombine.high %v1002_v62, %v1006_v0  ;;  %v1045_v50 = vld [vmem:[%s12346_s1 + $0x1fa0] sm:$0xff]  ;;  %v1042_v52 = vld [vmem:[%s12346_s1 + $0x1f88] sm:$0xff] }
 0x1d2   :  { %6565 = vmatpush1.bf16.msra.mxu0 %v8721_v11  ;;  %6909 = vmatpush1.bf16.msra.mxu1 %v8723_v12  ;;  %v1014_v11 = vld [vmem:[%s12346_s1 + $0x1ea8] sm:$0xff]  ;;  %v8769_v12 = vcombine.low %v1001_v60, %v1005_v61  ;;  %v1049_v61 = vld [vmem:[%s12346_s1 + $0x1fc0] sm:$0xff] }
 0x1d3   :  { %6566 = vmatprep.subr.bf16.mxu0 %v8730_v13  ;;  %6910 = vmatprep.subr.bf16.mxu1 %v8732_v14  ;;  %v8771_v13 = vcombine.low %v1002_v62, %v1006_v0  ;;  %v8778_v14 = vcombine.high %v1009_v46, %v1013_v7  ;;  %v8780_v16 = vcombine.high %v1010_v9, %v1014_v11  ;;  %v1053_v62 = vld [vmem:[%s12346_s1 + $0x1fe0] sm:$0xff]  ;;  %v1050_v0 = vld [vmem:[%s12346_s1 + $0x1fc8] sm:$0xff] }
 0x1d6   :  { %6567 = vmatpush1.bf16.msra.mxu0 %v8729_v20  ;;  %6911 = vmatpush1.bf16.msra.mxu1 %v8731_v21  ;;  %v1022_v20 = vld [vmem:[%s12346_s1 + $0x1ee8] sm:$0xff]  ;;  %v8777_v21 = vcombine.low %v1009_v46, %v1013_v7  ;;  %v35_v7 = vld [vmem:[%s12346_s1 + $0x10] sm:$0xff] }
 0x1d7   :  { %6568 = vmatprep.subr.bf16.mxu0 %v8738_v22  ;;  %6912 = vmatprep.subr.bf16.mxu1 %v8740_v24  ;;  %v8779_v22 = vcombine.low %v1010_v9, %v1014_v11  ;;  %v8786_v24 = vcombine.high %v1017_v19, %v1021_v53  ;;  %v8788_v25 = vcombine.high %v1018_v54, %v1022_v20  ;;  %v39_v9 = vld [vmem:[%s12346_s1 + $0x30] sm:$0xff]  ;;  %v36_v11 = vld [vmem:[%s12346_s1 + $0x18] sm:$0xff] }
 0x1da   :  { %6569 = vmatpush1.bf16.msra.mxu0 %v8737_v33  ;;  %6913 = vmatpush1.bf16.msra.mxu1 %v8739_v4  ;;  %v1030_v33 = vld [vmem:[%s12346_s1 + $0x1f28] sm:$0xff]  ;;  %v8785_v4 = vcombine.low %v1017_v19, %v1021_v53  ;;  %v43_v53 = vld [vmem:[%s12346_s1 + $0x50] sm:$0xff] }
 0x1db   :  { %6570 = vmatprep.subr.bf16.mxu0 %v8746_v5  ;;  %6914 = vmatprep.subr.bf16.mxu1 %v8748_v34  ;;  %v8787_v5 = vcombine.low %v1018_v54, %v1022_v20  ;;  %v8794_v34 = vcombine.high %v1025_v26, %v1029_v28  ;;  %v8796_v36 = vcombine.high %v1026_v17, %v1030_v33  ;;  %v47_v54 = vld [vmem:[%s12346_s1 + $0x70] sm:$0xff] }
 0x1dc   :  { %v10690_v20 = vcombine.low %v10487_v41, %v10492_v42  ;;  %v51_v41 = vld [vmem:[%s12346_s1 + $0x90] sm:$0xff] }
 0x1dd   :  { %v55_v42 = vld [vmem:[%s12346_s1 + $0xb0] sm:$0xff] }
 0x1de   :  { %6571 = vmatpush1.bf16.msra.mxu0 %v8745_v1  ;;  %6915 = vmatpush1.bf16.msra.mxu1 %v8747_v3  ;;  %v1038_v1 = vld [vmem:[%s12346_s1 + $0x1f68] sm:$0xff]  ;;  %v8793_v3 = vcombine.low %v1025_v26, %v1029_v28  ;;  %v7814_v26 = vcombine.high %v43_v53, %v47_v54 }
 0x1df   :  { %6572 = vmatprep.subr.bf16.mxu0 %v8754_v47  ;;  %6916 = vmatprep.subr.bf16.mxu1 %v8756_v29  ;;  %v8795_v47 = vcombine.low %v1026_v17, %v1030_v33  ;;  %v8802_v29 = vcombine.high %v1033_v37, %v1037_v40  ;;  %v8804_v30 = vcombine.high %v1034_v44, %v1038_v1  ;;  %v52_v17 = vld [vmem:[%s12346_s1 + $0x98] sm:$0xff] }
 0x1e0   :  { %v56_v33 = vld [vmem:[%s12346_s1 + $0xb8] sm:$0xff] }
 0x1e2   :  { %6573 = vmatpush1.bf16.msra.mxu0 %v8753_v55  ;;  %6917 = vmatpush1.bf16.msra.mxu1 %v8755_v56  ;;  %v1046_v55 = vld [vmem:[%s12346_s1 + $0x1fa8] sm:$0xff]  ;;  %v8801_v56 = vcombine.low %v1033_v37, %v1037_v40  ;;  %v59_v37 = vld [vmem:[%s12346_s1 + $0xd0] sm:$0xff] }
 0x1e3   :  { %6574 = vmatprep.subr.bf16.mxu0 %v8762_v57  ;;  %6918 = vmatprep.subr.bf16.mxu1 %v8764_v59  ;;  %v8803_v57 = vcombine.low %v1034_v44, %v1038_v1  ;;  %v8810_v59 = vcombine.high %v1041_v49, %v1045_v50  ;;  %v8812_v60 = vcombine.high %v1042_v52, %v1046_v55  ;;  %v63_v40 = vld [vmem:[%s12346_s1 + $0xf0] sm:$0xff]  ;;  %v60_v44 = vld [vmem:[%s12346_s1 + $0xd8] sm:$0xff] }
 0x1e4   :  { %v64_v1 = vld [vmem:[%s12346_s1 + $0xf8] sm:$0xff] }
 0x1e6   :  { %6575 = vmatpush1.bf16.msra.mxu0 %v8761_v6  ;;  %6919 = vmatpush1.bf16.msra.mxu1 %v8763_v18  ;;  %v1054_v6 = vld [vmem:[%s12346_s1 + $0x1fe8] sm:$0xff]  ;;  %v8809_v18 = vcombine.low %v1041_v49, %v1045_v50  ;;  %v67_v49 = vld [vmem:[%s12346_s1 + $0x110] sm:$0xff] }
 0x1e7   :  { %6576 = vmatprep.subr.bf16.mxu0 %v8770_v32  ;;  %6920 = vmatprep.subr.bf16.mxu1 %v8772_v45  ;;  %v8811_v32 = vcombine.low %v1042_v52, %v1046_v55  ;;  %v8818_v45 = vcombine.high %v1049_v61, %v1053_v62  ;;  %v8820_v46 = vcombine.high %v1050_v0, %v1054_v6  ;;  %v71_v50 = vld [vmem:[%s12346_s1 + $0x130] sm:$0xff]  ;;  %v72_v52 = vld [vmem:[%s12346_s1 + $0x138] sm:$0xff] }
 0x1e8   :  { %v7829_v55 = vcombine.low %v59_v37, %v63_v40 }
 0x1ea   :  { %6577 = vmatpush1.bf16.msra.mxu0 %v8769_v12  ;;  %6921 = vmatpush1.bf16.msra.mxu1 %v8771_v13  ;;  %v40_v12 = vld [vmem:[%s12346_s1 + $0x38] sm:$0xff]  ;;  %v8817_v13 = vcombine.low %v1049_v61, %v1053_v62  ;;  %v79_v61 = vld [vmem:[%s12346_s1 + $0x170] sm:$0xff] }
 0x1eb   :  { %6578 = vmatprep.subr.bf16.mxu0 %v8778_v14  ;;  %6922 = vmatprep.subr.bf16.mxu1 %v8780_v16  ;;  %v8819_v14 = vcombine.low %v1050_v0, %v1054_v6  ;;  %v7806_v16 = vcombine.high %v35_v7, %v39_v9  ;;  %v7808_v19 = vcombine.high %v36_v11, %v40_v12  ;;  %v76_v62 = vld [vmem:[%s12346_s1 + $0x158] sm:$0xff] }
 0x1ec   :  { %v80_v0 = vld [vmem:[%s12346_s1 + $0x178] sm:$0xff]  ;;  %v7837_v6 = vcombine.low %v67_v49, %v71_v50 }
 0x1ee   :  { %6579 = vmatpush1.bf16.msra.mxu0 %v8777_v21  ;;  %6923 = vmatpush1.bf16.msra.mxu1 %v8779_v22  ;;  %v44_v21 = vld [vmem:[%s12346_s1 + $0x58] sm:$0xff] }
 0x1ef   :  { %6580 = vmatprep.subr.bf16.mxu0 %v8786_v24  ;;  %6924 = vmatprep.subr.bf16.mxu1 %v8788_v25  ;;  %v48_v22 = vld [vmem:[%s12346_s1 + $0x78] sm:$0xff]  ;;  %v7805_v24 = vcombine.low %v35_v7, %v39_v9  ;;  %v7807_v25 = vcombine.low %v36_v11, %v40_v12  ;;  %v87_v7 = vld [vmem:[%s12346_s1 + $0x1b0] sm:$0xff] }
 0x1f0   :  { %v7816_v28 = vcombine.high %v44_v21, %v48_v22  ;;  %v84_v9 = vld [vmem:[%s12346_s1 + $0x198] sm:$0xff] }
 0x1f1   :  { %v88_v11 = vld [vmem:[%s12346_s1 + $0x1b8] sm:$0xff] }
 0x1f2   :  { %6581 = vmatpush1.bf16.msra.mxu0 %v8785_v4  ;;  %6925 = vmatpush1.bf16.msra.mxu1 %v8787_v5  ;;  %v7813_v4 = vcombine.low %v43_v53, %v47_v54  ;;  %v7815_v5 = vcombine.low %v44_v21, %v48_v22  ;;  %v95_v53 = vld [vmem:[%s12346_s1 + $0x1f0] sm:$0xff]  ;;  %v92_v54 = vld [vmem:[%s12346_s1 + $0x1d8] sm:$0xff] }
 0x1f3   :  { %6582 = vmatprep.subr.bf16.mxu0 %v8794_v34  ;;  %6926 = vmatprep.subr.bf16.mxu1 %v8796_v36  ;;  %v7822_v34 = vcombine.high %v51_v41, %v55_v42  ;;  %v7824_v36 = vcombine.high %v52_v17, %v56_v33  ;;  %v96_v21 = vld [vmem:[%s12346_s1 + $0x1f8] sm:$0xff] }
 0x1f6   :  { %6583 = vmatpush1.bf16.msra.mxu0 %v8793_v3  ;;  %6927 = vmatpush1.bf16.msra.mxu1 %v8795_v47  ;;  %v7821_v3 = vcombine.low %v51_v41, %v55_v42  ;;  %v7823_v47 = vcombine.low %v52_v17, %v56_v33  ;;  %v103_v41 = vld [vmem:[%s12346_s1 + $0x230] sm:$0xff]  ;;  %v100_v42 = vld [vmem:[%s12346_s1 + $0x218] sm:$0xff] }
 0x1f7   :  { %6584 = vmatprep.subr.bf16.mxu0 %v8802_v29  ;;  %6928 = vmatprep.subr.bf16.mxu1 %v8804_v30  ;;  %v7830_v29 = vcombine.high %v59_v37, %v63_v40  ;;  %v7832_v30 = vcombine.high %v60_v44, %v64_v1  ;;  %v104_v17 = vld [vmem:[%s12346_s1 + $0x238] sm:$0xff]  ;;  %v111_v37 = vld [vmem:[%s12346_s1 + $0x270] sm:$0xff] }
 0x1f8   :  { %v108_v40 = vld [vmem:[%s12346_s1 + $0x258] sm:$0xff] }
 0x1fa   :  { %6585 = vmatpush1.bf16.msra.mxu0 %v8801_v56  ;;  %6929 = vmatpush1.bf16.msra.mxu1 %v8803_v57  ;;  %v7831_v56 = vcombine.low %v60_v44, %v64_v1  ;;  %v7838_v57 = vcombine.high %v67_v49, %v71_v50  ;;  %v112_v44 = vld [vmem:[%s12346_s1 + $0x278] sm:$0xff]  ;;  %v119_v49 = vld [vmem:[%s12346_s1 + $0x2b0] sm:$0xff] }
 0x1fb   :  { %6586 = vmatprep.subr.bf16.mxu0 %v8810_v59  ;;  %6930 = vmatprep.subr.bf16.mxu1 %v8812_v60  ;;  %v75_v60 = vld [vmem:[%s12346_s1 + $0x150] sm:$0xff]  ;;  %v116_v50 = vld [vmem:[%s12346_s1 + $0x298] sm:$0xff] }
 0x1fc   :  { %v7845_v12 = vcombine.low %v75_v60, %v79_v61 }
 0x1fe   :  { %6587 = vmatpush1.bf16.msra.mxu0 %v8809_v18  ;;  %6931 = vmatpush1.bf16.msra.mxu1 %v8811_v32  ;;  %v7846_v32 = vcombine.high %v75_v60, %v79_v61  ;;  %v127_v60 = vld [vmem:[%s12346_s1 + $0x2f0] sm:$0xff]  ;;  %v124_v61 = vld [vmem:[%s12346_s1 + $0x2d8] sm:$0xff] }
 0x1ff   :  { %6588 = vmatprep.subr.bf16.mxu0 %v8818_v45  ;;  %6932 = vmatprep.subr.bf16.mxu1 %v8820_v46  ;;  %v7848_v45 = vcombine.high %v76_v62, %v80_v0  ;;  %v83_v46 = vld [vmem:[%s12346_s1 + $0x190] sm:$0xff] }
 0x200   :  { %v7853_v22 = vcombine.low %v83_v46, %v87_v7 }
 0x202   :  { %6589 = vmatpush1.bf16.msra.mxu0 %v8817_v13  ;;  %6933 = vmatpush1.bf16.msra.mxu1 %v8819_v14  ;;  %v7847_v13 = vcombine.low %v76_v62, %v80_v0  ;;  %v7854_v14 = vcombine.high %v83_v46, %v87_v7  ;;  %v128_v62 = vld [vmem:[%s12346_s1 + $0x2f8] sm:$0xff]  ;;  %v135_v46 = vld [vmem:[%s12346_s1 + $0x330] sm:$0xff] }
 0x203   :  { %6945 = vmatprep.subr.bf16.mxu0 %v7806_v16  ;;  %7289 = vmatprep.subr.bf16.mxu1 %v7808_v19  ;;  %v7856_v16 = vcombine.high %v84_v9, %v88_v11  ;;  %v91_v19 = vld [vmem:[%s12346_s1 + $0x1d0] sm:$0xff]  ;;  %v132_v7 = vld [vmem:[%s12346_s1 + $0x318] sm:$0xff] }
 0x204   :  { %v7861_v33 = vcombine.low %v91_v19, %v95_v53 }
 0x205   :  { %6591 = vmatmul.mubr.bf16.vlgmr.msra.gmra.mrb[0].mxu0 %v10690_v20  ;;  %6935 = vmatmul.mubr.bf16.vlgmr.msra.gmra.mrb[0].mxu1 %v10690_v20 }
 0x206   :  { %6946 = vmatpush1.bf16.msra.mxu0 %v7805_v24  ;;  %7290 = vmatpush1.bf16.msra.mxu1 %v7807_v25  ;;  %v7855_v24 = vcombine.low %v84_v9, %v88_v11  ;;  %v7862_v25 = vcombine.high %v91_v19, %v95_v53  ;;  %v136_v9 = vld [vmem:[%s12346_s1 + $0x338] sm:$0xff]  ;;  %v143_v19 = vld [vmem:[%s12346_s1 + $0x370] sm:$0xff] }
 0x207   :  { %6947 = vmatprep.subr.bf16.mxu0 %v7814_v26  ;;  %7291 = vmatprep.subr.bf16.mxu1 %v7816_v28  ;;  %v7864_v26 = vcombine.high %v92_v54, %v96_v21  ;;  %v99_v28 = vld [vmem:[%s12346_s1 + $0x210] sm:$0xff]  ;;  %v140_v53 = vld [vmem:[%s12346_s1 + $0x358] sm:$0xff] }
 0x208   :  { %6977 = vmatprep.mubr.bf16.mxu0 %v9066_v58  ;;  %7321 = vmatprep.mubr.bf16.mxu1 %v9066_v58  ;;  %v68_v58 = vld [vmem:[%s12346_s1 + $0x118] sm:$0xff]  ;;  %v7869_v1 = vcombine.low %v99_v28, %v103_v41 }
 0x209   :  { %v7840_v59 = vcombine.high %v68_v58, %v72_v52  ;;  %v7839_v18 = vcombine.low %v68_v58, %v72_v52  ;;  %v120_v58 = vld [vmem:[%s12346_s1 + $0x2b8] sm:$0xff] }
 0x20a   :  { %6948 = vmatpush1.bf16.msra.mxu0 %v7813_v4  ;;  %7292 = vmatpush1.bf16.msra.mxu1 %v7815_v5  ;;  %v7863_v4 = vcombine.low %v92_v54, %v96_v21  ;;  %v7870_v5 = vcombine.high %v99_v28, %v103_v41  ;;  %v144_v54 = vld [vmem:[%s12346_s1 + $0x378] sm:$0xff]  ;;  %v151_v28 = vld [vmem:[%s12346_s1 + $0x3b0] sm:$0xff] }
 0x20b   :  { %6949 = vmatprep.subr.bf16.mxu0 %v7822_v34  ;;  %7293 = vmatprep.subr.bf16.mxu1 %v7824_v36  ;;  %v7872_v34 = vcombine.high %v100_v42, %v104_v17  ;;  %v107_v36 = vld [vmem:[%s12346_s1 + $0x250] sm:$0xff]  ;;  %v148_v41 = vld [vmem:[%s12346_s1 + $0x398] sm:$0xff] }
 0x20c   :  { %v7877_v52 = vcombine.low %v107_v36, %v111_v37 }
 0x20e   :  { %6950 = vmatpush1.bf16.msra.mxu0 %v7821_v3  ;;  %7294 = vmatpush1.bf16.msra.mxu1 %v7823_v47  ;;  %v7871_v3 = vcombine.low %v100_v42, %v104_v17  ;;  %v7878_v47 = vcombine.high %v107_v36, %v111_v37  ;;  %v152_v42 = vld [vmem:[%s12346_s1 + $0x3b8] sm:$0xff]  ;;  %v159_v36 = vld [vmem:[%s12346_s1 + $0x3f0] sm:$0xff] }
 0x20f   :  { %6951 = vmatprep.subr.bf16.mxu0 %v7830_v29  ;;  %7295 = vmatprep.subr.bf16.mxu1 %v7832_v30  ;;  %v7880_v29 = vcombine.high %v108_v40, %v112_v44  ;;  %v115_v30 = vld [vmem:[%s12346_s1 + $0x290] sm:$0xff]  ;;  %v156_v37 = vld [vmem:[%s12346_s1 + $0x3d8] sm:$0xff] }
 0x210   :  { %v7885_v0 = vcombine.low %v115_v30, %v119_v49 }
 0x212   :  { %6952 = vmatpush1.bf16.msra.mxu0 %v7829_v55  ;;  %7296 = vmatpush1.bf16.msra.mxu1 %v7831_v56  ;;  %v7879_v55 = vcombine.low %v108_v40, %v112_v44  ;;  %v7886_v56 = vcombine.high %v115_v30, %v119_v49  ;;  %v160_v40 = vld [vmem:[%s12346_s1 + $0x3f8] sm:$0xff]  ;;  %v167_v30 = vld [vmem:[%s12346_s1 + $0x430] sm:$0xff] }
 0x213   :  { %6953 = vmatprep.subr.bf16.mxu0 %v7838_v57  ;;  %7297 = vmatprep.subr.bf16.mxu1 %v7840_v59  ;;  %v7888_v57 = vcombine.high %v116_v50, %v120_v58  ;;  %v123_v59 = vld [vmem:[%s12346_s1 + $0x2d0] sm:$0xff]  ;;  %v164_v49 = vld [vmem:[%s12346_s1 + $0x418] sm:$0xff] }
 0x214   :  { %v7893_v11 = vcombine.low %v123_v59, %v127_v60 }
 0x216   :  { %6954 = vmatpush1.bf16.msra.mxu0 %v7837_v6  ;;  %7298 = vmatpush1.bf16.msra.mxu1 %v7839_v18  ;;  %v7887_v6 = vcombine.low %v116_v50, %v120_v58  ;;  %v7894_v18 = vcombine.high %v123_v59, %v127_v60  ;;  %v168_v50 = vld [vmem:[%s12346_s1 + $0x438] sm:$0xff]  ;;  %v175_v59 = vld [vmem:[%s12346_s1 + $0x470] sm:$0xff] }
 0x217   :  { %6955 = vmatprep.subr.bf16.mxu0 %v7846_v32  ;;  %7299 = vmatprep.subr.bf16.mxu1 %v7848_v45  ;;  %v7896_v32 = vcombine.high %v124_v61, %v128_v62  ;;  %v131_v45 = vld [vmem:[%s12346_s1 + $0x310] sm:$0xff]  ;;  %v172_v60 = vld [vmem:[%s12346_s1 + $0x458] sm:$0xff] }
 0x218   :  { %v7901_v21 = vcombine.low %v131_v45, %v135_v46 }
 0x21a   :  { %6956 = vmatpush1.bf16.msra.mxu0 %v7845_v12  ;;  %7300 = vmatpush1.bf16.msra.mxu1 %v7847_v13  ;;  %v7895_v12 = vcombine.low %v124_v61, %v128_v62  ;;  %v7902_v13 = vcombine.high %v131_v45, %v135_v46  ;;  %v176_v61 = vld [vmem:[%s12346_s1 + $0x478] sm:$0xff]  ;;  %v183_v45 = vld [vmem:[%s12346_s1 + $0x4b0] sm:$0xff] }
 0x21b   :  { %6957 = vmatprep.subr.bf16.mxu0 %v7854_v14  ;;  %7301 = vmatprep.subr.bf16.mxu1 %v7856_v16  ;;  %v7904_v14 = vcombine.high %v132_v7, %v136_v9  ;;  %v139_v16 = vld [vmem:[%s12346_s1 + $0x350] sm:$0xff]  ;;  %v180_v46 = vld [vmem:[%s12346_s1 + $0x498] sm:$0xff] }
 0x21c   :  { %v7909_v17 = vcombine.low %v139_v16, %v143_v19 }
 0x21e   :  { %6958 = vmatpush1.bf16.msra.mxu0 %v7853_v22  ;;  %7302 = vmatpush1.bf16.msra.mxu1 %v7855_v24  ;;  %v7903_v22 = vcombine.low %v132_v7, %v136_v9  ;;  %v7910_v24 = vcombine.high %v139_v16, %v143_v19  ;;  %v184_v7 = vld [vmem:[%s12346_s1 + $0x4b8] sm:$0xff]  ;;  %v191_v16 = vld [vmem:[%s12346_s1 + $0x4f0] sm:$0xff] }
 0x21f   :  { %6959 = vmatprep.subr.bf16.mxu0 %v7862_v25  ;;  %7303 = vmatprep.subr.bf16.mxu1 %v7864_v26  ;;  %v7912_v25 = vcombine.high %v140_v53, %v144_v54  ;;  %v147_v26 = vld [vmem:[%s12346_s1 + $0x390] sm:$0xff]  ;;  %v192_v19 = vld [vmem:[%s12346_s1 + $0x4f8] sm:$0xff] }
 0x220   :  { %v7917_v44 = vcombine.low %v147_v26, %v151_v28 }
 0x222   :  { %6960 = vmatpush1.bf16.msra.mxu0 %v7861_v33  ;;  %7304 = vmatpush1.bf16.msra.mxu1 %v7863_v4  ;;  %v7911_v33 = vcombine.low %v140_v53, %v144_v54  ;;  %v7918_v4 = vcombine.high %v147_v26, %v151_v28  ;;  %v7951_v54 = vcombine.low %v180_v46, %v184_v7  ;;  %v200_v26 = vld [vmem:[%s12346_s1 + $0x538] sm:$0xff] }
 0x223   :  { %6961 = vmatprep.subr.bf16.mxu0 %v7870_v5  ;;  %7305 = vmatprep.subr.bf16.mxu1 %v7872_v34  ;;  %v7920_v5 = vcombine.high %v148_v41, %v152_v42  ;;  %v155_v34 = vld [vmem:[%s12346_s1 + $0x3d0] sm:$0xff] }
 0x224   :  { %v7925_v58 = vcombine.low %v155_v34, %v159_v36 }
 0x226   :  { %6962 = vmatpush1.bf16.msra.mxu0 %v7869_v1  ;;  %7306 = vmatpush1.bf16.msra.mxu1 %v7871_v3  ;;  %v7919_v1 = vcombine.low %v148_v41, %v152_v42  ;;  %v7926_v3 = vcombine.high %v155_v34, %v159_v36  ;;  %v208_v34 = vld [vmem:[%s12346_s1 + $0x578] sm:$0xff] }
 0x227   :  { %6963 = vmatprep.subr.bf16.mxu0 %v7878_v47  ;;  %7307 = vmatprep.subr.bf16.mxu1 %v7880_v29  ;;  %v7928_v47 = vcombine.high %v156_v37, %v160_v40  ;;  %v163_v29 = vld [vmem:[%s12346_s1 + $0x410] sm:$0xff] }
 0x228   :  { %v7933_v62 = vcombine.low %v163_v29, %v167_v30 }
 0x22a   :  { %6964 = vmatpush1.bf16.msra.mxu0 %v7877_v52  ;;  %7308 = vmatpush1.bf16.msra.mxu1 %v7879_v55  ;;  %v7927_v52 = vcombine.low %v156_v37, %v160_v40  ;;  %v7934_v55 = vcombine.high %v163_v29, %v167_v30  ;;  %v216_v29 = vld [vmem:[%s12346_s1 + $0x5b8] sm:$0xff] }
 0x22b   :  { %6965 = vmatprep.subr.bf16.mxu0 %v7886_v56  ;;  %7309 = vmatprep.subr.bf16.mxu1 %v7888_v57  ;;  %v7936_v56 = vcombine.high %v164_v49, %v168_v50  ;;  %v171_v57 = vld [vmem:[%s12346_s1 + $0x450] sm:$0xff] }
 0x22c   :  { %v7941_v9 = vcombine.low %v171_v57, %v175_v59 }
 0x22e   :  { %6966 = vmatpush1.bf16.msra.mxu0 %v7885_v0  ;;  %7310 = vmatpush1.bf16.msra.mxu1 %v7887_v6  ;;  %v7935_v0 = vcombine.low %v164_v49, %v168_v50  ;;  %v7942_v6 = vcombine.high %v171_v57, %v175_v59  ;;  %v224_v57 = vld [vmem:[%s12346_s1 + $0x5f8] sm:$0xff] }
 0x22f   :  { %6967 = vmatprep.subr.bf16.mxu0 %v7894_v18  ;;  %7311 = vmatprep.subr.bf16.mxu1 %v7896_v32  ;;  %v7944_v18 = vcombine.high %v172_v60, %v176_v61  ;;  %v179_v32 = vld [vmem:[%s12346_s1 + $0x490] sm:$0xff] }
 0x230   :  { %v7949_v53 = vcombine.low %v179_v32, %v183_v45 }
 0x232   :  { %6968 = vmatpush1.bf16.msra.mxu0 %v7893_v11  ;;  %7312 = vmatpush1.bf16.msra.mxu1 %v7895_v12  ;;  %v7943_v11 = vcombine.low %v172_v60, %v176_v61  ;;  %v7950_v12 = vcombine.high %v179_v32, %v183_v45  ;;  %v232_v32 = vld [vmem:[%s12346_s1 + $0x638] sm:$0xff] }
 0x233   :  { %6969 = vmatprep.subr.bf16.mxu0 %v7902_v13  ;;  %7313 = vmatprep.subr.bf16.mxu1 %v7904_v14  ;;  %v7952_v13 = vcombine.high %v180_v46, %v184_v7  ;;  %v187_v14 = vld [vmem:[%s12346_s1 + $0x4d0] sm:$0xff] }
 0x234   :  { %v7957_v28 = vcombine.low %v187_v14, %v191_v16 }
 0x236   :  { %6970 = vmatpush1.bf16.msra.mxu0 %v7901_v21  ;;  %7314 = vmatpush1.bf16.msra.mxu1 %v7903_v22  ;;  %v7958_v21 = vcombine.high %v187_v14, %v191_v16  ;;  %v240_v14 = vld [vmem:[%s12346_s1 + $0x678] sm:$0xff] }
 0x237   :  { %6971 = vmatprep.subr.bf16.mxu0 %v7910_v24  ;;  %7315 = vmatprep.subr.bf16.mxu1 %v7912_v25  ;;  %v195_v24 = vld [vmem:[%s12346_s1 + $0x510] sm:$0xff] }
 0x238   :  { %v199_v25 = vld [vmem:[%s12346_s1 + $0x530] sm:$0xff] }
 0x239   :  { %v7966_v42 = vcombine.high %v195_v24, %v199_v25  ;;  %v7965_v36 = vcombine.low %v195_v24, %v199_v25  ;;  %v248_v24 = vld [vmem:[%s12346_s1 + $0x6b8] sm:$0xff] }
 0x23a   :  { %6972 = vmatpush1.bf16.msra.mxu0 %v7909_v17  ;;  %7316 = vmatpush1.bf16.msra.mxu1 %v7911_v33  ;;  %v203_v33 = vld [vmem:[%s12346_s1 + $0x550] sm:$0xff] }
 0x23b   :  { %6973 = vmatprep.subr.bf16.mxu0 %v7918_v4  ;;  %7317 = vmatprep.subr.bf16.mxu1 %v7920_v5  ;;  %v207_v4 = vld [vmem:[%s12346_s1 + $0x570] sm:$0xff]  ;;  %v204_v5 = vld [vmem:[%s12346_s1 + $0x558] sm:$0xff] }
 0x23c   :  { %v7974_v40 = vcombine.high %v203_v33, %v207_v4  ;;  %v7973_v30 = vcombine.low %v203_v33, %v207_v4  ;;  %v7975_v49 = vcombine.low %v204_v5, %v208_v34  ;;  %v256_v33 = vld [vmem:[%s12346_s1 + $0x6f8] sm:$0xff] }
 0x23e   :  { %6974 = vmatpush1.bf16.msra.mxu0 %v7917_v44  ;;  %7318 = vmatpush1.bf16.msra.mxu1 %v7919_v1  ;;  %v7976_v44 = vcombine.high %v204_v5, %v208_v34  ;;  %v211_v1 = vld [vmem:[%s12346_s1 + $0x590] sm:$0xff] }
 0x23f   :  { %6975 = vmatprep.subr.bf16.mxu0 %v7926_v3  ;;  %7319 = vmatprep.subr.bf16.mxu1 %v7928_v47  ;;  %v215_v3 = vld [vmem:[%s12346_s1 + $0x5b0] sm:$0xff]  ;;  %v212_v47 = vld [vmem:[%s12346_s1 + $0x598] sm:$0xff] }
 0x240   :  { %v7982_v50 = vcombine.high %v211_v1, %v215_v3  ;;  %v7981_v59 = vcombine.low %v211_v1, %v215_v3  ;;  %v7983_v60 = vcombine.low %v212_v47, %v216_v29  ;;  %v264_v1 = vld [vmem:[%s12346_s1 + $0x738] sm:$0xff] }
 0x242   :  { %6976 = vmatpush1.bf16.msra.mxu0 %v7925_v58  ;;  %7320 = vmatpush1.bf16.msra.mxu1 %v7927_v52  ;;  %v7984_v58 = vcombine.high %v212_v47, %v216_v29  ;;  %v219_v52 = vld [vmem:[%s12346_s1 + $0x5d0] sm:$0xff] }
 0x243   :  { %6988 = vmatprep.subr.bf16.mxu0 %v7934_v55  ;;  %7332 = vmatprep.subr.bf16.mxu1 %v7936_v56  ;;  %v223_v55 = vld [vmem:[%s12346_s1 + $0x5f0] sm:$0xff]  ;;  %v220_v56 = vld [vmem:[%s12346_s1 + $0x5d8] sm:$0xff] }
 0x244   :  { %v7990_v61 = vcombine.high %v219_v52, %v223_v55  ;;  %v7989_v45 = vcombine.low %v219_v52, %v223_v55  ;;  %v7991_v46 = vcombine.low %v220_v56, %v224_v57  ;;  %v272_v52 = vld [vmem:[%s12346_s1 + $0x778] sm:$0xff] }
 0x245   :  { %6978 = vmatmul.mubr.bf16.vlgmr.msra.gmra.mrb[4].mxu0 %v9195_v15  ;;  %7322 = vmatmul.mubr.bf16.vlgmr.msra.gmra.mrb[4].mxu1 %v9195_v15  ;;  %v188_v15 = vld [vmem:[%s12346_s1 + $0x4d8] sm:$0xff] }
 0x246   :  { %6989 = vmatpush1.bf16.msra.mxu0 %v7933_v62  ;;  %7333 = vmatpush1.bf16.msra.mxu1 %v7935_v0  ;;  %v7960_v22 = vcombine.high %v188_v15, %v192_v19  ;;  %v7959_v41 = vcombine.low %v188_v15, %v192_v19  ;;  %v7992_v62 = vcombine.high %v220_v56, %v224_v57  ;;  %v227_v0 = vld [vmem:[%s12346_s1 + $0x610] sm:$0xff] }
 0x247   :  { %6990 = vmatprep.subr.bf16.mxu0 %v7942_v6  ;;  %7334 = vmatprep.subr.bf16.mxu1 %v7944_v18  ;;  %v231_v6 = vld [vmem:[%s12346_s1 + $0x630] sm:$0xff]  ;;  %v228_v18 = vld [vmem:[%s12346_s1 + $0x618] sm:$0xff] }
 0x248   :  { %7020 = vmatprep.mubr.bf16.mxu0 %v9218_v23  ;;  %7364 = vmatprep.mubr.bf16.mxu1 %v9218_v23  ;;  %v196_v23 = vld [vmem:[%s12346_s1 + $0x518] sm:$0xff]  ;;  %v7998_v7 = vcombine.high %v227_v0, %v231_v6  ;;  %v7997_v16 = vcombine.low %v227_v0, %v231_v6  ;;  %v7999_v15 = vcombine.low %v228_v18, %v232_v32 }
 0x249   :  { %v7968_v17 = vcombine.high %v196_v23, %v200_v26  ;;  %v7967_v37 = vcombine.low %v196_v23, %v200_v26  ;;  %v280_v0 = vld [vmem:[%s12346_s1 + $0x7b8] sm:$0xff] }
 0x24a   :  { %6991 = vmatpush1.bf16.msra.mxu0 %v7941_v9  ;;  %7335 = vmatpush1.bf16.msra.mxu1 %v7943_v11  ;;  %v8000_v9 = vcombine.high %v228_v18, %v232_v32  ;;  %v235_v11 = vld [vmem:[%s12346_s1 + $0x650] sm:$0xff] }
 0x24b   :  { %6992 = vmatprep.subr.bf16.mxu0 %v7950_v12  ;;  %7336 = vmatprep.subr.bf16.mxu1 %v7952_v13  ;;  %v239_v12 = vld [vmem:[%s12346_s1 + $0x670] sm:$0xff]  ;;  %v236_v13 = vld [vmem:[%s12346_s1 + $0x658] sm:$0xff] }
 0x24c   :  { %v8006_v19 = vcombine.high %v235_v11, %v239_v12  ;;  %v8005_v25 = vcombine.low %v235_v11, %v239_v12  ;;  %v8007_v23 = vcombine.low %v236_v13, %v240_v14  ;;  %v288_v11 = vld [vmem:[%s12346_s1 + $0x7f8] sm:$0xff] }
 0x24e   :  { %6993 = vmatpush1.bf16.msra.mxu0 %v7949_v53  ;;  %7337 = vmatpush1.bf16.msra.mxu1 %v7951_v54  ;;  %v8008_v53 = vcombine.high %v236_v13, %v240_v14  ;;  %v243_v54 = vld [vmem:[%s12346_s1 + $0x690] sm:$0xff] }
 0x24f   :  { %6994 = vmatprep.subr.bf16.mxu0 %v7958_v21  ;;  %7338 = vmatprep.subr.bf16.mxu1 %v7960_v22  ;;  %v247_v21 = vld [vmem:[%s12346_s1 + $0x6b0] sm:$0xff]  ;;  %v244_v22 = vld [vmem:[%s12346_s1 + $0x698] sm:$0xff] }
 0x250   :  { %v8014_v26 = vcombine.high %v243_v54, %v247_v21  ;;  %v8013_v4 = vcombine.low %v243_v54, %v247_v21  ;;  %v8015_v5 = vcombine.low %v244_v22, %v248_v24  ;;  %v296_v54 = vld [vmem:[%s12346_s1 + $0x838] sm:$0xff] }
 0x252   :  { %6995 = vmatpush1.bf16.msra.mxu0 %v7957_v28  ;;  %7339 = vmatpush1.bf16.msra.mxu1 %v7959_v41  ;;  %v8016_v28 = vcombine.high %v244_v22, %v248_v24  ;;  %v251_v41 = vld [vmem:[%s12346_s1 + $0x6d0] sm:$0xff] }
 0x253   :  { %6996 = vmatprep.subr.bf16.mxu0 %v7966_v42  ;;  %7340 = vmatprep.subr.bf16.mxu1 %v7968_v17  ;;  %v255_v42 = vld [vmem:[%s12346_s1 + $0x6f0] sm:$0xff]  ;;  %v252_v17 = vld [vmem:[%s12346_s1 + $0x6d8] sm:$0xff] }
 0x254   :  { %v8022_v34 = vcombine.high %v251_v41, %v255_v42  ;;  %v8021_v3 = vcombine.low %v251_v41, %v255_v42  ;;  %v8023_v47 = vcombine.low %v252_v17, %v256_v33  ;;  %v304_v41 = vld [vmem:[%s12346_s1 + $0x878] sm:$0xff] }
 0x256   :  { %6997 = vmatpush1.bf16.msra.mxu0 %v7965_v36  ;;  %7341 = vmatpush1.bf16.msra.mxu1 %v7967_v37  ;;  %v8024_v36 = vcombine.high %v252_v17, %v256_v33  ;;  %v259_v37 = vld [vmem:[%s12346_s1 + $0x710] sm:$0xff] }
 0x257   :  { %6998 = vmatprep.subr.bf16.mxu0 %v7974_v40  ;;  %7342 = vmatprep.subr.bf16.mxu1 %v7976_v44  ;;  %v263_v40 = vld [vmem:[%s12346_s1 + $0x730] sm:$0xff]  ;;  %v260_v44 = vld [vmem:[%s12346_s1 + $0x718] sm:$0xff] }
 0x258   :  { %v8030_v29 = vcombine.high %v259_v37, %v263_v40  ;;  %v8029_v55 = vcombine.low %v259_v37, %v263_v40  ;;  %v8031_v56 = vcombine.low %v260_v44, %v264_v1  ;;  %v312_v37 = vld [vmem:[%s12346_s1 + $0x8b8] sm:$0xff] }
 0x25a   :  { %6999 = vmatpush1.bf16.msra.mxu0 %v7973_v30  ;;  %7343 = vmatpush1.bf16.msra.mxu1 %v7975_v49  ;;  %v8032_v30 = vcombine.high %v260_v44, %v264_v1  ;;  %v267_v49 = vld [vmem:[%s12346_s1 + $0x750] sm:$0xff] }
 0x25b   :  { %7000 = vmatprep.subr.bf16.mxu0 %v7982_v50  ;;  %7344 = vmatprep.subr.bf16.mxu1 %v7984_v58  ;;  %v271_v50 = vld [vmem:[%s12346_s1 + $0x770] sm:$0xff]  ;;  %v268_v58 = vld [vmem:[%s12346_s1 + $0x758] sm:$0xff] }
 0x25c   :  { %v8038_v57 = vcombine.high %v267_v49, %v271_v50  ;;  %v8037_v6 = vcombine.low %v267_v49, %v271_v50  ;;  %v8039_v18 = vcombine.low %v268_v58, %v272_v52 }
 0x25e   :  { %7001 = vmatpush1.bf16.msra.mxu0 %v7981_v59  ;;  %7345 = vmatpush1.bf16.msra.mxu1 %v7983_v60  ;;  %v8040_v59 = vcombine.high %v268_v58, %v272_v52  ;;  %v275_v60 = vld [vmem:[%s12346_s1 + $0x790] sm:$0xff] }
 0x25f   :  { %7002 = vmatprep.subr.bf16.mxu0 %v7990_v61  ;;  %7346 = vmatprep.subr.bf16.mxu1 %v7992_v62  ;;  %v279_v61 = vld [vmem:[%s12346_s1 + $0x7b0] sm:$0xff]  ;;  %v276_v62 = vld [vmem:[%s12346_s1 + $0x798] sm:$0xff] }
 0x260   :  { %v8046_v32 = vcombine.high %v275_v60, %v279_v61  ;;  %v8045_v12 = vcombine.low %v275_v60, %v279_v61  ;;  %v8047_v13 = vcombine.low %v276_v62, %v280_v0 }
 0x262   :  { %7003 = vmatpush1.bf16.msra.mxu0 %v7989_v45  ;;  %7347 = vmatpush1.bf16.msra.mxu1 %v7991_v46  ;;  %v8048_v45 = vcombine.high %v276_v62, %v280_v0  ;;  %v283_v46 = vld [vmem:[%s12346_s1 + $0x7d0] sm:$0xff] }
 0x263   :  { %7004 = vmatprep.subr.bf16.mxu0 %v7998_v7  ;;  %7348 = vmatprep.subr.bf16.mxu1 %v8000_v9  ;;  %v287_v7 = vld [vmem:[%s12346_s1 + $0x7f0] sm:$0xff]  ;;  %v284_v9 = vld [vmem:[%s12346_s1 + $0x7d8] sm:$0xff] }
 0x264   :  { %v8054_v14 = vcombine.high %v283_v46, %v287_v7  ;;  %v8053_v21 = vcombine.low %v283_v46, %v287_v7  ;;  %v8055_v22 = vcombine.low %v284_v9, %v288_v11  ;;  %v331_v0 = vld [vmem:[%s12346_s1 + $0x950] sm:$0xff] }
 0x266   :  { %7005 = vmatpush1.bf16.msra.mxu0 %v7997_v16  ;;  %7349 = vmatpush1.bf16.msra.mxu1 %v7999_v15  ;;  %v8056_v16 = vcombine.high %v284_v9, %v288_v11  ;;  %v291_v15 = vld [vmem:[%s12346_s1 + $0x810] sm:$0xff] }
 0x267   :  { %7006 = vmatprep.subr.bf16.mxu0 %v8006_v19  ;;  %7350 = vmatprep.subr.bf16.mxu1 %v8008_v53  ;;  %v295_v19 = vld [vmem:[%s12346_s1 + $0x830] sm:$0xff]  ;;  %v292_v53 = vld [vmem:[%s12346_s1 + $0x818] sm:$0xff] }
 0x268   :  { %v8062_v24 = vcombine.high %v291_v15, %v295_v19  ;;  %v8061_v42 = vcombine.low %v291_v15, %v295_v19  ;;  %v8063_v17 = vcombine.low %v292_v53, %v296_v54  ;;  %v339_v11 = vld [vmem:[%s12346_s1 + $0x990] sm:$0xff] }
 0x26a   :  { %7007 = vmatpush1.bf16.msra.mxu0 %v8005_v25  ;;  %7351 = vmatpush1.bf16.msra.mxu1 %v8007_v23  ;;  %v8064_v25 = vcombine.high %v292_v53, %v296_v54  ;;  %v299_v23 = vld [vmem:[%s12346_s1 + $0x850] sm:$0xff] }
 0x26b   :  { %7008 = vmatprep.subr.bf16.mxu0 %v8014_v26  ;;  %7352 = vmatprep.subr.bf16.mxu1 %v8016_v28  ;;  %v303_v26 = vld [vmem:[%s12346_s1 + $0x870] sm:$0xff]  ;;  %v300_v28 = vld [vmem:[%s12346_s1 + $0x858] sm:$0xff] }
 0x26c   :  { %v8070_v33 = vcombine.high %v299_v23, %v303_v26  ;;  %v8069_v40 = vcombine.low %v299_v23, %v303_v26  ;;  %v8071_v44 = vcombine.low %v300_v28, %v304_v41  ;;  %v347_v54 = vld [vmem:[%s12346_s1 + $0x9d0] sm:$0xff] }
 0x26e   :  { %7009 = vmatpush1.bf16.msra.mxu0 %v8013_v4  ;;  %7353 = vmatpush1.bf16.msra.mxu1 %v8015_v5  ;;  %v8072_v4 = vcombine.high %v300_v28, %v304_v41  ;;  %v307_v5 = vld [vmem:[%s12346_s1 + $0x890] sm:$0xff] }
 0x26f   :  { %7010 = vmatprep.subr.bf16.mxu0 %v8022_v34  ;;  %7354 = vmatprep.subr.bf16.mxu1 %v8024_v36  ;;  %v311_v34 = vld [vmem:[%s12346_s1 + $0x8b0] sm:$0xff]  ;;  %v308_v36 = vld [vmem:[%s12346_s1 + $0x898] sm:$0xff] }
 0x270   :  { %v8078_v1 = vcombine.high %v307_v5, %v311_v34  ;;  %v8077_v49 = vcombine.low %v307_v5, %v311_v34  ;;  %v8079_v50 = vcombine.low %v308_v36, %v312_v37  ;;  %v355_v41 = vld [vmem:[%s12346_s1 + $0xa10] sm:$0xff] }
 0x272   :  { %7011 = vmatpush1.bf16.msra.mxu0 %v8021_v3  ;;  %7355 = vmatpush1.bf16.msra.mxu1 %v8023_v47  ;;  %v8080_v3 = vcombine.high %v308_v36, %v312_v37  ;;  %v315_v47 = vld [vmem:[%s12346_s1 + $0x8d0] sm:$0xff] }
 0x273   :  { %7012 = vmatprep.subr.bf16.mxu0 %v8030_v29  ;;  %7356 = vmatprep.subr.bf16.mxu1 %v8032_v30  ;;  %v319_v29 = vld [vmem:[%s12346_s1 + $0x8f0] sm:$0xff]  ;;  %v320_v30 = vld [vmem:[%s12346_s1 + $0x8f8] sm:$0xff] }
 0x274   :  { %v8086_v58 = vcombine.high %v315_v47, %v319_v29  ;;  %v363_v37 = vld [vmem:[%s12346_s1 + $0xa50] sm:$0xff] }
 0x276   :  { %7013 = vmatpush1.bf16.msra.mxu0 %v8029_v55  ;;  %7357 = vmatpush1.bf16.msra.mxu1 %v8031_v56  ;;  %v323_v55 = vld [vmem:[%s12346_s1 + $0x910] sm:$0xff] }
 0x277   :  { %7014 = vmatprep.subr.bf16.mxu0 %v8038_v57  ;;  %7358 = vmatprep.subr.bf16.mxu1 %v8040_v59  ;;  %v327_v56 = vld [vmem:[%s12346_s1 + $0x930] sm:$0xff]  ;;  %v328_v57 = vld [vmem:[%s12346_s1 + $0x938] sm:$0xff]  ;;  %v8085_v59 = vcombine.low %v315_v47, %v319_v29 }
 0x278   :  { %v8094_v61 = vcombine.high %v323_v55, %v327_v56 }
 0x27a   :  { %7015 = vmatpush1.bf16.msra.mxu0 %v8037_v6  ;;  %7359 = vmatpush1.bf16.msra.mxu1 %v8039_v18  ;;  %v335_v6 = vld [vmem:[%s12346_s1 + $0x970] sm:$0xff]  ;;  %v332_v18 = vld [vmem:[%s12346_s1 + $0x958] sm:$0xff] }
 0x27b   :  { %7016 = vmatprep.subr.bf16.mxu0 %v8046_v32  ;;  %7360 = vmatprep.subr.bf16.mxu1 %v8048_v45  ;;  %v336_v32 = vld [vmem:[%s12346_s1 + $0x978] sm:$0xff]  ;;  %v8093_v45 = vcombine.low %v323_v55, %v327_v56  ;;  %v8102_v7 = vcombine.high %v331_v0, %v335_v6 }
 0x27c   :  { %v8104_v9 = vcombine.high %v332_v18, %v336_v32  ;;  %v8103_v15 = vcombine.low %v332_v18, %v336_v32  ;;  %v387_v32 = vld [vmem:[%s12346_s1 + $0xb10] sm:$0xff] }
 0x27e   :  { %7017 = vmatpush1.bf16.msra.mxu0 %v8045_v12  ;;  %7361 = vmatpush1.bf16.msra.mxu1 %v8047_v13  ;;  %v343_v12 = vld [vmem:[%s12346_s1 + $0x9b0] sm:$0xff]  ;;  %v340_v13 = vld [vmem:[%s12346_s1 + $0x998] sm:$0xff] }
 0x27f   :  { %7018 = vmatprep.subr.bf16.mxu0 %v8054_v14  ;;  %7362 = vmatprep.subr.bf16.mxu1 %v8056_v16  ;;  %v344_v14 = vld [vmem:[%s12346_s1 + $0x9b8] sm:$0xff]  ;;  %v8101_v16 = vcombine.low %v331_v0, %v335_v6  ;;  %v8110_v19 = vcombine.high %v339_v11, %v343_v12 }
 0x280   :  { %v8112_v53 = vcombine.high %v340_v13, %v344_v14  ;;  %v8111_v23 = vcombine.low %v340_v13, %v344_v14  ;;  %v395_v14 = vld [vmem:[%s12346_s1 + $0xb50] sm:$0xff] }
 0x282   :  { %7019 = vmatpush1.bf16.msra.mxu0 %v8053_v21  ;;  %7363 = vmatpush1.bf16.msra.mxu1 %v8055_v22  ;;  %v351_v21 = vld [vmem:[%s12346_s1 + $0x9f0] sm:$0xff]  ;;  %v348_v22 = vld [vmem:[%s12346_s1 + $0x9d8] sm:$0xff] }
 0x283   :  { %7031 = vmatprep.subr.bf16.mxu0 %v8062_v24  ;;  %7375 = vmatprep.subr.bf16.mxu1 %v8064_v25  ;;  %v352_v24 = vld [vmem:[%s12346_s1 + $0x9f8] sm:$0xff]  ;;  %v8109_v25 = vcombine.low %v339_v11, %v343_v12  ;;  %v8118_v26 = vcombine.high %v347_v54, %v351_v21 }
 0x284   :  { %v8120_v28 = vcombine.high %v348_v22, %v352_v24  ;;  %v8119_v5 = vcombine.low %v348_v22, %v352_v24  ;;  %v403_v24 = vld [vmem:[%s12346_s1 + $0xb90] sm:$0xff] }
 0x285   :  { %7021 = vmatmul.mubr.bf16.vlgmr.msra.gmra.mrb[4].mxu0 %v9409_v27  ;;  %7365 = vmatmul.mubr.bf16.vlgmr.msra.gmra.mrb[4].mxu1 %v9409_v27  ;;  %v316_v27 = vld [vmem:[%s12346_s1 + $0x8d8] sm:$0xff] }
 0x286   :  { %7032 = vmatpush1.bf16.msra.mxu0 %v8061_v42  ;;  %7376 = vmatpush1.bf16.msra.mxu1 %v8063_v17  ;;  %v8088_v52 = vcombine.high %v316_v27, %v320_v30  ;;  %v8087_v60 = vcombine.low %v316_v27, %v320_v30  ;;  %v359_v42 = vld [vmem:[%s12346_s1 + $0xa30] sm:$0xff]  ;;  %v356_v17 = vld [vmem:[%s12346_s1 + $0xa18] sm:$0xff] }
 0x287   :  { %7033 = vmatprep.subr.bf16.mxu0 %v8070_v33  ;;  %7377 = vmatprep.subr.bf16.mxu1 %v8072_v4  ;;  %v360_v33 = vld [vmem:[%s12346_s1 + $0xa38] sm:$0xff]  ;;  %v8117_v4 = vcombine.low %v347_v54, %v351_v21  ;;  %v8126_v34 = vcombine.high %v355_v41, %v359_v42  ;;  %v371_v30 = vld [vmem:[%s12346_s1 + $0xa90] sm:$0xff] }
 0x288   :  { %7063 = vmatprep.mubr.bf16.mxu0 %v9432_v35  ;;  %7407 = vmatprep.mubr.bf16.mxu1 %v9432_v35  ;;  %v324_v35 = vld [vmem:[%s12346_s1 + $0x918] sm:$0xff]  ;;  %v8128_v36 = vcombine.high %v356_v17, %v360_v33  ;;  %v8127_v47 = vcombine.low %v356_v17, %v360_v33  ;;  %v411_v33 = vld [vmem:[%s12346_s1 + $0xbd0] sm:$0xff] }
 0x289   :  { %v8096_v62 = vcombine.high %v324_v35, %v328_v57  ;;  %v8095_v46 = vcombine.low %v324_v35, %v328_v57  ;;  %v379_v57 = vld [vmem:[%s12346_s1 + $0xad0] sm:$0xff] }
 0x28a   :  { %7034 = vmatpush1.bf16.msra.mxu0 %v8069_v40  ;;  %7378 = vmatpush1.bf16.msra.mxu1 %v8071_v44  ;;  %v367_v40 = vld [vmem:[%s12346_s1 + $0xa70] sm:$0xff]  ;;  %v364_v44 = vld [vmem:[%s12346_s1 + $0xa58] sm:$0xff] }
 0x28b   :  { %7035 = vmatprep.subr.bf16.mxu0 %v8078_v1  ;;  %7379 = vmatprep.subr.bf16.mxu1 %v8080_v3  ;;  %v368_v1 = vld [vmem:[%s12346_s1 + $0xa78] sm:$0xff]  ;;  %v8125_v3 = vcombine.low %v355_v41, %v359_v42  ;;  %v8134_v29 = vcombine.high %v363_v37, %v367_v40 }
 0x28c   :  { %v8136_v27 = vcombine.high %v364_v44, %v368_v1  ;;  %v8135_v55 = vcombine.low %v364_v44, %v368_v1  ;;  %v419_v1 = vld [vmem:[%s12346_s1 + $0xc10] sm:$0xff] }
 0x28e   :  { %7036 = vmatpush1.bf16.msra.mxu0 %v8077_v49  ;;  %7380 = vmatpush1.bf16.msra.mxu1 %v8079_v50  ;;  %v375_v49 = vld [vmem:[%s12346_s1 + $0xab0] sm:$0xff]  ;;  %v372_v50 = vld [vmem:[%s12346_s1 + $0xa98] sm:$0xff] }
 0x28f   :  { %7037 = vmatprep.subr.bf16.mxu0 %v8086_v58  ;;  %7381 = vmatprep.subr.bf16.mxu1 %v8088_v52  ;;  %v376_v58 = vld [vmem:[%s12346_s1 + $0xab8] sm:$0xff]  ;;  %v8133_v52 = vcombine.low %v363_v37, %v367_v40  ;;  %v8142_v56 = vcombine.high %v371_v30, %v375_v49 }
 0x290   :  { %v8144_v35 = vcombine.high %v372_v50, %v376_v58  ;;  %v8143_v0 = vcombine.low %v372_v50, %v376_v58  ;;  %v427_v58 = vld [vmem:[%s12346_s1 + $0xc50] sm:$0xff] }
 0x292   :  { %7038 = vmatpush1.bf16.msra.mxu0 %v8085_v59  ;;  %7382 = vmatpush1.bf16.msra.mxu1 %v8087_v60  ;;  %v383_v59 = vld [vmem:[%s12346_s1 + $0xaf0] sm:$0xff]  ;;  %v380_v60 = vld [vmem:[%s12346_s1 + $0xad8] sm:$0xff] }
 0x293   :  { %7039 = vmatprep.subr.bf16.mxu0 %v8094_v61  ;;  %7383 = vmatprep.subr.bf16.mxu1 %v8096_v62  ;;  %v384_v61 = vld [vmem:[%s12346_s1 + $0xaf8] sm:$0xff]  ;;  %v8141_v62 = vcombine.low %v371_v30, %v375_v49  ;;  %v8150_v6 = vcombine.high %v379_v57, %v383_v59 }
 0x294   :  { %v8152_v18 = vcombine.high %v380_v60, %v384_v61  ;;  %v8151_v11 = vcombine.low %v380_v60, %v384_v61  ;;  %v435_v61 = vld [vmem:[%s12346_s1 + $0xc90] sm:$0xff] }
 0x296   :  { %7040 = vmatpush1.bf16.msra.mxu0 %v8093_v45  ;;  %7384 = vmatpush1.bf16.msra.mxu1 %v8095_v46  ;;  %v391_v45 = vld [vmem:[%s12346_s1 + $0xb30] sm:$0xff]  ;;  %v388_v46 = vld [vmem:[%s12346_s1 + $0xb18] sm:$0xff] }
 0x297   :  { %7041 = vmatprep.subr.bf16.mxu0 %v8102_v7  ;;  %7385 = vmatprep.subr.bf16.mxu1 %v8104_v9  ;;  %v392_v7 = vld [vmem:[%s12346_s1 + $0xb38] sm:$0xff]  ;;  %v8149_v9 = vcombine.low %v379_v57, %v383_v59  ;;  %v8158_v12 = vcombine.high %v387_v32, %v391_v45 }
 0x298   :  { %v8160_v13 = vcombine.high %v388_v46, %v392_v7  ;;  %v8159_v54 = vcombine.low %v388_v46, %v392_v7  ;;  %v443_v7 = vld [vmem:[%s12346_s1 + $0xcd0] sm:$0xff] }
 0x29a   :  { %7042 = vmatpush1.bf16.msra.mxu0 %v8101_v16  ;;  %7386 = vmatpush1.bf16.msra.mxu1 %v8103_v15  ;;  %v399_v16 = vld [vmem:[%s12346_s1 + $0xb70] sm:$0xff]  ;;  %v396_v15 = vld [vmem:[%s12346_s1 + $0xb58] sm:$0xff] }
 0x29b   :  { %7043 = vmatprep.subr.bf16.mxu0 %v8110_v19  ;;  %7387 = vmatprep.subr.bf16.mxu1 %v8112_v53  ;;  %v400_v19 = vld [vmem:[%s12346_s1 + $0xb78] sm:$0xff]  ;;  %v8157_v53 = vcombine.low %v387_v32, %v391_v45  ;;  %v8166_v21 = vcombine.high %v395_v14, %v399_v16 }
 0x29c   :  { %v8168_v22 = vcombine.high %v396_v15, %v400_v19  ;;  %v8167_v41 = vcombine.low %v396_v15, %v400_v19  ;;  %v451_v19 = vld [vmem:[%s12346_s1 + $0xd10] sm:$0xff] }
 0x29e   :  { %7044 = vmatpush1.bf16.msra.mxu0 %v8109_v25  ;;  %7388 = vmatpush1.bf16.msra.mxu1 %v8111_v23  ;;  %v407_v25 = vld [vmem:[%s12346_s1 + $0xbb0] sm:$0xff]  ;;  %v404_v23 = vld [vmem:[%s12346_s1 + $0xb98] sm:$0xff] }
 0x29f   :  { %7045 = vmatprep.subr.bf16.mxu0 %v8118_v26  ;;  %7389 = vmatprep.subr.bf16.mxu1 %v8120_v28  ;;  %v408_v26 = vld [vmem:[%s12346_s1 + $0xbb8] sm:$0xff]  ;;  %v8165_v28 = vcombine.low %v395_v14, %v399_v16  ;;  %v8174_v42 = vcombine.high %v403_v24, %v407_v25 }
 0x2a0   :  { %v8176_v17 = vcombine.high %v404_v23, %v408_v26  ;;  %v8175_v37 = vcombine.low %v404_v23, %v408_v26  ;;  %v459_v26 = vld [vmem:[%s12346_s1 + $0xd50] sm:$0xff] }
 0x2a2   :  { %7046 = vmatpush1.bf16.msra.mxu0 %v8117_v4  ;;  %7390 = vmatpush1.bf16.msra.mxu1 %v8119_v5  ;;  %v415_v4 = vld [vmem:[%s12346_s1 + $0xbf0] sm:$0xff]  ;;  %v412_v5 = vld [vmem:[%s12346_s1 + $0xbd8] sm:$0xff] }
 0x2a3   :  { %7047 = vmatprep.subr.bf16.mxu0 %v8126_v34  ;;  %7391 = vmatprep.subr.bf16.mxu1 %v8128_v36  ;;  %v416_v34 = vld [vmem:[%s12346_s1 + $0xbf8] sm:$0xff]  ;;  %v8173_v36 = vcombine.low %v403_v24, %v407_v25  ;;  %v8182_v40 = vcombine.high %v411_v33, %v415_v4 }
 0x2a4   :  { %v8184_v44 = vcombine.high %v412_v5, %v416_v34  ;;  %v8183_v30 = vcombine.low %v412_v5, %v416_v34  ;;  %v7633_v5 = vld [vmem:[%s12348_s2] sm:$0xff] }
 0x2a6   :  { %7048 = vmatpush1.bf16.msra.mxu0 %v8125_v3  ;;  %7392 = vmatpush1.bf16.msra.mxu1 %v8127_v47  ;;  %v423_v3 = vld [vmem:[%s12346_s1 + $0xc30] sm:$0xff]  ;;  %v420_v47 = vld [vmem:[%s12346_s1 + $0xc18] sm:$0xff] }
 0x2a7   :  { %7049 = vmatprep.subr.bf16.mxu0 %v8134_v29  ;;  %7393 = vmatprep.subr.bf16.mxu1 %v8136_v27  ;;  %v424_v29 = vld [vmem:[%s12346_s1 + $0xc38] sm:$0xff]  ;;  %v8181_v27 = vcombine.low %v411_v33, %v415_v4  ;;  %v8190_v49 = vcombine.high %v419_v1, %v423_v3 }
 0x2a8   :  { %v8192_v50 = vcombine.high %v420_v47, %v424_v29  ;;  %v8191_v57 = vcombine.low %v420_v47, %v424_v29  ;;  %v464_v33 = vld [vmem:[%s12346_s1 + $0xd78] sm:$0xff]  ;;  %v11358_v47 = vld [vmem:[%s12346_s1 + $0xdb0] sm:$0xff] }
 0x2aa   :  { %7050 = vmatpush1.bf16.msra.mxu0 %v8133_v52  ;;  %7394 = vmatpush1.bf16.msra.mxu1 %v8135_v55  ;;  %v431_v52 = vld [vmem:[%s12346_s1 + $0xc70] sm:$0xff]  ;;  %v428_v55 = vld [vmem:[%s12346_s1 + $0xc58] sm:$0xff] }
 0x2ab   :  { %7051 = vmatprep.subr.bf16.mxu0 %v8142_v56  ;;  %7395 = vmatprep.subr.bf16.mxu1 %v8144_v35  ;;  %v432_v56 = vld [vmem:[%s12346_s1 + $0xc78] sm:$0xff]  ;;  %v8189_v35 = vcombine.low %v419_v1, %v423_v3  ;;  %v8198_v59 = vcombine.high %v427_v58, %v431_v52  ;;  %v11353_v3 = vld [vmem:[%s12346_s1 + $0xd90] sm:$0xff] }
 0x2ac   :  { %v8200_v60 = vcombine.high %v428_v55, %v432_v56  ;;  %v8199_v32 = vcombine.low %v428_v55, %v432_v56  ;;  %v11373_v56 = vld [vmem:[%s12346_s1 + $0xdd0] sm:$0xff] }
 0x2ae   :  { %7052 = vmatpush1.bf16.msra.mxu0 %v8141_v62  ;;  %7396 = vmatpush1.bf16.msra.mxu1 %v8143_v0  ;;  %v439_v62 = vld [vmem:[%s12346_s1 + $0xcb0] sm:$0xff]  ;;  %v436_v0 = vld [vmem:[%s12346_s1 + $0xc98] sm:$0xff] }
 0x2af   :  { %7053 = vmatprep.subr.bf16.mxu0 %v8150_v6  ;;  %7397 = vmatprep.subr.bf16.mxu1 %v8152_v18  ;;  %v440_v6 = vld [vmem:[%s12346_s1 + $0xcb8] sm:$0xff]  ;;  %v8197_v18 = vcombine.low %v427_v58, %v431_v52  ;;  %v8206_v45 = vcombine.high %v435_v61, %v439_v62 }
 0x2b0   :  { %v8208_v46 = vcombine.high %v436_v0, %v440_v6  ;;  %v8207_v14 = vcombine.low %v436_v0, %v440_v6 }
 0x2b2   :  { %7054 = vmatpush1.bf16.msra.mxu0 %v8149_v9  ;;  %7398 = vmatpush1.bf16.msra.mxu1 %v8151_v11  ;;  %v447_v9 = vld [vmem:[%s12346_s1 + $0xcf0] sm:$0xff]  ;;  %v448_v11 = vld [vmem:[%s12346_s1 + $0xcf8] sm:$0xff] }
 0x2b3   :  { %7055 = vmatprep.subr.bf16.mxu0 %v8158_v12  ;;  %7399 = vmatprep.subr.bf16.mxu1 %v8160_v13  ;;  %v7635_v12 = vlaneseq  ;;  %v8205_v13 = vcombine.low %v435_v61, %v439_v62  ;;  %v8214_v16 = vcombine.high %v443_v7, %v447_v9  ;;  %v11385_v61 = vld [vmem:[%s12346_s1 + $0xdd8] sm:$0xff] }
 0x2b4   :  { %v11390_v62 = vld [vmem:[%s12346_s1 + $0xdf8] sm:$0xff] }
 0x2b6   :  { %7056 = vmatpush1.bf16.msra.mxu0 %v8157_v53  ;;  %7400 = vmatpush1.bf16.msra.mxu1 %v8159_v54  ;;  %v455_v53 = vld [vmem:[%s12346_s1 + $0xd30] sm:$0xff]  ;;  %v456_v54 = vld [vmem:[%s12346_s1 + $0xd38] sm:$0xff] }
 0x2b7   :  { %7057 = vmatprep.subr.bf16.mxu0 %v8166_v21  ;;  %7401 = vmatprep.subr.bf16.mxu1 %v8168_v22  ;;  %v11326_v21 = vshrl.u32 %v7635_v12, 7  ;;  %v8213_v22 = vcombine.low %v443_v7, %v447_v9  ;;  %v8222_v25 = vcombine.high %v451_v19, %v455_v53  ;;  %v8221_v4 = vcombine.low %v451_v19, %v455_v53 }
 0x2b8   :  { %v8247_v19 = vcombine.low %v11385_v61, %v11390_v62  ;;  %v8248_v53 = vcombine.high %v11385_v61, %v11390_v62 }
 0x2b9   :  { %v7641_v34 = vsub.s32 1, %v11326_v21 }
 0x2ba   :  { %7058 = vmatpush1.bf16.msra.mxu0 %v8165_v28  ;;  %7402 = vmatpush1.bf16.msra.mxu1 %v8167_v41  ;;  %v463_v28 = vld [vmem:[%s12346_s1 + $0xd70] sm:$0xff]  ;;  %v7637_v41 = vsub.s32 0, %v11326_v21 }
 0x2bb   :  { %7059 = vmatprep.subr.bf16.mxu0 %v8174_v42  ;;  %7403 = vmatprep.subr.bf16.mxu1 %v8176_v17  ;;  %v7645_v42 = vsub.s32 2, %v11326_v21  ;;  %v460_v17 = vld [vmem:[%s12346_s1 + $0xd58] sm:$0xff]  ;;  %v8229_v52 = vcombine.low %v459_v26, %v463_v28 }
 0x2bc   :  { %v8232_v1 = vcombine.high %v460_v17, %v464_v33  ;;  %v7638_v29 = vrot.slane %v7633_v5, %v7637_v41  ;;  %v8231_v55 = vcombine.low %v460_v17, %v464_v33  ;;  %v483_v17 = vld [vmem:[%s12346_s1 + $0xe10] sm:$0xff] }
 0x2bd   :  { %v487_v33 = vld [vmem:[%s12346_s1 + $0xe30] sm:$0xff] }
 0x2be   :  { %7060 = vmatpush1.bf16.msra.mxu0 %v8173_v36  ;;  %7404 = vmatpush1.bf16.msra.mxu1 %v8175_v37  ;;  %v7649_v36 = vsub.s32 3, %v11326_v21 }
 0x2bf   :  { %7061 = vmatprep.subr.bf16.mxu0 %v8182_v40  ;;  %7405 = vmatprep.subr.bf16.mxu1 %v8184_v44  ;;  %v8230_v40 = vcombine.high %v459_v26, %v463_v28  ;;  %v7691_v44 = vld [vmem:[%s12349_s3] sm:$0xff] }
 0x2c0   :  { %v7650_v58 = vrot.slane %v7633_v5, %v7649_v36  ;;  %v7700_v6 = vrot.slane %v7691_v44, %v7641_v34 }
 0x2c2   :  { %7062 = vmatpush1.bf16.msra.mxu0 %v8181_v27  ;;  %7406 = vmatpush1.bf16.msra.mxu1 %v8183_v30  ;;  %v7646_v27 = vrot.slane %v7633_v5, %v7645_v42  ;;  %v11363_v30 = vld [vmem:[%s12346_s1 + $0xd98] sm:$0xff] }
 0x2c3   :  { %7074 = vmatprep.subr.bf16.mxu0 %v8190_v49  ;;  %7418 = vmatprep.subr.bf16.mxu1 %v8192_v50  ;;  %v11368_v49 = vld [vmem:[%s12346_s1 + $0xdb8] sm:$0xff]  ;;  %v7642_v50 = vrot.slane %v7633_v5, %v7641_v34 }
 0x2c5   :  { %7064 = vmatmul.mubr.bf16.vlgmr.msra.gmra.mrb[4].mxu0 %v9623_v43  ;;  %7408 = vmatmul.mubr.bf16.vlgmr.msra.gmra.mrb[4].mxu1 %v9623_v43  ;;  %v444_v43 = vld [vmem:[%s12346_s1 + $0xcd8] sm:$0xff] }
 0x2c6   :  { %7075 = vmatpush1.bf16.msra.mxu0 %v8189_v35  ;;  %7419 = vmatpush1.bf16.msra.mxu1 %v8191_v57  ;;  %v8216_v15 = vcombine.high %v444_v43, %v448_v11  ;;  %v8215_v24 = vcombine.low %v444_v43, %v448_v11  ;;  %v11378_v35 = vld [vmem:[%s12346_s1 + $0xdf0] sm:$0xff]  ;;  %v7696_v57 = vrot.slane %v7691_v44, %v7637_v41 }
 0x2c7   :  { %7076 = vmatprep.subr.bf16.mxu0 %v8198_v59  ;;  %7420 = vmatprep.subr.bf16.mxu1 %v8200_v60  ;;  %v7704_v59 = vrot.slane %v7691_v44, %v7645_v42  ;;  %v8238_v60 = vcombine.high %v11353_v3, %v11358_v47  ;;  %v8239_v43 = vcombine.low %v11363_v30, %v11368_v49 }
 0x2c8   :  { %7106 = vmatprep.mubr.bf16.mxu0 %v9646_v51  ;;  %7450 = vmatprep.mubr.bf16.mxu1 %v9646_v51  ;;  %v452_v51 = vld [vmem:[%s12346_s1 + $0xd18] sm:$0xff]  ;;  %v8245_v11 = vcombine.low %v11373_v56, %v11378_v35  ;;  %v8246_v12 = vcombine.high %v11373_v56, %v11378_v35  ;;  %v495_v56 = vld [vmem:[%s12346_s1 + $0xe70] sm:$0xff] }
 0x2c9   :  { %v8224_v23 = vcombine.high %v452_v51, %v456_v54  ;;  %v8223_v37 = vcombine.low %v452_v51, %v456_v54 }
 0x2ca   :  { %7077 = vmatpush1.bf16.msra.mxu0 %v8197_v18  ;;  %7421 = vmatpush1.bf16.msra.mxu1 %v8199_v32  ;;  %v7708_v18 = vrot.slane %v7691_v44, %v7649_v36  ;;  %v8237_v32 = vcombine.low %v11353_v3, %v11358_v47 }
 0x2cb   :  { %7078 = vmatprep.subr.bf16.mxu0 %v8206_v45  ;;  %7422 = vmatprep.subr.bf16.mxu1 %v8208_v46  ;;  %v8240_v45 = vcombine.high %v11363_v30, %v11368_v49  ;;  %v8254_v49 = vcombine.high %v483_v17, %v487_v33 }
 0x2ce   :  { %7079 = vmatpush1.bf16.msra.mxu0 %v8205_v13  ;;  %7423 = vmatpush1.bf16.msra.mxu1 %v8207_v14 }
 0x2cf   :  { %7080 = vmatprep.subr.bf16.mxu0 %v8214_v16  ;;  %7424 = vmatprep.subr.bf16.mxu1 %v8216_v15 }
 0x2d2   :  { %7081 = vmatpush1.bf16.msra.mxu0 %v8213_v22  ;;  %7425 = vmatpush1.bf16.msra.mxu1 %v8215_v24 }
 0x2d3   :  { %7082 = vmatprep.subr.bf16.mxu0 %v8222_v25  ;;  %7426 = vmatprep.subr.bf16.mxu1 %v8224_v23 }
 0x2d6   :  { %7083 = vmatpush1.bf16.msra.mxu0 %v8221_v4  ;;  %7427 = vmatpush1.bf16.msra.mxu1 %v8223_v37  ;;  %v484_v37 = vld [vmem:[%s12346_s1 + $0xe18] sm:$0xff] }
 0x2d7   :  { %7084 = vmatprep.subr.bf16.mxu0 %v8230_v40  ;;  %7428 = vmatprep.subr.bf16.mxu1 %v8232_v1  ;;  %v488_v40 = vld [vmem:[%s12346_s1 + $0xe38] sm:$0xff] }
 0x2d8   :  { %v6592_v0 = vpop.f32.mrb[0].mxu0  ;;  %v6936_v7 = vpop.f32.mrb[0].mxu1  ;;  %v8255_v61 = vcombine.low %v484_v37, %v488_v40 }
 0x2d9   :  { %v7675_v46 = vmul.f32 %v7638_v29, %v6592_v0  ;;  %v6594_v9 = vpop.f32.mrb[1].mxu0  ;;  %v7677_v13 = vmul.f32 %v7646_v27, %v6936_v7  ;;  %v6938_v16 = vpop.f32.mrb[1].mxu1 }
 0x2da   :  { %v7676_v14 = vmul.f32 %v7642_v50, %v6594_v9  ;;  %v6596_v15 = vpop.f32.mrb[2].mxu0  ;;  %7085 = vmatpush1.bf16.msra.mxu0 %v8229_v52  ;;  %v7678_v54 = vmul.f32 %v7650_v58, %v6938_v16  ;;  %v6940_v24 = vpop.f32.mrb[2].mxu1  ;;  %7429 = vmatpush1.bf16.msra.mxu1 %v8231_v55  ;;  %v8256_v52 = vcombine.high %v484_v37, %v488_v40  ;;  %v491_v55 = vld [vmem:[%s12346_s1 + $0xe50] sm:$0xff] }
 0x2db   :  { %v7733_v51 = vadd.f32 %v7696_v57, %v7675_v46  ;;  %v7683_v22 = vmul.f32 %v7638_v29, %v6596_v15  ;;  %v6598_v25 = vpop.f32.mrb[3].mxu0  ;;  %7086 = vmatprep.subr.bf16.mxu0 %v8238_v60  ;;  %v7735_v23 = vadd.f32 %v7704_v59, %v7677_v13  ;;  %v7685_v28 = vmul.f32 %v7646_v27, %v6940_v24  ;;  %v6942_v42 = vpop.f32.mrb[3].mxu1  ;;  %v508_v13 = vld [vmem:[%s12346_s1 + $0xed8] sm:$0xff]  ;;  %v531_v37 = vld [vmem:[%s12346_s1 + $0xf90] sm:$0xff] }
 0x2dc   :  { %v7734_v26 = vadd.f32 %v7700_v6, %v7676_v14  ;;  %v7684_v41 = vmul.f32 %v7642_v50, %v6598_v25  ;;  %7430 = vmatprep.subr.bf16.mxu1 %v8240_v45  ;;  %v7736_v5 = vadd.f32 %v7708_v18, %v7678_v54  ;;  %v7686_v36 = vmul.f32 %v7650_v58, %v6942_v42  ;;  %v504_v45 = vld [vmem:[%s12346_s1 + $0xeb8] sm:$0xff]  ;;  %v519_v54 = vld [vmem:[%s12346_s1 + $0xf30] sm:$0xff] }
 0x2dd   :  { %v7749_v4 = vmax.f32 %v7733_v51, 0.0  ;;  %v7741_v34 = vadd.f32 %v7696_v57, %v7683_v22  ;;  %v7751_v44 = vmax.f32 %v7735_v23, 0.0  ;;  %v7743_v3 = vadd.f32 %v7704_v59, %v7685_v28  ;;  %v492_v57 = vld [vmem:[%s12346_s1 + $0xe58] sm:$0xff]  ;;  %v515_v51 = vld [vmem:[%s12346_s1 + $0xf10] sm:$0xff] }
 0x2de   :  { %v7750_v1 = vmax.f32 %v7734_v26, 0.0  ;;  %v7742_v47 = vadd.f32 %v7700_v6, %v7684_v41  ;;  %7087 = vmatpush1.bf16.msra.mxu0 %v8237_v32  ;;  %v7752_v29 = vmax.f32 %v7736_v5, 0.0  ;;  %v7744_v30 = vadd.f32 %v7708_v18, %v7686_v36  ;;  %7431 = vmatpush1.bf16.msra.mxu1 %v8239_v43  ;;  %v496_v59 = vld [vmem:[%s12346_s1 + $0xe78] sm:$0xff]  ;;  %v499_v6 = vld [vmem:[%s12346_s1 + $0xe90] sm:$0xff] }
 0x2df   :  { %7765 = vst [vmem:[%s12350_s4] sm:$0xff] %v7749_v4  ;;  %v7757_v27 = vmax.f32 %v7741_v34, 0.0  ;;  %7088 = vmatprep.subr.bf16.mxu0 %v8246_v12  ;;  %7767 = vst [vmem:[%s12350_s4 + $0x10] sm:$0xff] %v7751_v44  ;;  %v7759_v50 = vmax.f32 %v7743_v3, 0.0  ;;  %7432 = vmatprep.subr.bf16.mxu1 %v8248_v53  ;;  %v8253_v60 = vcombine.low %v483_v17, %v487_v33  ;;  %v503_v18 = vld [vmem:[%s12346_s1 + $0xeb0] sm:$0xff]  ;;  %v500_v32 = vld [vmem:[%s12346_s1 + $0xe98] sm:$0xff] }
 0x2e0   :  { %7766 = vst [vmem:[%s12350_s4 + $0x8] sm:$0xff] %v7750_v1  ;;  %v7758_v58 = vmax.f32 %v7742_v47, 0.0  ;;  %7768 = vst [vmem:[%s12350_s4 + $0x18] sm:$0xff] %v7752_v29  ;;  %v7760_v35 = vmax.f32 %v7744_v30, 0.0  ;;  %v8262_v62 = vcombine.high %v491_v55, %v495_v56  ;;  %v8264_v0 = vcombine.high %v492_v57, %v496_v59  ;;  %v511_v12 = vld [vmem:[%s12346_s1 + $0xef0] sm:$0xff]  ;;  %v512_v14 = vld [vmem:[%s12346_s1 + $0xef8] sm:$0xff] }
 0x2e1   :  { %7773 = vst [vmem:[%s12350_s4 + $0x40] sm:$0xff] %v7757_v27  ;;  %7775 = vst [vmem:[%s12350_s4 + $0x50] sm:$0xff] %v7759_v50  ;;  %v8261_v46 = vcombine.low %v491_v55, %v495_v56  ;;  %v8263_v7 = vcombine.low %v492_v57, %v496_v59  ;;  %v8270_v9 = vcombine.high %v499_v6, %v503_v18  ;;  %v516_v22 = vld [vmem:[%s12346_s1 + $0xf18] sm:$0xff]  ;;  %v523_v41 = vld [vmem:[%s12346_s1 + $0xf50] sm:$0xff] }
 0x2e2   :  { %7774 = vst [vmem:[%s12350_s4 + $0x48] sm:$0xff] %v7758_v58  ;;  %7089 = vmatpush1.bf16.msra.mxu0 %v8245_v11  ;;  %7776 = vst [vmem:[%s12350_s4 + $0x58] sm:$0xff] %v7760_v35  ;;  %7433 = vmatpush1.bf16.msra.mxu1 %v8247_v19  ;;  %v8272_v43 = vcombine.high %v500_v32, %v504_v45  ;;  %v507_v11 = vld [vmem:[%s12346_s1 + $0xed0] sm:$0xff]  ;;  %v8269_v16 = vcombine.low %v499_v6, %v503_v18  ;;  %v520_v24 = vld [vmem:[%s12346_s1 + $0xf38] sm:$0xff] }
 0x2e3   :  { %7090 = vmatprep.subr.bf16.mxu0 %v8254_v49  ;;  %7434 = vmatprep.subr.bf16.mxu1 %v8256_v52  ;;  %v8271_v15 = vcombine.low %v500_v32, %v504_v45  ;;  %v8278_v19 = vcombine.high %v507_v11, %v511_v12  ;;  %v8280_v53 = vcombine.high %v508_v13, %v512_v14  ;;  %v527_v42 = vld [vmem:[%s12346_s1 + $0xf70] sm:$0xff]  ;;  %v524_v17 = vld [vmem:[%s12346_s1 + $0xf58] sm:$0xff] }
 0x2e4   :  { %v8277_v25 = vcombine.low %v507_v11, %v511_v12  ;;  %v8279_v23 = vcombine.low %v508_v13, %v512_v14  ;;  %v8286_v26 = vcombine.high %v515_v51, %v519_v54  ;;  %v8288_v28 = vcombine.high %v516_v22, %v520_v24  ;;  %v528_v33 = vld [vmem:[%s12346_s1 + $0xf78] sm:$0xff]  ;;  %v535_v40 = vld [vmem:[%s12346_s1 + $0xfb0] sm:$0xff] }
 0x2e5   :  { %v8285_v4 = vcombine.low %v515_v51, %v519_v54  ;;  %v8287_v5 = vcombine.low %v516_v22, %v520_v24  ;;  %v8294_v34 = vcombine.high %v523_v41, %v527_v42  ;;  %v8296_v36 = vcombine.high %v524_v17, %v528_v33  ;;  %v532_v44 = vld [vmem:[%s12346_s1 + $0xf98] sm:$0xff]  ;;  %v539_v30 = vld [vmem:[%s12346_s1 + $0xfd0] sm:$0xff] }
 0x2e6   :  { %7091 = vmatpush1.bf16.msra.mxu0 %v8253_v60  ;;  %7435 = vmatpush1.bf16.msra.mxu1 %v8255_v61  ;;  %v536_v1 = vld [vmem:[%s12346_s1 + $0xfb8] sm:$0xff]  ;;  %v8293_v3 = vcombine.low %v523_v41, %v527_v42  ;;  %v8295_v47 = vcombine.low %v524_v17, %v528_v33  ;;  %v8302_v29 = vcombine.high %v531_v37, %v535_v40  ;;  %v543_v49 = vld [vmem:[%s12346_s1 + $0xff0] sm:$0xff] }
 0x2e7   :  { %7092 = vmatprep.subr.bf16.mxu0 %v8262_v62  ;;  %7436 = vmatprep.subr.bf16.mxu1 %v8264_v0  ;;  %v8304_v27 = vcombine.high %v532_v44, %v536_v1  ;;  %v540_v50 = vld [vmem:[%s12346_s1 + $0xfd8] sm:$0xff]  ;;  %v8301_v52 = vcombine.low %v531_v37, %v535_v40  ;;  %v8303_v55 = vcombine.low %v532_v44, %v536_v1  ;;  %v547_v57 = vld [vmem:[%s12346_s1 + $0x1010] sm:$0xff] }
 0x2e8   :  { %v544_v58 = vld [vmem:[%s12346_s1 + $0xff8] sm:$0xff]  ;;  %v8310_v56 = vcombine.high %v539_v30, %v543_v49  ;;  %v551_v59 = vld [vmem:[%s12346_s1 + $0x1030] sm:$0xff]  ;;  %v8309_v62 = vcombine.low %v539_v30, %v543_v49 }
 0x2e9   :  { %v8312_v35 = vcombine.high %v540_v50, %v544_v58  ;;  %v548_v60 = vld [vmem:[%s12346_s1 + $0x1018] sm:$0xff]  ;;  %v8311_v0 = vcombine.low %v540_v50, %v544_v58  ;;  %v8318_v6 = vcombine.high %v547_v57, %v551_v59  ;;  %v555_v32 = vld [vmem:[%s12346_s1 + $0x1050] sm:$0xff] }
 0x2ea   :  { %7093 = vmatpush1.bf16.msra.mxu0 %v8261_v46  ;;  %7437 = vmatpush1.bf16.msra.mxu1 %v8263_v7  ;;  %v552_v61 = vld [vmem:[%s12346_s1 + $0x1038] sm:$0xff]  ;;  %v559_v45 = vld [vmem:[%s12346_s1 + $0x1070] sm:$0xff] }
 0x2eb   :  { %7094 = vmatprep.subr.bf16.mxu0 %v8270_v9  ;;  %7438 = vmatprep.subr.bf16.mxu1 %v8272_v43  ;;  %v8320_v18 = vcombine.high %v548_v60, %v552_v61  ;;  %v556_v46 = vld [vmem:[%s12346_s1 + $0x1058] sm:$0xff]  ;;  %v8317_v9 = vcombine.low %v547_v57, %v551_v59  ;;  %v8319_v43 = vcombine.low %v548_v60, %v552_v61  ;;  %v563_v13 = vld [vmem:[%s12346_s1 + $0x1090] sm:$0xff] }
 0x2ec   :  { %v560_v7 = vld [vmem:[%s12346_s1 + $0x1078] sm:$0xff]  ;;  %v8326_v11 = vcombine.high %v555_v32, %v559_v45  ;;  %v567_v14 = vld [vmem:[%s12346_s1 + $0x10b0] sm:$0xff] }
 0x2ed   :  { %v8328_v12 = vcombine.high %v556_v46, %v560_v7  ;;  %v8334_v51 = vcombine.high %v563_v13, %v567_v14  ;;  %v571_v22 = vld [vmem:[%s12346_s1 + $0x10d0] sm:$0xff]  ;;  %v584_v33 = vld [vmem:[%s12346_s1 + $0x1138] sm:$0xff] }
 0x2ee   :  { %7095 = vmatpush1.bf16.msra.mxu0 %v8269_v16  ;;  %7439 = vmatpush1.bf16.msra.mxu1 %v8271_v15  ;;  %v564_v16 = vld [vmem:[%s12346_s1 + $0x1098] sm:$0xff]  ;;  %v575_v24 = vld [vmem:[%s12346_s1 + $0x10f0] sm:$0xff] }
 0x2ef   :  { %7096 = vmatprep.subr.bf16.mxu0 %v8278_v19  ;;  %7440 = vmatprep.subr.bf16.mxu1 %v8280_v53  ;;  %v568_v15 = vld [vmem:[%s12346_s1 + $0x10b8] sm:$0xff]  ;;  %v8325_v19 = vcombine.low %v555_v32, %v559_v45  ;;  %v8327_v53 = vcombine.low %v556_v46, %v560_v7  ;;  %v579_v42 = vld [vmem:[%s12346_s1 + $0x1110] sm:$0xff] }
 0x2f0   :  { %v8336_v54 = vcombine.high %v564_v16, %v568_v15  ;;  %v583_v17 = vld [vmem:[%s12346_s1 + $0x1130] sm:$0xff]  ;;  %v588_v44 = vld [vmem:[%s12346_s1 + $0x1158] sm:$0xff] }
 0x2f1   :  { %v587_v37 = vld [vmem:[%s12346_s1 + $0x1150] sm:$0xff]  ;;  %v592_v1 = vld [vmem:[%s12346_s1 + $0x1178] sm:$0xff] }
 0x2f2   :  { %7097 = vmatpush1.bf16.msra.mxu0 %v8277_v25  ;;  %7441 = vmatpush1.bf16.msra.mxu1 %v8279_v23  ;;  %v576_v25 = vld [vmem:[%s12346_s1 + $0x10f8] sm:$0xff]  ;;  %v8333_v23 = vcombine.low %v563_v13, %v567_v14  ;;  %v591_v40 = vld [vmem:[%s12346_s1 + $0x1170] sm:$0xff] }
 0x2f3   :  { %7098 = vmatprep.subr.bf16.mxu0 %v8286_v26  ;;  %7442 = vmatprep.subr.bf16.mxu1 %v8288_v28  ;;  %v8335_v26 = vcombine.low %v564_v16, %v568_v15  ;;  %v8342_v28 = vcombine.high %v571_v22, %v575_v24  ;;  %v595_v30 = vld [vmem:[%s12346_s1 + $0x1190] sm:$0xff]  ;;  %v596_v50 = vld [vmem:[%s12346_s1 + $0x1198] sm:$0xff] }
 0x2f4   :  { %v599_v49 = vld [vmem:[%s12346_s1 + $0x11b0] sm:$0xff]  ;;  %v600_v58 = vld [vmem:[%s12346_s1 + $0x11b8] sm:$0xff] }
 0x2f5   :  { %v603_v57 = vld [vmem:[%s12346_s1 + $0x11d0] sm:$0xff]  ;;  %v604_v60 = vld [vmem:[%s12346_s1 + $0x11d8] sm:$0xff] }
 0x2f6   :  { %7099 = vmatpush1.bf16.msra.mxu0 %v8285_v4  ;;  %7443 = vmatpush1.bf16.msra.mxu1 %v8287_v5  ;;  %v8341_v4 = vcombine.low %v571_v22, %v575_v24  ;;  %v607_v59 = vld [vmem:[%s12346_s1 + $0x11f0] sm:$0xff]  ;;  %v608_v61 = vld [vmem:[%s12346_s1 + $0x11f8] sm:$0xff] }
 0x2f7   :  { %7100 = vmatprep.subr.bf16.mxu0 %v8294_v34  ;;  %7444 = vmatprep.subr.bf16.mxu1 %v8296_v36  ;;  %v8350_v34 = vcombine.high %v579_v42, %v583_v17  ;;  %v611_v32 = vld [vmem:[%s12346_s1 + $0x1210] sm:$0xff]  ;;  %v612_v46 = vld [vmem:[%s12346_s1 + $0x1218] sm:$0xff] }
 0x2f8   :  { %v615_v45 = vld [vmem:[%s12346_s1 + $0x1230] sm:$0xff]  ;;  %v616_v7 = vld [vmem:[%s12346_s1 + $0x1238] sm:$0xff] }
 0x2f9   :  { %v619_v13 = vld [vmem:[%s12346_s1 + $0x1250] sm:$0xff]  ;;  %v620_v16 = vld [vmem:[%s12346_s1 + $0x1258] sm:$0xff] }
 0x2fa   :  { %7101 = vmatpush1.bf16.msra.mxu0 %v8293_v3  ;;  %7445 = vmatpush1.bf16.msra.mxu1 %v8295_v47  ;;  %v8349_v3 = vcombine.low %v579_v42, %v583_v17  ;;  %v623_v14 = vld [vmem:[%s12346_s1 + $0x1270] sm:$0xff]  ;;  %v624_v15 = vld [vmem:[%s12346_s1 + $0x1278] sm:$0xff] }
 0x2fb   :  { %7102 = vmatprep.subr.bf16.mxu0 %v8302_v29  ;;  %7446 = vmatprep.subr.bf16.mxu1 %v8304_v27  ;;  %v8358_v29 = vcombine.high %v587_v37, %v591_v40  ;;  %v8360_v27 = vcombine.high %v588_v44, %v592_v1  ;;  %v627_v22 = vld [vmem:[%s12346_s1 + $0x1290] sm:$0xff] }
 0x2fc   :  { %v631_v24 = vld [vmem:[%s12346_s1 + $0x12b0] sm:$0xff] }
 0x2fd   :  { %v635_v42 = vld [vmem:[%s12346_s1 + $0x12d0] sm:$0xff] }
 0x2fe   :  { %7103 = vmatpush1.bf16.msra.mxu0 %v8301_v52  ;;  %7447 = vmatpush1.bf16.msra.mxu1 %v8303_v55  ;;  %v8357_v52 = vcombine.low %v587_v37, %v591_v40  ;;  %v8359_v55 = vcombine.low %v588_v44, %v592_v1  ;;  %v639_v17 = vld [vmem:[%s12346_s1 + $0x12f0] sm:$0xff]  ;;  %v644_v44 = vld [vmem:[%s12346_s1 + $0x1318] sm:$0xff] }
 0x2ff   :  { %7104 = vmatprep.subr.bf16.mxu0 %v8310_v56  ;;  %7448 = vmatprep.subr.bf16.mxu1 %v8312_v35  ;;  %v8366_v56 = vcombine.high %v595_v30, %v599_v49  ;;  %v8368_v35 = vcombine.high %v596_v50, %v600_v58  ;;  %v643_v37 = vld [vmem:[%s12346_s1 + $0x1310] sm:$0xff]  ;;  %v648_v1 = vld [vmem:[%s12346_s1 + $0x1338] sm:$0xff] }
 0x300   :  { %v647_v40 = vld [vmem:[%s12346_s1 + $0x1330] sm:$0xff] }
 0x302   :  { %7105 = vmatpush1.bf16.msra.mxu0 %v8309_v62  ;;  %7449 = vmatpush1.bf16.msra.mxu1 %v8311_v0  ;;  %v8365_v62 = vcombine.low %v595_v30, %v599_v49  ;;  %v8367_v0 = vcombine.low %v596_v50, %v600_v58  ;;  %v651_v30 = vld [vmem:[%s12346_s1 + $0x1350] sm:$0xff]  ;;  %v652_v50 = vld [vmem:[%s12346_s1 + $0x1358] sm:$0xff] }
 0x303   :  { %7117 = vmatprep.subr.bf16.mxu0 %v8318_v6  ;;  %7461 = vmatprep.subr.bf16.mxu1 %v8320_v18  ;;  %v8374_v6 = vcombine.high %v603_v57, %v607_v59  ;;  %v8376_v18 = vcombine.high %v604_v60, %v608_v61  ;;  %v655_v49 = vld [vmem:[%s12346_s1 + $0x1370] sm:$0xff]  ;;  %v656_v58 = vld [vmem:[%s12346_s1 + $0x1378] sm:$0xff] }
 0x305   :  { %7107 = vmatmul.mubr.bf16.vlgmr.msra.gmra.mrb[4].mxu0 %v9837_v2  ;;  %7451 = vmatmul.mubr.bf16.vlgmr.msra.gmra.mrb[4].mxu1 %v9837_v2  ;;  %v572_v2 = vld [vmem:[%s12346_s1 + $0x10d8] sm:$0xff] }
 0x306   :  { %7118 = vmatpush1.bf16.msra.mxu0 %v8317_v9  ;;  %7462 = vmatpush1.bf16.msra.mxu1 %v8319_v43  ;;  %v8344_v41 = vcombine.high %v572_v2, %v576_v25  ;;  %v8343_v5 = vcombine.low %v572_v2, %v576_v25  ;;  %v8373_v9 = vcombine.low %v603_v57, %v607_v59  ;;  %v628_v2 = vld [vmem:[%s12346_s1 + $0x1298] sm:$0xff]  ;;  %v659_v57 = vld [vmem:[%s12346_s1 + $0x1390] sm:$0xff] }
 0x307   :  { %7119 = vmatprep.subr.bf16.mxu0 %v8326_v11  ;;  %7463 = vmatprep.subr.bf16.mxu1 %v8328_v12  ;;  %v8375_v43 = vcombine.low %v604_v60, %v608_v61  ;;  %v8382_v11 = vcombine.high %v611_v32, %v615_v45  ;;  %v8384_v12 = vcombine.high %v612_v46, %v616_v7  ;;  %v632_v25 = vld [vmem:[%s12346_s1 + $0x12b8] sm:$0xff]  ;;  %v663_v59 = vld [vmem:[%s12346_s1 + $0x13b0] sm:$0xff] }
 0x308   :  { %7149 = vmatprep.mubr.bf16.mxu0 %v9860_v10  ;;  %7493 = vmatprep.mubr.bf16.mxu1 %v9860_v10  ;;  %v580_v10 = vld [vmem:[%s12346_s1 + $0x1118] sm:$0xff] }
 0x309   :  { %v8352_v36 = vcombine.high %v580_v10, %v584_v33  ;;  %v8351_v47 = vcombine.low %v580_v10, %v584_v33  ;;  %v636_v10 = vld [vmem:[%s12346_s1 + $0x12d8] sm:$0xff] }
 0x30a   :  { %7120 = vmatpush1.bf16.msra.mxu0 %v8325_v19  ;;  %7464 = vmatpush1.bf16.msra.mxu1 %v8327_v53  ;;  %v8381_v19 = vcombine.low %v611_v32, %v615_v45  ;;  %v8383_v53 = vcombine.low %v612_v46, %v616_v7  ;;  %v640_v33 = vld [vmem:[%s12346_s1 + $0x12f8] sm:$0xff]  ;;  %v667_v32 = vld [vmem:[%s12346_s1 + $0x13d0] sm:$0xff] }
 0x30b   :  { %7121 = vmatprep.subr.bf16.mxu0 %v8334_v51  ;;  %7465 = vmatprep.subr.bf16.mxu1 %v8336_v54  ;;  %v8390_v51 = vcombine.high %v619_v13, %v623_v14  ;;  %v8392_v54 = vcombine.high %v620_v16, %v624_v15  ;;  %v660_v60 = vld [vmem:[%s12346_s1 + $0x1398] sm:$0xff]  ;;  %v671_v45 = vld [vmem:[%s12346_s1 + $0x13f0] sm:$0xff] }
 0x30c   :  { %v664_v61 = vld [vmem:[%s12346_s1 + $0x13b8] sm:$0xff] }
 0x30d   :  { %v668_v46 = vld [vmem:[%s12346_s1 + $0x13d8] sm:$0xff] }
 0x30e   :  { %7122 = vmatpush1.bf16.msra.mxu0 %v8333_v23  ;;  %7466 = vmatpush1.bf16.msra.mxu1 %v8335_v26  ;;  %v8389_v23 = vcombine.low %v619_v13, %v623_v14  ;;  %v8391_v26 = vcombine.low %v620_v16, %v624_v15  ;;  %v672_v7 = vld [vmem:[%s12346_s1 + $0x13f8] sm:$0xff]  ;;  %v675_v13 = vld [vmem:[%s12346_s1 + $0x1410] sm:$0xff] }
 0x30f   :  { %7123 = vmatprep.subr.bf16.mxu0 %v8342_v28  ;;  %7467 = vmatprep.subr.bf16.mxu1 %v8344_v41  ;;  %v8398_v28 = vcombine.high %v627_v22, %v631_v24  ;;  %v8400_v41 = vcombine.high %v628_v2, %v632_v25  ;;  %v679_v14 = vld [vmem:[%s12346_s1 + $0x1430] sm:$0xff]  ;;  %v676_v16 = vld [vmem:[%s12346_s1 + $0x1418] sm:$0xff] }
 0x310   :  { %v680_v15 = vld [vmem:[%s12346_s1 + $0x1438] sm:$0xff] }
 0x312   :  { %7124 = vmatpush1.bf16.msra.mxu0 %v8341_v4  ;;  %7468 = vmatpush1.bf16.msra.mxu1 %v8343_v5  ;;  %v8397_v4 = vcombine.low %v627_v22, %v631_v24  ;;  %v8399_v5 = vcombine.low %v628_v2, %v632_v25  ;;  %v683_v22 = vld [vmem:[%s12346_s1 + $0x1450] sm:$0xff]  ;;  %v684_v2 = vld [vmem:[%s12346_s1 + $0x1458] sm:$0xff] }
 0x313   :  { %7125 = vmatprep.subr.bf16.mxu0 %v8350_v34  ;;  %7469 = vmatprep.subr.bf16.mxu1 %v8352_v36  ;;  %v8406_v34 = vcombine.high %v635_v42, %v639_v17  ;;  %v8408_v36 = vcombine.high %v636_v10, %v640_v33  ;;  %v687_v24 = vld [vmem:[%s12346_s1 + $0x1470] sm:$0xff]  ;;  %v688_v25 = vld [vmem:[%s12346_s1 + $0x1478] sm:$0xff] }
 0x316   :  { %7126 = vmatpush1.bf16.msra.mxu0 %v8349_v3  ;;  %7470 = vmatpush1.bf16.msra.mxu1 %v8351_v47  ;;  %v8405_v3 = vcombine.low %v635_v42, %v639_v17  ;;  %v8407_v47 = vcombine.low %v636_v10, %v640_v33  ;;  %v691_v42 = vld [vmem:[%s12346_s1 + $0x1490] sm:$0xff]  ;;  %v692_v10 = vld [vmem:[%s12346_s1 + $0x1498] sm:$0xff] }
 0x317   :  { %7127 = vmatprep.subr.bf16.mxu0 %v8358_v29  ;;  %7471 = vmatprep.subr.bf16.mxu1 %v8360_v27  ;;  %v8414_v29 = vcombine.high %v643_v37, %v647_v40  ;;  %v8416_v27 = vcombine.high %v644_v44, %v648_v1  ;;  %v695_v17 = vld [vmem:[%s12346_s1 + $0x14b0] sm:$0xff]  ;;  %v696_v33 = vld [vmem:[%s12346_s1 + $0x14b8] sm:$0xff] }
 0x31a   :  { %7128 = vmatpush1.bf16.msra.mxu0 %v8357_v52  ;;  %7472 = vmatpush1.bf16.msra.mxu1 %v8359_v55  ;;  %v8413_v52 = vcombine.low %v643_v37, %v647_v40  ;;  %v8415_v55 = vcombine.low %v644_v44, %v648_v1  ;;  %v699_v37 = vld [vmem:[%s12346_s1 + $0x14d0] sm:$0xff]  ;;  %v704_v44 = vld [vmem:[%s12346_s1 + $0x14f8] sm:$0xff]  ;;  %v8461_v1 = vcombine.low %v691_v42, %v695_v17 }
 0x31b   :  { %7129 = vmatprep.subr.bf16.mxu0 %v8366_v56  ;;  %7473 = vmatprep.subr.bf16.mxu1 %v8368_v35  ;;  %v8422_v56 = vcombine.high %v651_v30, %v655_v49  ;;  %v8424_v35 = vcombine.high %v652_v50, %v656_v58  ;;  %v703_v40 = vld [vmem:[%s12346_s1 + $0x14f0] sm:$0xff] }
 0x31e   :  { %7130 = vmatpush1.bf16.msra.mxu0 %v8365_v62  ;;  %7474 = vmatpush1.bf16.msra.mxu1 %v8367_v0  ;;  %v8421_v62 = vcombine.low %v651_v30, %v655_v49  ;;  %v8423_v0 = vcombine.low %v652_v50, %v656_v58  ;;  %v711_v30 = vld [vmem:[%s12346_s1 + $0x1530] sm:$0xff]  ;;  %v712_v49 = vld [vmem:[%s12346_s1 + $0x1538] sm:$0xff]  ;;  %v8469_v50 = vcombine.low %v699_v37, %v703_v40 }
 0x31f   :  { %7131 = vmatprep.subr.bf16.mxu0 %v8374_v6  ;;  %7475 = vmatprep.subr.bf16.mxu1 %v8376_v18  ;;  %v8430_v6 = vcombine.high %v659_v57, %v663_v59  ;;  %v8432_v18 = vcombine.high %v660_v60, %v664_v61 }
 0x322   :  { %7132 = vmatpush1.bf16.msra.mxu0 %v8373_v9  ;;  %7476 = vmatpush1.bf16.msra.mxu1 %v8375_v43  ;;  %v8429_v9 = vcombine.low %v659_v57, %v663_v59  ;;  %v8431_v43 = vcombine.low %v660_v60, %v664_v61  ;;  %v716_v57 = vld [vmem:[%s12346_s1 + $0x1558] sm:$0xff] }
 0x323   :  { %7133 = vmatprep.subr.bf16.mxu0 %v8382_v11  ;;  %7477 = vmatprep.subr.bf16.mxu1 %v8384_v12  ;;  %v8438_v11 = vcombine.high %v667_v32, %v671_v45  ;;  %v8440_v12 = vcombine.high %v668_v46, %v672_v7  ;;  %v720_v59 = vld [vmem:[%s12346_s1 + $0x1578] sm:$0xff] }
 0x326   :  { %7134 = vmatpush1.bf16.msra.mxu0 %v8381_v19  ;;  %7478 = vmatpush1.bf16.msra.mxu1 %v8383_v53  ;;  %v8437_v19 = vcombine.low %v667_v32, %v671_v45  ;;  %v8439_v53 = vcombine.low %v668_v46, %v672_v7  ;;  %v724_v32 = vld [vmem:[%s12346_s1 + $0x1598] sm:$0xff]  ;;  %v8487_v7 = vcombine.low %v716_v57, %v720_v59 }
 0x327   :  { %7135 = vmatprep.subr.bf16.mxu0 %v8390_v51  ;;  %7479 = vmatprep.subr.bf16.mxu1 %v8392_v54  ;;  %v8446_v51 = vcombine.high %v675_v13, %v679_v14  ;;  %v8448_v54 = vcombine.high %v676_v16, %v680_v15  ;;  %v728_v45 = vld [vmem:[%s12346_s1 + $0x15b8] sm:$0xff] }
 0x32a   :  { %7136 = vmatpush1.bf16.msra.mxu0 %v8389_v23  ;;  %7480 = vmatpush1.bf16.msra.mxu1 %v8391_v26  ;;  %v8445_v23 = vcombine.low %v675_v13, %v679_v14  ;;  %v8447_v26 = vcombine.low %v676_v16, %v680_v15  ;;  %v732_v13 = vld [vmem:[%s12346_s1 + $0x15d8] sm:$0xff]  ;;  %v8495_v15 = vcombine.low %v724_v32, %v728_v45 }
 0x32b   :  { %7137 = vmatprep.subr.bf16.mxu0 %v8398_v28  ;;  %7481 = vmatprep.subr.bf16.mxu1 %v8400_v41  ;;  %v8454_v28 = vcombine.high %v683_v22, %v687_v24  ;;  %v8456_v41 = vcombine.high %v684_v2, %v688_v25  ;;  %v736_v14 = vld [vmem:[%s12346_s1 + $0x15f8] sm:$0xff] }
 0x32e   :  { %7138 = vmatpush1.bf16.msra.mxu0 %v8397_v4  ;;  %7482 = vmatpush1.bf16.msra.mxu1 %v8399_v5  ;;  %v8453_v4 = vcombine.low %v683_v22, %v687_v24  ;;  %v8455_v5 = vcombine.low %v684_v2, %v688_v25  ;;  %v740_v22 = vld [vmem:[%s12346_s1 + $0x1618] sm:$0xff]  ;;  %v8503_v25 = vcombine.low %v732_v13, %v736_v14 }
 0x32f   :  { %7139 = vmatprep.subr.bf16.mxu0 %v8406_v34  ;;  %7483 = vmatprep.subr.bf16.mxu1 %v8408_v36  ;;  %v8462_v34 = vcombine.high %v691_v42, %v695_v17  ;;  %v8464_v36 = vcombine.high %v692_v10, %v696_v33  ;;  %v744_v24 = vld [vmem:[%s12346_s1 + $0x1638] sm:$0xff] }
 0x330   :  { %v748_v42 = vld [vmem:[%s12346_s1 + $0x1658] sm:$0xff] }
 0x331   :  { %v752_v17 = vld [vmem:[%s12346_s1 + $0x1678] sm:$0xff] }
 0x332   :  { %7140 = vmatpush1.bf16.msra.mxu0 %v8405_v3  ;;  %7484 = vmatpush1.bf16.msra.mxu1 %v8407_v47  ;;  %v8463_v3 = vcombine.low %v692_v10, %v696_v33  ;;  %v8470_v47 = vcombine.high %v699_v37, %v703_v40  ;;  %v8511_v33 = vcombine.low %v740_v22, %v744_v24  ;;  %v756_v37 = vld [vmem:[%s12346_s1 + $0x1698] sm:$0xff] }
 0x333   :  { %7141 = vmatprep.subr.bf16.mxu0 %v8414_v29  ;;  %7485 = vmatprep.subr.bf16.mxu1 %v8416_v27  ;;  %v707_v27 = vld [vmem:[%s12346_s1 + $0x1510] sm:$0xff]  ;;  %v760_v40 = vld [vmem:[%s12346_s1 + $0x16b8] sm:$0xff] }
 0x334   :  { %v8477_v60 = vcombine.low %v707_v27, %v711_v30 }
 0x336   :  { %7142 = vmatpush1.bf16.msra.mxu0 %v8413_v52  ;;  %7486 = vmatpush1.bf16.msra.mxu1 %v8415_v55  ;;  %v8478_v52 = vcombine.high %v707_v27, %v711_v30  ;;  %v764_v27 = vld [vmem:[%s12346_s1 + $0x16d8] sm:$0xff] }
 0x337   :  { %7143 = vmatprep.subr.bf16.mxu0 %v8422_v56  ;;  %7487 = vmatprep.subr.bf16.mxu1 %v8424_v35  ;;  %v715_v56 = vld [vmem:[%s12346_s1 + $0x1550] sm:$0xff]  ;;  %v768_v30 = vld [vmem:[%s12346_s1 + $0x16f8] sm:$0xff] }
 0x338   :  { %v719_v35 = vld [vmem:[%s12346_s1 + $0x1570] sm:$0xff] }
 0x339   :  { %v8485_v46 = vcombine.low %v715_v56, %v719_v35 }
 0x33a   :  { %7144 = vmatpush1.bf16.msra.mxu0 %v8421_v62  ;;  %7488 = vmatpush1.bf16.msra.mxu1 %v8423_v0  ;;  %v8486_v62 = vcombine.high %v715_v56, %v719_v35  ;;  %v8488_v0 = vcombine.high %v716_v57, %v720_v59  ;;  %v772_v56 = vld [vmem:[%s12346_s1 + $0x1718] sm:$0xff]  ;;  %v8535_v59 = vcombine.low %v764_v27, %v768_v30 }
 0x33b   :  { %7145 = vmatprep.subr.bf16.mxu0 %v8430_v6  ;;  %7489 = vmatprep.subr.bf16.mxu1 %v8432_v18  ;;  %v723_v6 = vld [vmem:[%s12346_s1 + $0x1590] sm:$0xff]  ;;  %v776_v35 = vld [vmem:[%s12346_s1 + $0x1738] sm:$0xff] }
 0x33c   :  { %v727_v18 = vld [vmem:[%s12346_s1 + $0x15b0] sm:$0xff] }
 0x33d   :  { %v8493_v16 = vcombine.low %v723_v6, %v727_v18 }
 0x33e   :  { %7146 = vmatpush1.bf16.msra.mxu0 %v8429_v9  ;;  %7490 = vmatpush1.bf16.msra.mxu1 %v8431_v43  ;;  %v8494_v9 = vcombine.high %v723_v6, %v727_v18  ;;  %v8496_v43 = vcombine.high %v724_v32, %v728_v45  ;;  %v780_v6 = vld [vmem:[%s12346_s1 + $0x1758] sm:$0xff]  ;;  %v8543_v45 = vcombine.low %v772_v56, %v776_v35 }
 0x33f   :  { %7147 = vmatprep.subr.bf16.mxu0 %v8438_v11  ;;  %7491 = vmatprep.subr.bf16.mxu1 %v8440_v12  ;;  %v731_v11 = vld [vmem:[%s12346_s1 + $0x15d0] sm:$0xff]  ;;  %v784_v18 = vld [vmem:[%s12346_s1 + $0x1778] sm:$0xff] }
 0x340   :  { %v735_v12 = vld [vmem:[%s12346_s1 + $0x15f0] sm:$0xff] }
 0x341   :  { %v8501_v2 = vcombine.low %v731_v11, %v735_v12 }
 0x342   :  { %7148 = vmatpush1.bf16.msra.mxu0 %v8437_v19  ;;  %7492 = vmatpush1.bf16.msra.mxu1 %v8439_v53  ;;  %v8502_v19 = vcombine.high %v731_v11, %v735_v12  ;;  %v8504_v53 = vcombine.high %v732_v13, %v736_v14  ;;  %v788_v11 = vld [vmem:[%s12346_s1 + $0x1798] sm:$0xff]  ;;  %v8551_v14 = vcombine.low %v780_v6, %v784_v18 }
 0x343   :  { %7160 = vmatprep.subr.bf16.mxu0 %v8446_v51  ;;  %7504 = vmatprep.subr.bf16.mxu1 %v8448_v54  ;;  %v739_v51 = vld [vmem:[%s12346_s1 + $0x1610] sm:$0xff]  ;;  %v792_v12 = vld [vmem:[%s12346_s1 + $0x17b8] sm:$0xff] }
 0x344   :  { %v743_v54 = vld [vmem:[%s12346_s1 + $0x1630] sm:$0xff] }
 0x345   :  { %7150 = vmatmul.mubr.bf16.vlgmr.msra.gmra.mrb[4].mxu0 %v10051_v31  ;;  %7494 = vmatmul.mubr.bf16.vlgmr.msra.gmra.mrb[4].mxu1 %v10051_v31  ;;  %v700_v31 = vld [vmem:[%s12346_s1 + $0x14d8] sm:$0xff]  ;;  %v8509_v10 = vcombine.low %v739_v51, %v743_v54 }
 0x346   :  { %7161 = vmatpush1.bf16.msra.mxu0 %v8445_v23  ;;  %7505 = vmatpush1.bf16.msra.mxu1 %v8447_v26  ;;  %v8472_v29 = vcombine.high %v700_v31, %v704_v44  ;;  %v8471_v58 = vcombine.low %v700_v31, %v704_v44  ;;  %v8510_v23 = vcombine.high %v739_v51, %v743_v54  ;;  %v796_v51 = vld [vmem:[%s12346_s1 + $0x17d8] sm:$0xff] }
 0x347   :  { %7162 = vmatprep.subr.bf16.mxu0 %v8454_v28  ;;  %7506 = vmatprep.subr.bf16.mxu1 %v8456_v41  ;;  %v8512_v26 = vcombine.high %v740_v22, %v744_v24  ;;  %v747_v28 = vld [vmem:[%s12346_s1 + $0x1650] sm:$0xff]  ;;  %v8519_v44 = vcombine.low %v748_v42, %v752_v17  ;;  %v800_v54 = vld [vmem:[%s12346_s1 + $0x17f8] sm:$0xff]  ;;  %v8559_v24 = vcombine.low %v788_v11, %v792_v12 }
 0x348   :  { %7192 = vmatprep.mubr.bf16.mxu0 %v10074_v38  ;;  %7536 = vmatprep.mubr.bf16.mxu1 %v10074_v38  ;;  %v708_v38 = vld [vmem:[%s12346_s1 + $0x1518] sm:$0xff]  ;;  %v751_v41 = vld [vmem:[%s12346_s1 + $0x1670] sm:$0xff] }
 0x349   :  { %v8480_v55 = vcombine.high %v708_v38, %v712_v49  ;;  %v8479_v61 = vcombine.low %v708_v38, %v712_v49  ;;  %v8517_v31 = vcombine.low %v747_v28, %v751_v41  ;;  %v8527_v49 = vcombine.low %v756_v37, %v760_v40 }
 0x34a   :  { %7163 = vmatpush1.bf16.msra.mxu0 %v8453_v4  ;;  %7507 = vmatpush1.bf16.msra.mxu1 %v8455_v5  ;;  %v8518_v4 = vcombine.high %v747_v28, %v751_v41  ;;  %v8520_v5 = vcombine.high %v748_v42, %v752_v17  ;;  %v804_v28 = vld [vmem:[%s12346_s1 + $0x1818] sm:$0xff]  ;;  %v8567_v17 = vcombine.low %v796_v51, %v800_v54 }
 0x34b   :  { %7164 = vmatprep.subr.bf16.mxu0 %v8462_v34  ;;  %7508 = vmatprep.subr.bf16.mxu1 %v8464_v36  ;;  %v755_v34 = vld [vmem:[%s12346_s1 + $0x1690] sm:$0xff]  ;;  %v808_v41 = vld [vmem:[%s12346_s1 + $0x1838] sm:$0xff] }
 0x34c   :  { %v759_v36 = vld [vmem:[%s12346_s1 + $0x16b0] sm:$0xff] }
 0x34d   :  { %v8525_v38 = vcombine.low %v755_v34, %v759_v36 }
 0x34e   :  { %7165 = vmatpush1.bf16.msra.mxu0 %v8461_v1  ;;  %7509 = vmatpush1.bf16.msra.mxu1 %v8463_v3  ;;  %v8526_v1 = vcombine.high %v755_v34, %v759_v36  ;;  %v8528_v3 = vcombine.high %v756_v37, %v760_v40  ;;  %v812_v34 = vld [vmem:[%s12346_s1 + $0x1858] sm:$0xff]  ;;  %v8575_v40 = vcombine.low %v804_v28, %v808_v41 }
 0x34f   :  { %7166 = vmatprep.subr.bf16.mxu0 %v8470_v47  ;;  %7510 = vmatprep.subr.bf16.mxu1 %v8472_v29  ;;  %v763_v47 = vld [vmem:[%s12346_s1 + $0x16d0] sm:$0xff]  ;;  %v816_v36 = vld [vmem:[%s12346_s1 + $0x1878] sm:$0xff] }
 0x350   :  { %v767_v29 = vld [vmem:[%s12346_s1 + $0x16f0] sm:$0xff] }
 0x351   :  { %v8533_v57 = vcombine.low %v763_v47, %v767_v29 }
 0x352   :  { %7167 = vmatpush1.bf16.msra.mxu0 %v8469_v50  ;;  %7511 = vmatpush1.bf16.msra.mxu1 %v8471_v58  ;;  %v8534_v50 = vcombine.high %v763_v47, %v767_v29  ;;  %v8536_v58 = vcombine.high %v764_v27, %v768_v30  ;;  %v820_v47 = vld [vmem:[%s12346_s1 + $0x1898] sm:$0xff]  ;;  %v8583_v30 = vcombine.low %v812_v34, %v816_v36 }
 0x353   :  { %7168 = vmatprep.subr.bf16.mxu0 %v8478_v52  ;;  %7512 = vmatprep.subr.bf16.mxu1 %v8480_v55  ;;  %v771_v52 = vld [vmem:[%s12346_s1 + $0x1710] sm:$0xff]  ;;  %v824_v29 = vld [vmem:[%s12346_s1 + $0x18b8] sm:$0xff] }
 0x354   :  { %v775_v55 = vld [vmem:[%s12346_s1 + $0x1730] sm:$0xff] }
 0x355   :  { %v8541_v32 = vcombine.low %v771_v52, %v775_v55 }
 0x356   :  { %7169 = vmatpush1.bf16.msra.mxu0 %v8477_v60  ;;  %7513 = vmatpush1.bf16.msra.mxu1 %v8479_v61  ;;  %v8542_v60 = vcombine.high %v771_v52, %v775_v55  ;;  %v8544_v61 = vcombine.high %v772_v56, %v776_v35  ;;  %v832_v52 = vld [vmem:[%s12346_s1 + $0x18f8] sm:$0xff]  ;;  %v8591_v56 = vcombine.low %v820_v47, %v824_v29 }
 0x357   :  { %7170 = vmatprep.subr.bf16.mxu0 %v8486_v62  ;;  %7514 = vmatprep.subr.bf16.mxu1 %v8488_v0  ;;  %v779_v62 = vld [vmem:[%s12346_s1 + $0x1750] sm:$0xff] }
 0x358   :  { %v783_v0 = vld [vmem:[%s12346_s1 + $0x1770] sm:$0xff] }
 0x359   :  { %v8549_v13 = vcombine.low %v779_v62, %v783_v0 }
 0x35a   :  { %7171 = vmatpush1.bf16.msra.mxu0 %v8485_v46  ;;  %7515 = vmatpush1.bf16.msra.mxu1 %v8487_v7  ;;  %v8550_v46 = vcombine.high %v779_v62, %v783_v0  ;;  %v8552_v7 = vcombine.high %v780_v6, %v784_v18 }
 0x35b   :  { %7172 = vmatprep.subr.bf16.mxu0 %v8494_v9  ;;  %7516 = vmatprep.subr.bf16.mxu1 %v8496_v43  ;;  %v787_v9 = vld [vmem:[%s12346_s1 + $0x1790] sm:$0xff] }
 0x35c   :  { %v791_v43 = vld [vmem:[%s12346_s1 + $0x17b0] sm:$0xff] }
 0x35d   :  { %v8557_v22 = vcombine.low %v787_v9, %v791_v43 }
 0x35e   :  { %7173 = vmatpush1.bf16.msra.mxu0 %v8493_v16  ;;  %7517 = vmatpush1.bf16.msra.mxu1 %v8495_v15  ;;  %v8558_v16 = vcombine.high %v787_v9, %v791_v43  ;;  %v8560_v15 = vcombine.high %v788_v11, %v792_v12 }
 0x35f   :  { %7174 = vmatprep.subr.bf16.mxu0 %v8502_v19  ;;  %7518 = vmatprep.subr.bf16.mxu1 %v8504_v53  ;;  %v795_v19 = vld [vmem:[%s12346_s1 + $0x17d0] sm:$0xff] }
 0x360   :  { %v799_v53 = vld [vmem:[%s12346_s1 + $0x17f0] sm:$0xff] }
 0x361   :  { %v8565_v42 = vcombine.low %v795_v19, %v799_v53 }
 0x362   :  { %7175 = vmatpush1.bf16.msra.mxu0 %v8501_v2  ;;  %7519 = vmatpush1.bf16.msra.mxu1 %v8503_v25  ;;  %v8566_v2 = vcombine.high %v795_v19, %v799_v53  ;;  %v8568_v25 = vcombine.high %v796_v51, %v800_v54 }
 0x363   :  { %7176 = vmatprep.subr.bf16.mxu0 %v8510_v23  ;;  %7520 = vmatprep.subr.bf16.mxu1 %v8512_v26  ;;  %v803_v23 = vld [vmem:[%s12346_s1 + $0x1810] sm:$0xff] }
 0x364   :  { %v807_v26 = vld [vmem:[%s12346_s1 + $0x1830] sm:$0xff] }
 0x365   :  { %v8573_v37 = vcombine.low %v803_v23, %v807_v26 }
 0x366   :  { %7177 = vmatpush1.bf16.msra.mxu0 %v8509_v10  ;;  %7521 = vmatpush1.bf16.msra.mxu1 %v8511_v33  ;;  %v8574_v10 = vcombine.high %v803_v23, %v807_v26  ;;  %v8576_v33 = vcombine.high %v804_v28, %v808_v41 }
 0x367   :  { %7178 = vmatprep.subr.bf16.mxu0 %v8518_v4  ;;  %7522 = vmatprep.subr.bf16.mxu1 %v8520_v5  ;;  %v811_v4 = vld [vmem:[%s12346_s1 + $0x1850] sm:$0xff] }
 0x368   :  { %v815_v5 = vld [vmem:[%s12346_s1 + $0x1870] sm:$0xff] }
 0x369   :  { %v8581_v27 = vcombine.low %v811_v4, %v815_v5 }
 0x36a   :  { %7179 = vmatpush1.bf16.msra.mxu0 %v8517_v31  ;;  %7523 = vmatpush1.bf16.msra.mxu1 %v8519_v44  ;;  %v8582_v31 = vcombine.high %v811_v4, %v815_v5  ;;  %v8584_v44 = vcombine.high %v812_v34, %v816_v36 }
 0x36b   :  { %7180 = vmatprep.subr.bf16.mxu0 %v8526_v1  ;;  %7524 = vmatprep.subr.bf16.mxu1 %v8528_v3  ;;  %v819_v1 = vld [vmem:[%s12346_s1 + $0x1890] sm:$0xff] }
 0x36c   :  { %v823_v3 = vld [vmem:[%s12346_s1 + $0x18b0] sm:$0xff] }
 0x36d   :  { %v8589_v55 = vcombine.low %v819_v1, %v823_v3 }
 0x36e   :  { %7181 = vmatpush1.bf16.msra.mxu0 %v8525_v38  ;;  %7525 = vmatpush1.bf16.msra.mxu1 %v8527_v49  ;;  %v8590_v38 = vcombine.high %v819_v1, %v823_v3  ;;  %v8592_v49 = vcombine.high %v820_v47, %v824_v29 }
 0x36f   :  { %7182 = vmatprep.subr.bf16.mxu0 %v8534_v50  ;;  %7526 = vmatprep.subr.bf16.mxu1 %v8536_v58  ;;  %v827_v50 = vld [vmem:[%s12346_s1 + $0x18d0] sm:$0xff] }
 0x370   :  { %v831_v58 = vld [vmem:[%s12346_s1 + $0x18f0] sm:$0xff] }
 0x371   :  { %v8598_v35 = vcombine.high %v827_v50, %v831_v58  ;;  %v8597_v62 = vcombine.low %v827_v50, %v831_v58 }
 0x372   :  { %7183 = vmatpush1.bf16.msra.mxu0 %v8533_v57  ;;  %7527 = vmatpush1.bf16.msra.mxu1 %v8535_v59  ;;  %v835_v59 = vld [vmem:[%s12346_s1 + $0x1910] sm:$0xff] }
 0x373   :  { %7184 = vmatprep.subr.bf16.mxu0 %v8542_v60  ;;  %7528 = vmatprep.subr.bf16.mxu1 %v8544_v61  ;;  %v839_v60 = vld [vmem:[%s12346_s1 + $0x1930] sm:$0xff]  ;;  %v840_v61 = vld [vmem:[%s12346_s1 + $0x1938] sm:$0xff] }
 0x374   :  { %v8606_v6 = vcombine.high %v835_v59, %v839_v60  ;;  %v8605_v9 = vcombine.low %v835_v59, %v839_v60 }
 0x376   :  { %7185 = vmatpush1.bf16.msra.mxu0 %v8541_v32  ;;  %7529 = vmatpush1.bf16.msra.mxu1 %v8543_v45  ;;  %v843_v32 = vld [vmem:[%s12346_s1 + $0x1950] sm:$0xff] }
 0x377   :  { %7186 = vmatprep.subr.bf16.mxu0 %v8550_v46  ;;  %7530 = vmatprep.subr.bf16.mxu1 %v8552_v7  ;;  %v847_v45 = vld [vmem:[%s12346_s1 + $0x1970] sm:$0xff]  ;;  %v844_v46 = vld [vmem:[%s12346_s1 + $0x1958] sm:$0xff] }
 0x378   :  { %v848_v7 = vld [vmem:[%s12346_s1 + $0x1978] sm:$0xff]  ;;  %v8614_v11 = vcombine.high %v843_v32, %v847_v45  ;;  %v8613_v19 = vcombine.low %v843_v32, %v847_v45 }
 0x379   :  { %v8616_v12 = vcombine.high %v844_v46, %v848_v7  ;;  %v8615_v53 = vcombine.low %v844_v46, %v848_v7 }
 0x37a   :  { %7187 = vmatpush1.bf16.msra.mxu0 %v8549_v13  ;;  %7531 = vmatpush1.bf16.msra.mxu1 %v8551_v14  ;;  %v851_v13 = vld [vmem:[%s12346_s1 + $0x1990] sm:$0xff] }
 0x37b   :  { %7188 = vmatprep.subr.bf16.mxu0 %v8558_v16  ;;  %7532 = vmatprep.subr.bf16.mxu1 %v8560_v15  ;;  %v855_v14 = vld [vmem:[%s12346_s1 + $0x19b0] sm:$0xff]  ;;  %v852_v16 = vld [vmem:[%s12346_s1 + $0x1998] sm:$0xff] }
 0x37c   :  { %v856_v15 = vld [vmem:[%s12346_s1 + $0x19b8] sm:$0xff]  ;;  %v8622_v51 = vcombine.high %v851_v13, %v855_v14  ;;  %v8621_v23 = vcombine.low %v851_v13, %v855_v14 }
 0x37d   :  { %v8624_v54 = vcombine.high %v852_v16, %v856_v15  ;;  %v8623_v26 = vcombine.low %v852_v16, %v856_v15 }
 0x37e   :  { %7189 = vmatpush1.bf16.msra.mxu0 %v8557_v22  ;;  %7533 = vmatpush1.bf16.msra.mxu1 %v8559_v24  ;;  %v859_v22 = vld [vmem:[%s12346_s1 + $0x19d0] sm:$0xff] }
 0x37f   :  { %7190 = vmatprep.subr.bf16.mxu0 %v8566_v2  ;;  %7534 = vmatprep.subr.bf16.mxu1 %v8568_v25  ;;  %v863_v24 = vld [vmem:[%s12346_s1 + $0x19f0] sm:$0xff]  ;;  %v860_v2 = vld [vmem:[%s12346_s1 + $0x19d8] sm:$0xff] }
 0x380   :  { %v864_v25 = vld [vmem:[%s12346_s1 + $0x19f8] sm:$0xff]  ;;  %v8630_v28 = vcombine.high %v859_v22, %v863_v24  ;;  %v8629_v4 = vcombine.low %v859_v22, %v863_v24 }
 0x381   :  { %v8632_v41 = vcombine.high %v860_v2, %v864_v25  ;;  %v8631_v5 = vcombine.low %v860_v2, %v864_v25 }
 0x382   :  { %7191 = vmatpush1.bf16.msra.mxu0 %v8565_v42  ;;  %7535 = vmatpush1.bf16.msra.mxu1 %v8567_v17  ;;  %v867_v42 = vld [vmem:[%s12346_s1 + $0x1a10] sm:$0xff] }
 0x383   :  { %7203 = vmatprep.subr.bf16.mxu0 %v8574_v10  ;;  %7547 = vmatprep.subr.bf16.mxu1 %v8576_v33  ;;  %v871_v17 = vld [vmem:[%s12346_s1 + $0x1a30] sm:$0xff]  ;;  %v868_v10 = vld [vmem:[%s12346_s1 + $0x1a18] sm:$0xff] }
 0x384   :  { %v872_v33 = vld [vmem:[%s12346_s1 + $0x1a38] sm:$0xff]  ;;  %v8638_v34 = vcombine.high %v867_v42, %v871_v17  ;;  %v8637_v1 = vcombine.low %v867_v42, %v871_v17 }
 0x385   :  { %7193 = vmatmul.mubr.bf16.vlgmr.msra.gmra.mrb[4].mxu0 %v10265_v63  ;;  %7537 = vmatmul.mubr.bf16.vlgmr.msra.gmra.mrb[4].mxu1 %v10265_v63  ;;  %v828_v63 = vld [vmem:[%s12346_s1 + $0x18d8] sm:$0xff]  ;;  %v8640_v36 = vcombine.high %v868_v10, %v872_v33  ;;  %v8639_v3 = vcombine.low %v868_v10, %v872_v33 }
 0x386   :  { %7204 = vmatpush1.bf16.msra.mxu0 %v8573_v37  ;;  %7548 = vmatpush1.bf16.msra.mxu1 %v8575_v40  ;;  %v8600_v57 = vcombine.high %v828_v63, %v832_v52  ;;  %v8599_v0 = vcombine.low %v828_v63, %v832_v52  ;;  %v875_v37 = vld [vmem:[%s12346_s1 + $0x1a50] sm:$0xff] }
 0x387   :  { %7205 = vmatprep.subr.bf16.mxu0 %v8582_v31  ;;  %7549 = vmatprep.subr.bf16.mxu1 %v8584_v44  ;;  %v879_v40 = vld [vmem:[%s12346_s1 + $0x1a70] sm:$0xff]  ;;  %v876_v31 = vld [vmem:[%s12346_s1 + $0x1a58] sm:$0xff] }
 0x388   :  { %7235 = vmatprep.mubr.bf16.mxu0 %v10288_v8  ;;  %7579 = vmatprep.mubr.bf16.mxu1 %v10288_v8  ;;  %v836_v8 = vld [vmem:[%s12346_s1 + $0x1918] sm:$0xff]  ;;  %v8646_v47 = vcombine.high %v875_v37, %v879_v40  ;;  %v8645_v50 = vcombine.low %v875_v37, %v879_v40 }
 0x389   :  { %v8608_v18 = vcombine.high %v836_v8, %v840_v61  ;;  %v8607_v43 = vcombine.low %v836_v8, %v840_v61  ;;  %v880_v44 = vld [vmem:[%s12346_s1 + $0x1a78] sm:$0xff] }
 0x38a   :  { %7206 = vmatpush1.bf16.msra.mxu0 %v8581_v27  ;;  %7550 = vmatpush1.bf16.msra.mxu1 %v8583_v30  ;;  %v8648_v29 = vcombine.high %v876_v31, %v880_v44  ;;  %v883_v27 = vld [vmem:[%s12346_s1 + $0x1a90] sm:$0xff]  ;;  %v8647_v58 = vcombine.low %v876_v31, %v880_v44 }
 0x38b   :  { %7207 = vmatprep.subr.bf16.mxu0 %v8590_v38  ;;  %7551 = vmatprep.subr.bf16.mxu1 %v8592_v49  ;;  %v887_v30 = vld [vmem:[%s12346_s1 + $0x1ab0] sm:$0xff]  ;;  %v884_v38 = vld [vmem:[%s12346_s1 + $0x1a98] sm:$0xff] }
 0x38c   :  { %v888_v49 = vld [vmem:[%s12346_s1 + $0x1ab8] sm:$0xff]  ;;  %v8654_v63 = vcombine.high %v883_v27, %v887_v30  ;;  %v8653_v59 = vcombine.low %v883_v27, %v887_v30 }
 0x38d   :  { %v8656_v52 = vcombine.high %v884_v38, %v888_v49  ;;  %v8655_v60 = vcombine.low %v884_v38, %v888_v49 }
 0x38e   :  { %7208 = vmatpush1.bf16.msra.mxu0 %v8589_v55  ;;  %7552 = vmatpush1.bf16.msra.mxu1 %v8591_v56  ;;  %v891_v55 = vld [vmem:[%s12346_s1 + $0x1ad0] sm:$0xff] }
 0x38f   :  { %7209 = vmatprep.subr.bf16.mxu0 %v8598_v35  ;;  %7553 = vmatprep.subr.bf16.mxu1 %v8600_v57  ;;  %v895_v56 = vld [vmem:[%s12346_s1 + $0x1af0] sm:$0xff]  ;;  %v892_v35 = vld [vmem:[%s12346_s1 + $0x1ad8] sm:$0xff] }
 0x390   :  { %v896_v57 = vld [vmem:[%s12346_s1 + $0x1af8] sm:$0xff]  ;;  %v8662_v8 = vcombine.high %v891_v55, %v895_v56  ;;  %v8661_v32 = vcombine.low %v891_v55, %v895_v56 }
 0x391   :  { %v8664_v61 = vcombine.high %v892_v35, %v896_v57  ;;  %v8663_v45 = vcombine.low %v892_v35, %v896_v57 }
 0x392   :  { %7210 = vmatpush1.bf16.msra.mxu0 %v8597_v62  ;;  %7554 = vmatpush1.bf16.msra.mxu1 %v8599_v0  ;;  %v899_v62 = vld [vmem:[%s12346_s1 + $0x1b10] sm:$0xff] }
 0x393   :  { %7211 = vmatprep.subr.bf16.mxu0 %v8606_v6  ;;  %7555 = vmatprep.subr.bf16.mxu1 %v8608_v18  ;;  %v903_v0 = vld [vmem:[%s12346_s1 + $0x1b30] sm:$0xff]  ;;  %v900_v6 = vld [vmem:[%s12346_s1 + $0x1b18] sm:$0xff] }
 0x394   :  { %v904_v18 = vld [vmem:[%s12346_s1 + $0x1b38] sm:$0xff]  ;;  %v8670_v46 = vcombine.high %v899_v62, %v903_v0  ;;  %v8669_v13 = vcombine.low %v899_v62, %v903_v0 }
 0x395   :  { %v8672_v7 = vcombine.high %v900_v6, %v904_v18  ;;  %v8671_v14 = vcombine.low %v900_v6, %v904_v18  ;;  %v963_v18 = vld [vmem:[%s12346_s1 + $0x1d10] sm:$0xff] }
 0x396   :  { %7212 = vmatpush1.bf16.msra.mxu0 %v8605_v9  ;;  %7556 = vmatpush1.bf16.msra.mxu1 %v8607_v43  ;;  %v907_v9 = vld [vmem:[%s12346_s1 + $0x1b50] sm:$0xff] }
 0x397   :  { %7213 = vmatprep.subr.bf16.mxu0 %v8614_v11  ;;  %7557 = vmatprep.subr.bf16.mxu1 %v8616_v12  ;;  %v911_v43 = vld [vmem:[%s12346_s1 + $0x1b70] sm:$0xff]  ;;  %v908_v11 = vld [vmem:[%s12346_s1 + $0x1b58] sm:$0xff] }
 0x398   :  { %v912_v12 = vld [vmem:[%s12346_s1 + $0x1b78] sm:$0xff]  ;;  %v8678_v16 = vcombine.high %v907_v9, %v911_v43  ;;  %v8677_v22 = vcombine.low %v907_v9, %v911_v43 }
 0x399   :  { %v8680_v15 = vcombine.high %v908_v11, %v912_v12  ;;  %v8679_v24 = vcombine.low %v908_v11, %v912_v12  ;;  %v971_v11 = vld [vmem:[%s12346_s1 + $0x1d50] sm:$0xff] }
 0x39a   :  { %7214 = vmatpush1.bf16.msra.mxu0 %v8613_v19  ;;  %7558 = vmatpush1.bf16.msra.mxu1 %v8615_v53  ;;  %v915_v19 = vld [vmem:[%s12346_s1 + $0x1b90] sm:$0xff] }
 0x39b   :  { %7215 = vmatprep.subr.bf16.mxu0 %v8622_v51  ;;  %7559 = vmatprep.subr.bf16.mxu1 %v8624_v54  ;;  %v919_v53 = vld [vmem:[%s12346_s1 + $0x1bb0] sm:$0xff]  ;;  %v916_v51 = vld [vmem:[%s12346_s1 + $0x1b98] sm:$0xff] }
 0x39c   :  { %v920_v54 = vld [vmem:[%s12346_s1 + $0x1bb8] sm:$0xff]  ;;  %v8686_v2 = vcombine.high %v915_v19, %v919_v53  ;;  %v8685_v42 = vcombine.low %v915_v19, %v919_v53  ;;  %v975_v12 = vld [vmem:[%s12346_s1 + $0x1d70] sm:$0xff] }
 0x39d   :  { %v8688_v25 = vcombine.high %v916_v51, %v920_v54  ;;  %v8687_v17 = vcombine.low %v916_v51, %v920_v54  ;;  %v8742_v19 = vcombine.high %v971_v11, %v975_v12  ;;  %v979_v51 = vld [vmem:[%s12346_s1 + $0x1d90] sm:$0xff] }
 0x39e   :  { %7216 = vmatpush1.bf16.msra.mxu0 %v8621_v23  ;;  %7560 = vmatpush1.bf16.msra.mxu1 %v8623_v26  ;;  %v923_v23 = vld [vmem:[%s12346_s1 + $0x1bd0] sm:$0xff] }
 0x39f   :  { %7217 = vmatprep.subr.bf16.mxu0 %v8630_v28  ;;  %7561 = vmatprep.subr.bf16.mxu1 %v8632_v41  ;;  %v927_v26 = vld [vmem:[%s12346_s1 + $0x1bf0] sm:$0xff]  ;;  %v924_v28 = vld [vmem:[%s12346_s1 + $0x1bd8] sm:$0xff] }
 0x3a0   :  { %v928_v41 = vld [vmem:[%s12346_s1 + $0x1bf8] sm:$0xff]  ;;  %v8694_v10 = vcombine.high %v923_v23, %v927_v26  ;;  %v8693_v37 = vcombine.low %v923_v23, %v927_v26  ;;  %v983_v54 = vld [vmem:[%s12346_s1 + $0x1db0] sm:$0xff] }
 0x3a1   :  { %v8696_v33 = vcombine.high %v924_v28, %v928_v41  ;;  %v8695_v40 = vcombine.low %v924_v28, %v928_v41  ;;  %v8750_v23 = vcombine.high %v979_v51, %v983_v54  ;;  %v987_v28 = vld [vmem:[%s12346_s1 + $0x1dd0] sm:$0xff] }
 0x3a2   :  { %7218 = vmatpush1.bf16.msra.mxu0 %v8629_v4  ;;  %7562 = vmatpush1.bf16.msra.mxu1 %v8631_v5  ;;  %v931_v4 = vld [vmem:[%s12346_s1 + $0x1c10] sm:$0xff] }
 0x3a3   :  { %7219 = vmatprep.subr.bf16.mxu0 %v8638_v34  ;;  %7563 = vmatprep.subr.bf16.mxu1 %v8640_v36  ;;  %v935_v5 = vld [vmem:[%s12346_s1 + $0x1c30] sm:$0xff]  ;;  %v932_v34 = vld [vmem:[%s12346_s1 + $0x1c18] sm:$0xff] }
 0x3a4   :  { %v936_v36 = vld [vmem:[%s12346_s1 + $0x1c38] sm:$0xff]  ;;  %v8702_v31 = vcombine.high %v931_v4, %v935_v5  ;;  %v8701_v27 = vcombine.low %v931_v4, %v935_v5  ;;  %v991_v41 = vld [vmem:[%s12346_s1 + $0x1df0] sm:$0xff] }
 0x3a5   :  { %v8704_v44 = vcombine.high %v932_v34, %v936_v36  ;;  %v8703_v30 = vcombine.low %v932_v34, %v936_v36  ;;  %v8758_v4 = vcombine.high %v987_v28, %v991_v41  ;;  %v995_v34 = vld [vmem:[%s12346_s1 + $0x1e10] sm:$0xff] }
 0x3a6   :  { %7220 = vmatpush1.bf16.msra.mxu0 %v8637_v1  ;;  %7564 = vmatpush1.bf16.msra.mxu1 %v8639_v3  ;;  %v939_v1 = vld [vmem:[%s12346_s1 + $0x1c50] sm:$0xff] }
 0x3a7   :  { %7221 = vmatprep.subr.bf16.mxu0 %v8646_v47  ;;  %7565 = vmatprep.subr.bf16.mxu1 %v8648_v29  ;;  %v943_v3 = vld [vmem:[%s12346_s1 + $0x1c70] sm:$0xff]  ;;  %v940_v47 = vld [vmem:[%s12346_s1 + $0x1c58] sm:$0xff] }
 0x3a8   :  { %v944_v29 = vld [vmem:[%s12346_s1 + $0x1c78] sm:$0xff]  ;;  %v8710_v38 = vcombine.high %v939_v1, %v943_v3  ;;  %v8709_v55 = vcombine.low %v939_v1, %v943_v3  ;;  %v999_v36 = vld [vmem:[%s12346_s1 + $0x1e30] sm:$0xff] }
 0x3a9   :  { %v8712_v49 = vcombine.high %v940_v47, %v944_v29  ;;  %v8711_v56 = vcombine.low %v940_v47, %v944_v29  ;;  %v8766_v1 = vcombine.high %v995_v34, %v999_v36  ;;  %v1003_v47 = vld [vmem:[%s12346_s1 + $0x1e50] sm:$0xff] }
 0x3aa   :  { %7222 = vmatpush1.bf16.msra.mxu0 %v8645_v50  ;;  %7566 = vmatpush1.bf16.msra.mxu1 %v8647_v58  ;;  %v947_v50 = vld [vmem:[%s12346_s1 + $0x1c90] sm:$0xff] }
 0x3ab   :  { %7223 = vmatprep.subr.bf16.mxu0 %v8654_v63  ;;  %7567 = vmatprep.subr.bf16.mxu1 %v8656_v52  ;;  %v951_v58 = vld [vmem:[%s12346_s1 + $0x1cb0] sm:$0xff]  ;;  %v948_v63 = vld [vmem:[%s12346_s1 + $0x1c98] sm:$0xff] }
 0x3ac   :  { %v952_v52 = vld [vmem:[%s12346_s1 + $0x1cb8] sm:$0xff]  ;;  %v8718_v35 = vcombine.high %v947_v50, %v951_v58  ;;  %v1007_v29 = vld [vmem:[%s12346_s1 + $0x1e70] sm:$0xff] }
 0x3ad   :  { %v8720_v57 = vcombine.high %v948_v63, %v952_v52  ;;  %v8719_v62 = vcombine.low %v948_v63, %v952_v52  ;;  %v1011_v63 = vld [vmem:[%s12346_s1 + $0x1e90] sm:$0xff] }
 0x3ae   :  { %7224 = vmatpush1.bf16.msra.mxu0 %v8653_v59  ;;  %7568 = vmatpush1.bf16.msra.mxu1 %v8655_v60  ;;  %v955_v59 = vld [vmem:[%s12346_s1 + $0x1cd0] sm:$0xff] }
 0x3af   :  { %7225 = vmatprep.subr.bf16.mxu0 %v8662_v8  ;;  %7569 = vmatprep.subr.bf16.mxu1 %v8664_v61  ;;  %v959_v60 = vld [vmem:[%s12346_s1 + $0x1cf0] sm:$0xff]  ;;  %v960_v8 = vld [vmem:[%s12346_s1 + $0x1cf8] sm:$0xff]  ;;  %v8717_v61 = vcombine.low %v947_v50, %v951_v58  ;;  %v8774_v50 = vcombine.high %v1003_v47, %v1007_v29 }
 0x3b0   :  { %v8726_v0 = vcombine.high %v955_v59, %v959_v60  ;;  %v1015_v52 = vld [vmem:[%s12346_s1 + $0x1eb0] sm:$0xff] }
 0x3b2   :  { %7226 = vmatpush1.bf16.msra.mxu0 %v8661_v32  ;;  %7570 = vmatpush1.bf16.msra.mxu1 %v8663_v45  ;;  %v967_v32 = vld [vmem:[%s12346_s1 + $0x1d30] sm:$0xff]  ;;  %v968_v45 = vld [vmem:[%s12346_s1 + $0x1d38] sm:$0xff] }
 0x3b3   :  { %7227 = vmatprep.subr.bf16.mxu0 %v8670_v46  ;;  %7571 = vmatprep.subr.bf16.mxu1 %v8672_v7  ;;  %v8725_v46 = vcombine.low %v955_v59, %v959_v60  ;;  %v8734_v9 = vcombine.high %v963_v18, %v967_v32  ;;  %v8782_v59 = vcombine.high %v1011_v63, %v1015_v52 }
 0x3b6   :  { %7228 = vmatpush1.bf16.msra.mxu0 %v8669_v13  ;;  %7572 = vmatpush1.bf16.msra.mxu1 %v8671_v14  ;;  %v972_v13 = vld [vmem:[%s12346_s1 + $0x1d58] sm:$0xff] }
 0x3b7   :  { %7229 = vmatprep.subr.bf16.mxu0 %v8678_v16  ;;  %7573 = vmatprep.subr.bf16.mxu1 %v8680_v15  ;;  %v976_v14 = vld [vmem:[%s12346_s1 + $0x1d78] sm:$0xff]  ;;  %v8733_v16 = vcombine.low %v963_v18, %v967_v32 }
 0x3b8   :  { %v8744_v53 = vcombine.high %v972_v13, %v976_v14 }
 0x3ba   :  { %7230 = vmatpush1.bf16.msra.mxu0 %v8677_v22  ;;  %7574 = vmatpush1.bf16.msra.mxu1 %v8679_v24  ;;  %v980_v22 = vld [vmem:[%s12346_s1 + $0x1d98] sm:$0xff] }
 0x3bb   :  { %7231 = vmatprep.subr.bf16.mxu0 %v8686_v2  ;;  %7575 = vmatprep.subr.bf16.mxu1 %v8688_v25  ;;  %v984_v24 = vld [vmem:[%s12346_s1 + $0x1db8] sm:$0xff]  ;;  %v8741_v2 = vcombine.low %v971_v11, %v975_v12  ;;  %v8743_v25 = vcombine.low %v972_v13, %v976_v14  ;;  %v1035_v13 = vld [vmem:[%s12346_s1 + $0x1f50] sm:$0xff] }
 0x3bc   :  { %v8752_v26 = vcombine.high %v980_v22, %v984_v24  ;;  %v1039_v14 = vld [vmem:[%s12346_s1 + $0x1f70] sm:$0xff] }
 0x3be   :  { %7232 = vmatpush1.bf16.msra.mxu0 %v8685_v42  ;;  %7576 = vmatpush1.bf16.msra.mxu1 %v8687_v17  ;;  %v988_v42 = vld [vmem:[%s12346_s1 + $0x1dd8] sm:$0xff] }
 0x3bf   :  { %7233 = vmatprep.subr.bf16.mxu0 %v8694_v10  ;;  %7577 = vmatprep.subr.bf16.mxu1 %v8696_v33  ;;  %v992_v17 = vld [vmem:[%s12346_s1 + $0x1df8] sm:$0xff]  ;;  %v8749_v10 = vcombine.low %v979_v51, %v983_v54  ;;  %v8751_v33 = vcombine.low %v980_v22, %v984_v24  ;;  %v8806_v51 = vcombine.high %v1035_v13, %v1039_v14  ;;  %v1043_v22 = vld [vmem:[%s12346_s1 + $0x1f90] sm:$0xff] }
 0x3c0   :  { %v8760_v5 = vcombine.high %v988_v42, %v992_v17  ;;  %v1047_v24 = vld [vmem:[%s12346_s1 + $0x1fb0] sm:$0xff] }
 0x3c2   :  { %7234 = vmatpush1.bf16.msra.mxu0 %v8693_v37  ;;  %7578 = vmatpush1.bf16.msra.mxu1 %v8695_v40  ;;  %v996_v37 = vld [vmem:[%s12346_s1 + $0x1e18] sm:$0xff] }
 0x3c3   :  { %7246 = vmatprep.subr.bf16.mxu0 %v8702_v31  ;;  %7590 = vmatprep.subr.bf16.mxu1 %v8704_v44  ;;  %v1000_v40 = vld [vmem:[%s12346_s1 + $0x1e38] sm:$0xff]  ;;  %v8757_v31 = vcombine.low %v987_v28, %v991_v41  ;;  %v8759_v44 = vcombine.low %v988_v42, %v992_v17  ;;  %v8814_v28 = vcombine.high %v1043_v22, %v1047_v24  ;;  %v1051_v42 = vld [vmem:[%s12346_s1 + $0x1fd0] sm:$0xff] }
 0x3c4   :  { %v8768_v3 = vcombine.high %v996_v37, %v1000_v40  ;;  %v1055_v17 = vld [vmem:[%s12346_s1 + $0x1ff0] sm:$0xff] }
 0x3c5   :  { %7236 = vmatmul.mubr.bf16.vlgmr.msra.gmra.mrb[4].mxu0 %v10479_v39  ;;  %7580 = vmatmul.mubr.bf16.vlgmr.msra.gmra.mrb[4].mxu1 %v10479_v39  ;;  %v956_v39 = vld [vmem:[%s12346_s1 + $0x1cd8] sm:$0xff] }
 0x3c6   :  { %7247 = vmatpush1.bf16.msra.mxu0 %v8701_v27  ;;  %7591 = vmatpush1.bf16.msra.mxu1 %v8703_v30  ;;  %v8728_v6 = vcombine.high %v956_v39, %v960_v8  ;;  %v8727_v7 = vcombine.low %v956_v39, %v960_v8  ;;  %v1004_v27 = vld [vmem:[%s12346_s1 + $0x1e58] sm:$0xff]  ;;  %v1019_v39 = vld [vmem:[%s12346_s1 + $0x1ed0] sm:$0xff] }
 0x3c7   :  { %7248 = vmatprep.subr.bf16.mxu0 %v8710_v38  ;;  %7592 = vmatprep.subr.bf16.mxu1 %v8712_v49  ;;  %v1008_v30 = vld [vmem:[%s12346_s1 + $0x1e78] sm:$0xff]  ;;  %v8765_v38 = vcombine.low %v995_v34, %v999_v36  ;;  %v8767_v49 = vcombine.low %v996_v37, %v1000_v40  ;;  %v1023_v8 = vld [vmem:[%s12346_s1 + $0x1ef0] sm:$0xff]  ;;  %v8822_v34 = vcombine.high %v1051_v42, %v1055_v17 }
 0x3c8   :  { %7278 = vmatprep.mubr.bf16.mxu0 %v10502_v48  ;;  %7622 = vmatprep.mubr.bf16.mxu1 %v10502_v48  ;;  %v964_v48 = vld [vmem:[%s12346_s1 + $0x1d18] sm:$0xff]  ;;  %v8776_v58 = vcombine.high %v1004_v27, %v1008_v30  ;;  %v8790_v18 = vcombine.high %v1019_v39, %v1023_v8  ;;  %v8821_v37 = vcombine.low %v1051_v42, %v1055_v17 }
 0x3c9   :  { %v8736_v43 = vcombine.high %v964_v48, %v968_v45  ;;  %v8735_v15 = vcombine.low %v964_v48, %v968_v45  ;;  %v1027_v48 = vld [vmem:[%s12346_s1 + $0x1f10] sm:$0xff] }
 0x3ca   :  { %7249 = vmatpush1.bf16.msra.mxu0 %v8709_v55  ;;  %7593 = vmatpush1.bf16.msra.mxu1 %v8711_v56  ;;  %v1012_v55 = vld [vmem:[%s12346_s1 + $0x1e98] sm:$0xff]  ;;  %v1031_v45 = vld [vmem:[%s12346_s1 + $0x1f30] sm:$0xff] }
 0x3cb   :  { %7250 = vmatprep.subr.bf16.mxu0 %v8718_v35  ;;  %7594 = vmatprep.subr.bf16.mxu1 %v8720_v57  ;;  %v1016_v56 = vld [vmem:[%s12346_s1 + $0x1eb8] sm:$0xff]  ;;  %v8773_v35 = vcombine.low %v1003_v47, %v1007_v29  ;;  %v8775_v57 = vcombine.low %v1004_v27, %v1008_v30  ;;  %v8798_v11 = vcombine.high %v1027_v48, %v1031_v45  ;;  %v8937_v47 = vld [vmem:[%s12348_s2] sm:$0xff] }
 0x3cc   :  { %v8784_v60 = vcombine.high %v1012_v55, %v1016_v56 }
 0x3ce   :  { %7251 = vmatpush1.bf16.msra.mxu0 %v8717_v61  ;;  %7595 = vmatpush1.bf16.msra.mxu1 %v8719_v62  ;;  %v1020_v61 = vld [vmem:[%s12346_s1 + $0x1ed8] sm:$0xff] }
 0x3cf   :  { %7252 = vmatprep.subr.bf16.mxu0 %v8726_v0  ;;  %7596 = vmatprep.subr.bf16.mxu1 %v8728_v6  ;;  %v1024_v62 = vld [vmem:[%s12346_s1 + $0x1ef8] sm:$0xff]  ;;  %v8781_v0 = vcombine.low %v1011_v63, %v1015_v52  ;;  %v8783_v6 = vcombine.low %v1012_v55, %v1016_v56 }
 0x3d0   :  { %v8792_v32 = vcombine.high %v1020_v61, %v1024_v62 }
 0x3d2   :  { %7253 = vmatpush1.bf16.msra.mxu0 %v8725_v46  ;;  %7597 = vmatpush1.bf16.msra.mxu1 %v8727_v7  ;;  %v1028_v46 = vld [vmem:[%s12346_s1 + $0x1f18] sm:$0xff] }
 0x3d3   :  { %7254 = vmatprep.subr.bf16.mxu0 %v8734_v9  ;;  %7598 = vmatprep.subr.bf16.mxu1 %v8736_v43  ;;  %v1032_v7 = vld [vmem:[%s12346_s1 + $0x1f38] sm:$0xff]  ;;  %v8789_v9 = vcombine.low %v1019_v39, %v1023_v8  ;;  %v8791_v43 = vcombine.low %v1020_v61, %v1024_v62 }
 0x3d4   :  { %v8800_v12 = vcombine.high %v1028_v46, %v1032_v7 }
 0x3d6   :  { %7255 = vmatpush1.bf16.msra.mxu0 %v8733_v16  ;;  %7599 = vmatpush1.bf16.msra.mxu1 %v8735_v15  ;;  %v1036_v16 = vld [vmem:[%s12346_s1 + $0x1f58] sm:$0xff] }
 0x3d7   :  { %7256 = vmatprep.subr.bf16.mxu0 %v8742_v19  ;;  %7600 = vmatprep.subr.bf16.mxu1 %v8744_v53  ;;  %v1040_v15 = vld [vmem:[%s12346_s1 + $0x1f78] sm:$0xff]  ;;  %v8797_v19 = vcombine.low %v1027_v48, %v1031_v45  ;;  %v8799_v53 = vcombine.low %v1028_v46, %v1032_v7 }
 0x3d8   :  { %v8808_v54 = vcombine.high %v1036_v16, %v1040_v15 }
 0x3da   :  { %7257 = vmatpush1.bf16.msra.mxu0 %v8741_v2  ;;  %7601 = vmatpush1.bf16.msra.mxu1 %v8743_v25  ;;  %v1044_v2 = vld [vmem:[%s12346_s1 + $0x1f98] sm:$0xff] }
 0x3db   :  { %7258 = vmatprep.subr.bf16.mxu0 %v8750_v23  ;;  %7602 = vmatprep.subr.bf16.mxu1 %v8752_v26  ;;  %v1048_v25 = vld [vmem:[%s12346_s1 + $0x1fb8] sm:$0xff]  ;;  %v8805_v23 = vcombine.low %v1035_v13, %v1039_v14  ;;  %v8807_v26 = vcombine.low %v1036_v16, %v1040_v15 }
 0x3dc   :  { %v8816_v41 = vcombine.high %v1044_v2, %v1048_v25 }
 0x3de   :  { %7259 = vmatpush1.bf16.msra.mxu0 %v8749_v10  ;;  %7603 = vmatpush1.bf16.msra.mxu1 %v8751_v33  ;;  %v1052_v10 = vld [vmem:[%s12346_s1 + $0x1fd8] sm:$0xff] }
 0x3df   :  { %7260 = vmatprep.subr.bf16.mxu0 %v8758_v4  ;;  %7604 = vmatprep.subr.bf16.mxu1 %v8760_v5  ;;  %v1056_v33 = vld [vmem:[%s12346_s1 + $0x1ff8] sm:$0xff]  ;;  %v8813_v4 = vcombine.low %v1043_v22, %v1047_v24  ;;  %v8815_v5 = vcombine.low %v1044_v2, %v1048_v25 }
 0x3e0   :  { %v8824_v36 = vcombine.high %v1052_v10, %v1056_v33  ;;  %v8823_v40 = vcombine.low %v1052_v10, %v1056_v33 }
 0x3e2   :  { %7261 = vmatpush1.bf16.msra.mxu0 %v8757_v31  ;;  %7605 = vmatpush1.bf16.msra.mxu1 %v8759_v44  ;;  %v7653_v31 = vsub.s32 4, %v11326_v21  ;;  %v7661_v44 = vsub.s32 6, %v11326_v21 }
 0x3e3   :  { %7262 = vmatprep.subr.bf16.mxu0 %v8766_v1  ;;  %7606 = vmatprep.subr.bf16.mxu1 %v8768_v3  ;;  %v7657_v1 = vsub.s32 5, %v11326_v21  ;;  %v7665_v3 = vsub.s32 7, %v11326_v21 }
 0x3e4   :  { %v7654_v29 = vrot.slane %v8937_v47, %v7653_v31  ;;  %v7662_v27 = vrot.slane %v8937_v47, %v7661_v44 }
 0x3e5   :  { %v7658_v30 = vrot.slane %v8937_v47, %v7657_v1 }
 0x3e6   :  { %7263 = vmatpush1.bf16.msra.mxu0 %v8765_v38  ;;  %7607 = vmatpush1.bf16.msra.mxu1 %v8767_v49  ;;  %v8938_v38 = vld [vmem:[%s12349_s3] sm:$0xff]  ;;  %v7666_v49 = vrot.slane %v8937_v47, %v7665_v3 }
 0x3e7   :  { %7264 = vmatprep.subr.bf16.mxu0 %v8774_v50  ;;  %7608 = vmatprep.subr.bf16.mxu1 %v8776_v58  ;;  %v7720_v58 = vrot.slane %v8938_v38, %v7661_v44  ;;  %v7716_v63 = vrot.slane %v8938_v38, %v7657_v1  ;;  %v7724_v21 = vrot.slane %v8938_v38, %v7665_v3 }
 0x3ea   :  { %7265 = vmatpush1.bf16.msra.mxu0 %v8773_v35  ;;  %7609 = vmatpush1.bf16.msra.mxu1 %v8775_v57 }
 0x3eb   :  { %7266 = vmatprep.subr.bf16.mxu0 %v8782_v59  ;;  %7610 = vmatprep.subr.bf16.mxu1 %v8784_v60 }
 0x3ee   :  { %7267 = vmatpush1.bf16.msra.mxu0 %v8781_v0  ;;  %7611 = vmatpush1.bf16.msra.mxu1 %v8783_v6 }
 0x3ef   :  { %7268 = vmatprep.subr.bf16.mxu0 %v8790_v18  ;;  %7612 = vmatprep.subr.bf16.mxu1 %v8792_v32 }
 0x3f2   :  { %7269 = vmatpush1.bf16.msra.mxu0 %v8789_v9  ;;  %7613 = vmatpush1.bf16.msra.mxu1 %v8791_v43 }
 0x3f3   :  { %7270 = vmatprep.subr.bf16.mxu0 %v8798_v11  ;;  %7614 = vmatprep.subr.bf16.mxu1 %v8800_v12 }
 0x3f6   :  { %7271 = vmatpush1.bf16.msra.mxu0 %v8797_v19  ;;  %7615 = vmatpush1.bf16.msra.mxu1 %v8799_v53 }
 0x3f7   :  { %7272 = vmatprep.subr.bf16.mxu0 %v8806_v51  ;;  %7616 = vmatprep.subr.bf16.mxu1 %v8808_v54 }
 0x3fa   :  { %7273 = vmatpush1.bf16.msra.mxu0 %v8805_v23  ;;  %7617 = vmatpush1.bf16.msra.mxu1 %v8807_v26 }
 0x3fb   :  { %7274 = vmatprep.subr.bf16.mxu0 %v8814_v28  ;;  %7618 = vmatprep.subr.bf16.mxu1 %v8816_v41 }
 0x3fe   :  { %7275 = vmatpush1.bf16.msra.mxu0 %v8813_v4  ;;  %7619 = vmatpush1.bf16.msra.mxu1 %v8815_v5 }
 0x3ff   :  { %7276 = vmatprep.subr.bf16.mxu0 %v8822_v34  ;;  %7620 = vmatprep.subr.bf16.mxu1 %v8824_v36 }
 0x402   :  { %7277 = vmatpush1.bf16.msra.mxu0 %v8821_v37  ;;  %7621 = vmatpush1.bf16.msra.mxu1 %v8823_v40 }
 0x405   :  { %7279 = vmatmul.mubr.bf16.vlgmr.msra.gmra.mrb[4].mxu0 %v10690_v20  ;;  %7623 = vmatmul.mubr.bf16.vlgmr.msra.gmra.mrb[4].mxu1 %v10690_v20  ;;  %v7712_v20 = vrot.slane %v8938_v38, %v7653_v31 }
 0x4d8   :  { %v7280_v50 = vpop.f32.mrb[4].mxu0  ;;  %v7624_v55 = vpop.f32.mrb[4].mxu1 }
 0x4d9   :  { %v7679_v52 = vmul.f32 %v7654_v29, %v7280_v50  ;;  %v7282_v56 = vpop.f32.mrb[5].mxu0  ;;  %v7681_v35 = vmul.f32 %v7662_v27, %v7624_v55  ;;  %v7626_v59 = vpop.f32.mrb[5].mxu1 }
 0x4da   :  { %v7680_v57 = vmul.f32 %v7658_v30, %v7282_v56  ;;  %v7284_v60 = vpop.f32.mrb[6].mxu0  ;;  %v7682_v8 = vmul.f32 %v7666_v49, %v7626_v59  ;;  %v7628_v62 = vpop.f32.mrb[6].mxu1 }
 0x4db   :  { %v7737_v39 = vadd.f32 %v7712_v20, %v7679_v52  ;;  %v7687_v61 = vmul.f32 %v7654_v29, %v7284_v60  ;;  %v7286_v0 = vpop.f32.mrb[7].mxu0  ;;  %v7739_v6 = vadd.f32 %v7720_v58, %v7681_v35  ;;  %v7689_v32 = vmul.f32 %v7662_v27, %v7628_v62  ;;  %v7630_v45 = vpop.f32.mrb[7].mxu1 }
 0x4dc   :  { %v7738_v18 = vadd.f32 %v7716_v63, %v7680_v57  ;;  %v7688_v48 = vmul.f32 %v7658_v30, %v7286_v0  ;;  %v7740_v7 = vadd.f32 %v7724_v21, %v7682_v8  ;;  %v7690_v43 = vmul.f32 %v7666_v49, %v7630_v45 }
 0x4dd   :  { %v7753_v46 = vmax.f32 %v7737_v39, 0.0  ;;  %v7745_v9 = vadd.f32 %v7712_v20, %v7687_v61  ;;  %v7755_v11 = vmax.f32 %v7739_v6, 0.0  ;;  %v7747_v13 = vadd.f32 %v7720_v58, %v7689_v32 }
 0x4de   :  { %v7754_v12 = vmax.f32 %v7738_v18, 0.0  ;;  %v7746_v14 = vadd.f32 %v7716_v63, %v7688_v48  ;;  %v7756_v16 = vmax.f32 %v7740_v7, 0.0  ;;  %v7748_v19 = vadd.f32 %v7724_v21, %v7690_v43 }
 0x4df   :  { %7769 = vst [vmem:[%s12350_s4 + $0x20] sm:$0xff] %v7753_v46  ;;  %v7761_v15 = vmax.f32 %v7745_v9, 0.0  ;;  %7771 = vst [vmem:[%s12350_s4 + $0x30] sm:$0xff] %v7755_v11  ;;  %v7763_v53 = vmax.f32 %v7747_v13, 0.0 }
 0x4e0   :  { %7770 = vst [vmem:[%s12350_s4 + $0x28] sm:$0xff] %v7754_v12  ;;  %v7762_v51 = vmax.f32 %v7746_v14, 0.0  ;;  %7772 = vst [vmem:[%s12350_s4 + $0x38] sm:$0xff] %v7756_v16  ;;  %v7764_v54 = vmax.f32 %v7748_v19, 0.0 }
 0x4e1   :  { %7777 = vst [vmem:[%s12350_s4 + $0x60] sm:$0xff] %v7761_v15  ;;  %7779 = vst [vmem:[%s12350_s4 + $0x70] sm:$0xff] %v7763_v53 }
 0x4e2   :  { %7778 = vst [vmem:[%s12350_s4 + $0x68] sm:$0xff] %v7762_v51  ;;  %7780 = vst [vmem:[%s12350_s4 + $0x78] sm:$0xff] %v7764_v54 }

</bundles_post_ra>
